<compile_context>
chip_gen: v5e
topology: v5e:2x2
jax: 0.10.0
libtpu: 0.0.40
codegen_flags: <defaults>
</compile_context>

<pallas_src>
import numpy as np
import jax
import jax.numpy as jnp
from jax import lax
from jax.experimental import pallas as pl
from jax.experimental.pallas import tpu as pltpu

NPOLE_PAD = 32      # poles 21 -> 32: sublane-aligned f32 and clean bf16 packing
P_PAD = 128         # per-sample joint*dim 50 -> 128: lane-dense slabs, free 128-aligned
                    # per-sample lane slices inside the kernel


# ---------------------------------------------------------------------------
# DYAN dictionary (numpy glue, zero-padded to NPOLE_PAD — exact)
# ---------------------------------------------------------------------------
def build_dyan_dictionary(T, n_poles_half, fista_lam):
    # TODO(synk): DyanEncoder source not provided; standard DYAN real dictionary
    # (constant column + r^t cos(t*theta) + r^t sin(t*theta)) + fixed-iteration FISTA.
    rng = np.random.RandomState(0)
    rr = rng.uniform(0.85, 1.05, n_poles_half).astype(np.float32)
    theta = rng.uniform(0.0, np.pi, n_poles_half).astype(np.float32)
    t = np.arange(T, dtype=np.float32).reshape(-1, 1)
    w1 = (rr[None, :] ** t) * np.cos(t * theta[None, :])
    w2 = (rr[None, :] ** t) * np.sin(t * theta[None, :])
    D = np.concatenate([np.ones((T, 1), np.float32), w1, w2], axis=1)   # (T, Npole)
    Npole = D.shape[1]
    DtD = D.T @ D
    L = float(np.linalg.norm(DtD, 2))                                   # FISTA 1/L step
    A = np.eye(Npole, dtype=np.float32) - DtD / L
    # Zero-pad poles 21 -> 32; padded rows/cols stay identically zero through FISTA.
    D_pad = np.zeros((T, NPOLE_PAD), np.float32); D_pad[:, :Npole] = D
    Dt_pad = np.zeros((NPOLE_PAD, T), np.float32); Dt_pad[:Npole, :] = D.T / L
    A_pad = np.zeros((NPOLE_PAD, NPOLE_PAD), np.float32); A_pad[:Npole, :Npole] = A
    thresh = fista_lam / L
    return (jnp.asarray(D), jnp.asarray(D_pad), jnp.asarray(Dt_pad),
            jnp.asarray(A_pad), float(thresh))


# ---------------------------------------------------------------------------
# Per-sample implicit-GEMM selection for conv1 (sample independent, O(N) use)
# ---------------------------------------------------------------------------
def build_head_selection(njoints, dim):
    H, W = njoints, dim
    Ho, Wo = H + 2, W + 2                     # conv 3x3 with padding=2
    S = Ho * Wo
    sel = np.zeros((9, S, P_PAD), np.float32)
    for kh in range(3):
        for kw in range(3):
            k = kh * 3 + kw
            for oh in range(Ho):
                h = oh + kh - 2
                if not (0 <= h < H):
                    continue
                for ow in range(Wo):
                    w = ow + kw - 2
                    if not (0 <= w < W):
                        continue
                    sel[k, oh * Wo + ow, h * W + w] = 1.0
    return jnp.asarray(sel, jnp.bfloat16), S   # 0/1 values -> exact in bf16


# ---------------------------------------------------------------------------
# Fused dynamics-stream kernel (FISTA + binarize + reconstruction + conv head)
# ---------------------------------------------------------------------------
def _make_fused_dynamics_kernel(thresh, max_iter, n_batch, n_spatial):
    # FISTA momentum coefficients are data independent -> bake at trace time.
    ts = [1.0]
    for _ in range(max_iter):
        ts.append((1.0 + (1.0 + 4.0 * ts[-1] * ts[-1]) ** 0.5) * 0.5)
    moms = [(ts[k] - 1.0) / ts[k + 1] for k in range(max_iter)]
    inv_s = 1.0 / float(n_spatial)

    def gn_leaky(x, eps=1e-5, slope=0.01):
        # GroupNorm(C, C) with gamma=1, beta=0: per-(sample, channel) stats over the
        # S spatial rows of this (S, C) block. Plain sublane reductions (XLU slot),
        # no MXU round trips. Followed by LeakyReLU(0.01).
        mean = jnp.sum(x, axis=0, keepdims=True) * inv_s
        d = x - mean
        var = jnp.sum(d * d, axis=0, keepdims=True) * inv_s
        xn = d * lax.rsqrt(var + eps)
        return jnp.where(xn >= 0, xn, slope * xn)

    def kernel(y_ref, dt_ref, a_ref, d_ref, sel_ref, w1_ref, w2_ref, w3_ref, w4_ref,
               sparse_ref, binary_ref, recon_ref, feat_ref):
        # ------------------ DyanEncoder: FISTA, fully unrolled (f32) ------------
        A = a_ref[...]                                                   # (32, 32)
        DtY = jnp.dot(dt_ref[...], y_ref[...],
                      preferred_element_type=jnp.float32)                # (32, N*128)
        x_old = jnp.zeros_like(DtY)
        y_cur = x_old
        for k in range(max_iter):
            Ay = jnp.dot(A, y_cur, preferred_element_type=jnp.float32) + DtY
            x_new = jnp.maximum(Ay - thresh, 0.0) - jnp.maximum(-Ay - thresh, 0.0)
            y_cur = x_new + moms[k] * (x_new - x_old)
            x_old = x_new
        c = x_old                                                        # sparseCode

        # ------------------ GumbelSigmoid (hard, inference) ---------------------
        # TODO(synk): assumes the hard eval path thresholds sigmoid(c^2/temp) > 0.5,
        # i.e. binary = (c != 0); then sparse*binary == sparse, so the product is
        # dropped from the reconstruction (exact at inference).
        binary = (c != 0.0).astype(jnp.float32)
        sparse_ref[...] = c
        binary_ref[...] = binary
        recon_ref[...] = jnp.dot(d_ref[...], c,
                                 preferred_element_type=jnp.float32)     # (T, N*128)

        # ------------------ classification head (per sample, channel-last) ------
        # Conv biases b1..b4 are mathematically inert (GroupNorm with beta=0
        # subtracts the per-channel mean), so they are not loaded or added.
        for n in range(n_batch):
            b_bf = binary[:, n * P_PAD:(n + 1) * P_PAD].astype(jnp.bfloat16)  # (32,128)
            # conv1 3x3 pad=2 as implicit GEMM over the 9 taps; accumulator is
            # initialized with the k=0 dot (no zeros + add).
            acc = None
            for k in range(9):
                xs = lax.dot_general(sel_ref[k], b_bf, (((1,), (1,)), ((), ())),
                                     preferred_element_type=jnp.float32)  # (S, 32)
                part = jnp.dot(xs.astype(jnp.bfloat16), w1_ref[k],
                               preferred_element_type=jnp.float32)        # (S, 128)
                acc = part if acc is None else acc + part
            # TODO(synk): further micro-opt — stage the 9 tap gathers into one
            # (S, 9*128) bf16 scratch and fold the 9-way sum into a single MXU K.
            x = gn_leaky(acc)
            x = gn_leaky(jnp.dot(x.astype(jnp.bfloat16), w2_ref[...],
                                 preferred_element_type=jnp.float32))     # (S, 64)
            x = gn_leaky(jnp.dot(x.astype(jnp.bfloat16), w3_ref[...],
                                 preferred_element_type=jnp.float32))     # (S, 64)
            x = gn_leaky(jnp.dot(x.astype(jnp.bfloat16), w4_ref[...],
                                 preferred_element_type=jnp.float32))     # (S, 128)
            feat_ref[n] = x                                               # lane-dense

    return kernel


def fused_dynamics(y2d, Dt_pad, A_pad, D_pad, sel, params, *, n_batch, n_spatial,
                   thresh, max_iter=30):
    T = D_pad.shape[0]
    npp = y2d.shape[1]                         # N * P_PAD, fully lane-dense

    def _full(a):
        nd = a.ndim
        return pl.BlockSpec(a.shape, lambda i, nd=nd: (0,) * nd)

    inputs = (y2d, Dt_pad, A_pad, D_pad, sel,
              params["w1s"], params["w2t"], params["w3t"], params["w4t"])
    return pl.pallas_call(
        _make_fused_dynamics_kernel(float(thresh), int(max_iter), n_batch, n_spatial),
        out_shape=(jax.ShapeDtypeStruct((NPOLE_PAD, npp), jnp.float32),   # sparse
                   jax.ShapeDtypeStruct((NPOLE_PAD, npp), jnp.float32),   # binary
                   jax.ShapeDtypeStruct((T, npp), jnp.float32),           # reconstruction
                   jax.ShapeDtypeStruct((n_batch, n_spatial, 128), jnp.float32)),
        grid=(1,),
        in_specs=[_full(a) for a in inputs],
        out_specs=(pl.BlockSpec((NPOLE_PAD, npp), lambda i: (0, 0)),
                   pl.BlockSpec((NPOLE_PAD, npp), lambda i: (0, 0)),
                   pl.BlockSpec((T, npp), lambda i: (0, 0)),
                   pl.BlockSpec((n_batch, n_spatial, 128), lambda i: (0, 0, 0))),
        # TODO(synk): for larger batches on v7x, add a leading batch-chunk grid axis
        # marked "parallel" (samples are independent) so both TensorCores are used;
        # at N=2 a single step keeps the serial FISTA latency minimal on v5e/v6e.
        compiler_params=pltpu.CompilerParams(dimension_semantics=("arbitrary",)),
    )(*inputs)


# ---------------------------------------------------------------------------
# Parameters (deterministic, synthetic) in kernel-ready layouts
# ---------------------------------------------------------------------------
def init_params(key, num_class, Npole, njoints, dim):
    S = (njoints + 2) * (dim + 2)              # conv1 output spatial (27*4 for 2D)
    keys = jax.random.split(key, 8)

    def kaiming(k, shape):                     # kaiming_normal_, mode=fan_out, relu
        fan_out = shape[0] * int(np.prod(shape[2:]))
        return jax.random.normal(k, shape, jnp.float32) * np.sqrt(2.0 / fan_out)

    def xavier(k, shape):                      # xavier_uniform_, gain=1
        bound = np.sqrt(6.0 / (shape[0] + shape[1]))
        return jax.random.uniform(k, shape, jnp.float32, -bound, bound)

    w1 = kaiming(keys[0], (128, Npole, 3, 3))
    w2 = kaiming(keys[1], (64, 128, 1, 1))
    w3 = kaiming(keys[2], (64, 64, 1, 1))
    w4 = kaiming(keys[3], (128, 64, 1, 1))
    wfc = xavier(keys[4], (num_class, 128 * S))            # PyTorch Linear layout
    bfc = jax.random.normal(keys[5], (1, num_class), jnp.float32) * 0.01
    wrgb = jax.random.normal(keys[6], (3, num_class), jnp.float32) * 0.1
    brgb = jax.random.normal(keys[7], (1, num_class), jnp.float32) * 0.01
    # Conv biases b1..b4 intentionally omitted: GroupNorm(C, C) with beta=0 subtracts
    # the per-channel mean, so a per-channel constant bias is a no-op on the output.

    # conv1 weight per 3x3 tap, channel-last, poles zero-padded 21 -> NPOLE_PAD:
    #   w1s[k, ci, co] = w1[co, ci, kh, kw]
    w1s = jnp.transpose(w1, (2, 3, 1, 0)).reshape(9, Npole, 128)
    w1s = jnp.pad(w1s, ((0, 0), (0, NPOLE_PAD - Npole), (0, 0)))
    # FC weight permuted so the row-major flatten of the (S, 128) feature slab equals
    # PyTorch's x.view(N, -1) (channel-major) flatten:
    #   wfc_perm[s*128 + co, cls] = wfc[cls, co*S + s]
    wfc_perm = jnp.transpose(wfc.reshape(num_class, 128, S),
                             (2, 1, 0)).reshape(S * 128, num_class)

    return {
        "w1s": w1s.astype(jnp.bfloat16),
        "w2t": w2.reshape(64, 128).T.astype(jnp.bfloat16),
        "w3t": w3.reshape(64, 64).T.astype(jnp.bfloat16),
        "w4t": w4.reshape(128, 64).T.astype(jnp.bfloat16),
        "wfc_perm": wfc_perm.astype(jnp.bfloat16), "bfc": bfc,
        "wrgb": wrgb, "brgb": brgb,
    }


# ---------------------------------------------------------------------------
# twoStreamClassification.forward
# ---------------------------------------------------------------------------
def two_stream_forward(params, dyan, sel, n_spatial, skeleton, image, dim, fusion=False):
    D, D_pad, Dt_pad, A_pad, thresh = dyan
    N, T, P = skeleton.shape
    Npole = D.shape[1]

    # Fold batch into the lane dim with per-sample zero padding to 128 lanes
    # (col = n*128 + p): every FISTA slab and output store is (8,128)-tile dense,
    # and per-sample head slices inside the kernel are 128-aligned (free).
    y = jnp.pad(jnp.transpose(skeleton, (1, 0, 2)), ((0, 0), (0, 0), (0, P_PAD - P)))
    y2d = y.reshape(T, N * P_PAD)

    sparse2d, binary2d, recon2d, feat = fused_dynamics(
        y2d, Dt_pad, A_pad, D_pad, sel, params,
        n_batch=N, n_spatial=n_spatial, thresh=thresh, max_iter=30)

    # Restore the module's (N, ...) layouts and strip zero padding (tiny XLA ops).
    sparse = jnp.transpose(sparse2d.reshape(NPOLE_PAD, N, P_PAD), (1, 0, 2))[:, :Npole, :P]
    binary = jnp.transpose(binary2d.reshape(NPOLE_PAD, N, P_PAD), (1, 0, 2))[:, :Npole, :P]
    recon = jnp.transpose(recon2d.reshape(T, N, P_PAD), (1, 0, 2))[:, :, :P]

    # FC (dynamics logits) + RGB placeholder left to XLA: ~0.3 MFLOP into 2x10 outputs
    # is cheaper as one fused XLA op than a second pallas_call + HBM bounce of `feat`.
    flat = feat.reshape(N, n_spatial * 128).astype(jnp.bfloat16)
    label1 = jnp.dot(flat, params["wfc_perm"],
                     preferred_element_type=jnp.float32) + params["bfc"]
    # TODO(synk): RGBAction kinetics-pretrained backbone not provided; placeholder is
    # global-average-pool + linear.
    pooled = jnp.mean(image, axis=(2, 3))
    label2 = jnp.dot(pooled, params["wrgb"]) + params["brgb"]

    if fusion:
        label = {"RGB": label1, "Dynamcis": label2}   # preserves original (swapped) pairing
    else:
        label = 0.5 * label1 + 0.5 * label2
    return label, binary, recon, sparse, D


if __name__ == "__main__":
    num_class = 10
    dim = 2                 # dataType == '2D'
    njoints = 25            # FC expects 128*27*4 features (25+2pad -> 27, 2+2pad -> 4)
    T = 8
    N = 2
    n_poles_half = 10
    Npole = 2 * n_poles_half + 1

    key = jax.random.PRNGKey(0)
    k_skel, k_img = jax.random.split(key)
    skeleton = jax.random.normal(k_skel, (N, T, njoints * dim), jnp.float32)
    image = jax.random.normal(k_img, (N, 3, 16, 16), jnp.float32)

    params = init_params(jax.random.PRNGKey(42), num_class, Npole, njoints, dim)
    dyan = build_dyan_dictionary(T, n_poles_half, fista_lam=0.1)
    sel, S = build_head_selection(njoints, dim)

    fwd = jax.jit(lambda sk, img: two_stream_forward(
        params, dyan, sel, S, sk, img, dim, fusion=False))

    label, binaryCode, Reconstruction, coeff, dictionary = fwd(skeleton, image)
    jax.block_until_ready((label, binaryCode, Reconstruction, coeff, dictionary))

    assert label.shape == (N, num_class)
    assert binaryCode.shape == (N, Npole, njoints * dim)
    assert Reconstruction.shape == (N, T, njoints * dim)
    assert coeff.shape == (N, Npole, njoints * dim)
    print("KERNEL_OK")
</pallas_src>

<mosaic_0001>
module attributes {stable_mosaic.version = 11 : i64} {
  func.func @kernel(%arg0: i32, %arg1: memref<8x256xf32, #tpu.memory_space<vmem>>, %arg2: memref<32x8xf32, #tpu.memory_space<vmem>>, %arg3: memref<32x32xf32, #tpu.memory_space<vmem>>, %arg4: memref<8x32xf32, #tpu.memory_space<vmem>>, %arg5: memref<9x108x128xbf16, #tpu.memory_space<vmem>>, %arg6: memref<9x32x128xbf16, #tpu.memory_space<vmem>>, %arg7: memref<128x64xbf16, #tpu.memory_space<vmem>>, %arg8: memref<64x64xbf16, #tpu.memory_space<vmem>>, %arg9: memref<64x128xbf16, #tpu.memory_space<vmem>>, %arg10: memref<32x256xf32, #tpu.memory_space<vmem>>, %arg11: memref<32x256xf32, #tpu.memory_space<vmem>>, %arg12: memref<8x256xf32, #tpu.memory_space<vmem>>, %arg13: memref<2x108x128xf32, #tpu.memory_space<vmem>>) attributes {dimension_semantics = [#tpu.dimension_semantics<arbitrary>], iteration_bounds = array<i64: 1>, scalar_prefetch = 0 : i64, scratch_operands = 0 : i64, tpu.core_type = #tpu.core_type<tc>, window_params = [{pipeline_mode = #tpu.pipeline_mode<synchronous>, transform_indices = @transform_0, window_bounds = array<i64: 8, 256>}, {pipeline_mode = #tpu.pipeline_mode<synchronous>, transform_indices = @transform_1, window_bounds = array<i64: 32, 8>}, {pipeline_mode = #tpu.pipeline_mode<synchronous>, transform_indices = @transform_2, window_bounds = array<i64: 32, 32>}, {pipeline_mode = #tpu.pipeline_mode<synchronous>, transform_indices = @transform_3, window_bounds = array<i64: 8, 32>}, {pipeline_mode = #tpu.pipeline_mode<synchronous>, transform_indices = @transform_4, window_bounds = array<i64: 9, 108, 128>}, {pipeline_mode = #tpu.pipeline_mode<synchronous>, transform_indices = @transform_5, window_bounds = array<i64: 9, 32, 128>}, {pipeline_mode = #tpu.pipeline_mode<synchronous>, transform_indices = @transform_6, window_bounds = array<i64: 128, 64>}, {pipeline_mode = #tpu.pipeline_mode<synchronous>, transform_indices = @transform_7, window_bounds = array<i64: 64, 64>}, {pipeline_mode = #tpu.pipeline_mode<synchronous>, transform_indices = @transform_8, window_bounds = array<i64: 64, 128>}, {pipeline_mode = #tpu.pipeline_mode<synchronous>, transform_indices = @transform_9, window_bounds = array<i64: 32, 256>}, {pipeline_mode = #tpu.pipeline_mode<synchronous>, transform_indices = @transform_10, window_bounds = array<i64: 32, 256>}, {pipeline_mode = #tpu.pipeline_mode<synchronous>, transform_indices = @transform_11, window_bounds = array<i64: 8, 256>}, {pipeline_mode = #tpu.pipeline_mode<synchronous>, transform_indices = @transform_12, window_bounds = array<i64: 2, 108, 128>}]} {
    %c0 = arith.constant 0 : index
    %c0_0 = arith.constant 0 : index
    %0 = vector.load %arg3[%c0, %c0_0] : memref<32x32xf32, #tpu.memory_space<vmem>>, vector<32x32xf32>
    %c0_1 = arith.constant 0 : index
    %c0_2 = arith.constant 0 : index
    %1 = vector.load %arg2[%c0_1, %c0_2] : memref<32x8xf32, #tpu.memory_space<vmem>>, vector<32x8xf32>
    %c0_3 = arith.constant 0 : index
    %c0_4 = arith.constant 0 : index
    %2 = vector.load %arg1[%c0_3, %c0_4] : memref<8x256xf32, #tpu.memory_space<vmem>>, vector<8x256xf32>
    %cst = arith.constant dense<0.000000e+00> : vector<32x256xf32>
    %3 = tpu.matmul %1, %2, %cst {dimension_numbers = #tpu.dot_dimension_numbers<[1], [0], [0], [1], [0, 0, 1, 1], [], []>} : vector<32x8xf32>, vector<8x256xf32>, vector<32x256xf32> -> vector<32x256xf32>
    %cst_5 = arith.constant 0.000000e+00 : f32
    %4 = vector.broadcast %cst_5 : f32 to vector<32x256xf32>
    %cst_6 = arith.constant dense<0.000000e+00> : vector<32x256xf32>
    %5 = tpu.matmul %0, %4, %cst_6 {dimension_numbers = #tpu.dot_dimension_numbers<[1], [0], [0], [1], [0, 0, 1, 1], [], []>} : vector<32x32xf32>, vector<32x256xf32>, vector<32x256xf32> -> vector<32x256xf32>
    %6 = arith.addf %5, %3 : vector<32x256xf32>
    %cst_7 = arith.constant 0.00427429564 : f32
    %7 = vector.broadcast %cst_7 : f32 to vector<32x256xf32>
    %8 = arith.subf %6, %7 : vector<32x256xf32>
    %cst_8 = arith.constant 0.000000e+00 : f32
    %9 = vector.broadcast %cst_8 : f32 to vector<32x256xf32>
    %10 = arith.maximumf %8, %9 : vector<32x256xf32>
    %cst_9 = arith.constant 0.000000e+00 : f32
    %11 = vector.broadcast %cst_9 : f32 to vector<32x256xf32>
    %12 = arith.subf %11, %6 : vector<32x256xf32>
    %cst_10 = arith.constant 0.00427429564 : f32
    %13 = vector.broadcast %cst_10 : f32 to vector<32x256xf32>
    %14 = arith.subf %12, %13 : vector<32x256xf32>
    %cst_11 = arith.constant 0.000000e+00 : f32
    %15 = vector.broadcast %cst_11 : f32 to vector<32x256xf32>
    %16 = arith.maximumf %14, %15 : vector<32x256xf32>
    %17 = arith.subf %10, %16 : vector<32x256xf32>
    %18 = arith.subf %17, %4 : vector<32x256xf32>
    %cst_12 = arith.constant 0.000000e+00 : f32
    %19 = vector.broadcast %cst_12 : f32 to vector<32x256xf32>
    %20 = arith.mulf %19, %18 : vector<32x256xf32>
    %21 = arith.addf %17, %20 : vector<32x256xf32>
    %cst_13 = arith.constant dense<0.000000e+00> : vector<32x256xf32>
    %22 = tpu.matmul %0, %21, %cst_13 {dimension_numbers = #tpu.dot_dimension_numbers<[1], [0], [0], [1], [0, 0, 1, 1], [], []>} : vector<32x32xf32>, vector<32x256xf32>, vector<32x256xf32> -> vector<32x256xf32>
    %23 = arith.addf %22, %3 : vector<32x256xf32>
    %cst_14 = arith.constant 0.00427429564 : f32
    %24 = vector.broadcast %cst_14 : f32 to vector<32x256xf32>
    %25 = arith.subf %23, %24 : vector<32x256xf32>
    %cst_15 = arith.constant 0.000000e+00 : f32
    %26 = vector.broadcast %cst_15 : f32 to vector<32x256xf32>
    %27 = arith.maximumf %25, %26 : vector<32x256xf32>
    %cst_16 = arith.constant 0.000000e+00 : f32
    %28 = vector.broadcast %cst_16 : f32 to vector<32x256xf32>
    %29 = arith.subf %28, %23 : vector<32x256xf32>
    %cst_17 = arith.constant 0.00427429564 : f32
    %30 = vector.broadcast %cst_17 : f32 to vector<32x256xf32>
    %31 = arith.subf %29, %30 : vector<32x256xf32>
    %cst_18 = arith.constant 0.000000e+00 : f32
    %32 = vector.broadcast %cst_18 : f32 to vector<32x256xf32>
    %33 = arith.maximumf %31, %32 : vector<32x256xf32>
    %34 = arith.subf %27, %33 : vector<32x256xf32>
    %35 = arith.subf %34, %17 : vector<32x256xf32>
    %cst_19 = arith.constant 0.28175351 : f32
    %36 = vector.broadcast %cst_19 : f32 to vector<32x256xf32>
    %37 = arith.mulf %36, %35 : vector<32x256xf32>
    %38 = arith.addf %34, %37 : vector<32x256xf32>
    %cst_20 = arith.constant dense<0.000000e+00> : vector<32x256xf32>
    %39 = tpu.matmul %0, %38, %cst_20 {dimension_numbers = #tpu.dot_dimension_numbers<[1], [0], [0], [1], [0, 0, 1, 1], [], []>} : vector<32x32xf32>, vector<32x256xf32>, vector<32x256xf32> -> vector<32x256xf32>
    %40 = arith.addf %39, %3 : vector<32x256xf32>
    %cst_21 = arith.constant 0.00427429564 : f32
    %41 = vector.broadcast %cst_21 : f32 to vector<32x256xf32>
    %42 = arith.subf %40, %41 : vector<32x256xf32>
    %cst_22 = arith.constant 0.000000e+00 : f32
    %43 = vector.broadcast %cst_22 : f32 to vector<32x256xf32>
    %44 = arith.maximumf %42, %43 : vector<32x256xf32>
    %cst_23 = arith.constant 0.000000e+00 : f32
    %45 = vector.broadcast %cst_23 : f32 to vector<32x256xf32>
    %46 = arith.subf %45, %40 : vector<32x256xf32>
    %cst_24 = arith.constant 0.00427429564 : f32
    %47 = vector.broadcast %cst_24 : f32 to vector<32x256xf32>
    %48 = arith.subf %46, %47 : vector<32x256xf32>
    %cst_25 = arith.constant 0.000000e+00 : f32
    %49 = vector.broadcast %cst_25 : f32 to vector<32x256xf32>
    %50 = arith.maximumf %48, %49 : vector<32x256xf32>
    %51 = arith.subf %44, %50 : vector<32x256xf32>
    %52 = arith.subf %51, %34 : vector<32x256xf32>
    %cst_26 = arith.constant 0.434042782 : f32
    %53 = vector.broadcast %cst_26 : f32 to vector<32x256xf32>
    %54 = arith.mulf %53, %52 : vector<32x256xf32>
    %55 = arith.addf %51, %54 : vector<32x256xf32>
    %cst_27 = arith.constant dense<0.000000e+00> : vector<32x256xf32>
    %56 = tpu.matmul %0, %55, %cst_27 {dimension_numbers = #tpu.dot_dimension_numbers<[1], [0], [0], [1], [0, 0, 1, 1], [], []>} : vector<32x32xf32>, vector<32x256xf32>, vector<32x256xf32> -> vector<32x256xf32>
    %57 = arith.addf %56, %3 : vector<32x256xf32>
    %cst_28 = arith.constant 0.00427429564 : f32
    %58 = vector.broadcast %cst_28 : f32 to vector<32x256xf32>
    %59 = arith.subf %57, %58 : vector<32x256xf32>
    %cst_29 = arith.constant 0.000000e+00 : f32
    %60 = vector.broadcast %cst_29 : f32 to vector<32x256xf32>
    %61 = arith.maximumf %59, %60 : vector<32x256xf32>
    %cst_30 = arith.constant 0.000000e+00 : f32
    %62 = vector.broadcast %cst_30 : f32 to vector<32x256xf32>
    %63 = arith.subf %62, %57 : vector<32x256xf32>
    %cst_31 = arith.constant 0.00427429564 : f32
    %64 = vector.broadcast %cst_31 : f32 to vector<32x256xf32>
    %65 = arith.subf %63, %64 : vector<32x256xf32>
    %cst_32 = arith.constant 0.000000e+00 : f32
    %66 = vector.broadcast %cst_32 : f32 to vector<32x256xf32>
    %67 = arith.maximumf %65, %66 : vector<32x256xf32>
    %68 = arith.subf %61, %67 : vector<32x256xf32>
    %69 = arith.subf %68, %51 : vector<32x256xf32>
    %cst_33 = arith.constant 0.531063795 : f32
    %70 = vector.broadcast %cst_33 : f32 to vector<32x256xf32>
    %71 = arith.mulf %70, %69 : vector<32x256xf32>
    %72 = arith.addf %68, %71 : vector<32x256xf32>
    %cst_34 = arith.constant dense<0.000000e+00> : vector<32x256xf32>
    %73 = tpu.matmul %0, %72, %cst_34 {dimension_numbers = #tpu.dot_dimension_numbers<[1], [0], [0], [1], [0, 0, 1, 1], [], []>} : vector<32x32xf32>, vector<32x256xf32>, vector<32x256xf32> -> vector<32x256xf32>
    %74 = arith.addf %73, %3 : vector<32x256xf32>
    %cst_35 = arith.constant 0.00427429564 : f32
    %75 = vector.broadcast %cst_35 : f32 to vector<32x256xf32>
    %76 = arith.subf %74, %75 : vector<32x256xf32>
    %cst_36 = arith.constant 0.000000e+00 : f32
    %77 = vector.broadcast %cst_36 : f32 to vector<32x256xf32>
    %78 = arith.maximumf %76, %77 : vector<32x256xf32>
    %cst_37 = arith.constant 0.000000e+00 : f32
    %79 = vector.broadcast %cst_37 : f32 to vector<32x256xf32>
    %80 = arith.subf %79, %74 : vector<32x256xf32>
    %cst_38 = arith.constant 0.00427429564 : f32
    %81 = vector.broadcast %cst_38 : f32 to vector<32x256xf32>
    %82 = arith.subf %80, %81 : vector<32x256xf32>
    %cst_39 = arith.constant 0.000000e+00 : f32
    %83 = vector.broadcast %cst_39 : f32 to vector<32x256xf32>
    %84 = arith.maximumf %82, %83 : vector<32x256xf32>
    %85 = arith.subf %78, %84 : vector<32x256xf32>
    %86 = arith.subf %85, %68 : vector<32x256xf32>
    %cst_40 = arith.constant 0.598778605 : f32
    %87 = vector.broadcast %cst_40 : f32 to vector<32x256xf32>
    %88 = arith.mulf %87, %86 : vector<32x256xf32>
    %89 = arith.addf %85, %88 : vector<32x256xf32>
    %cst_41 = arith.constant dense<0.000000e+00> : vector<32x256xf32>
    %90 = tpu.matmul %0, %89, %cst_41 {dimension_numbers = #tpu.dot_dimension_numbers<[1], [0], [0], [1], [0, 0, 1, 1], [], []>} : vector<32x32xf32>, vector<32x256xf32>, vector<32x256xf32> -> vector<32x256xf32>
    %91 = arith.addf %90, %3 : vector<32x256xf32>
    %cst_42 = arith.constant 0.00427429564 : f32
    %92 = vector.broadcast %cst_42 : f32 to vector<32x256xf32>
    %93 = arith.subf %91, %92 : vector<32x256xf32>
    %cst_43 = arith.constant 0.000000e+00 : f32
    %94 = vector.broadcast %cst_43 : f32 to vector<32x256xf32>
    %95 = arith.maximumf %93, %94 : vector<32x256xf32>
    %cst_44 = arith.constant 0.000000e+00 : f32
    %96 = vector.broadcast %cst_44 : f32 to vector<32x256xf32>
    %97 = arith.subf %96, %91 : vector<32x256xf32>
    %cst_45 = arith.constant 0.00427429564 : f32
    %98 = vector.broadcast %cst_45 : f32 to vector<32x256xf32>
    %99 = arith.subf %97, %98 : vector<32x256xf32>
    %cst_46 = arith.constant 0.000000e+00 : f32
    %100 = vector.broadcast %cst_46 : f32 to vector<32x256xf32>
    %101 = arith.maximumf %99, %100 : vector<32x256xf32>
    %102 = arith.subf %95, %101 : vector<32x256xf32>
    %103 = arith.subf %102, %85 : vector<32x256xf32>
    %cst_47 = arith.constant 0.648923337 : f32
    %104 = vector.broadcast %cst_47 : f32 to vector<32x256xf32>
    %105 = arith.mulf %104, %103 : vector<32x256xf32>
    %106 = arith.addf %102, %105 : vector<32x256xf32>
    %cst_48 = arith.constant dense<0.000000e+00> : vector<32x256xf32>
    %107 = tpu.matmul %0, %106, %cst_48 {dimension_numbers = #tpu.dot_dimension_numbers<[1], [0], [0], [1], [0, 0, 1, 1], [], []>} : vector<32x32xf32>, vector<32x256xf32>, vector<32x256xf32> -> vector<32x256xf32>
    %108 = arith.addf %107, %3 : vector<32x256xf32>
    %cst_49 = arith.constant 0.00427429564 : f32
    %109 = vector.broadcast %cst_49 : f32 to vector<32x256xf32>
    %110 = arith.subf %108, %109 : vector<32x256xf32>
    %cst_50 = arith.constant 0.000000e+00 : f32
    %111 = vector.broadcast %cst_50 : f32 to vector<32x256xf32>
    %112 = arith.maximumf %110, %111 : vector<32x256xf32>
    %cst_51 = arith.constant 0.000000e+00 : f32
    %113 = vector.broadcast %cst_51 : f32 to vector<32x256xf32>
    %114 = arith.subf %113, %108 : vector<32x256xf32>
    %cst_52 = arith.constant 0.00427429564 : f32
    %115 = vector.broadcast %cst_52 : f32 to vector<32x256xf32>
    %116 = arith.subf %114, %115 : vector<32x256xf32>
    %cst_53 = arith.constant 0.000000e+00 : f32
    %117 = vector.broadcast %cst_53 : f32 to vector<32x256xf32>
    %118 = arith.maximumf %116, %117 : vector<32x256xf32>
    %119 = arith.subf %112, %118 : vector<32x256xf32>
    %120 = arith.subf %119, %102 : vector<32x256xf32>
    %cst_54 = arith.constant 0.687645852 : f32
    %121 = vector.broadcast %cst_54 : f32 to vector<32x256xf32>
    %122 = arith.mulf %121, %120 : vector<32x256xf32>
    %123 = arith.addf %119, %122 : vector<32x256xf32>
    %cst_55 = arith.constant dense<0.000000e+00> : vector<32x256xf32>
    %124 = tpu.matmul %0, %123, %cst_55 {dimension_numbers = #tpu.dot_dimension_numbers<[1], [0], [0], [1], [0, 0, 1, 1], [], []>} : vector<32x32xf32>, vector<32x256xf32>, vector<32x256xf32> -> vector<32x256xf32>
    %125 = arith.addf %124, %3 : vector<32x256xf32>
    %cst_56 = arith.constant 0.00427429564 : f32
    %126 = vector.broadcast %cst_56 : f32 to vector<32x256xf32>
    %127 = arith.subf %125, %126 : vector<32x256xf32>
    %cst_57 = arith.constant 0.000000e+00 : f32
    %128 = vector.broadcast %cst_57 : f32 to vector<32x256xf32>
    %129 = arith.maximumf %127, %128 : vector<32x256xf32>
    %cst_58 = arith.constant 0.000000e+00 : f32
    %130 = vector.broadcast %cst_58 : f32 to vector<32x256xf32>
    %131 = arith.subf %130, %125 : vector<32x256xf32>
    %cst_59 = arith.constant 0.00427429564 : f32
    %132 = vector.broadcast %cst_59 : f32 to vector<32x256xf32>
    %133 = arith.subf %131, %132 : vector<32x256xf32>
    %cst_60 = arith.constant 0.000000e+00 : f32
    %134 = vector.broadcast %cst_60 : f32 to vector<32x256xf32>
    %135 = arith.maximumf %133, %134 : vector<32x256xf32>
    %136 = arith.subf %129, %135 : vector<32x256xf32>
    %137 = arith.subf %136, %119 : vector<32x256xf32>
    %cst_61 = arith.constant 0.718499839 : f32
    %138 = vector.broadcast %cst_61 : f32 to vector<32x256xf32>
    %139 = arith.mulf %138, %137 : vector<32x256xf32>
    %140 = arith.addf %136, %139 : vector<32x256xf32>
    %cst_62 = arith.constant dense<0.000000e+00> : vector<32x256xf32>
    %141 = tpu.matmul %0, %140, %cst_62 {dimension_numbers = #tpu.dot_dimension_numbers<[1], [0], [0], [1], [0, 0, 1, 1], [], []>} : vector<32x32xf32>, vector<32x256xf32>, vector<32x256xf32> -> vector<32x256xf32>
    %142 = arith.addf %141, %3 : vector<32x256xf32>
    %cst_63 = arith.constant 0.00427429564 : f32
    %143 = vector.broadcast %cst_63 : f32 to vector<32x256xf32>
    %144 = arith.subf %142, %143 : vector<32x256xf32>
    %cst_64 = arith.constant 0.000000e+00 : f32
    %145 = vector.broadcast %cst_64 : f32 to vector<32x256xf32>
    %146 = arith.maximumf %144, %145 : vector<32x256xf32>
    %cst_65 = arith.constant 0.000000e+00 : f32
    %147 = vector.broadcast %cst_65 : f32 to vector<32x256xf32>
    %148 = arith.subf %147, %142 : vector<32x256xf32>
    %cst_66 = arith.constant 0.00427429564 : f32
    %149 = vector.broadcast %cst_66 : f32 to vector<32x256xf32>
    %150 = arith.subf %148, %149 : vector<32x256xf32>
    %cst_67 = arith.constant 0.000000e+00 : f32
    %151 = vector.broadcast %cst_67 : f32 to vector<32x256xf32>
    %152 = arith.maximumf %150, %151 : vector<32x256xf32>
    %153 = arith.subf %146, %152 : vector<32x256xf32>
    %154 = arith.subf %153, %136 : vector<32x256xf32>
    %cst_68 = arith.constant 7.436910e-01 : f32
    %155 = vector.broadcast %cst_68 : f32 to vector<32x256xf32>
    %156 = arith.mulf %155, %154 : vector<32x256xf32>
    %157 = arith.addf %153, %156 : vector<32x256xf32>
    %cst_69 = arith.constant dense<0.000000e+00> : vector<32x256xf32>
    %158 = tpu.matmul %0, %157, %cst_69 {dimension_numbers = #tpu.dot_dimension_numbers<[1], [0], [0], [1], [0, 0, 1, 1], [], []>} : vector<32x32xf32>, vector<32x256xf32>, vector<32x256xf32> -> vector<32x256xf32>
    %159 = arith.addf %158, %3 : vector<32x256xf32>
    %cst_70 = arith.constant 0.00427429564 : f32
    %160 = vector.broadcast %cst_70 : f32 to vector<32x256xf32>
    %161 = arith.subf %159, %160 : vector<32x256xf32>
    %cst_71 = arith.constant 0.000000e+00 : f32
    %162 = vector.broadcast %cst_71 : f32 to vector<32x256xf32>
    %163 = arith.maximumf %161, %162 : vector<32x256xf32>
    %cst_72 = arith.constant 0.000000e+00 : f32
    %164 = vector.broadcast %cst_72 : f32 to vector<32x256xf32>
    %165 = arith.subf %164, %159 : vector<32x256xf32>
    %cst_73 = arith.constant 0.00427429564 : f32
    %166 = vector.broadcast %cst_73 : f32 to vector<32x256xf32>
    %167 = arith.subf %165, %166 : vector<32x256xf32>
    %cst_74 = arith.constant 0.000000e+00 : f32
    %168 = vector.broadcast %cst_74 : f32 to vector<32x256xf32>
    %169 = arith.maximumf %167, %168 : vector<32x256xf32>
    %170 = arith.subf %163, %169 : vector<32x256xf32>
    %171 = arith.subf %170, %153 : vector<32x256xf32>
    %cst_75 = arith.constant 0.764664709 : f32
    %172 = vector.broadcast %cst_75 : f32 to vector<32x256xf32>
    %173 = arith.mulf %172, %171 : vector<32x256xf32>
    %174 = arith.addf %170, %173 : vector<32x256xf32>
    %cst_76 = arith.constant dense<0.000000e+00> : vector<32x256xf32>
    %175 = tpu.matmul %0, %174, %cst_76 {dimension_numbers = #tpu.dot_dimension_numbers<[1], [0], [0], [1], [0, 0, 1, 1], [], []>} : vector<32x32xf32>, vector<32x256xf32>, vector<32x256xf32> -> vector<32x256xf32>
    %176 = arith.addf %175, %3 : vector<32x256xf32>
    %cst_77 = arith.constant 0.00427429564 : f32
    %177 = vector.broadcast %cst_77 : f32 to vector<32x256xf32>
    %178 = arith.subf %176, %177 : vector<32x256xf32>
    %cst_78 = arith.constant 0.000000e+00 : f32
    %179 = vector.broadcast %cst_78 : f32 to vector<32x256xf32>
    %180 = arith.maximumf %178, %179 : vector<32x256xf32>
    %cst_79 = arith.constant 0.000000e+00 : f32
    %181 = vector.broadcast %cst_79 : f32 to vector<32x256xf32>
    %182 = arith.subf %181, %176 : vector<32x256xf32>
    %cst_80 = arith.constant 0.00427429564 : f32
    %183 = vector.broadcast %cst_80 : f32 to vector<32x256xf32>
    %184 = arith.subf %182, %183 : vector<32x256xf32>
    %cst_81 = arith.constant 0.000000e+00 : f32
    %185 = vector.broadcast %cst_81 : f32 to vector<32x256xf32>
    %186 = arith.maximumf %184, %185 : vector<32x256xf32>
    %187 = arith.subf %180, %186 : vector<32x256xf32>
    %188 = arith.subf %187, %170 : vector<32x256xf32>
    %cst_82 = arith.constant 0.78240925 : f32
    %189 = vector.broadcast %cst_82 : f32 to vector<32x256xf32>
    %190 = arith.mulf %189, %188 : vector<32x256xf32>
    %191 = arith.addf %187, %190 : vector<32x256xf32>
    %cst_83 = arith.constant dense<0.000000e+00> : vector<32x256xf32>
    %192 = tpu.matmul %0, %191, %cst_83 {dimension_numbers = #tpu.dot_dimension_numbers<[1], [0], [0], [1], [0, 0, 1, 1], [], []>} : vector<32x32xf32>, vector<32x256xf32>, vector<32x256xf32> -> vector<32x256xf32>
    %193 = arith.addf %192, %3 : vector<32x256xf32>
    %cst_84 = arith.constant 0.00427429564 : f32
    %194 = vector.broadcast %cst_84 : f32 to vector<32x256xf32>
    %195 = arith.subf %193, %194 : vector<32x256xf32>
    %cst_85 = arith.constant 0.000000e+00 : f32
    %196 = vector.broadcast %cst_85 : f32 to vector<32x256xf32>
    %197 = arith.maximumf %195, %196 : vector<32x256xf32>
    %cst_86 = arith.constant 0.000000e+00 : f32
    %198 = vector.broadcast %cst_86 : f32 to vector<32x256xf32>
    %199 = arith.subf %198, %193 : vector<32x256xf32>
    %cst_87 = arith.constant 0.00427429564 : f32
    %200 = vector.broadcast %cst_87 : f32 to vector<32x256xf32>
    %201 = arith.subf %199, %200 : vector<32x256xf32>
    %cst_88 = arith.constant 0.000000e+00 : f32
    %202 = vector.broadcast %cst_88 : f32 to vector<32x256xf32>
    %203 = arith.maximumf %201, %202 : vector<32x256xf32>
    %204 = arith.subf %197, %203 : vector<32x256xf32>
    %205 = arith.subf %204, %187 : vector<32x256xf32>
    %cst_89 = arith.constant 0.797624409 : f32
    %206 = vector.broadcast %cst_89 : f32 to vector<32x256xf32>
    %207 = arith.mulf %206, %205 : vector<32x256xf32>
    %208 = arith.addf %204, %207 : vector<32x256xf32>
    %cst_90 = arith.constant dense<0.000000e+00> : vector<32x256xf32>
    %209 = tpu.matmul %0, %208, %cst_90 {dimension_numbers = #tpu.dot_dimension_numbers<[1], [0], [0], [1], [0, 0, 1, 1], [], []>} : vector<32x32xf32>, vector<32x256xf32>, vector<32x256xf32> -> vector<32x256xf32>
    %210 = arith.addf %209, %3 : vector<32x256xf32>
    %cst_91 = arith.constant 0.00427429564 : f32
    %211 = vector.broadcast %cst_91 : f32 to vector<32x256xf32>
    %212 = arith.subf %210, %211 : vector<32x256xf32>
    %cst_92 = arith.constant 0.000000e+00 : f32
    %213 = vector.broadcast %cst_92 : f32 to vector<32x256xf32>
    %214 = arith.maximumf %212, %213 : vector<32x256xf32>
    %cst_93 = arith.constant 0.000000e+00 : f32
    %215 = vector.broadcast %cst_93 : f32 to vector<32x256xf32>
    %216 = arith.subf %215, %210 : vector<32x256xf32>
    %cst_94 = arith.constant 0.00427429564 : f32
    %217 = vector.broadcast %cst_94 : f32 to vector<32x256xf32>
    %218 = arith.subf %216, %217 : vector<32x256xf32>
    %cst_95 = arith.constant 0.000000e+00 : f32
    %219 = vector.broadcast %cst_95 : f32 to vector<32x256xf32>
    %220 = arith.maximumf %218, %219 : vector<32x256xf32>
    %221 = arith.subf %214, %220 : vector<32x256xf32>
    %222 = arith.subf %221, %204 : vector<32x256xf32>
    %cst_96 = arith.constant 0.810819983 : f32
    %223 = vector.broadcast %cst_96 : f32 to vector<32x256xf32>
    %224 = arith.mulf %223, %222 : vector<32x256xf32>
    %225 = arith.addf %221, %224 : vector<32x256xf32>
    %cst_97 = arith.constant dense<0.000000e+00> : vector<32x256xf32>
    %226 = tpu.matmul %0, %225, %cst_97 {dimension_numbers = #tpu.dot_dimension_numbers<[1], [0], [0], [1], [0, 0, 1, 1], [], []>} : vector<32x32xf32>, vector<32x256xf32>, vector<32x256xf32> -> vector<32x256xf32>
    %227 = arith.addf %226, %3 : vector<32x256xf32>
    %cst_98 = arith.constant 0.00427429564 : f32
    %228 = vector.broadcast %cst_98 : f32 to vector<32x256xf32>
    %229 = arith.subf %227, %228 : vector<32x256xf32>
    %cst_99 = arith.constant 0.000000e+00 : f32
    %230 = vector.broadcast %cst_99 : f32 to vector<32x256xf32>
    %231 = arith.maximumf %229, %230 : vector<32x256xf32>
    %cst_100 = arith.constant 0.000000e+00 : f32
    %232 = vector.broadcast %cst_100 : f32 to vector<32x256xf32>
    %233 = arith.subf %232, %227 : vector<32x256xf32>
    %cst_101 = arith.constant 0.00427429564 : f32
    %234 = vector.broadcast %cst_101 : f32 to vector<32x256xf32>
    %235 = arith.subf %233, %234 : vector<32x256xf32>
    %cst_102 = arith.constant 0.000000e+00 : f32
    %236 = vector.broadcast %cst_102 : f32 to vector<32x256xf32>
    %237 = arith.maximumf %235, %236 : vector<32x256xf32>
    %238 = arith.subf %231, %237 : vector<32x256xf32>
    %239 = arith.subf %238, %221 : vector<32x256xf32>
    %cst_103 = arith.constant 0.822376668 : f32
    %240 = vector.broadcast %cst_103 : f32 to vector<32x256xf32>
    %241 = arith.mulf %240, %239 : vector<32x256xf32>
    %242 = arith.addf %238, %241 : vector<32x256xf32>
    %cst_104 = arith.constant dense<0.000000e+00> : vector<32x256xf32>
    %243 = tpu.matmul %0, %242, %cst_104 {dimension_numbers = #tpu.dot_dimension_numbers<[1], [0], [0], [1], [0, 0, 1, 1], [], []>} : vector<32x32xf32>, vector<32x256xf32>, vector<32x256xf32> -> vector<32x256xf32>
    %244 = arith.addf %243, %3 : vector<32x256xf32>
    %cst_105 = arith.constant 0.00427429564 : f32
    %245 = vector.broadcast %cst_105 : f32 to vector<32x256xf32>
    %246 = arith.subf %244, %245 : vector<32x256xf32>
    %cst_106 = arith.constant 0.000000e+00 : f32
    %247 = vector.broadcast %cst_106 : f32 to vector<32x256xf32>
    %248 = arith.maximumf %246, %247 : vector<32x256xf32>
    %cst_107 = arith.constant 0.000000e+00 : f32
    %249 = vector.broadcast %cst_107 : f32 to vector<32x256xf32>
    %250 = arith.subf %249, %244 : vector<32x256xf32>
    %cst_108 = arith.constant 0.00427429564 : f32
    %251 = vector.broadcast %cst_108 : f32 to vector<32x256xf32>
    %252 = arith.subf %250, %251 : vector<32x256xf32>
    %cst_109 = arith.constant 0.000000e+00 : f32
    %253 = vector.broadcast %cst_109 : f32 to vector<32x256xf32>
    %254 = arith.maximumf %252, %253 : vector<32x256xf32>
    %255 = arith.subf %248, %254 : vector<32x256xf32>
    %256 = arith.subf %255, %238 : vector<32x256xf32>
    %cst_110 = arith.constant 0.832584381 : f32
    %257 = vector.broadcast %cst_110 : f32 to vector<32x256xf32>
    %258 = arith.mulf %257, %256 : vector<32x256xf32>
    %259 = arith.addf %255, %258 : vector<32x256xf32>
    %cst_111 = arith.constant dense<0.000000e+00> : vector<32x256xf32>
    %260 = tpu.matmul %0, %259, %cst_111 {dimension_numbers = #tpu.dot_dimension_numbers<[1], [0], [0], [1], [0, 0, 1, 1], [], []>} : vector<32x32xf32>, vector<32x256xf32>, vector<32x256xf32> -> vector<32x256xf32>
    %261 = arith.addf %260, %3 : vector<32x256xf32>
    %cst_112 = arith.constant 0.00427429564 : f32
    %262 = vector.broadcast %cst_112 : f32 to vector<32x256xf32>
    %263 = arith.subf %261, %262 : vector<32x256xf32>
    %cst_113 = arith.constant 0.000000e+00 : f32
    %264 = vector.broadcast %cst_113 : f32 to vector<32x256xf32>
    %265 = arith.maximumf %263, %264 : vector<32x256xf32>
    %cst_114 = arith.constant 0.000000e+00 : f32
    %266 = vector.broadcast %cst_114 : f32 to vector<32x256xf32>
    %267 = arith.subf %266, %261 : vector<32x256xf32>
    %cst_115 = arith.constant 0.00427429564 : f32
    %268 = vector.broadcast %cst_115 : f32 to vector<32x256xf32>
    %269 = arith.subf %267, %268 : vector<32x256xf32>
    %cst_116 = arith.constant 0.000000e+00 : f32
    %270 = vector.broadcast %cst_116 : f32 to vector<32x256xf32>
    %271 = arith.maximumf %269, %270 : vector<32x256xf32>
    %272 = arith.subf %265, %271 : vector<32x256xf32>
    %273 = arith.subf %272, %255 : vector<32x256xf32>
    %cst_117 = arith.constant 0.841668248 : f32
    %274 = vector.broadcast %cst_117 : f32 to vector<32x256xf32>
    %275 = arith.mulf %274, %273 : vector<32x256xf32>
    %276 = arith.addf %272, %275 : vector<32x256xf32>
    %cst_118 = arith.constant dense<0.000000e+00> : vector<32x256xf32>
    %277 = tpu.matmul %0, %276, %cst_118 {dimension_numbers = #tpu.dot_dimension_numbers<[1], [0], [0], [1], [0, 0, 1, 1], [], []>} : vector<32x32xf32>, vector<32x256xf32>, vector<32x256xf32> -> vector<32x256xf32>
    %278 = arith.addf %277, %3 : vector<32x256xf32>
    %cst_119 = arith.constant 0.00427429564 : f32
    %279 = vector.broadcast %cst_119 : f32 to vector<32x256xf32>
    %280 = arith.subf %278, %279 : vector<32x256xf32>
    %cst_120 = arith.constant 0.000000e+00 : f32
    %281 = vector.broadcast %cst_120 : f32 to vector<32x256xf32>
    %282 = arith.maximumf %280, %281 : vector<32x256xf32>
    %cst_121 = arith.constant 0.000000e+00 : f32
    %283 = vector.broadcast %cst_121 : f32 to vector<32x256xf32>
    %284 = arith.subf %283, %278 : vector<32x256xf32>
    %cst_122 = arith.constant 0.00427429564 : f32
    %285 = vector.broadcast %cst_122 : f32 to vector<32x256xf32>
    %286 = arith.subf %284, %285 : vector<32x256xf32>
    %cst_123 = arith.constant 0.000000e+00 : f32
    %287 = vector.broadcast %cst_123 : f32 to vector<32x256xf32>
    %288 = arith.maximumf %286, %287 : vector<32x256xf32>
    %289 = arith.subf %282, %288 : vector<32x256xf32>
    %290 = arith.subf %289, %272 : vector<32x256xf32>
    %cst_124 = arith.constant 0.849805533 : f32
    %291 = vector.broadcast %cst_124 : f32 to vector<32x256xf32>
    %292 = arith.mulf %291, %290 : vector<32x256xf32>
    %293 = arith.addf %289, %292 : vector<32x256xf32>
    %cst_125 = arith.constant dense<0.000000e+00> : vector<32x256xf32>
    %294 = tpu.matmul %0, %293, %cst_125 {dimension_numbers = #tpu.dot_dimension_numbers<[1], [0], [0], [1], [0, 0, 1, 1], [], []>} : vector<32x32xf32>, vector<32x256xf32>, vector<32x256xf32> -> vector<32x256xf32>
    %295 = arith.addf %294, %3 : vector<32x256xf32>
    %cst_126 = arith.constant 0.00427429564 : f32
    %296 = vector.broadcast %cst_126 : f32 to vector<32x256xf32>
    %297 = arith.subf %295, %296 : vector<32x256xf32>
    %cst_127 = arith.constant 0.000000e+00 : f32
    %298 = vector.broadcast %cst_127 : f32 to vector<32x256xf32>
    %299 = arith.maximumf %297, %298 : vector<32x256xf32>
    %cst_128 = arith.constant 0.000000e+00 : f32
    %300 = vector.broadcast %cst_128 : f32 to vector<32x256xf32>
    %301 = arith.subf %300, %295 : vector<32x256xf32>
    %cst_129 = arith.constant 0.00427429564 : f32
    %302 = vector.broadcast %cst_129 : f32 to vector<32x256xf32>
    %303 = arith.subf %301, %302 : vector<32x256xf32>
    %cst_130 = arith.constant 0.000000e+00 : f32
    %304 = vector.broadcast %cst_130 : f32 to vector<32x256xf32>
    %305 = arith.maximumf %303, %304 : vector<32x256xf32>
    %306 = arith.subf %299, %305 : vector<32x256xf32>
    %307 = arith.subf %306, %289 : vector<32x256xf32>
    %cst_131 = arith.constant 0.857137918 : f32
    %308 = vector.broadcast %cst_131 : f32 to vector<32x256xf32>
    %309 = arith.mulf %308, %307 : vector<32x256xf32>
    %310 = arith.addf %306, %309 : vector<32x256xf32>
    %cst_132 = arith.constant dense<0.000000e+00> : vector<32x256xf32>
    %311 = tpu.matmul %0, %310, %cst_132 {dimension_numbers = #tpu.dot_dimension_numbers<[1], [0], [0], [1], [0, 0, 1, 1], [], []>} : vector<32x32xf32>, vector<32x256xf32>, vector<32x256xf32> -> vector<32x256xf32>
    %312 = arith.addf %311, %3 : vector<32x256xf32>
    %cst_133 = arith.constant 0.00427429564 : f32
    %313 = vector.broadcast %cst_133 : f32 to vector<32x256xf32>
    %314 = arith.subf %312, %313 : vector<32x256xf32>
    %cst_134 = arith.constant 0.000000e+00 : f32
    %315 = vector.broadcast %cst_134 : f32 to vector<32x256xf32>
    %316 = arith.maximumf %314, %315 : vector<32x256xf32>
    %cst_135 = arith.constant 0.000000e+00 : f32
    %317 = vector.broadcast %cst_135 : f32 to vector<32x256xf32>
    %318 = arith.subf %317, %312 : vector<32x256xf32>
    %cst_136 = arith.constant 0.00427429564 : f32
    %319 = vector.broadcast %cst_136 : f32 to vector<32x256xf32>
    %320 = arith.subf %318, %319 : vector<32x256xf32>
    %cst_137 = arith.constant 0.000000e+00 : f32
    %321 = vector.broadcast %cst_137 : f32 to vector<32x256xf32>
    %322 = arith.maximumf %320, %321 : vector<32x256xf32>
    %323 = arith.subf %316, %322 : vector<32x256xf32>
    %324 = arith.subf %323, %306 : vector<32x256xf32>
    %cst_138 = arith.constant 0.86378014 : f32
    %325 = vector.broadcast %cst_138 : f32 to vector<32x256xf32>
    %326 = arith.mulf %325, %324 : vector<32x256xf32>
    %327 = arith.addf %323, %326 : vector<32x256xf32>
    %cst_139 = arith.constant dense<0.000000e+00> : vector<32x256xf32>
    %328 = tpu.matmul %0, %327, %cst_139 {dimension_numbers = #tpu.dot_dimension_numbers<[1], [0], [0], [1], [0, 0, 1, 1], [], []>} : vector<32x32xf32>, vector<32x256xf32>, vector<32x256xf32> -> vector<32x256xf32>
    %329 = arith.addf %328, %3 : vector<32x256xf32>
    %cst_140 = arith.constant 0.00427429564 : f32
    %330 = vector.broadcast %cst_140 : f32 to vector<32x256xf32>
    %331 = arith.subf %329, %330 : vector<32x256xf32>
    %cst_141 = arith.constant 0.000000e+00 : f32
    %332 = vector.broadcast %cst_141 : f32 to vector<32x256xf32>
    %333 = arith.maximumf %331, %332 : vector<32x256xf32>
    %cst_142 = arith.constant 0.000000e+00 : f32
    %334 = vector.broadcast %cst_142 : f32 to vector<32x256xf32>
    %335 = arith.subf %334, %329 : vector<32x256xf32>
    %cst_143 = arith.constant 0.00427429564 : f32
    %336 = vector.broadcast %cst_143 : f32 to vector<32x256xf32>
    %337 = arith.subf %335, %336 : vector<32x256xf32>
    %cst_144 = arith.constant 0.000000e+00 : f32
    %338 = vector.broadcast %cst_144 : f32 to vector<32x256xf32>
    %339 = arith.maximumf %337, %338 : vector<32x256xf32>
    %340 = arith.subf %333, %339 : vector<32x256xf32>
    %341 = arith.subf %340, %323 : vector<32x256xf32>
    %cst_145 = arith.constant 0.86982578 : f32
    %342 = vector.broadcast %cst_145 : f32 to vector<32x256xf32>
    %343 = arith.mulf %342, %341 : vector<32x256xf32>
    %344 = arith.addf %340, %343 : vector<32x256xf32>
    %cst_146 = arith.constant dense<0.000000e+00> : vector<32x256xf32>
    %345 = tpu.matmul %0, %344, %cst_146 {dimension_numbers = #tpu.dot_dimension_numbers<[1], [0], [0], [1], [0, 0, 1, 1], [], []>} : vector<32x32xf32>, vector<32x256xf32>, vector<32x256xf32> -> vector<32x256xf32>
    %346 = arith.addf %345, %3 : vector<32x256xf32>
    %cst_147 = arith.constant 0.00427429564 : f32
    %347 = vector.broadcast %cst_147 : f32 to vector<32x256xf32>
    %348 = arith.subf %346, %347 : vector<32x256xf32>
    %cst_148 = arith.constant 0.000000e+00 : f32
    %349 = vector.broadcast %cst_148 : f32 to vector<32x256xf32>
    %350 = arith.maximumf %348, %349 : vector<32x256xf32>
    %cst_149 = arith.constant 0.000000e+00 : f32
    %351 = vector.broadcast %cst_149 : f32 to vector<32x256xf32>
    %352 = arith.subf %351, %346 : vector<32x256xf32>
    %cst_150 = arith.constant 0.00427429564 : f32
    %353 = vector.broadcast %cst_150 : f32 to vector<32x256xf32>
    %354 = arith.subf %352, %353 : vector<32x256xf32>
    %cst_151 = arith.constant 0.000000e+00 : f32
    %355 = vector.broadcast %cst_151 : f32 to vector<32x256xf32>
    %356 = arith.maximumf %354, %355 : vector<32x256xf32>
    %357 = arith.subf %350, %356 : vector<32x256xf32>
    %358 = arith.subf %357, %340 : vector<32x256xf32>
    %cst_152 = arith.constant 0.875352323 : f32
    %359 = vector.broadcast %cst_152 : f32 to vector<32x256xf32>
    %360 = arith.mulf %359, %358 : vector<32x256xf32>
    %361 = arith.addf %357, %360 : vector<32x256xf32>
    %cst_153 = arith.constant dense<0.000000e+00> : vector<32x256xf32>
    %362 = tpu.matmul %0, %361, %cst_153 {dimension_numbers = #tpu.dot_dimension_numbers<[1], [0], [0], [1], [0, 0, 1, 1], [], []>} : vector<32x32xf32>, vector<32x256xf32>, vector<32x256xf32> -> vector<32x256xf32>
    %363 = arith.addf %362, %3 : vector<32x256xf32>
    %cst_154 = arith.constant 0.00427429564 : f32
    %364 = vector.broadcast %cst_154 : f32 to vector<32x256xf32>
    %365 = arith.subf %363, %364 : vector<32x256xf32>
    %cst_155 = arith.constant 0.000000e+00 : f32
    %366 = vector.broadcast %cst_155 : f32 to vector<32x256xf32>
    %367 = arith.maximumf %365, %366 : vector<32x256xf32>
    %cst_156 = arith.constant 0.000000e+00 : f32
    %368 = vector.broadcast %cst_156 : f32 to vector<32x256xf32>
    %369 = arith.subf %368, %363 : vector<32x256xf32>
    %cst_157 = arith.constant 0.00427429564 : f32
    %370 = vector.broadcast %cst_157 : f32 to vector<32x256xf32>
    %371 = arith.subf %369, %370 : vector<32x256xf32>
    %cst_158 = arith.constant 0.000000e+00 : f32
    %372 = vector.broadcast %cst_158 : f32 to vector<32x256xf32>
    %373 = arith.maximumf %371, %372 : vector<32x256xf32>
    %374 = arith.subf %367, %373 : vector<32x256xf32>
    %375 = arith.subf %374, %357 : vector<32x256xf32>
    %cst_159 = arith.constant 0.88042432 : f32
    %376 = vector.broadcast %cst_159 : f32 to vector<32x256xf32>
    %377 = arith.mulf %376, %375 : vector<32x256xf32>
    %378 = arith.addf %374, %377 : vector<32x256xf32>
    %cst_160 = arith.constant dense<0.000000e+00> : vector<32x256xf32>
    %379 = tpu.matmul %0, %378, %cst_160 {dimension_numbers = #tpu.dot_dimension_numbers<[1], [0], [0], [1], [0, 0, 1, 1], [], []>} : vector<32x32xf32>, vector<32x256xf32>, vector<32x256xf32> -> vector<32x256xf32>
    %380 = arith.addf %379, %3 : vector<32x256xf32>
    %cst_161 = arith.constant 0.00427429564 : f32
    %381 = vector.broadcast %cst_161 : f32 to vector<32x256xf32>
    %382 = arith.subf %380, %381 : vector<32x256xf32>
    %cst_162 = arith.constant 0.000000e+00 : f32
    %383 = vector.broadcast %cst_162 : f32 to vector<32x256xf32>
    %384 = arith.maximumf %382, %383 : vector<32x256xf32>
    %cst_163 = arith.constant 0.000000e+00 : f32
    %385 = vector.broadcast %cst_163 : f32 to vector<32x256xf32>
    %386 = arith.subf %385, %380 : vector<32x256xf32>
    %cst_164 = arith.constant 0.00427429564 : f32
    %387 = vector.broadcast %cst_164 : f32 to vector<32x256xf32>
    %388 = arith.subf %386, %387 : vector<32x256xf32>
    %cst_165 = arith.constant 0.000000e+00 : f32
    %389 = vector.broadcast %cst_165 : f32 to vector<32x256xf32>
    %390 = arith.maximumf %388, %389 : vector<32x256xf32>
    %391 = arith.subf %384, %390 : vector<32x256xf32>
    %392 = arith.subf %391, %374 : vector<32x256xf32>
    %cst_166 = arith.constant 0.885095894 : f32
    %393 = vector.broadcast %cst_166 : f32 to vector<32x256xf32>
    %394 = arith.mulf %393, %392 : vector<32x256xf32>
    %395 = arith.addf %391, %394 : vector<32x256xf32>
    %cst_167 = arith.constant dense<0.000000e+00> : vector<32x256xf32>
    %396 = tpu.matmul %0, %395, %cst_167 {dimension_numbers = #tpu.dot_dimension_numbers<[1], [0], [0], [1], [0, 0, 1, 1], [], []>} : vector<32x32xf32>, vector<32x256xf32>, vector<32x256xf32> -> vector<32x256xf32>
    %397 = arith.addf %396, %3 : vector<32x256xf32>
    %cst_168 = arith.constant 0.00427429564 : f32
    %398 = vector.broadcast %cst_168 : f32 to vector<32x256xf32>
    %399 = arith.subf %397, %398 : vector<32x256xf32>
    %cst_169 = arith.constant 0.000000e+00 : f32
    %400 = vector.broadcast %cst_169 : f32 to vector<32x256xf32>
    %401 = arith.maximumf %399, %400 : vector<32x256xf32>
    %cst_170 = arith.constant 0.000000e+00 : f32
    %402 = vector.broadcast %cst_170 : f32 to vector<32x256xf32>
    %403 = arith.subf %402, %397 : vector<32x256xf32>
    %cst_171 = arith.constant 0.00427429564 : f32
    %404 = vector.broadcast %cst_171 : f32 to vector<32x256xf32>
    %405 = arith.subf %403, %404 : vector<32x256xf32>
    %cst_172 = arith.constant 0.000000e+00 : f32
    %406 = vector.broadcast %cst_172 : f32 to vector<32x256xf32>
    %407 = arith.maximumf %405, %406 : vector<32x256xf32>
    %408 = arith.subf %401, %407 : vector<32x256xf32>
    %409 = arith.subf %408, %391 : vector<32x256xf32>
    %cst_173 = arith.constant 0.889412999 : f32
    %410 = vector.broadcast %cst_173 : f32 to vector<32x256xf32>
    %411 = arith.mulf %410, %409 : vector<32x256xf32>
    %412 = arith.addf %408, %411 : vector<32x256xf32>
    %cst_174 = arith.constant dense<0.000000e+00> : vector<32x256xf32>
    %413 = tpu.matmul %0, %412, %cst_174 {dimension_numbers = #tpu.dot_dimension_numbers<[1], [0], [0], [1], [0, 0, 1, 1], [], []>} : vector<32x32xf32>, vector<32x256xf32>, vector<32x256xf32> -> vector<32x256xf32>
    %414 = arith.addf %413, %3 : vector<32x256xf32>
    %cst_175 = arith.constant 0.00427429564 : f32
    %415 = vector.broadcast %cst_175 : f32 to vector<32x256xf32>
    %416 = arith.subf %414, %415 : vector<32x256xf32>
    %cst_176 = arith.constant 0.000000e+00 : f32
    %417 = vector.broadcast %cst_176 : f32 to vector<32x256xf32>
    %418 = arith.maximumf %416, %417 : vector<32x256xf32>
    %cst_177 = arith.constant 0.000000e+00 : f32
    %419 = vector.broadcast %cst_177 : f32 to vector<32x256xf32>
    %420 = arith.subf %419, %414 : vector<32x256xf32>
    %cst_178 = arith.constant 0.00427429564 : f32
    %421 = vector.broadcast %cst_178 : f32 to vector<32x256xf32>
    %422 = arith.subf %420, %421 : vector<32x256xf32>
    %cst_179 = arith.constant 0.000000e+00 : f32
    %423 = vector.broadcast %cst_179 : f32 to vector<32x256xf32>
    %424 = arith.maximumf %422, %423 : vector<32x256xf32>
    %425 = arith.subf %418, %424 : vector<32x256xf32>
    %426 = arith.subf %425, %408 : vector<32x256xf32>
    %cst_180 = arith.constant 0.893414736 : f32
    %427 = vector.broadcast %cst_180 : f32 to vector<32x256xf32>
    %428 = arith.mulf %427, %426 : vector<32x256xf32>
    %429 = arith.addf %425, %428 : vector<32x256xf32>
    %cst_181 = arith.constant dense<0.000000e+00> : vector<32x256xf32>
    %430 = tpu.matmul %0, %429, %cst_181 {dimension_numbers = #tpu.dot_dimension_numbers<[1], [0], [0], [1], [0, 0, 1, 1], [], []>} : vector<32x32xf32>, vector<32x256xf32>, vector<32x256xf32> -> vector<32x256xf32>
    %431 = arith.addf %430, %3 : vector<32x256xf32>
    %cst_182 = arith.constant 0.00427429564 : f32
    %432 = vector.broadcast %cst_182 : f32 to vector<32x256xf32>
    %433 = arith.subf %431, %432 : vector<32x256xf32>
    %cst_183 = arith.constant 0.000000e+00 : f32
    %434 = vector.broadcast %cst_183 : f32 to vector<32x256xf32>
    %435 = arith.maximumf %433, %434 : vector<32x256xf32>
    %cst_184 = arith.constant 0.000000e+00 : f32
    %436 = vector.broadcast %cst_184 : f32 to vector<32x256xf32>
    %437 = arith.subf %436, %431 : vector<32x256xf32>
    %cst_185 = arith.constant 0.00427429564 : f32
    %438 = vector.broadcast %cst_185 : f32 to vector<32x256xf32>
    %439 = arith.subf %437, %438 : vector<32x256xf32>
    %cst_186 = arith.constant 0.000000e+00 : f32
    %440 = vector.broadcast %cst_186 : f32 to vector<32x256xf32>
    %441 = arith.maximumf %439, %440 : vector<32x256xf32>
    %442 = arith.subf %435, %441 : vector<32x256xf32>
    %443 = arith.subf %442, %425 : vector<32x256xf32>
    %cst_187 = arith.constant 0.897134542 : f32
    %444 = vector.broadcast %cst_187 : f32 to vector<32x256xf32>
    %445 = arith.mulf %444, %443 : vector<32x256xf32>
    %446 = arith.addf %442, %445 : vector<32x256xf32>
    %cst_188 = arith.constant dense<0.000000e+00> : vector<32x256xf32>
    %447 = tpu.matmul %0, %446, %cst_188 {dimension_numbers = #tpu.dot_dimension_numbers<[1], [0], [0], [1], [0, 0, 1, 1], [], []>} : vector<32x32xf32>, vector<32x256xf32>, vector<32x256xf32> -> vector<32x256xf32>
    %448 = arith.addf %447, %3 : vector<32x256xf32>
    %cst_189 = arith.constant 0.00427429564 : f32
    %449 = vector.broadcast %cst_189 : f32 to vector<32x256xf32>
    %450 = arith.subf %448, %449 : vector<32x256xf32>
    %cst_190 = arith.constant 0.000000e+00 : f32
    %451 = vector.broadcast %cst_190 : f32 to vector<32x256xf32>
    %452 = arith.maximumf %450, %451 : vector<32x256xf32>
    %cst_191 = arith.constant 0.000000e+00 : f32
    %453 = vector.broadcast %cst_191 : f32 to vector<32x256xf32>
    %454 = arith.subf %453, %448 : vector<32x256xf32>
    %cst_192 = arith.constant 0.00427429564 : f32
    %455 = vector.broadcast %cst_192 : f32 to vector<32x256xf32>
    %456 = arith.subf %454, %455 : vector<32x256xf32>
    %cst_193 = arith.constant 0.000000e+00 : f32
    %457 = vector.broadcast %cst_193 : f32 to vector<32x256xf32>
    %458 = arith.maximumf %456, %457 : vector<32x256xf32>
    %459 = arith.subf %452, %458 : vector<32x256xf32>
    %460 = arith.subf %459, %442 : vector<32x256xf32>
    %cst_194 = arith.constant 0.900601446 : f32
    %461 = vector.broadcast %cst_194 : f32 to vector<32x256xf32>
    %462 = arith.mulf %461, %460 : vector<32x256xf32>
    %463 = arith.addf %459, %462 : vector<32x256xf32>
    %cst_195 = arith.constant dense<0.000000e+00> : vector<32x256xf32>
    %464 = tpu.matmul %0, %463, %cst_195 {dimension_numbers = #tpu.dot_dimension_numbers<[1], [0], [0], [1], [0, 0, 1, 1], [], []>} : vector<32x32xf32>, vector<32x256xf32>, vector<32x256xf32> -> vector<32x256xf32>
    %465 = arith.addf %464, %3 : vector<32x256xf32>
    %cst_196 = arith.constant 0.00427429564 : f32
    %466 = vector.broadcast %cst_196 : f32 to vector<32x256xf32>
    %467 = arith.subf %465, %466 : vector<32x256xf32>
    %cst_197 = arith.constant 0.000000e+00 : f32
    %468 = vector.broadcast %cst_197 : f32 to vector<32x256xf32>
    %469 = arith.maximumf %467, %468 : vector<32x256xf32>
    %cst_198 = arith.constant 0.000000e+00 : f32
    %470 = vector.broadcast %cst_198 : f32 to vector<32x256xf32>
    %471 = arith.subf %470, %465 : vector<32x256xf32>
    %cst_199 = arith.constant 0.00427429564 : f32
    %472 = vector.broadcast %cst_199 : f32 to vector<32x256xf32>
    %473 = arith.subf %471, %472 : vector<32x256xf32>
    %cst_200 = arith.constant 0.000000e+00 : f32
    %474 = vector.broadcast %cst_200 : f32 to vector<32x256xf32>
    %475 = arith.maximumf %473, %474 : vector<32x256xf32>
    %476 = arith.subf %469, %475 : vector<32x256xf32>
    %477 = arith.subf %476, %459 : vector<32x256xf32>
    %cst_201 = arith.constant 0.903840422 : f32
    %478 = vector.broadcast %cst_201 : f32 to vector<32x256xf32>
    %479 = arith.mulf %478, %477 : vector<32x256xf32>
    %480 = arith.addf %476, %479 : vector<32x256xf32>
    %cst_202 = arith.constant dense<0.000000e+00> : vector<32x256xf32>
    %481 = tpu.matmul %0, %480, %cst_202 {dimension_numbers = #tpu.dot_dimension_numbers<[1], [0], [0], [1], [0, 0, 1, 1], [], []>} : vector<32x32xf32>, vector<32x256xf32>, vector<32x256xf32> -> vector<32x256xf32>
    %482 = arith.addf %481, %3 : vector<32x256xf32>
    %cst_203 = arith.constant 0.00427429564 : f32
    %483 = vector.broadcast %cst_203 : f32 to vector<32x256xf32>
    %484 = arith.subf %482, %483 : vector<32x256xf32>
    %cst_204 = arith.constant 0.000000e+00 : f32
    %485 = vector.broadcast %cst_204 : f32 to vector<32x256xf32>
    %486 = arith.maximumf %484, %485 : vector<32x256xf32>
    %cst_205 = arith.constant 0.000000e+00 : f32
    %487 = vector.broadcast %cst_205 : f32 to vector<32x256xf32>
    %488 = arith.subf %487, %482 : vector<32x256xf32>
    %cst_206 = arith.constant 0.00427429564 : f32
    %489 = vector.broadcast %cst_206 : f32 to vector<32x256xf32>
    %490 = arith.subf %488, %489 : vector<32x256xf32>
    %cst_207 = arith.constant 0.000000e+00 : f32
    %491 = vector.broadcast %cst_207 : f32 to vector<32x256xf32>
    %492 = arith.maximumf %490, %491 : vector<32x256xf32>
    %493 = arith.subf %486, %492 : vector<32x256xf32>
    %494 = arith.subf %493, %476 : vector<32x256xf32>
    %cst_208 = arith.constant 0.906873465 : f32
    %495 = vector.broadcast %cst_208 : f32 to vector<32x256xf32>
    %496 = arith.mulf %495, %494 : vector<32x256xf32>
    %497 = arith.addf %493, %496 : vector<32x256xf32>
    %cst_209 = arith.constant dense<0.000000e+00> : vector<32x256xf32>
    %498 = tpu.matmul %0, %497, %cst_209 {dimension_numbers = #tpu.dot_dimension_numbers<[1], [0], [0], [1], [0, 0, 1, 1], [], []>} : vector<32x32xf32>, vector<32x256xf32>, vector<32x256xf32> -> vector<32x256xf32>
    %499 = arith.addf %498, %3 : vector<32x256xf32>
    %cst_210 = arith.constant 0.00427429564 : f32
    %500 = vector.broadcast %cst_210 : f32 to vector<32x256xf32>
    %501 = arith.subf %499, %500 : vector<32x256xf32>
    %cst_211 = arith.constant 0.000000e+00 : f32
    %502 = vector.broadcast %cst_211 : f32 to vector<32x256xf32>
    %503 = arith.maximumf %501, %502 : vector<32x256xf32>
    %cst_212 = arith.constant 0.000000e+00 : f32
    %504 = vector.broadcast %cst_212 : f32 to vector<32x256xf32>
    %505 = arith.subf %504, %499 : vector<32x256xf32>
    %cst_213 = arith.constant 0.00427429564 : f32
    %506 = vector.broadcast %cst_213 : f32 to vector<32x256xf32>
    %507 = arith.subf %505, %506 : vector<32x256xf32>
    %cst_214 = arith.constant 0.000000e+00 : f32
    %508 = vector.broadcast %cst_214 : f32 to vector<32x256xf32>
    %509 = arith.maximumf %507, %508 : vector<32x256xf32>
    %510 = arith.subf %503, %509 : vector<32x256xf32>
    %cst_215 = arith.constant 0.000000e+00 : f32
    %511 = vector.broadcast %cst_215 : f32 to vector<32x256xf32>
    %512 = arith.cmpf one, %510, %511 : vector<32x256xf32>
    %513 = arith.extui %512 : vector<32x256xi1> to vector<32x256xi32>
    %514 = arith.sitofp %513 : vector<32x256xi32> to vector<32x256xf32>
    %c0_216 = arith.constant 0 : index
    %c0_217 = arith.constant 0 : index
    %515 = vector.load %arg10[%c0_216, %c0_217] : memref<32x256xf32, #tpu.memory_space<vmem>>, vector<32x256xf32>
    tpu.vector_store %arg10[%c0_216, %c0_217], %510 {strides = array<i32>} : memref<32x256xf32, #tpu.memory_space<vmem>>, vector<32x256xf32>,
    %c0_218 = arith.constant 0 : index
    %c0_219 = arith.constant 0 : index
    %516 = vector.load %arg11[%c0_218, %c0_219] : memref<32x256xf32, #tpu.memory_space<vmem>>, vector<32x256xf32>
    tpu.vector_store %arg11[%c0_218, %c0_219], %514 {strides = array<i32>} : memref<32x256xf32, #tpu.memory_space<vmem>>, vector<32x256xf32>,
    %c0_220 = arith.constant 0 : index
    %c0_221 = arith.constant 0 : index
    %517 = vector.load %arg4[%c0_220, %c0_221] : memref<8x32xf32, #tpu.memory_space<vmem>>, vector<8x32xf32>
    %cst_222 = arith.constant dense<0.000000e+00> : vector<8x256xf32>
    %518 = tpu.matmul %517, %510, %cst_222 {dimension_numbers = #tpu.dot_dimension_numbers<[1], [0], [0], [1], [0, 0, 1, 1], [], []>} : vector<8x32xf32>, vector<32x256xf32>, vector<8x256xf32> -> vector<8x256xf32>
    %c0_223 = arith.constant 0 : index
    %c0_224 = arith.constant 0 : index
    %519 = vector.load %arg12[%c0_223, %c0_224] : memref<8x256xf32, #tpu.memory_space<vmem>>, vector<8x256xf32>
    tpu.vector_store %arg12[%c0_223, %c0_224], %518 {strides = array<i32>} : memref<8x256xf32, #tpu.memory_space<vmem>>, vector<8x256xf32>,
    %520 = vector.extract_strided_slice %514 {offsets = [0, 0], sizes = [32, 128], strides = [1, 1]} : vector<32x256xf32> to vector<32x128xf32>
    %521 = arith.truncf %520 : vector<32x128xf32> to vector<32x128xbf16>
    %c0_225 = arith.constant 0 : index
    %c0_226 = arith.constant 0 : index
    %c0_227 = arith.constant 0 : index
    %522 = vector.load %arg5[%c0_225, %c0_226, %c0_227] : memref<9x108x128xbf16, #tpu.memory_space<vmem>>, vector<1x108x128xbf16>
    %523 = vector.shape_cast %522 : vector<1x108x128xbf16> to vector<108x128xbf16>
    %cst_228 = arith.constant dense<0.000000e+00> : vector<108x32xf32>
    %524 = tpu.matmul %523, %521, %cst_228 {dimension_numbers = #tpu.dot_dimension_numbers<[1], [1], [0], [0], [0, 0, 1, 0], [], []>} : vector<108x128xbf16>, vector<32x128xbf16>, vector<108x32xf32> -> vector<108x32xf32>
    %525 = arith.truncf %524 : vector<108x32xf32> to vector<108x32xbf16>
    %c0_229 = arith.constant 0 : index
    %c0_230 = arith.constant 0 : index
    %c0_231 = arith.constant 0 : index
    %526 = vector.load %arg6[%c0_229, %c0_230, %c0_231] : memref<9x32x128xbf16, #tpu.memory_space<vmem>>, vector<1x32x128xbf16>
    %527 = vector.shape_cast %526 : vector<1x32x128xbf16> to vector<32x128xbf16>
    %cst_232 = arith.constant dense<0.000000e+00> : vector<108x128xf32>
    %528 = tpu.matmul %525, %527, %cst_232 {dimension_numbers = #tpu.dot_dimension_numbers<[1], [0], [0], [1], [0, 0, 1, 1], [], []>} : vector<108x32xbf16>, vector<32x128xbf16>, vector<108x128xf32> -> vector<108x128xf32>
    %c1 = arith.constant 1 : index
    %c0_233 = arith.constant 0 : index
    %c0_234 = arith.constant 0 : index
    %529 = vector.load %arg5[%c1, %c0_233, %c0_234] : memref<9x108x128xbf16, #tpu.memory_space<vmem>>, vector<1x108x128xbf16>
    %530 = vector.shape_cast %529 : vector<1x108x128xbf16> to vector<108x128xbf16>
    %cst_235 = arith.constant dense<0.000000e+00> : vector<108x32xf32>
    %531 = tpu.matmul %530, %521, %cst_235 {dimension_numbers = #tpu.dot_dimension_numbers<[1], [1], [0], [0], [0, 0, 1, 0], [], []>} : vector<108x128xbf16>, vector<32x128xbf16>, vector<108x32xf32> -> vector<108x32xf32>
    %532 = arith.truncf %531 : vector<108x32xf32> to vector<108x32xbf16>
    %c1_236 = arith.constant 1 : index
    %c0_237 = arith.constant 0 : index
    %c0_238 = arith.constant 0 : index
    %533 = vector.load %arg6[%c1_236, %c0_237, %c0_238] : memref<9x32x128xbf16, #tpu.memory_space<vmem>>, vector<1x32x128xbf16>
    %534 = vector.shape_cast %533 : vector<1x32x128xbf16> to vector<32x128xbf16>
    %cst_239 = arith.constant dense<0.000000e+00> : vector<108x128xf32>
    %535 = tpu.matmul %532, %534, %cst_239 {dimension_numbers = #tpu.dot_dimension_numbers<[1], [0], [0], [1], [0, 0, 1, 1], [], []>} : vector<108x32xbf16>, vector<32x128xbf16>, vector<108x128xf32> -> vector<108x128xf32>
    %536 = arith.addf %528, %535 : vector<108x128xf32>
    %c2 = arith.constant 2 : index
    %c0_240 = arith.constant 0 : index
    %c0_241 = arith.constant 0 : index
    %537 = vector.load %arg5[%c2, %c0_240, %c0_241] : memref<9x108x128xbf16, #tpu.memory_space<vmem>>, vector<1x108x128xbf16>
    %538 = vector.shape_cast %537 : vector<1x108x128xbf16> to vector<108x128xbf16>
    %cst_242 = arith.constant dense<0.000000e+00> : vector<108x32xf32>
    %539 = tpu.matmul %538, %521, %cst_242 {dimension_numbers = #tpu.dot_dimension_numbers<[1], [1], [0], [0], [0, 0, 1, 0], [], []>} : vector<108x128xbf16>, vector<32x128xbf16>, vector<108x32xf32> -> vector<108x32xf32>
    %540 = arith.truncf %539 : vector<108x32xf32> to vector<108x32xbf16>
    %c2_243 = arith.constant 2 : index
    %c0_244 = arith.constant 0 : index
    %c0_245 = arith.constant 0 : index
    %541 = vector.load %arg6[%c2_243, %c0_244, %c0_245] : memref<9x32x128xbf16, #tpu.memory_space<vmem>>, vector<1x32x128xbf16>
    %542 = vector.shape_cast %541 : vector<1x32x128xbf16> to vector<32x128xbf16>
    %cst_246 = arith.constant dense<0.000000e+00> : vector<108x128xf32>
    %543 = tpu.matmul %540, %542, %cst_246 {dimension_numbers = #tpu.dot_dimension_numbers<[1], [0], [0], [1], [0, 0, 1, 1], [], []>} : vector<108x32xbf16>, vector<32x128xbf16>, vector<108x128xf32> -> vector<108x128xf32>
    %544 = arith.addf %536, %543 : vector<108x128xf32>
    %c3 = arith.constant 3 : index
    %c0_247 = arith.constant 0 : index
    %c0_248 = arith.constant 0 : index
    %545 = vector.load %arg5[%c3, %c0_247, %c0_248] : memref<9x108x128xbf16, #tpu.memory_space<vmem>>, vector<1x108x128xbf16>
    %546 = vector.shape_cast %545 : vector<1x108x128xbf16> to vector<108x128xbf16>
    %cst_249 = arith.constant dense<0.000000e+00> : vector<108x32xf32>
    %547 = tpu.matmul %546, %521, %cst_249 {dimension_numbers = #tpu.dot_dimension_numbers<[1], [1], [0], [0], [0, 0, 1, 0], [], []>} : vector<108x128xbf16>, vector<32x128xbf16>, vector<108x32xf32> -> vector<108x32xf32>
    %548 = arith.truncf %547 : vector<108x32xf32> to vector<108x32xbf16>
    %c3_250 = arith.constant 3 : index
    %c0_251 = arith.constant 0 : index
    %c0_252 = arith.constant 0 : index
    %549 = vector.load %arg6[%c3_250, %c0_251, %c0_252] : memref<9x32x128xbf16, #tpu.memory_space<vmem>>, vector<1x32x128xbf16>
    %550 = vector.shape_cast %549 : vector<1x32x128xbf16> to vector<32x128xbf16>
    %cst_253 = arith.constant dense<0.000000e+00> : vector<108x128xf32>
    %551 = tpu.matmul %548, %550, %cst_253 {dimension_numbers = #tpu.dot_dimension_numbers<[1], [0], [0], [1], [0, 0, 1, 1], [], []>} : vector<108x32xbf16>, vector<32x128xbf16>, vector<108x128xf32> -> vector<108x128xf32>
    %552 = arith.addf %544, %551 : vector<108x128xf32>
    %c4 = arith.constant 4 : index
    %c0_254 = arith.constant 0 : index
    %c0_255 = arith.constant 0 : index
    %553 = vector.load %arg5[%c4, %c0_254, %c0_255] : memref<9x108x128xbf16, #tpu.memory_space<vmem>>, vector<1x108x128xbf16>
    %554 = vector.shape_cast %553 : vector<1x108x128xbf16> to vector<108x128xbf16>
    %cst_256 = arith.constant dense<0.000000e+00> : vector<108x32xf32>
    %555 = tpu.matmul %554, %521, %cst_256 {dimension_numbers = #tpu.dot_dimension_numbers<[1], [1], [0], [0], [0, 0, 1, 0], [], []>} : vector<108x128xbf16>, vector<32x128xbf16>, vector<108x32xf32> -> vector<108x32xf32>
    %556 = arith.truncf %555 : vector<108x32xf32> to vector<108x32xbf16>
    %c4_257 = arith.constant 4 : index
    %c0_258 = arith.constant 0 : index
    %c0_259 = arith.constant 0 : index
    %557 = vector.load %arg6[%c4_257, %c0_258, %c0_259] : memref<9x32x128xbf16, #tpu.memory_space<vmem>>, vector<1x32x128xbf16>
    %558 = vector.shape_cast %557 : vector<1x32x128xbf16> to vector<32x128xbf16>
    %cst_260 = arith.constant dense<0.000000e+00> : vector<108x128xf32>
    %559 = tpu.matmul %556, %558, %cst_260 {dimension_numbers = #tpu.dot_dimension_numbers<[1], [0], [0], [1], [0, 0, 1, 1], [], []>} : vector<108x32xbf16>, vector<32x128xbf16>, vector<108x128xf32> -> vector<108x128xf32>
    %560 = arith.addf %552, %559 : vector<108x128xf32>
    %c5 = arith.constant 5 : index
    %c0_261 = arith.constant 0 : index
    %c0_262 = arith.constant 0 : index
    %561 = vector.load %arg5[%c5, %c0_261, %c0_262] : memref<9x108x128xbf16, #tpu.memory_space<vmem>>, vector<1x108x128xbf16>
    %562 = vector.shape_cast %561 : vector<1x108x128xbf16> to vector<108x128xbf16>
    %cst_263 = arith.constant dense<0.000000e+00> : vector<108x32xf32>
    %563 = tpu.matmul %562, %521, %cst_263 {dimension_numbers = #tpu.dot_dimension_numbers<[1], [1], [0], [0], [0, 0, 1, 0], [], []>} : vector<108x128xbf16>, vector<32x128xbf16>, vector<108x32xf32> -> vector<108x32xf32>
    %564 = arith.truncf %563 : vector<108x32xf32> to vector<108x32xbf16>
    %c5_264 = arith.constant 5 : index
    %c0_265 = arith.constant 0 : index
    %c0_266 = arith.constant 0 : index
    %565 = vector.load %arg6[%c5_264, %c0_265, %c0_266] : memref<9x32x128xbf16, #tpu.memory_space<vmem>>, vector<1x32x128xbf16>
    %566 = vector.shape_cast %565 : vector<1x32x128xbf16> to vector<32x128xbf16>
    %cst_267 = arith.constant dense<0.000000e+00> : vector<108x128xf32>
    %567 = tpu.matmul %564, %566, %cst_267 {dimension_numbers = #tpu.dot_dimension_numbers<[1], [0], [0], [1], [0, 0, 1, 1], [], []>} : vector<108x32xbf16>, vector<32x128xbf16>, vector<108x128xf32> -> vector<108x128xf32>
    %568 = arith.addf %560, %567 : vector<108x128xf32>
    %c6 = arith.constant 6 : index
    %c0_268 = arith.constant 0 : index
    %c0_269 = arith.constant 0 : index
    %569 = vector.load %arg5[%c6, %c0_268, %c0_269] : memref<9x108x128xbf16, #tpu.memory_space<vmem>>, vector<1x108x128xbf16>
    %570 = vector.shape_cast %569 : vector<1x108x128xbf16> to vector<108x128xbf16>
    %cst_270 = arith.constant dense<0.000000e+00> : vector<108x32xf32>
    %571 = tpu.matmul %570, %521, %cst_270 {dimension_numbers = #tpu.dot_dimension_numbers<[1], [1], [0], [0], [0, 0, 1, 0], [], []>} : vector<108x128xbf16>, vector<32x128xbf16>, vector<108x32xf32> -> vector<108x32xf32>
    %572 = arith.truncf %571 : vector<108x32xf32> to vector<108x32xbf16>
    %c6_271 = arith.constant 6 : index
    %c0_272 = arith.constant 0 : index
    %c0_273 = arith.constant 0 : index
    %573 = vector.load %arg6[%c6_271, %c0_272, %c0_273] : memref<9x32x128xbf16, #tpu.memory_space<vmem>>, vector<1x32x128xbf16>
    %574 = vector.shape_cast %573 : vector<1x32x128xbf16> to vector<32x128xbf16>
    %cst_274 = arith.constant dense<0.000000e+00> : vector<108x128xf32>
    %575 = tpu.matmul %572, %574, %cst_274 {dimension_numbers = #tpu.dot_dimension_numbers<[1], [0], [0], [1], [0, 0, 1, 1], [], []>} : vector<108x32xbf16>, vector<32x128xbf16>, vector<108x128xf32> -> vector<108x128xf32>
    %576 = arith.addf %568, %575 : vector<108x128xf32>
    %c7 = arith.constant 7 : index
    %c0_275 = arith.constant 0 : index
    %c0_276 = arith.constant 0 : index
    %577 = vector.load %arg5[%c7, %c0_275, %c0_276] : memref<9x108x128xbf16, #tpu.memory_space<vmem>>, vector<1x108x128xbf16>
    %578 = vector.shape_cast %577 : vector<1x108x128xbf16> to vector<108x128xbf16>
    %cst_277 = arith.constant dense<0.000000e+00> : vector<108x32xf32>
    %579 = tpu.matmul %578, %521, %cst_277 {dimension_numbers = #tpu.dot_dimension_numbers<[1], [1], [0], [0], [0, 0, 1, 0], [], []>} : vector<108x128xbf16>, vector<32x128xbf16>, vector<108x32xf32> -> vector<108x32xf32>
    %580 = arith.truncf %579 : vector<108x32xf32> to vector<108x32xbf16>
    %c7_278 = arith.constant 7 : index
    %c0_279 = arith.constant 0 : index
    %c0_280 = arith.constant 0 : index
    %581 = vector.load %arg6[%c7_278, %c0_279, %c0_280] : memref<9x32x128xbf16, #tpu.memory_space<vmem>>, vector<1x32x128xbf16>
    %582 = vector.shape_cast %581 : vector<1x32x128xbf16> to vector<32x128xbf16>
    %cst_281 = arith.constant dense<0.000000e+00> : vector<108x128xf32>
    %583 = tpu.matmul %580, %582, %cst_281 {dimension_numbers = #tpu.dot_dimension_numbers<[1], [0], [0], [1], [0, 0, 1, 1], [], []>} : vector<108x32xbf16>, vector<32x128xbf16>, vector<108x128xf32> -> vector<108x128xf32>
    %584 = arith.addf %576, %583 : vector<108x128xf32>
    %c8 = arith.constant 8 : index
    %c0_282 = arith.constant 0 : index
    %c0_283 = arith.constant 0 : index
    %585 = vector.load %arg5[%c8, %c0_282, %c0_283] : memref<9x108x128xbf16, #tpu.memory_space<vmem>>, vector<1x108x128xbf16>
    %586 = vector.shape_cast %585 : vector<1x108x128xbf16> to vector<108x128xbf16>
    %cst_284 = arith.constant dense<0.000000e+00> : vector<108x32xf32>
    %587 = tpu.matmul %586, %521, %cst_284 {dimension_numbers = #tpu.dot_dimension_numbers<[1], [1], [0], [0], [0, 0, 1, 0], [], []>} : vector<108x128xbf16>, vector<32x128xbf16>, vector<108x32xf32> -> vector<108x32xf32>
    %588 = arith.truncf %587 : vector<108x32xf32> to vector<108x32xbf16>
    %c8_285 = arith.constant 8 : index
    %c0_286 = arith.constant 0 : index
    %c0_287 = arith.constant 0 : index
    %589 = vector.load %arg6[%c8_285, %c0_286, %c0_287] : memref<9x32x128xbf16, #tpu.memory_space<vmem>>, vector<1x32x128xbf16>
    %590 = vector.shape_cast %589 : vector<1x32x128xbf16> to vector<32x128xbf16>
    %cst_288 = arith.constant dense<0.000000e+00> : vector<108x128xf32>
    %591 = tpu.matmul %588, %590, %cst_288 {dimension_numbers = #tpu.dot_dimension_numbers<[1], [0], [0], [1], [0, 0, 1, 1], [], []>} : vector<108x32xbf16>, vector<32x128xbf16>, vector<108x128xf32> -> vector<108x128xf32>
    %592 = arith.addf %584, %591 : vector<108x128xf32>
    %cst_289 = arith.constant dense<0.000000e+00> : vector<128xf32>
    %593 = vector.multi_reduction <add>, %592, %cst_289 [0] : vector<108x128xf32> to vector<128xf32>
    %594 = vector.shape_cast %593 : vector<128xf32> to vector<1x128xf32>
    %cst_290 = arith.constant 0.00925925932 : f32
    %595 = vector.broadcast %cst_290 : f32 to vector<1x128xf32>
    %596 = arith.mulf %594, %595 : vector<1x128xf32>
    %597 = vector.broadcast %596 : vector<1x128xf32> to vector<108x128xf32>
    %598 = arith.subf %592, %597 : vector<108x128xf32>
    %599 = arith.mulf %598, %598 : vector<108x128xf32>
    %cst_291 = arith.constant dense<0.000000e+00> : vector<128xf32>
    %600 = vector.multi_reduction <add>, %599, %cst_291 [0] : vector<108x128xf32> to vector<128xf32>
    %601 = vector.shape_cast %600 : vector<128xf32> to vector<1x128xf32>
    %cst_292 = arith.constant 0.00925925932 : f32
    %602 = vector.broadcast %cst_292 : f32 to vector<1x128xf32>
    %603 = arith.mulf %601, %602 : vector<1x128xf32>
    %cst_293 = arith.constant 9.99999974E-6 : f32
    %604 = vector.broadcast %cst_293 : f32 to vector<1x128xf32>
    %605 = arith.addf %603, %604 : vector<1x128xf32>
    %606 = math.rsqrt %605 : vector<1x128xf32>
    %607 = vector.broadcast %606 : vector<1x128xf32> to vector<108x128xf32>
    %608 = arith.mulf %598, %607 : vector<108x128xf32>
    %cst_294 = arith.constant 0.000000e+00 : f32
    %609 = vector.broadcast %cst_294 : f32 to vector<108x128xf32>
    %610 = arith.cmpf oge, %608, %609 : vector<108x128xf32>
    %cst_295 = arith.constant 0.00999999977 : f32
    %611 = vector.broadcast %cst_295 : f32 to vector<108x128xf32>
    %612 = arith.mulf %611, %608 : vector<108x128xf32>
    %613 = arith.select %610, %608, %612 : vector<108x128xi1>, vector<108x128xf32>
    %614 = arith.truncf %613 : vector<108x128xf32> to vector<108x128xbf16>
    %c0_296 = arith.constant 0 : index
    %c0_297 = arith.constant 0 : index
    %615 = vector.load %arg7[%c0_296, %c0_297] : memref<128x64xbf16, #tpu.memory_space<vmem>>, vector<128x64xbf16>
    %cst_298 = arith.constant dense<0.000000e+00> : vector<108x64xf32>
    %616 = tpu.matmul %614, %615, %cst_298 {dimension_numbers = #tpu.dot_dimension_numbers<[1], [0], [0], [1], [0, 0, 1, 1], [], []>} : vector<108x128xbf16>, vector<128x64xbf16>, vector<108x64xf32> -> vector<108x64xf32>
    %cst_299 = arith.constant dense<0.000000e+00> : vector<64xf32>
    %617 = vector.multi_reduction <add>, %616, %cst_299 [0] : vector<108x64xf32> to vector<64xf32>
    %618 = vector.shape_cast %617 : vector<64xf32> to vector<1x64xf32>
    %cst_300 = arith.constant 0.00925925932 : f32
    %619 = vector.broadcast %cst_300 : f32 to vector<1x64xf32>
    %620 = arith.mulf %618, %619 : vector<1x64xf32>
    %621 = vector.broadcast %620 : vector<1x64xf32> to vector<108x64xf32>
    %622 = arith.subf %616, %621 : vector<108x64xf32>
    %623 = arith.mulf %622, %622 : vector<108x64xf32>
    %cst_301 = arith.constant dense<0.000000e+00> : vector<64xf32>
    %624 = vector.multi_reduction <add>, %623, %cst_301 [0] : vector<108x64xf32> to vector<64xf32>
    %625 = vector.shape_cast %624 : vector<64xf32> to vector<1x64xf32>
    %cst_302 = arith.constant 0.00925925932 : f32
    %626 = vector.broadcast %cst_302 : f32 to vector<1x64xf32>
    %627 = arith.mulf %625, %626 : vector<1x64xf32>
    %cst_303 = arith.constant 9.99999974E-6 : f32
    %628 = vector.broadcast %cst_303 : f32 to vector<1x64xf32>
    %629 = arith.addf %627, %628 : vector<1x64xf32>
    %630 = math.rsqrt %629 : vector<1x64xf32>
    %631 = vector.broadcast %630 : vector<1x64xf32> to vector<108x64xf32>
    %632 = arith.mulf %622, %631 : vector<108x64xf32>
    %cst_304 = arith.constant 0.000000e+00 : f32
    %633 = vector.broadcast %cst_304 : f32 to vector<108x64xf32>
    %634 = arith.cmpf oge, %632, %633 : vector<108x64xf32>
    %cst_305 = arith.constant 0.00999999977 : f32
    %635 = vector.broadcast %cst_305 : f32 to vector<108x64xf32>
    %636 = arith.mulf %635, %632 : vector<108x64xf32>
    %637 = arith.select %634, %632, %636 : vector<108x64xi1>, vector<108x64xf32>
    %638 = arith.truncf %637 : vector<108x64xf32> to vector<108x64xbf16>
    %c0_306 = arith.constant 0 : index
    %c0_307 = arith.constant 0 : index
    %639 = vector.load %arg8[%c0_306, %c0_307] : memref<64x64xbf16, #tpu.memory_space<vmem>>, vector<64x64xbf16>
    %cst_308 = arith.constant dense<0.000000e+00> : vector<108x64xf32>
    %640 = tpu.matmul %638, %639, %cst_308 {dimension_numbers = #tpu.dot_dimension_numbers<[1], [0], [0], [1], [0, 0, 1, 1], [], []>} : vector<108x64xbf16>, vector<64x64xbf16>, vector<108x64xf32> -> vector<108x64xf32>
    %cst_309 = arith.constant dense<0.000000e+00> : vector<64xf32>
    %641 = vector.multi_reduction <add>, %640, %cst_309 [0] : vector<108x64xf32> to vector<64xf32>
    %642 = vector.shape_cast %641 : vector<64xf32> to vector<1x64xf32>
    %cst_310 = arith.constant 0.00925925932 : f32
    %643 = vector.broadcast %cst_310 : f32 to vector<1x64xf32>
    %644 = arith.mulf %642, %643 : vector<1x64xf32>
    %645 = vector.broadcast %644 : vector<1x64xf32> to vector<108x64xf32>
    %646 = arith.subf %640, %645 : vector<108x64xf32>
    %647 = arith.mulf %646, %646 : vector<108x64xf32>
    %cst_311 = arith.constant dense<0.000000e+00> : vector<64xf32>
    %648 = vector.multi_reduction <add>, %647, %cst_311 [0] : vector<108x64xf32> to vector<64xf32>
    %649 = vector.shape_cast %648 : vector<64xf32> to vector<1x64xf32>
    %cst_312 = arith.constant 0.00925925932 : f32
    %650 = vector.broadcast %cst_312 : f32 to vector<1x64xf32>
    %651 = arith.mulf %649, %650 : vector<1x64xf32>
    %cst_313 = arith.constant 9.99999974E-6 : f32
    %652 = vector.broadcast %cst_313 : f32 to vector<1x64xf32>
    %653 = arith.addf %651, %652 : vector<1x64xf32>
    %654 = math.rsqrt %653 : vector<1x64xf32>
    %655 = vector.broadcast %654 : vector<1x64xf32> to vector<108x64xf32>
    %656 = arith.mulf %646, %655 : vector<108x64xf32>
    %cst_314 = arith.constant 0.000000e+00 : f32
    %657 = vector.broadcast %cst_314 : f32 to vector<108x64xf32>
    %658 = arith.cmpf oge, %656, %657 : vector<108x64xf32>
    %cst_315 = arith.constant 0.00999999977 : f32
    %659 = vector.broadcast %cst_315 : f32 to vector<108x64xf32>
    %660 = arith.mulf %659, %656 : vector<108x64xf32>
    %661 = arith.select %658, %656, %660 : vector<108x64xi1>, vector<108x64xf32>
    %662 = arith.truncf %661 : vector<108x64xf32> to vector<108x64xbf16>
    %c0_316 = arith.constant 0 : index
    %c0_317 = arith.constant 0 : index
    %663 = vector.load %arg9[%c0_316, %c0_317] : memref<64x128xbf16, #tpu.memory_space<vmem>>, vector<64x128xbf16>
    %cst_318 = arith.constant dense<0.000000e+00> : vector<108x128xf32>
    %664 = tpu.matmul %662, %663, %cst_318 {dimension_numbers = #tpu.dot_dimension_numbers<[1], [0], [0], [1], [0, 0, 1, 1], [], []>} : vector<108x64xbf16>, vector<64x128xbf16>, vector<108x128xf32> -> vector<108x128xf32>
    %cst_319 = arith.constant dense<0.000000e+00> : vector<128xf32>
    %665 = vector.multi_reduction <add>, %664, %cst_319 [0] : vector<108x128xf32> to vector<128xf32>
    %666 = vector.shape_cast %665 : vector<128xf32> to vector<1x128xf32>
    %cst_320 = arith.constant 0.00925925932 : f32
    %667 = vector.broadcast %cst_320 : f32 to vector<1x128xf32>
    %668 = arith.mulf %666, %667 : vector<1x128xf32>
    %669 = vector.broadcast %668 : vector<1x128xf32> to vector<108x128xf32>
    %670 = arith.subf %664, %669 : vector<108x128xf32>
    %671 = arith.mulf %670, %670 : vector<108x128xf32>
    %cst_321 = arith.constant dense<0.000000e+00> : vector<128xf32>
    %672 = vector.multi_reduction <add>, %671, %cst_321 [0] : vector<108x128xf32> to vector<128xf32>
    %673 = vector.shape_cast %672 : vector<128xf32> to vector<1x128xf32>
    %cst_322 = arith.constant 0.00925925932 : f32
    %674 = vector.broadcast %cst_322 : f32 to vector<1x128xf32>
    %675 = arith.mulf %673, %674 : vector<1x128xf32>
    %cst_323 = arith.constant 9.99999974E-6 : f32
    %676 = vector.broadcast %cst_323 : f32 to vector<1x128xf32>
    %677 = arith.addf %675, %676 : vector<1x128xf32>
    %678 = math.rsqrt %677 : vector<1x128xf32>
    %679 = vector.broadcast %678 : vector<1x128xf32> to vector<108x128xf32>
    %680 = arith.mulf %670, %679 : vector<108x128xf32>
    %cst_324 = arith.constant 0.000000e+00 : f32
    %681 = vector.broadcast %cst_324 : f32 to vector<108x128xf32>
    %682 = arith.cmpf oge, %680, %681 : vector<108x128xf32>
    %cst_325 = arith.constant 0.00999999977 : f32
    %683 = vector.broadcast %cst_325 : f32 to vector<108x128xf32>
    %684 = arith.mulf %683, %680 : vector<108x128xf32>
    %685 = arith.select %682, %680, %684 : vector<108x128xi1>, vector<108x128xf32>
    %c0_326 = arith.constant 0 : index
    %c0_327 = arith.constant 0 : index
    %c0_328 = arith.constant 0 : index
    %686 = vector.load %arg13[%c0_326, %c0_327, %c0_328] : memref<2x108x128xf32, #tpu.memory_space<vmem>>, vector<1x108x128xf32>
    %687 = vector.shape_cast %686 : vector<1x108x128xf32> to vector<108x128xf32>
    %688 = vector.shape_cast %685 : vector<108x128xf32> to vector<1x108x128xf32>
    tpu.vector_store %arg13[%c0_326, %c0_327, %c0_328], %688 {strides = array<i32>} : memref<2x108x128xf32, #tpu.memory_space<vmem>>, vector<1x108x128xf32>,
    %689 = vector.extract_strided_slice %514 {offsets = [0, 128], sizes = [32, 128], strides = [1, 1]} : vector<32x256xf32> to vector<32x128xf32>
    %690 = arith.truncf %689 : vector<32x128xf32> to vector<32x128xbf16>
    %c0_329 = arith.constant 0 : index
    %c0_330 = arith.constant 0 : index
    %c0_331 = arith.constant 0 : index
    %691 = vector.load %arg5[%c0_329, %c0_330, %c0_331] : memref<9x108x128xbf16, #tpu.memory_space<vmem>>, vector<1x108x128xbf16>
    %692 = vector.shape_cast %691 : vector<1x108x128xbf16> to vector<108x128xbf16>
    %cst_332 = arith.constant dense<0.000000e+00> : vector<108x32xf32>
    %693 = tpu.matmul %692, %690, %cst_332 {dimension_numbers = #tpu.dot_dimension_numbers<[1], [1], [0], [0], [0, 0, 1, 0], [], []>} : vector<108x128xbf16>, vector<32x128xbf16>, vector<108x32xf32> -> vector<108x32xf32>
    %694 = arith.truncf %693 : vector<108x32xf32> to vector<108x32xbf16>
    %c0_333 = arith.constant 0 : index
    %c0_334 = arith.constant 0 : index
    %c0_335 = arith.constant 0 : index
    %695 = vector.load %arg6[%c0_333, %c0_334, %c0_335] : memref<9x32x128xbf16, #tpu.memory_space<vmem>>, vector<1x32x128xbf16>
    %696 = vector.shape_cast %695 : vector<1x32x128xbf16> to vector<32x128xbf16>
    %cst_336 = arith.constant dense<0.000000e+00> : vector<108x128xf32>
    %697 = tpu.matmul %694, %696, %cst_336 {dimension_numbers = #tpu.dot_dimension_numbers<[1], [0], [0], [1], [0, 0, 1, 1], [], []>} : vector<108x32xbf16>, vector<32x128xbf16>, vector<108x128xf32> -> vector<108x128xf32>
    %c1_337 = arith.constant 1 : index
    %c0_338 = arith.constant 0 : index
    %c0_339 = arith.constant 0 : index
    %698 = vector.load %arg5[%c1_337, %c0_338, %c0_339] : memref<9x108x128xbf16, #tpu.memory_space<vmem>>, vector<1x108x128xbf16>
    %699 = vector.shape_cast %698 : vector<1x108x128xbf16> to vector<108x128xbf16>
    %cst_340 = arith.constant dense<0.000000e+00> : vector<108x32xf32>
    %700 = tpu.matmul %699, %690, %cst_340 {dimension_numbers = #tpu.dot_dimension_numbers<[1], [1], [0], [0], [0, 0, 1, 0], [], []>} : vector<108x128xbf16>, vector<32x128xbf16>, vector<108x32xf32> -> vector<108x32xf32>
    %701 = arith.truncf %700 : vector<108x32xf32> to vector<108x32xbf16>
    %c1_341 = arith.constant 1 : index
    %c0_342 = arith.constant 0 : index
    %c0_343 = arith.constant 0 : index
    %702 = vector.load %arg6[%c1_341, %c0_342, %c0_343] : memref<9x32x128xbf16, #tpu.memory_space<vmem>>, vector<1x32x128xbf16>
    %703 = vector.shape_cast %702 : vector<1x32x128xbf16> to vector<32x128xbf16>
    %cst_344 = arith.constant dense<0.000000e+00> : vector<108x128xf32>
    %704 = tpu.matmul %701, %703, %cst_344 {dimension_numbers = #tpu.dot_dimension_numbers<[1], [0], [0], [1], [0, 0, 1, 1], [], []>} : vector<108x32xbf16>, vector<32x128xbf16>, vector<108x128xf32> -> vector<108x128xf32>
    %705 = arith.addf %697, %704 : vector<108x128xf32>
    %c2_345 = arith.constant 2 : index
    %c0_346 = arith.constant 0 : index
    %c0_347 = arith.constant 0 : index
    %706 = vector.load %arg5[%c2_345, %c0_346, %c0_347] : memref<9x108x128xbf16, #tpu.memory_space<vmem>>, vector<1x108x128xbf16>
    %707 = vector.shape_cast %706 : vector<1x108x128xbf16> to vector<108x128xbf16>
    %cst_348 = arith.constant dense<0.000000e+00> : vector<108x32xf32>
    %708 = tpu.matmul %707, %690, %cst_348 {dimension_numbers = #tpu.dot_dimension_numbers<[1], [1], [0], [0], [0, 0, 1, 0], [], []>} : vector<108x128xbf16>, vector<32x128xbf16>, vector<108x32xf32> -> vector<108x32xf32>
    %709 = arith.truncf %708 : vector<108x32xf32> to vector<108x32xbf16>
    %c2_349 = arith.constant 2 : index
    %c0_350 = arith.constant 0 : index
    %c0_351 = arith.constant 0 : index
    %710 = vector.load %arg6[%c2_349, %c0_350, %c0_351] : memref<9x32x128xbf16, #tpu.memory_space<vmem>>, vector<1x32x128xbf16>
    %711 = vector.shape_cast %710 : vector<1x32x128xbf16> to vector<32x128xbf16>
    %cst_352 = arith.constant dense<0.000000e+00> : vector<108x128xf32>
    %712 = tpu.matmul %709, %711, %cst_352 {dimension_numbers = #tpu.dot_dimension_numbers<[1], [0], [0], [1], [0, 0, 1, 1], [], []>} : vector<108x32xbf16>, vector<32x128xbf16>, vector<108x128xf32> -> vector<108x128xf32>
    %713 = arith.addf %705, %712 : vector<108x128xf32>
    %c3_353 = arith.constant 3 : index
    %c0_354 = arith.constant 0 : index
    %c0_355 = arith.constant 0 : index
    %714 = vector.load %arg5[%c3_353, %c0_354, %c0_355] : memref<9x108x128xbf16, #tpu.memory_space<vmem>>, vector<1x108x128xbf16>
    %715 = vector.shape_cast %714 : vector<1x108x128xbf16> to vector<108x128xbf16>
    %cst_356 = arith.constant dense<0.000000e+00> : vector<108x32xf32>
    %716 = tpu.matmul %715, %690, %cst_356 {dimension_numbers = #tpu.dot_dimension_numbers<[1], [1], [0], [0], [0, 0, 1, 0], [], []>} : vector<108x128xbf16>, vector<32x128xbf16>, vector<108x32xf32> -> vector<108x32xf32>
    %717 = arith.truncf %716 : vector<108x32xf32> to vector<108x32xbf16>
    %c3_357 = arith.constant 3 : index
    %c0_358 = arith.constant 0 : index
    %c0_359 = arith.constant 0 : index
    %718 = vector.load %arg6[%c3_357, %c0_358, %c0_359] : memref<9x32x128xbf16, #tpu.memory_space<vmem>>, vector<1x32x128xbf16>
    %719 = vector.shape_cast %718 : vector<1x32x128xbf16> to vector<32x128xbf16>
    %cst_360 = arith.constant dense<0.000000e+00> : vector<108x128xf32>
    %720 = tpu.matmul %717, %719, %cst_360 {dimension_numbers = #tpu.dot_dimension_numbers<[1], [0], [0], [1], [0, 0, 1, 1], [], []>} : vector<108x32xbf16>, vector<32x128xbf16>, vector<108x128xf32> -> vector<108x128xf32>
    %721 = arith.addf %713, %720 : vector<108x128xf32>
    %c4_361 = arith.constant 4 : index
    %c0_362 = arith.constant 0 : index
    %c0_363 = arith.constant 0 : index
    %722 = vector.load %arg5[%c4_361, %c0_362, %c0_363] : memref<9x108x128xbf16, #tpu.memory_space<vmem>>, vector<1x108x128xbf16>
    %723 = vector.shape_cast %722 : vector<1x108x128xbf16> to vector<108x128xbf16>
    %cst_364 = arith.constant dense<0.000000e+00> : vector<108x32xf32>
    %724 = tpu.matmul %723, %690, %cst_364 {dimension_numbers = #tpu.dot_dimension_numbers<[1], [1], [0], [0], [0, 0, 1, 0], [], []>} : vector<108x128xbf16>, vector<32x128xbf16>, vector<108x32xf32> -> vector<108x32xf32>
    %725 = arith.truncf %724 : vector<108x32xf32> to vector<108x32xbf16>
    %c4_365 = arith.constant 4 : index
    %c0_366 = arith.constant 0 : index
    %c0_367 = arith.constant 0 : index
    %726 = vector.load %arg6[%c4_365, %c0_366, %c0_367] : memref<9x32x128xbf16, #tpu.memory_space<vmem>>, vector<1x32x128xbf16>
    %727 = vector.shape_cast %726 : vector<1x32x128xbf16> to vector<32x128xbf16>
    %cst_368 = arith.constant dense<0.000000e+00> : vector<108x128xf32>
    %728 = tpu.matmul %725, %727, %cst_368 {dimension_numbers = #tpu.dot_dimension_numbers<[1], [0], [0], [1], [0, 0, 1, 1], [], []>} : vector<108x32xbf16>, vector<32x128xbf16>, vector<108x128xf32> -> vector<108x128xf32>
    %729 = arith.addf %721, %728 : vector<108x128xf32>
    %c5_369 = arith.constant 5 : index
    %c0_370 = arith.constant 0 : index
    %c0_371 = arith.constant 0 : index
    %730 = vector.load %arg5[%c5_369, %c0_370, %c0_371] : memref<9x108x128xbf16, #tpu.memory_space<vmem>>, vector<1x108x128xbf16>
    %731 = vector.shape_cast %730 : vector<1x108x128xbf16> to vector<108x128xbf16>
    %cst_372 = arith.constant dense<0.000000e+00> : vector<108x32xf32>
    %732 = tpu.matmul %731, %690, %cst_372 {dimension_numbers = #tpu.dot_dimension_numbers<[1], [1], [0], [0], [0, 0, 1, 0], [], []>} : vector<108x128xbf16>, vector<32x128xbf16>, vector<108x32xf32> -> vector<108x32xf32>
    %733 = arith.truncf %732 : vector<108x32xf32> to vector<108x32xbf16>
    %c5_373 = arith.constant 5 : index
    %c0_374 = arith.constant 0 : index
    %c0_375 = arith.constant 0 : index
    %734 = vector.load %arg6[%c5_373, %c0_374, %c0_375] : memref<9x32x128xbf16, #tpu.memory_space<vmem>>, vector<1x32x128xbf16>
    %735 = vector.shape_cast %734 : vector<1x32x128xbf16> to vector<32x128xbf16>
    %cst_376 = arith.constant dense<0.000000e+00> : vector<108x128xf32>
    %736 = tpu.matmul %733, %735, %cst_376 {dimension_numbers = #tpu.dot_dimension_numbers<[1], [0], [0], [1], [0, 0, 1, 1], [], []>} : vector<108x32xbf16>, vector<32x128xbf16>, vector<108x128xf32> -> vector<108x128xf32>
    %737 = arith.addf %729, %736 : vector<108x128xf32>
    %c6_377 = arith.constant 6 : index
    %c0_378 = arith.constant 0 : index
    %c0_379 = arith.constant 0 : index
    %738 = vector.load %arg5[%c6_377, %c0_378, %c0_379] : memref<9x108x128xbf16, #tpu.memory_space<vmem>>, vector<1x108x128xbf16>
    %739 = vector.shape_cast %738 : vector<1x108x128xbf16> to vector<108x128xbf16>
    %cst_380 = arith.constant dense<0.000000e+00> : vector<108x32xf32>
    %740 = tpu.matmul %739, %690, %cst_380 {dimension_numbers = #tpu.dot_dimension_numbers<[1], [1], [0], [0], [0, 0, 1, 0], [], []>} : vector<108x128xbf16>, vector<32x128xbf16>, vector<108x32xf32> -> vector<108x32xf32>
    %741 = arith.truncf %740 : vector<108x32xf32> to vector<108x32xbf16>
    %c6_381 = arith.constant 6 : index
    %c0_382 = arith.constant 0 : index
    %c0_383 = arith.constant 0 : index
    %742 = vector.load %arg6[%c6_381, %c0_382, %c0_383] : memref<9x32x128xbf16, #tpu.memory_space<vmem>>, vector<1x32x128xbf16>
    %743 = vector.shape_cast %742 : vector<1x32x128xbf16> to vector<32x128xbf16>
    %cst_384 = arith.constant dense<0.000000e+00> : vector<108x128xf32>
    %744 = tpu.matmul %741, %743, %cst_384 {dimension_numbers = #tpu.dot_dimension_numbers<[1], [0], [0], [1], [0, 0, 1, 1], [], []>} : vector<108x32xbf16>, vector<32x128xbf16>, vector<108x128xf32> -> vector<108x128xf32>
    %745 = arith.addf %737, %744 : vector<108x128xf32>
    %c7_385 = arith.constant 7 : index
    %c0_386 = arith.constant 0 : index
    %c0_387 = arith.constant 0 : index
    %746 = vector.load %arg5[%c7_385, %c0_386, %c0_387] : memref<9x108x128xbf16, #tpu.memory_space<vmem>>, vector<1x108x128xbf16>
    %747 = vector.shape_cast %746 : vector<1x108x128xbf16> to vector<108x128xbf16>
    %cst_388 = arith.constant dense<0.000000e+00> : vector<108x32xf32>
    %748 = tpu.matmul %747, %690, %cst_388 {dimension_numbers = #tpu.dot_dimension_numbers<[1], [1], [0], [0], [0, 0, 1, 0], [], []>} : vector<108x128xbf16>, vector<32x128xbf16>, vector<108x32xf32> -> vector<108x32xf32>
    %749 = arith.truncf %748 : vector<108x32xf32> to vector<108x32xbf16>
    %c7_389 = arith.constant 7 : index
    %c0_390 = arith.constant 0 : index
    %c0_391 = arith.constant 0 : index
    %750 = vector.load %arg6[%c7_389, %c0_390, %c0_391] : memref<9x32x128xbf16, #tpu.memory_space<vmem>>, vector<1x32x128xbf16>
    %751 = vector.shape_cast %750 : vector<1x32x128xbf16> to vector<32x128xbf16>
    %cst_392 = arith.constant dense<0.000000e+00> : vector<108x128xf32>
    %752 = tpu.matmul %749, %751, %cst_392 {dimension_numbers = #tpu.dot_dimension_numbers<[1], [0], [0], [1], [0, 0, 1, 1], [], []>} : vector<108x32xbf16>, vector<32x128xbf16>, vector<108x128xf32> -> vector<108x128xf32>
    %753 = arith.addf %745, %752 : vector<108x128xf32>
    %c8_393 = arith.constant 8 : index
    %c0_394 = arith.constant 0 : index
    %c0_395 = arith.constant 0 : index
    %754 = vector.load %arg5[%c8_393, %c0_394, %c0_395] : memref<9x108x128xbf16, #tpu.memory_space<vmem>>, vector<1x108x128xbf16>
    %755 = vector.shape_cast %754 : vector<1x108x128xbf16> to vector<108x128xbf16>
    %cst_396 = arith.constant dense<0.000000e+00> : vector<108x32xf32>
    %756 = tpu.matmul %755, %690, %cst_396 {dimension_numbers = #tpu.dot_dimension_numbers<[1], [1], [0], [0], [0, 0, 1, 0], [], []>} : vector<108x128xbf16>, vector<32x128xbf16>, vector<108x32xf32> -> vector<108x32xf32>
    %757 = arith.truncf %756 : vector<108x32xf32> to vector<108x32xbf16>
    %c8_397 = arith.constant 8 : index
    %c0_398 = arith.constant 0 : index
    %c0_399 = arith.constant 0 : index
    %758 = vector.load %arg6[%c8_397, %c0_398, %c0_399] : memref<9x32x128xbf16, #tpu.memory_space<vmem>>, vector<1x32x128xbf16>
    %759 = vector.shape_cast %758 : vector<1x32x128xbf16> to vector<32x128xbf16>
    %cst_400 = arith.constant dense<0.000000e+00> : vector<108x128xf32>
    %760 = tpu.matmul %757, %759, %cst_400 {dimension_numbers = #tpu.dot_dimension_numbers<[1], [0], [0], [1], [0, 0, 1, 1], [], []>} : vector<108x32xbf16>, vector<32x128xbf16>, vector<108x128xf32> -> vector<108x128xf32>
    %761 = arith.addf %753, %760 : vector<108x128xf32>
    %cst_401 = arith.constant dense<0.000000e+00> : vector<128xf32>
    %762 = vector.multi_reduction <add>, %761, %cst_401 [0] : vector<108x128xf32> to vector<128xf32>
    %763 = vector.shape_cast %762 : vector<128xf32> to vector<1x128xf32>
    %cst_402 = arith.constant 0.00925925932 : f32
    %764 = vector.broadcast %cst_402 : f32 to vector<1x128xf32>
    %765 = arith.mulf %763, %764 : vector<1x128xf32>
    %766 = vector.broadcast %765 : vector<1x128xf32> to vector<108x128xf32>
    %767 = arith.subf %761, %766 : vector<108x128xf32>
    %768 = arith.mulf %767, %767 : vector<108x128xf32>
    %cst_403 = arith.constant dense<0.000000e+00> : vector<128xf32>
    %769 = vector.multi_reduction <add>, %768, %cst_403 [0] : vector<108x128xf32> to vector<128xf32>
    %770 = vector.shape_cast %769 : vector<128xf32> to vector<1x128xf32>
    %cst_404 = arith.constant 0.00925925932 : f32
    %771 = vector.broadcast %cst_404 : f32 to vector<1x128xf32>
    %772 = arith.mulf %770, %771 : vector<1x128xf32>
    %cst_405 = arith.constant 9.99999974E-6 : f32
    %773 = vector.broadcast %cst_405 : f32 to vector<1x128xf32>
    %774 = arith.addf %772, %773 : vector<1x128xf32>
    %775 = math.rsqrt %774 : vector<1x128xf32>
    %776 = vector.broadcast %775 : vector<1x128xf32> to vector<108x128xf32>
    %777 = arith.mulf %767, %776 : vector<108x128xf32>
    %cst_406 = arith.constant 0.000000e+00 : f32
    %778 = vector.broadcast %cst_406 : f32 to vector<108x128xf32>
    %779 = arith.cmpf oge, %777, %778 : vector<108x128xf32>
    %cst_407 = arith.constant 0.00999999977 : f32
    %780 = vector.broadcast %cst_407 : f32 to vector<108x128xf32>
    %781 = arith.mulf %780, %777 : vector<108x128xf32>
    %782 = arith.select %779, %777, %781 : vector<108x128xi1>, vector<108x128xf32>
    %783 = arith.truncf %782 : vector<108x128xf32> to vector<108x128xbf16>
    %c0_408 = arith.constant 0 : index
    %c0_409 = arith.constant 0 : index
    %784 = vector.load %arg7[%c0_408, %c0_409] : memref<128x64xbf16, #tpu.memory_space<vmem>>, vector<128x64xbf16>
    %cst_410 = arith.constant dense<0.000000e+00> : vector<108x64xf32>
    %785 = tpu.matmul %783, %784, %cst_410 {dimension_numbers = #tpu.dot_dimension_numbers<[1], [0], [0], [1], [0, 0, 1, 1], [], []>} : vector<108x128xbf16>, vector<128x64xbf16>, vector<108x64xf32> -> vector<108x64xf32>
    %cst_411 = arith.constant dense<0.000000e+00> : vector<64xf32>
    %786 = vector.multi_reduction <add>, %785, %cst_411 [0] : vector<108x64xf32> to vector<64xf32>
    %787 = vector.shape_cast %786 : vector<64xf32> to vector<1x64xf32>
    %cst_412 = arith.constant 0.00925925932 : f32
    %788 = vector.broadcast %cst_412 : f32 to vector<1x64xf32>
    %789 = arith.mulf %787, %788 : vector<1x64xf32>
    %790 = vector.broadcast %789 : vector<1x64xf32> to vector<108x64xf32>
    %791 = arith.subf %785, %790 : vector<108x64xf32>
    %792 = arith.mulf %791, %791 : vector<108x64xf32>
    %cst_413 = arith.constant dense<0.000000e+00> : vector<64xf32>
    %793 = vector.multi_reduction <add>, %792, %cst_413 [0] : vector<108x64xf32> to vector<64xf32>
    %794 = vector.shape_cast %793 : vector<64xf32> to vector<1x64xf32>
    %cst_414 = arith.constant 0.00925925932 : f32
    %795 = vector.broadcast %cst_414 : f32 to vector<1x64xf32>
    %796 = arith.mulf %794, %795 : vector<1x64xf32>
    %cst_415 = arith.constant 9.99999974E-6 : f32
    %797 = vector.broadcast %cst_415 : f32 to vector<1x64xf32>
    %798 = arith.addf %796, %797 : vector<1x64xf32>
    %799 = math.rsqrt %798 : vector<1x64xf32>
    %800 = vector.broadcast %799 : vector<1x64xf32> to vector<108x64xf32>
    %801 = arith.mulf %791, %800 : vector<108x64xf32>
    %cst_416 = arith.constant 0.000000e+00 : f32
    %802 = vector.broadcast %cst_416 : f32 to vector<108x64xf32>
    %803 = arith.cmpf oge, %801, %802 : vector<108x64xf32>
    %cst_417 = arith.constant 0.00999999977 : f32
    %804 = vector.broadcast %cst_417 : f32 to vector<108x64xf32>
    %805 = arith.mulf %804, %801 : vector<108x64xf32>
    %806 = arith.select %803, %801, %805 : vector<108x64xi1>, vector<108x64xf32>
    %807 = arith.truncf %806 : vector<108x64xf32> to vector<108x64xbf16>
    %c0_418 = arith.constant 0 : index
    %c0_419 = arith.constant 0 : index
    %808 = vector.load %arg8[%c0_418, %c0_419] : memref<64x64xbf16, #tpu.memory_space<vmem>>, vector<64x64xbf16>
    %cst_420 = arith.constant dense<0.000000e+00> : vector<108x64xf32>
    %809 = tpu.matmul %807, %808, %cst_420 {dimension_numbers = #tpu.dot_dimension_numbers<[1], [0], [0], [1], [0, 0, 1, 1], [], []>} : vector<108x64xbf16>, vector<64x64xbf16>, vector<108x64xf32> -> vector<108x64xf32>
    %cst_421 = arith.constant dense<0.000000e+00> : vector<64xf32>
    %810 = vector.multi_reduction <add>, %809, %cst_421 [0] : vector<108x64xf32> to vector<64xf32>
    %811 = vector.shape_cast %810 : vector<64xf32> to vector<1x64xf32>
    %cst_422 = arith.constant 0.00925925932 : f32
    %812 = vector.broadcast %cst_422 : f32 to vector<1x64xf32>
    %813 = arith.mulf %811, %812 : vector<1x64xf32>
    %814 = vector.broadcast %813 : vector<1x64xf32> to vector<108x64xf32>
    %815 = arith.subf %809, %814 : vector<108x64xf32>
    %816 = arith.mulf %815, %815 : vector<108x64xf32>
    %cst_423 = arith.constant dense<0.000000e+00> : vector<64xf32>
    %817 = vector.multi_reduction <add>, %816, %cst_423 [0] : vector<108x64xf32> to vector<64xf32>
    %818 = vector.shape_cast %817 : vector<64xf32> to vector<1x64xf32>
    %cst_424 = arith.constant 0.00925925932 : f32
    %819 = vector.broadcast %cst_424 : f32 to vector<1x64xf32>
    %820 = arith.mulf %818, %819 : vector<1x64xf32>
    %cst_425 = arith.constant 9.99999974E-6 : f32
    %821 = vector.broadcast %cst_425 : f32 to vector<1x64xf32>
    %822 = arith.addf %820, %821 : vector<1x64xf32>
    %823 = math.rsqrt %822 : vector<1x64xf32>
    %824 = vector.broadcast %823 : vector<1x64xf32> to vector<108x64xf32>
    %825 = arith.mulf %815, %824 : vector<108x64xf32>
    %cst_426 = arith.constant 0.000000e+00 : f32
    %826 = vector.broadcast %cst_426 : f32 to vector<108x64xf32>
    %827 = arith.cmpf oge, %825, %826 : vector<108x64xf32>
    %cst_427 = arith.constant 0.00999999977 : f32
    %828 = vector.broadcast %cst_427 : f32 to vector<108x64xf32>
    %829 = arith.mulf %828, %825 : vector<108x64xf32>
    %830 = arith.select %827, %825, %829 : vector<108x64xi1>, vector<108x64xf32>
    %831 = arith.truncf %830 : vector<108x64xf32> to vector<108x64xbf16>
    %c0_428 = arith.constant 0 : index
    %c0_429 = arith.constant 0 : index
    %832 = vector.load %arg9[%c0_428, %c0_429] : memref<64x128xbf16, #tpu.memory_space<vmem>>, vector<64x128xbf16>
    %cst_430 = arith.constant dense<0.000000e+00> : vector<108x128xf32>
    %833 = tpu.matmul %831, %832, %cst_430 {dimension_numbers = #tpu.dot_dimension_numbers<[1], [0], [0], [1], [0, 0, 1, 1], [], []>} : vector<108x64xbf16>, vector<64x128xbf16>, vector<108x128xf32> -> vector<108x128xf32>
    %cst_431 = arith.constant dense<0.000000e+00> : vector<128xf32>
    %834 = vector.multi_reduction <add>, %833, %cst_431 [0] : vector<108x128xf32> to vector<128xf32>
    %835 = vector.shape_cast %834 : vector<128xf32> to vector<1x128xf32>
    %cst_432 = arith.constant 0.00925925932 : f32
    %836 = vector.broadcast %cst_432 : f32 to vector<1x128xf32>
    %837 = arith.mulf %835, %836 : vector<1x128xf32>
    %838 = vector.broadcast %837 : vector<1x128xf32> to vector<108x128xf32>
    %839 = arith.subf %833, %838 : vector<108x128xf32>
    %840 = arith.mulf %839, %839 : vector<108x128xf32>
    %cst_433 = arith.constant dense<0.000000e+00> : vector<128xf32>
    %841 = vector.multi_reduction <add>, %840, %cst_433 [0] : vector<108x128xf32> to vector<128xf32>
    %842 = vector.shape_cast %841 : vector<128xf32> to vector<1x128xf32>
    %cst_434 = arith.constant 0.00925925932 : f32
    %843 = vector.broadcast %cst_434 : f32 to vector<1x128xf32>
    %844 = arith.mulf %842, %843 : vector<1x128xf32>
    %cst_435 = arith.constant 9.99999974E-6 : f32
    %845 = vector.broadcast %cst_435 : f32 to vector<1x128xf32>
    %846 = arith.addf %844, %845 : vector<1x128xf32>
    %847 = math.rsqrt %846 : vector<1x128xf32>
    %848 = vector.broadcast %847 : vector<1x128xf32> to vector<108x128xf32>
    %849 = arith.mulf %839, %848 : vector<108x128xf32>
    %cst_436 = arith.constant 0.000000e+00 : f32
    %850 = vector.broadcast %cst_436 : f32 to vector<108x128xf32>
    %851 = arith.cmpf oge, %849, %850 : vector<108x128xf32>
    %cst_437 = arith.constant 0.00999999977 : f32
    %852 = vector.broadcast %cst_437 : f32 to vector<108x128xf32>
    %853 = arith.mulf %852, %849 : vector<108x128xf32>
    %854 = arith.select %851, %849, %853 : vector<108x128xi1>, vector<108x128xf32>
    %c1_438 = arith.constant 1 : index
    %c0_439 = arith.constant 0 : index
    %c0_440 = arith.constant 0 : index
    %855 = vector.load %arg13[%c1_438, %c0_439, %c0_440] : memref<2x108x128xf32, #tpu.memory_space<vmem>>, vector<1x108x128xf32>
    %856 = vector.shape_cast %855 : vector<1x108x128xf32> to vector<108x128xf32>
    %857 = vector.shape_cast %854 : vector<108x128xf32> to vector<1x108x128xf32>
    tpu.vector_store %arg13[%c1_438, %c0_439, %c0_440], %857 {strides = array<i32>} : memref<2x108x128xf32, #tpu.memory_space<vmem>>, vector<1x108x128xf32>,
    return
  }
  func.func @transform_0(%arg0: i32) -> (i32, i32) {
    %c0_i32 = arith.constant 0 : i32
    %c0_i32_0 = arith.constant 0 : i32
    %c0_i32_1 = arith.constant 0 : i32
    return %c0_i32, %c0_i32_0 : i32, i32
  }
  func.func @transform_1(%arg0: i32) -> (i32, i32) {
    %c0_i32 = arith.constant 0 : i32
    %c0_i32_0 = arith.constant 0 : i32
    %c0_i32_1 = arith.constant 0 : i32
    return %c0_i32, %c0_i32_0 : i32, i32
  }
  func.func @transform_2(%arg0: i32) -> (i32, i32) {
    %c0_i32 = arith.constant 0 : i32
    %c0_i32_0 = arith.constant 0 : i32
    %c0_i32_1 = arith.constant 0 : i32
    return %c0_i32, %c0_i32_0 : i32, i32
  }
  func.func @transform_3(%arg0: i32) -> (i32, i32) {
    %c0_i32 = arith.constant 0 : i32
    %c0_i32_0 = arith.constant 0 : i32
    %c0_i32_1 = arith.constant 0 : i32
    return %c0_i32, %c0_i32_0 : i32, i32
  }
  func.func @transform_4(%arg0: i32) -> (i32, i32, i32) {
    %c0_i32 = arith.constant 0 : i32
    %c0_i32_0 = arith.constant 0 : i32
    %c0_i32_1 = arith.constant 0 : i32
    %c0_i32_2 = arith.constant 0 : i32
    return %c0_i32, %c0_i32_0, %c0_i32_1 : i32, i32, i32
  }
  func.func @transform_5(%arg0: i32) -> (i32, i32, i32) {
    %c0_i32 = arith.constant 0 : i32
    %c0_i32_0 = arith.constant 0 : i32
    %c0_i32_1 = arith.constant 0 : i32
    %c0_i32_2 = arith.constant 0 : i32
    return %c0_i32, %c0_i32_0, %c0_i32_1 : i32, i32, i32
  }
  func.func @transform_6(%arg0: i32) -> (i32, i32) {
    %c0_i32 = arith.constant 0 : i32
    %c0_i32_0 = arith.constant 0 : i32
    %c0_i32_1 = arith.constant 0 : i32
    return %c0_i32, %c0_i32_0 : i32, i32
  }
  func.func @transform_7(%arg0: i32) -> (i32, i32) {
    %c0_i32 = arith.constant 0 : i32
    %c0_i32_0 = arith.constant 0 : i32
    %c0_i32_1 = arith.constant 0 : i32
    return %c0_i32, %c0_i32_0 : i32, i32
  }
  func.func @transform_8(%arg0: i32) -> (i32, i32) {
    %c0_i32 = arith.constant 0 : i32
    %c0_i32_0 = arith.constant 0 : i32
    %c0_i32_1 = arith.constant 0 : i32
    return %c0_i32, %c0_i32_0 : i32, i32
  }
  func.func @transform_9(%arg0: i32) -> (i32, i32) {
    %c0_i32 = arith.constant 0 : i32
    %c0_i32_0 = arith.constant 0 : i32
    %c0_i32_1 = arith.constant 0 : i32
    return %c0_i32, %c0_i32_0 : i32, i32
  }
  func.func @transform_10(%arg0: i32) -> (i32, i32) {
    %c0_i32 = arith.constant 0 : i32
    %c0_i32_0 = arith.constant 0 : i32
    %c0_i32_1 = arith.constant 0 : i32
    return %c0_i32, %c0_i32_0 : i32, i32
  }
  func.func @transform_11(%arg0: i32) -> (i32, i32) {
    %c0_i32 = arith.constant 0 : i32
    %c0_i32_0 = arith.constant 0 : i32
    %c0_i32_1 = arith.constant 0 : i32
    return %c0_i32, %c0_i32_0 : i32, i32
  }
  func.func @transform_12(%arg0: i32) -> (i32, i32, i32) {
    %c0_i32 = arith.constant 0 : i32
    %c0_i32_0 = arith.constant 0 : i32
    %c0_i32_1 = arith.constant 0 : i32
    %c0_i32_2 = arith.constant 0 : i32
    return %c0_i32, %c0_i32_0, %c0_i32_1 : i32, i32, i32
  }
}

</mosaic_0001>

<bundles_post_ra>
// kernel: _lambda_.1
= control target key start
LH: loop header
LB: loop body
LE: loop exit
PB: predicated region body
PF: predicated region fallthrough
CT: control target
= control target key end

     0   :  { %18 = vsyncpa [#allocation3], 0  ;;  %s15719_s0 = inlined_call_operand.vmem [shape: f32[8,256], index: 0, kind: input, shape index: {}]   ;;  %s15720_s1 = inlined_call_operand.vmem [shape: f32[32,8], index: 1, kind: input, shape index: {}]   ;;  %s15721_s2 = inlined_call_operand.hbm [shape: f32[32,32], index: 2, kind: input, shape index: {}]   ;;  %s15722_s3 = inlined_call_operand.vmem [shape: f32[8,32], index: 3, kind: input, shape index: {}]   ;;  %s15723_s4 = inlined_call_operand.hbm [shape: bf16[9,108,128], index: 4, kind: input, shape index: {}]   ;;  %s15724_s5 = inlined_call_operand.hbm [shape: bf16[9,32,128], index: 5, kind: input, shape index: {}]   ;;  %s15725_s6 = inlined_call_operand.hbm [shape: bf16[128,64], index: 6, kind: input, shape index: {}]   ;;  %s15726_s7 = inlined_call_operand.hbm [shape: bf16[64,64], index: 7, kind: input, shape index: {}]   ;;  %s15727_s8 = inlined_call_operand.hbm [shape: bf16[64,128], index: 8, kind: input, shape index: {}]   ;;  %s15728_s9 = inlined_call_operand.vmem [shape: f32[32,256], index: 9, kind: output, shape index: {0}]   ;;  %s15729_s10 = inlined_call_operand.vmem [shape: f32[32,256], index: 10, kind: output, shape index: {1}]   ;;  %s15730_s11 = inlined_call_operand.hbm [shape: f32[8,256], index: 11, kind: output, shape index: {2}]   ;;  %s15731_s12 = inlined_call_operand.vmem [shape: f32[2,108,128], index: 12, kind: output, shape index: {3}]  }
   0x1   :  { %19 = vsyncpa [#allocation6], 0 }
   0x2   :  { %20 = vsyncpa [#allocation9], 0 }
   0x3   :  { %21 = vsyncpa [#allocation12], 0  ;;  %s46_s23 = sshll.u32 %s15723_s4, 4  ;;  %s47_s23 = int_to_ptr.hbm [resolvable:$true] %s46_s23 }
   0x4   :  { %22 = vsyncpa [#allocation4], 0  ;;  %s11869_s24 = smov [#allocation5]   ;;  %s72_s28 = sshll.u32 %s15725_s6, 4  ;;  %s73_s28 = int_to_ptr.hbm [resolvable:$true] %s72_s28 }
   0x5   :  { %s48_s25 = sshll.u32 %s11869_s24, 4  ;;  %s11870_s29 = smov 64   ;;  %s49_s25 = int_to_ptr.vmem [resolvable:$true] %s48_s25 }
   0x6   :  { %s11871_s30 = smov 4   ;;  %s11872_s13 = smov [#allocation8]  }
   0x7   :  { %54 = dma.hbm_to_vmem [thread:$0]  %s47_s23, 8064, %s49_s25, [#allocation6], %s11870_s29, %s11870_s29, %s11871_s30  }
   0x8   :  { %s74_s14 = sshll.u32 %s11872_s13, 4  ;;  %s31_s16 = sshll.u32 %s15721_s2, 4  ;;  %s75_s14 = int_to_ptr.vmem [resolvable:$true] %s74_s14  ;;  %s32_s16 = int_to_ptr.hbm [resolvable:$true] %s31_s16 }
   0x9   :  { %80 = dma.hbm_to_vmem [thread:$0]  %s73_s28, 1024, %s75_s14, [#allocation9], %s11870_s29, %s11870_s29, %s11871_s30  }
   0xa   :  { %s11873_s6 = smov [#allocation2]   ;;  %s59_s20 = sshll.u32 %s15724_s5, 4  ;;  %s60_s20 = int_to_ptr.hbm [resolvable:$true] %s59_s20 }
   0xb   :  { %s33_s17 = sshll.u32 %s11873_s6, 4  ;;  %s11874_s21 = smov 128   ;;  %s34_s17 = int_to_ptr.vmem [resolvable:$true] %s33_s17 }
   0xc   :  { %s11875_s22 = smov 8   ;;  %s11876_s23 = smov [#allocation7]  }
   0xd   :  { %39 = dma.hbm_to_vmem [thread:$0]  %s32_s16, 512, %s34_s17, [#allocation3], %s11874_s21, %s11874_s21, %s11875_s22  }
   0xe   :  { %s61_s24 = sshll.u32 %s11876_s23, 4  ;;  %s85_s26 = sshll.u32 %s15726_s7, 4  ;;  %s62_s24 = int_to_ptr.vmem [resolvable:$true] %s61_s24  ;;  %s86_s26 = int_to_ptr.hbm [resolvable:$true] %s85_s26 }
   0xf   :  { %67 = dma.hbm_to_vmem [thread:$0]  %s60_s20, 2304, %s62_s24, [#allocation6], %s11870_s29, %s11870_s29, %s11871_s30  }
  0x10   :  { %s98_s5 = sshll.u32 %s15727_s8, 4  ;;  %s11877_s13 = smov [#allocation10]   ;;  %s99_s5 = int_to_ptr.hbm [resolvable:$true] %s98_s5 }
  0x11   :  { %s87_s14 = sshll.u32 %s11877_s13, 4  ;;  %s11878_s15 = smov [#allocation11]   ;;  %s88_s14 = int_to_ptr.vmem [resolvable:$true] %s87_s14 }
  0x12   :  { %93 = dma.hbm_to_vmem [thread:$0]  %s86_s26, 512, %s88_s14, [#allocation9], %s11870_s29, %s11870_s29, %s11871_s30  }
  0x13   :  { %s100_s7 = sshll.u32 %s11878_s15, 4  ;;  %s101_s7 = int_to_ptr.vmem [resolvable:$true] %s100_s7 }
  0x14   :  { %106 = dma.hbm_to_vmem [thread:$0]  %s99_s5, 512, %s101_s7, [#allocation12], %s11870_s29, %s11870_s29, %s11871_s30  }
  0x15   :  { %11859 = dma.done.wait [#allocation3], 512  }
  0x16   :  { %11860 = vsyncadd [#allocation3], 4294966784 }
  0x17   :  { %11861 = dma.done.wait [#allocation6], 10368  }
  0x18   :  { %11862 = vsyncadd [#allocation6], 4294956928 }
  0x19   :  { %11863 = dma.done.wait [#allocation9], 1536  }
  0x1a   :  { %11864 = vsyncadd [#allocation9], 4294965760 }
  0x1b   :  { %11865 = dma.done.wait [#allocation12], 512  }
  0x1c   :  { %11866 = vsyncadd [#allocation12], 4294966784  ;;  %v11879_v0 = vmov 0.0   ;;  %vm213_vm0 = vcmask 261120   ;;  %v11982_v1 = vld [vmem:[#allocation2] sm:$0xff]  ;;  %v141_v3 = vld [vmem:[%s15719_s0 + $0x8] sm:$0xff] }
  0x1d   :  { %241 = vmatpush.msra.mxu2 %v11879_v0  ;;  %270 = vmatpush.msra.mxu3 %v11879_v0  ;;  %v140_v2 = vld [vmem:[%s15719_s0] sm:$0xff]  ;;  %vm142_vm1 = vcmask 64512   ;;  %v11999_v5 = vld [vmem:[#allocation2 + $0x8] sm:$0xff]  ;;  %v12010_v7 = vld [vmem:[#allocation2 + $0x10] sm:$0xff]  ;;  %vm6000_vm14 = vcmask 1043456   ;;  %s11881_s26 = smov [#allocation13]  }
  0x1e   :  { %9698 = vmatmul.msk.f32.vlgmr.msra.gmra.mxu2 %vm213_vm0, %v11982_v1  ;;  %9702 = vmatmul.msk.f32.vlgmr.msra.gmra.mxu3 %vm213_vm0, %v11982_v1  ;;  %v136_v4 = vld [vmem:[%s15720_s1] sm:$0xff]  ;;  %v137_v6 = vld [vmem:[%s15720_s1 + $0x8] sm:$0xff]  ;;  %v138_v8 = vld [vmem:[%s15720_s1 + $0x10] sm:$0xff]  ;;  %s9669_s28 = sshll.u32 %s15730_s11, 4  ;;  %s9670_s28 = int_to_ptr.hbm [resolvable:$true] %s9669_s28 }
  0x1f   :  { %170 = vmatpush.msra.mxu0 %v140_v2  ;;  %199 = vmatpush.msra.mxu1 %v141_v3  ;;  %v12021_v9 = vld [vmem:[#allocation2 + $0x18] sm:$0xff] }
  0x20   :  { %9690 = vmatmul.msk.f32.vlgmr.msra.gmra.mxu0 %vm142_vm1, %v136_v4  ;;  %9694 = vmatmul.msk.f32.vlgmr.msra.gmra.mxu1 %vm142_vm1, %v136_v4  ;;  %v139_v10 = vld [vmem:[%s15720_s1 + $0x18] sm:$0xff] }
  0x26   :  { %9699 = vmatmul.msk.f32.gmra.mxu2 %vm213_vm0, %v11999_v5  ;;  %9703 = vmatmul.msk.f32.gmra.mxu3 %vm213_vm0, %v11999_v5 }
  0x28   :  { %9691 = vmatmul.msk.f32.gmra.mxu0 %vm142_vm1, %v137_v6  ;;  %9695 = vmatmul.msk.f32.gmra.mxu1 %vm142_vm1, %v137_v6 }
  0x2e   :  { %9700 = vmatmul.msk.f32.gmra.mxu2 %vm213_vm0, %v12010_v7  ;;  %9704 = vmatmul.msk.f32.gmra.mxu3 %vm213_vm0, %v12010_v7 }
  0x30   :  { %9692 = vmatmul.msk.f32.gmra.mxu0 %vm142_vm1, %v138_v8  ;;  %9696 = vmatmul.msk.f32.gmra.mxu1 %vm142_vm1, %v138_v8 }
  0x36   :  { %9701 = vmatmul.msk.f32.gmra.mxu2 %vm213_vm0, %v12021_v9  ;;  %9705 = vmatmul.msk.f32.gmra.mxu3 %vm213_vm0, %v12021_v9 }
  0x38   :  { %9693 = vmatmul.msk.f32.gmra.mxu0 %vm142_vm1, %v139_v10  ;;  %9697 = vmatmul.msk.f32.gmra.mxu1 %vm142_vm1, %v139_v10 }
  0x9d   :  { %v12032_v11 = vpop.f32.mrf.mxu0  ;;  %v12034_v12 = vpop.f32.mrf.mxu1 }
  0xa1   :  { %v243_v13 = vpop.f32.mrf.mxu2  ;;  %v272_v14 = vpop.f32.mrf.mxu3 }
  0xa2   :  { %v244_v22 = vadd.f32 %v243_v13, %v12032_v11  ;;  %v273_v23 = vadd.f32 %v272_v14, %v12034_v12 }
  0xa4   :  { %v300_v30 = vsub.f32 0.0, %v244_v22  ;;  %v301_v33 = vsub.f32 0.0, %v273_v23  ;;  %v9706_v42 = vadd.f32 -0.0042742956, %v244_v22  ;;  %v9707_v44 = vadd.f32 -0.0042742956, %v273_v23 }
  0xa5   :  { %v12036_v15 = vpop.f32.mrf.mxu0  ;;  %v12038_v16 = vpop.f32.mrf.mxu1 }
  0xa6   :  { %v9714_v43 = vadd.f32 -0.0042742956, %v300_v30  ;;  %v9715_v45 = vadd.f32 -0.0042742956, %v301_v33  ;;  %v293_v62 = vmax.f32 %v9707_v44, 0.0 }
  0xa8   :  { %v317_v63 = vmax.f32 %v9715_v45, 0.0  ;;  %v316_v13 = vmax.f32 %v9714_v43, 0.0 }
  0xa9   :  { %v246_v17 = vpop.f32.mrf.mxu2  ;;  %v275_v18 = vpop.f32.mrf.mxu3 }
  0xaa   :  { %v276_v21 = vadd.f32 %v275_v18, %v12038_v16  ;;  %v247_v24 = vadd.f32 %v246_v17, %v12036_v15 }
  0xac   :  { %v303_v29 = vsub.f32 0.0, %v276_v21  ;;  %v302_v34 = vsub.f32 0.0, %v247_v24  ;;  %v9709_v37 = vadd.f32 -0.0042742956, %v276_v21  ;;  %v9708_v54 = vadd.f32 -0.0042742956, %v247_v24 }
  0xad   :  { %v12040_v19 = vpop.f32.mrf.mxu0  ;;  %v12042_v20 = vpop.f32.mrf.mxu1  ;;  %v292_v24 = vmax.f32 %v9706_v42, 0.0 }
  0xae   :  { %v9717_v38 = vadd.f32 -0.0042742956, %v303_v29  ;;  %v9716_v46 = vadd.f32 -0.0042742956, %v302_v34  ;;  %v295_v55 = vmax.f32 %v9709_v37, 0.0  ;;  %v294_v14 = vmax.f32 %v9708_v54, 0.0 }
  0xaf   :  { %v12071_v30 = vsub.f32 %v292_v24, %v316_v13 }
  0xb0   :  { %v319_v56 = vmax.f32 %v9717_v38, 0.0  ;;  %v318_v2 = vmax.f32 %v9716_v46, 0.0 }
  0xb1   :  { %v249_v25 = vpop.f32.mrf.mxu2  ;;  %v278_v26 = vpop.f32.mrf.mxu3  ;;  %v332_v44 = vmul.f32 0.0, %v12071_v30 }
  0xb2   :  { %v250_v27 = vadd.f32 %v249_v25, %v12040_v19  ;;  %v279_v28 = vadd.f32 %v278_v26, %v12042_v20  ;;  %v12058_v17 = vsub.f32 %v295_v55, %v319_v56  ;;  %v12062_v25 = vsub.f32 %v293_v62, %v317_v63 }
  0xb3   :  { %v12069_v29 = vsub.f32 %v294_v14, %v318_v2 }
  0xb4   :  { %v304_v31 = vsub.f32 0.0, %v250_v27  ;;  %v305_v32 = vsub.f32 0.0, %v279_v28  ;;  %v9711_v35 = vadd.f32 -0.0042742956, %v279_v28  ;;  %v9710_v47 = vadd.f32 -0.0042742956, %v250_v27 }
  0xb5   :  { %v12050_v40 = vpop.f32.mrf.mxu0  ;;  %v12052_v41 = vpop.f32.mrf.mxu1  ;;  %v335_v34 = vmul.f32 0.0, %v12058_v17 }
  0xb6   :  { %v9719_v36 = vadd.f32 -0.0042742956, %v305_v32  ;;  %v9718_v39 = vadd.f32 -0.0042742956, %v304_v31  ;;  %v297_v50 = vmax.f32 %v9711_v35, 0.0  ;;  %v296_v3 = vmax.f32 %v9710_v47, 0.0 }
  0xb7   :  { %v333_v35 = vmul.f32 0.0, %v12062_v25  ;;  %v343_v43 = vadd.f32 %v335_v34, %v12058_v17  ;;  %v340_v47 = vadd.f32 %v332_v44, %v12071_v30 }
  0xb8   :  { %v321_v51 = vmax.f32 %v9719_v36, 0.0  ;;  %v320_v57 = vmax.f32 %v9718_v39, 0.0  ;;  %v334_v39 = vmul.f32 0.0, %v12069_v29 }
  0xb9   :  { %v252_v48 = vpop.f32.mrf.mxu2  ;;  %v281_v49 = vpop.f32.mrf.mxu3  ;;  %v341_v46 = vadd.f32 %v333_v35, %v12062_v25 }
  0xba   :  { %v253_v52 = vadd.f32 %v252_v48, %v12050_v40  ;;  %v282_v53 = vadd.f32 %v281_v49, %v12052_v41  ;;  %v12056_v10 = vsub.f32 %v297_v50, %v321_v51  ;;  %v12060_v23 = vsub.f32 %v296_v3, %v320_v57 }
  0xbb   :  { %v342_v45 = vadd.f32 %v334_v39, %v12069_v29 }
  0xbc   :  { %v9712_v58 = vadd.f32 -0.0042742956, %v253_v52  ;;  %v306_v59 = vsub.f32 0.0, %v253_v52  ;;  %v9713_v60 = vadd.f32 -0.0042742956, %v282_v53  ;;  %v307_v61 = vsub.f32 0.0, %v282_v53 }
  0xbd   :  { %v337_v28 = vmul.f32 0.0, %v12056_v10  ;;  %v336_v33 = vmul.f32 0.0, %v12060_v23 }
  0xbe   :  { %v9720_v4 = vadd.f32 -0.0042742956, %v306_v59  ;;  %v299_v6 = vmax.f32 %v9713_v60, 0.0  ;;  %v9721_v8 = vadd.f32 -0.0042742956, %v307_v61  ;;  %v298_v18 = vmax.f32 %v9712_v58, 0.0 }
  0xbf   :  { %v345_v38 = vadd.f32 %v337_v28, %v12056_v10  ;;  %v344_v42 = vadd.f32 %v336_v33, %v12060_v23 }
  0xc0   :  { %v322_v21 = vmax.f32 %v9720_v4, 0.0  ;;  %v323_v22 = vmax.f32 %v9721_v8, 0.0 }
  0xc2   :  { %v12064_v26 = vsub.f32 %v298_v18, %v322_v21  ;;  %v12066_v27 = vsub.f32 %v299_v6, %v323_v22 }
  0xc4   :  { %v338_v31 = vmul.f32 0.0, %v12064_v26  ;;  %v339_v32 = vmul.f32 0.0, %v12066_v27 }
  0xc6   :  { %v346_v36 = vadd.f32 %v338_v31, %v12064_v26  ;;  %v347_v37 = vadd.f32 %v339_v32, %v12066_v27 }
  0xc8   :  { %360 = vmatpush.msrb.mxu0 %v346_v36  ;;  %389 = vmatpush.msrb.mxu1 %v347_v37 }
  0xca   :  { %361 = vmatpush.msrb.mxu0 %v344_v42  ;;  %390 = vmatpush.msrb.mxu1 %v345_v38 }
  0xcc   :  { %362 = vmatpush.msrb.mxu0 %v342_v45  ;;  %391 = vmatpush.msrb.mxu1 %v343_v43 }
  0xce   :  { %363 = vmatpush.msrb.mxu0 %v340_v47  ;;  %392 = vmatpush.msrb.mxu1 %v341_v46 }
  0xcf   :  { %9722 = vmatmul.msk.f32.vlgmr.msrb.gmra.mxu0 %vm213_vm0, %v11982_v1  ;;  %9726 = vmatmul.msk.f32.vlgmr.msrb.gmra.mxu1 %vm213_vm0, %v11982_v1 }
  0xd7   :  { %9723 = vmatmul.msk.f32.gmra.mxu0 %vm213_vm0, %v11999_v5  ;;  %9727 = vmatmul.msk.f32.gmra.mxu1 %vm213_vm0, %v11999_v5 }
  0xdf   :  { %9724 = vmatmul.msk.f32.gmra.mxu0 %vm213_vm0, %v12010_v7  ;;  %9728 = vmatmul.msk.f32.gmra.mxu1 %vm213_vm0, %v12010_v7 }
  0xe7   :  { %9725 = vmatmul.msk.f32.gmra.mxu0 %vm213_vm0, %v12021_v9  ;;  %9729 = vmatmul.msk.f32.gmra.mxu1 %vm213_vm0, %v12021_v9 }
 0x14c   :  { %v365_v48 = vpop.f32.mrf.mxu0  ;;  %v394_v49 = vpop.f32.mrf.mxu1 }
 0x14d   :  { %v366_v54 = vadd.f32 %v365_v48, %v12032_v11  ;;  %v395_v55 = vadd.f32 %v394_v49, %v12034_v12 }
 0x14f   :  { %v422_v62 = vsub.f32 0.0, %v366_v54  ;;  %v423_v3 = vsub.f32 0.0, %v395_v55  ;;  %v9730_v21 = vadd.f32 -0.0042742956, %v366_v54  ;;  %v9731_v24 = vadd.f32 -0.0042742956, %v395_v55 }
 0x151   :  { %v9738_v22 = vadd.f32 -0.0042742956, %v422_v62  ;;  %v9739_v35 = vadd.f32 -0.0042742956, %v423_v3 }
 0x153   :  { %v438_v49 = vmax.f32 %v9738_v22, 0.0 }
 0x154   :  { %v368_v50 = vpop.f32.mrf.mxu0  ;;  %v397_v51 = vpop.f32.mrf.mxu1 }
 0x155   :  { %v369_v52 = vadd.f32 %v368_v50, %v12036_v15  ;;  %v398_v53 = vadd.f32 %v397_v51, %v12038_v16 }
 0x157   :  { %v424_v58 = vsub.f32 0.0, %v369_v52  ;;  %v425_v61 = vsub.f32 0.0, %v398_v53  ;;  %v9732_v28 = vadd.f32 -0.0042742956, %v369_v52  ;;  %v9733_v31 = vadd.f32 -0.0042742956, %v398_v53 }
 0x158   :  { %v439_v53 = vmax.f32 %v9739_v35, 0.0 }
 0x159   :  { %v9740_v4 = vadd.f32 -0.0042742956, %v424_v58  ;;  %v9741_v13 = vadd.f32 -0.0042742956, %v425_v61  ;;  %v416_v50 = vmax.f32 %v9732_v28, 0.0  ;;  %v417_v51 = vmax.f32 %v9733_v31, 0.0 }
 0x15a   :  { %v415_v58 = vmax.f32 %v9731_v24, 0.0 }
 0x15b   :  { %v440_v39 = vmax.f32 %v9740_v4, 0.0  ;;  %v441_v42 = vmax.f32 %v9741_v13, 0.0 }
 0x15c   :  { %v371_v56 = vpop.f32.mrf.mxu0  ;;  %v400_v57 = vpop.f32.mrf.mxu1 }
 0x15d   :  { %v372_v59 = vadd.f32 %v371_v56, %v12040_v19  ;;  %v401_v60 = vadd.f32 %v400_v57, %v12042_v20  ;;  %v414_v57 = vmax.f32 %v9730_v21, 0.0 }
 0x15f   :  { %v426_v63 = vsub.f32 0.0, %v372_v59  ;;  %v427_v2 = vsub.f32 0.0, %v401_v60  ;;  %v9734_v14 = vadd.f32 -0.0042742956, %v372_v59  ;;  %v9735_v18 = vadd.f32 -0.0042742956, %v401_v60 }
 0x160   :  { %v12116_v59 = vsub.f32 %v416_v50, %v440_v39  ;;  %v12118_v60 = vsub.f32 %v417_v51, %v441_v42  ;;  %v12122_v4 = vsub.f32 %v414_v57, %v438_v49 }
 0x161   :  { %v9742_v6 = vadd.f32 -0.0042742956, %v426_v63  ;;  %v9743_v8 = vadd.f32 -0.0042742956, %v427_v2  ;;  %v418_v43 = vmax.f32 %v9734_v14, 0.0  ;;  %v419_v44 = vmax.f32 %v9735_v18, 0.0 }
 0x162   :  { %v12130_v14 = vsub.f32 %v415_v58, %v439_v53  ;;  %v457_v22 = vsub.f32 %v12118_v60, %v12058_v17  ;;  %v454_v28 = vsub.f32 %v12122_v4, %v12071_v30 }
 0x163   :  { %v442_v32 = vmax.f32 %v9742_v6, 0.0  ;;  %v443_v36 = vmax.f32 %v9743_v8, 0.0 }
 0x164   :  { %v374_v33 = vpop.f32.mrf.mxu0  ;;  %v403_v34 = vpop.f32.mrf.mxu1  ;;  %v465_v35 = vmul.f32 0.2817535, %v457_v22 }
 0x165   :  { %v375_v37 = vadd.f32 %v374_v33, %v12050_v40  ;;  %v404_v38 = vadd.f32 %v403_v34, %v12052_v41  ;;  %v12112_v52 = vsub.f32 %v418_v43, %v442_v32  ;;  %v12114_v56 = vsub.f32 %v419_v44, %v443_v36 }
 0x166   :  { %v455_v33 = vsub.f32 %v12130_v14, %v12062_v25  ;;  %v462_v36 = vmul.f32 0.2817535, %v454_v28  ;;  %v473_v25 = vadd.f32 %v465_v35, %v12118_v60 }
 0x167   :  { %v9736_v45 = vadd.f32 -0.0042742956, %v375_v37  ;;  %v428_v46 = vsub.f32 0.0, %v375_v37  ;;  %v9737_v47 = vadd.f32 -0.0042742956, %v404_v38  ;;  %v429_v48 = vsub.f32 0.0, %v404_v38 }
 0x168   :  { %v458_v3 = vsub.f32 %v12112_v52, %v12060_v23  ;;  %v459_v13 = vsub.f32 %v12114_v56, %v12056_v10  ;;  %v456_v23 = vsub.f32 %v12116_v59, %v12069_v29  ;;  %v463_v30 = vmul.f32 0.2817535, %v455_v33 }
 0x169   :  { %v9744_v54 = vadd.f32 -0.0042742956, %v428_v46  ;;  %v9745_v55 = vadd.f32 -0.0042742956, %v429_v48  ;;  %v420_v61 = vmax.f32 %v9736_v45, 0.0  ;;  %v421_v63 = vmax.f32 %v9737_v47, 0.0 }
 0x16a   :  { %v466_v24 = vmul.f32 0.2817535, %v458_v3  ;;  %v467_v32 = vmul.f32 0.2817535, %v459_v13  ;;  %v464_v34 = vmul.f32 0.2817535, %v456_v23  ;;  %v470_v38 = vadd.f32 %v462_v36, %v12122_v4 }
 0x16b   :  { %v444_v62 = vmax.f32 %v9744_v54, 0.0  ;;  %v445_v2 = vmax.f32 %v9745_v55, 0.0  ;;  %v471_v39 = vadd.f32 %v463_v30, %v12130_v14 }
 0x16c   :  { %v474_v17 = vadd.f32 %v466_v24, %v12112_v52  ;;  %v475_v29 = vadd.f32 %v467_v32, %v12114_v56  ;;  %v472_v37 = vadd.f32 %v464_v34, %v12116_v59 }
 0x16d   :  { %v12124_v6 = vsub.f32 %v420_v61, %v444_v62  ;;  %v12126_v8 = vsub.f32 %v421_v63, %v445_v2 }
 0x16f   :  { %v460_v18 = vsub.f32 %v12124_v6, %v12064_v26  ;;  %v461_v21 = vsub.f32 %v12126_v8, %v12066_v27 }
 0x171   :  { %v468_v31 = vmul.f32 0.2817535, %v460_v18  ;;  %v469_v10 = vmul.f32 0.2817535, %v461_v21 }
 0x173   :  { %v476_v26 = vadd.f32 %v468_v31, %v12124_v6  ;;  %v477_v27 = vadd.f32 %v469_v10, %v12126_v8 }
 0x175   :  { %490 = vmatpush.msrb.mxu2 %v476_v26  ;;  %519 = vmatpush.msrb.mxu3 %v477_v27 }
 0x177   :  { %491 = vmatpush.msrb.mxu2 %v474_v17  ;;  %520 = vmatpush.msrb.mxu3 %v475_v29 }
 0x179   :  { %492 = vmatpush.msrb.mxu2 %v472_v37  ;;  %521 = vmatpush.msrb.mxu3 %v473_v25 }
 0x17b   :  { %493 = vmatpush.msrb.mxu2 %v470_v38  ;;  %522 = vmatpush.msrb.mxu3 %v471_v39 }
 0x17c   :  { %9746 = vmatmul.msk.f32.vlgmr.msrb.gmra.mxu2 %vm213_vm0, %v11982_v1  ;;  %9750 = vmatmul.msk.f32.vlgmr.msrb.gmra.mxu3 %vm213_vm0, %v11982_v1 }
 0x184   :  { %9747 = vmatmul.msk.f32.gmra.mxu2 %vm213_vm0, %v11999_v5  ;;  %9751 = vmatmul.msk.f32.gmra.mxu3 %vm213_vm0, %v11999_v5 }
 0x18c   :  { %9748 = vmatmul.msk.f32.gmra.mxu2 %vm213_vm0, %v12010_v7  ;;  %9752 = vmatmul.msk.f32.gmra.mxu3 %vm213_vm0, %v12010_v7 }
 0x194   :  { %9749 = vmatmul.msk.f32.gmra.mxu2 %vm213_vm0, %v12021_v9  ;;  %9753 = vmatmul.msk.f32.gmra.mxu3 %vm213_vm0, %v12021_v9 }
 0x1ff   :  { %v495_v42 = vpop.f32.mrf.mxu2  ;;  %v524_v43 = vpop.f32.mrf.mxu3 }
 0x200   :  { %v496_v48 = vadd.f32 %v495_v42, %v12032_v11  ;;  %v525_v49 = vadd.f32 %v524_v43, %v12034_v12 }
 0x202   :  { %v552_v58 = vsub.f32 0.0, %v496_v48  ;;  %v553_v63 = vsub.f32 0.0, %v525_v49  ;;  %v9754_v22 = vadd.f32 -0.0042742956, %v496_v48  ;;  %v9755_v28 = vadd.f32 -0.0042742956, %v525_v49 }
 0x204   :  { %v9762_v24 = vadd.f32 -0.0042742956, %v552_v58  ;;  %v9763_v27 = vadd.f32 -0.0042742956, %v553_v63 }
 0x206   :  { %v568_v43 = vmax.f32 %v9762_v24, 0.0 }
 0x207   :  { %v498_v44 = vpop.f32.mrf.mxu2  ;;  %v527_v45 = vpop.f32.mrf.mxu3 }
 0x208   :  { %v499_v46 = vadd.f32 %v498_v44, %v12036_v15  ;;  %v528_v47 = vadd.f32 %v527_v45, %v12038_v16 }
 0x20a   :  { %v554_v53 = vsub.f32 0.0, %v499_v46  ;;  %v555_v57 = vsub.f32 0.0, %v528_v47  ;;  %v9756_v31 = vadd.f32 -0.0042742956, %v499_v46  ;;  %v9757_v10 = vadd.f32 -0.0042742956, %v528_v47 }
 0x20b   :  { %v569_v47 = vmax.f32 %v9763_v27, 0.0 }
 0x20c   :  { %v9764_v2 = vadd.f32 -0.0042742956, %v554_v53  ;;  %v9765_v18 = vadd.f32 -0.0042742956, %v555_v57  ;;  %v546_v44 = vmax.f32 %v9756_v31, 0.0  ;;  %v547_v45 = vmax.f32 %v9757_v10, 0.0 }
 0x20d   :  { %v545_v53 = vmax.f32 %v9755_v28, 0.0 }
 0x20e   :  { %v570_v29 = vmax.f32 %v9764_v2, 0.0  ;;  %v571_v36 = vmax.f32 %v9765_v18, 0.0 }
 0x20f   :  { %v501_v50 = vpop.f32.mrf.mxu2  ;;  %v530_v51 = vpop.f32.mrf.mxu3 }
 0x210   :  { %v502_v54 = vadd.f32 %v501_v50, %v12040_v19  ;;  %v531_v55 = vadd.f32 %v530_v51, %v12042_v20  ;;  %v544_v51 = vmax.f32 %v9754_v22, 0.0 }
 0x212   :  { %v556_v61 = vsub.f32 0.0, %v502_v54  ;;  %v557_v62 = vsub.f32 0.0, %v531_v55  ;;  %v9758_v21 = vadd.f32 -0.0042742956, %v502_v54  ;;  %v9759_v23 = vadd.f32 -0.0042742956, %v531_v55 }
 0x213   :  { %v12180_v54 = vsub.f32 %v546_v44, %v570_v29  ;;  %v12182_v55 = vsub.f32 %v547_v45, %v571_v36  ;;  %v12184_v63 = vsub.f32 %v544_v51, %v568_v43 }
 0x214   :  { %v9766_v3 = vadd.f32 -0.0042742956, %v556_v61  ;;  %v9767_v13 = vadd.f32 -0.0042742956, %v557_v62  ;;  %v548_v30 = vmax.f32 %v9758_v21, 0.0  ;;  %v549_v37 = vmax.f32 %v9759_v23, 0.0 }
 0x215   :  { %v586_v24 = vsub.f32 %v12180_v54, %v12116_v59  ;;  %v584_v31 = vsub.f32 %v12184_v63, %v12122_v4 }
 0x216   :  { %v572_v32 = vmax.f32 %v9766_v3, 0.0  ;;  %v573_v34 = vmax.f32 %v9767_v13, 0.0  ;;  %v12188_v3 = vsub.f32 %v545_v53, %v569_v47 }
 0x217   :  { %v504_v33 = vpop.f32.mrf.mxu2  ;;  %v533_v26 = vpop.f32.mrf.mxu3 }
 0x218   :  { %v505_v35 = vadd.f32 %v504_v33, %v12050_v40  ;;  %v534_v17 = vadd.f32 %v533_v26, %v12052_v41  ;;  %v12176_v46 = vsub.f32 %v548_v30, %v572_v32  ;;  %v12178_v48 = vsub.f32 %v549_v37, %v573_v34 }
 0x219   :  { %v594_v26 = vmul.f32 0.43404278, %v586_v24  ;;  %v592_v34 = vmul.f32 0.43404278, %v584_v31 }
 0x21a   :  { %v9760_v25 = vadd.f32 -0.0042742956, %v505_v35  ;;  %v558_v38 = vsub.f32 0.0, %v505_v35  ;;  %v9761_v39 = vadd.f32 -0.0042742956, %v534_v17  ;;  %v559_v42 = vsub.f32 0.0, %v534_v17 }
 0x21b   :  { %v588_v2 = vsub.f32 %v12176_v46, %v12112_v52  ;;  %v589_v21 = vsub.f32 %v12178_v48, %v12114_v56  ;;  %v587_v52 = vsub.f32 %v12182_v55, %v12118_v60  ;;  %v585_v56 = vsub.f32 %v12188_v3, %v12130_v14 }
 0x21c   :  { %v9768_v49 = vadd.f32 -0.0042742956, %v558_v38  ;;  %v9769_v50 = vadd.f32 -0.0042742956, %v559_v42  ;;  %v550_v57 = vmax.f32 %v9760_v25, 0.0  ;;  %v551_v61 = vmax.f32 %v9761_v39, 0.0 }
 0x21d   :  { %v596_v28 = vmul.f32 0.43404278, %v588_v2  ;;  %v597_v33 = vmul.f32 0.43404278, %v589_v21  ;;  %v595_v27 = vmul.f32 0.43404278, %v587_v52  ;;  %v602_v35 = vadd.f32 %v594_v26, %v12180_v54 }
 0x21e   :  { %v574_v58 = vmax.f32 %v9768_v49, 0.0  ;;  %v575_v62 = vmax.f32 %v9769_v50, 0.0  ;;  %v593_v4 = vmul.f32 0.43404278, %v585_v56  ;;  %v600_v17 = vadd.f32 %v592_v34, %v12184_v63 }
 0x21f   :  { %v604_v59 = vadd.f32 %v596_v28, %v12176_v46  ;;  %v605_v60 = vadd.f32 %v597_v33, %v12178_v48  ;;  %v603_v14 = vadd.f32 %v595_v27, %v12182_v55 }
 0x220   :  { %v12190_v13 = vsub.f32 %v550_v57, %v574_v58  ;;  %v12192_v18 = vsub.f32 %v551_v61, %v575_v62  ;;  %v601_v29 = vadd.f32 %v593_v4, %v12188_v3 }
 0x222   :  { %v590_v23 = vsub.f32 %v12190_v13, %v12124_v6  ;;  %v591_v22 = vsub.f32 %v12192_v18, %v12126_v8 }
 0x224   :  { %v598_v10 = vmul.f32 0.43404278, %v590_v23  ;;  %v599_v32 = vmul.f32 0.43404278, %v591_v22 }
 0x226   :  { %v606_v6 = vadd.f32 %v598_v10, %v12190_v13  ;;  %v607_v8 = vadd.f32 %v599_v32, %v12192_v18 }
 0x228   :  { %620 = vmatpush.msra.mxu0 %v606_v6  ;;  %649 = vmatpush.msra.mxu1 %v607_v8 }
 0x22a   :  { %621 = vmatpush.msra.mxu0 %v604_v59  ;;  %650 = vmatpush.msra.mxu1 %v605_v60 }
 0x22c   :  { %622 = vmatpush.msra.mxu0 %v602_v35  ;;  %651 = vmatpush.msra.mxu1 %v603_v14 }
 0x22e   :  { %623 = vmatpush.msra.mxu0 %v600_v17  ;;  %652 = vmatpush.msra.mxu1 %v601_v29 }
 0x22f   :  { %9770 = vmatmul.msk.f32.vlgmr.msra.gmra.mxu0 %vm213_vm0, %v11982_v1  ;;  %9774 = vmatmul.msk.f32.vlgmr.msra.gmra.mxu1 %vm213_vm0, %v11982_v1 }
 0x237   :  { %9771 = vmatmul.msk.f32.gmra.mxu0 %vm213_vm0, %v11999_v5  ;;  %9775 = vmatmul.msk.f32.gmra.mxu1 %vm213_vm0, %v11999_v5 }
 0x23f   :  { %9772 = vmatmul.msk.f32.gmra.mxu0 %vm213_vm0, %v12010_v7  ;;  %9776 = vmatmul.msk.f32.gmra.mxu1 %vm213_vm0, %v12010_v7 }
 0x247   :  { %9773 = vmatmul.msk.f32.gmra.mxu0 %vm213_vm0, %v12021_v9  ;;  %9777 = vmatmul.msk.f32.gmra.mxu1 %vm213_vm0, %v12021_v9 }
 0x2ac   :  { %v625_v36 = vpop.f32.mrf.mxu0  ;;  %v654_v30 = vpop.f32.mrf.mxu1 }
 0x2ad   :  { %v626_v42 = vadd.f32 %v625_v36, %v12032_v11  ;;  %v655_v43 = vadd.f32 %v654_v30, %v12034_v12 }
 0x2af   :  { %v682_v53 = vsub.f32 0.0, %v626_v42  ;;  %v683_v61 = vsub.f32 0.0, %v655_v43  ;;  %v9778_v52 = vadd.f32 -0.0042742956, %v626_v42  ;;  %v9779_v31 = vadd.f32 -0.0042742956, %v655_v43 }
 0x2b1   :  { %v9786_v28 = vadd.f32 -0.0042742956, %v682_v53  ;;  %v9787_v8 = vadd.f32 -0.0042742956, %v683_v61 }
 0x2b3   :  { %v698_v30 = vmax.f32 %v9786_v28, 0.0 }
 0x2b4   :  { %v628_v37 = vpop.f32.mrf.mxu0  ;;  %v657_v25 = vpop.f32.mrf.mxu1 }
 0x2b5   :  { %v629_v38 = vadd.f32 %v628_v37, %v12036_v15  ;;  %v658_v39 = vadd.f32 %v657_v25, %v12038_v16 }
 0x2b7   :  { %v684_v47 = vsub.f32 0.0, %v629_v38  ;;  %v685_v51 = vsub.f32 0.0, %v658_v39  ;;  %v9780_v10 = vadd.f32 -0.0042742956, %v629_v38  ;;  %v9781_v32 = vadd.f32 -0.0042742956, %v658_v39 }
 0x2b8   :  { %v699_v39 = vmax.f32 %v9787_v8, 0.0 }
 0x2b9   :  { %v9788_v62 = vadd.f32 -0.0042742956, %v684_v47  ;;  %v9789_v23 = vadd.f32 -0.0042742956, %v685_v51  ;;  %v676_v37 = vmax.f32 %v9780_v10, 0.0  ;;  %v677_v25 = vmax.f32 %v9781_v32, 0.0 }
 0x2ba   :  { %v675_v47 = vmax.f32 %v9779_v31, 0.0 }
 0x2bb   :  { %v700_v60 = vmax.f32 %v9788_v62, 0.0  ;;  %v701_v34 = vmax.f32 %v9789_v23, 0.0 }
 0x2bc   :  { %v631_v44 = vpop.f32.mrf.mxu0  ;;  %v660_v45 = vpop.f32.mrf.mxu1 }
 0x2bd   :  { %v632_v49 = vadd.f32 %v631_v44, %v12040_v19  ;;  %v661_v50 = vadd.f32 %v660_v45, %v12042_v20  ;;  %v674_v45 = vmax.f32 %v9778_v52, 0.0 }
 0x2bf   :  { %v686_v57 = vsub.f32 0.0, %v632_v49  ;;  %v687_v58 = vsub.f32 0.0, %v661_v50  ;;  %v9782_v22 = vadd.f32 -0.0042742956, %v632_v49  ;;  %v9783_v24 = vadd.f32 -0.0042742956, %v661_v50 }
 0x2c0   :  { %v12244_v49 = vsub.f32 %v676_v37, %v700_v60  ;;  %v12246_v50 = vsub.f32 %v677_v25, %v701_v34  ;;  %v12248_v61 = vsub.f32 %v674_v45, %v698_v30 }
 0x2c1   :  { %v9790_v2 = vadd.f32 -0.0042742956, %v686_v57  ;;  %v9791_v21 = vadd.f32 -0.0042742956, %v687_v58  ;;  %v678_v4 = vmax.f32 %v9782_v22, 0.0  ;;  %v679_v35 = vmax.f32 %v9783_v24, 0.0 }
 0x2c2   :  { %v716_v28 = vsub.f32 %v12244_v49, %v12180_v54  ;;  %v714_v10 = vsub.f32 %v12248_v61, %v12184_v63 }
 0x2c3   :  { %v702_v33 = vmax.f32 %v9790_v2, 0.0  ;;  %v703_v26 = vmax.f32 %v9791_v21, 0.0  ;;  %v12252_v2 = vsub.f32 %v675_v47, %v699_v39 }
 0x2c4   :  { %v634_v56 = vpop.f32.mrf.mxu0  ;;  %v663_v6 = vpop.f32.mrf.mxu1 }
 0x2c5   :  { %v635_v27 = vadd.f32 %v634_v56, %v12050_v40  ;;  %v664_v59 = vadd.f32 %v663_v6, %v12052_v41  ;;  %v12240_v38 = vsub.f32 %v678_v4, %v702_v33  ;;  %v12242_v42 = vsub.f32 %v679_v35, %v703_v26 }
 0x2c6   :  { %v724_v6 = vmul.f32 0.5310638, %v716_v28  ;;  %v722_v26 = vmul.f32 0.5310638, %v714_v10 }
 0x2c7   :  { %v9784_v14 = vadd.f32 -0.0042742956, %v635_v27  ;;  %v688_v17 = vsub.f32 0.0, %v635_v27  ;;  %v9785_v29 = vadd.f32 -0.0042742956, %v664_v59  ;;  %v689_v36 = vsub.f32 0.0, %v664_v59 }
 0x2c8   :  { %v718_v62 = vsub.f32 %v12240_v38, %v12176_v46  ;;  %v719_v22 = vsub.f32 %v12242_v42, %v12178_v48  ;;  %v717_v46 = vsub.f32 %v12246_v50, %v12182_v55  ;;  %v715_v48 = vsub.f32 %v12252_v2, %v12188_v3 }
 0x2c9   :  { %v9792_v43 = vadd.f32 -0.0042742956, %v688_v17  ;;  %v9793_v44 = vadd.f32 -0.0042742956, %v689_v36  ;;  %v680_v51 = vmax.f32 %v9784_v14, 0.0  ;;  %v681_v57 = vmax.f32 %v9785_v29, 0.0 }
 0x2ca   :  { %v726_v31 = vmul.f32 0.5310638, %v718_v62  ;;  %v727_v56 = vmul.f32 0.5310638, %v719_v22  ;;  %v725_v8 = vmul.f32 0.5310638, %v717_v46  ;;  %v732_v27 = vadd.f32 %v724_v6, %v12244_v49 }
 0x2cb   :  { %v704_v53 = vmax.f32 %v9792_v43, 0.0  ;;  %v705_v58 = vmax.f32 %v9793_v44, 0.0  ;;  %v723_v63 = vmul.f32 0.5310638, %v715_v48  ;;  %v730_v59 = vadd.f32 %v722_v26, %v12248_v61 }
 0x2cc   :  { %v734_v54 = vadd.f32 %v726_v31, %v12240_v38  ;;  %v735_v55 = vadd.f32 %v727_v56, %v12242_v42  ;;  %v733_v3 = vadd.f32 %v725_v8, %v12246_v50 }
 0x2cd   :  { %v12254_v21 = vsub.f32 %v680_v51, %v704_v53  ;;  %v12256_v23 = vsub.f32 %v681_v57, %v705_v58  ;;  %v731_v60 = vadd.f32 %v723_v63, %v12252_v2 }
 0x2cf   :  { %v720_v24 = vsub.f32 %v12254_v21, %v12190_v13  ;;  %v721_v52 = vsub.f32 %v12256_v23, %v12192_v18 }
 0x2d1   :  { %v728_v32 = vmul.f32 0.5310638, %v720_v24  ;;  %v729_v33 = vmul.f32 0.5310638, %v721_v52 }
 0x2d3   :  { %v736_v13 = vadd.f32 %v728_v32, %v12254_v21  ;;  %v737_v18 = vadd.f32 %v729_v33, %v12256_v23 }
 0x2d5   :  { %750 = vmatpush.msra.mxu2 %v736_v13  ;;  %779 = vmatpush.msra.mxu3 %v737_v18 }
 0x2d7   :  { %751 = vmatpush.msra.mxu2 %v734_v54  ;;  %780 = vmatpush.msra.mxu3 %v735_v55 }
 0x2d9   :  { %752 = vmatpush.msra.mxu2 %v732_v27  ;;  %781 = vmatpush.msra.mxu3 %v733_v3 }
 0x2db   :  { %753 = vmatpush.msra.mxu2 %v730_v59  ;;  %782 = vmatpush.msra.mxu3 %v731_v60 }
 0x2dc   :  { %9794 = vmatmul.msk.f32.vlgmr.msra.gmra.mxu2 %vm213_vm0, %v11982_v1  ;;  %9798 = vmatmul.msk.f32.vlgmr.msra.gmra.mxu3 %vm213_vm0, %v11982_v1 }
 0x2e4   :  { %9795 = vmatmul.msk.f32.gmra.mxu2 %vm213_vm0, %v11999_v5  ;;  %9799 = vmatmul.msk.f32.gmra.mxu3 %vm213_vm0, %v11999_v5 }
 0x2ec   :  { %9796 = vmatmul.msk.f32.gmra.mxu2 %vm213_vm0, %v12010_v7  ;;  %9800 = vmatmul.msk.f32.gmra.mxu3 %vm213_vm0, %v12010_v7 }
 0x2f4   :  { %9797 = vmatmul.msk.f32.gmra.mxu2 %vm213_vm0, %v12021_v9  ;;  %9801 = vmatmul.msk.f32.gmra.mxu3 %vm213_vm0, %v12021_v9 }
 0x35f   :  { %v755_v34 = vpop.f32.mrf.mxu2  ;;  %v784_v1 = vpop.f32.mrf.mxu3 }
 0x360   :  { %v756_v17 = vadd.f32 %v755_v34, %v12032_v11  ;;  %v785_v29 = vadd.f32 %v784_v1, %v12034_v12 }
 0x362   :  { %v812_v39 = vsub.f32 0.0, %v756_v17  ;;  %v813_v45 = vsub.f32 0.0, %v785_v29  ;;  %v9802_v22 = vadd.f32 -0.0042742956, %v756_v17  ;;  %v9803_v52 = vadd.f32 -0.0042742956, %v785_v29 }
 0x364   :  { %v9810_v24 = vadd.f32 -0.0042742956, %v812_v39  ;;  %v9811_v33 = vadd.f32 -0.0042742956, %v813_v45  ;;  %v805_v17 = vmax.f32 %v9803_v52, 0.0 }
 0x366   :  { %v828_v3 = vmax.f32 %v9810_v24, 0.0  ;;  %v829_v1 = vmax.f32 %v9811_v33, 0.0 }
 0x367   :  { %v758_v4 = vpop.f32.mrf.mxu2  ;;  %v787_v35 = vpop.f32.mrf.mxu3 }
 0x368   :  { %v759_v14 = vadd.f32 %v758_v4, %v12036_v15  ;;  %v788_v5 = vadd.f32 %v787_v35, %v12038_v16 }
 0x36a   :  { %v814_v30 = vsub.f32 0.0, %v759_v14  ;;  %v815_v9 = vsub.f32 0.0, %v788_v5  ;;  %v9804_v28 = vadd.f32 -0.0042742956, %v759_v14  ;;  %v9805_v46 = vadd.f32 -0.0042742956, %v788_v5 }
 0x36b   :  { %v804_v5 = vmax.f32 %v9802_v22, 0.0 }
 0x36c   :  { %v9812_v47 = vadd.f32 -0.0042742956, %v814_v30  ;;  %v9813_v57 = vadd.f32 -0.0042742956, %v815_v9  ;;  %v806_v59 = vmax.f32 %v9804_v28, 0.0  ;;  %v807_v60 = vmax.f32 %v9805_v46, 0.0 }
 0x36d   :  { %v12312_v9 = vsub.f32 %v804_v5, %v828_v3 }
 0x36e   :  { %v830_v18 = vmax.f32 %v9812_v47, 0.0  ;;  %v831_v6 = vmax.f32 %v9813_v57, 0.0 }
 0x36f   :  { %v761_v36 = vpop.f32.mrf.mxu2  ;;  %v790_v7 = vpop.f32.mrf.mxu3 }
 0x370   :  { %v762_v37 = vadd.f32 %v761_v36, %v12040_v19  ;;  %v791_v25 = vadd.f32 %v790_v7, %v12042_v20  ;;  %v12308_v29 = vsub.f32 %v806_v59, %v830_v18  ;;  %v12310_v36 = vsub.f32 %v807_v60, %v831_v6  ;;  %v12362_v18 = vld [vmem:[#allocation2 + $0x18] sm:$0xff] }
 0x372   :  { %v816_v43 = vsub.f32 0.0, %v762_v37  ;;  %v817_v44 = vsub.f32 0.0, %v791_v25  ;;  %v9806_v58 = vadd.f32 -0.0042742956, %v762_v37  ;;  %v9807_v62 = vadd.f32 -0.0042742956, %v791_v25 }
 0x373   :  { %v846_v57 = vsub.f32 %v12308_v29, %v12244_v49 }
 0x374   :  { %v9814_v51 = vadd.f32 -0.0042742956, %v816_v43  ;;  %v9815_v53 = vadd.f32 -0.0042742956, %v817_v44  ;;  %v808_v8 = vmax.f32 %v9806_v58, 0.0  ;;  %v809_v54 = vmax.f32 %v9807_v62, 0.0 }
 0x375   :  { %v12316_v43 = vsub.f32 %v805_v17, %v829_v1  ;;  %v844_v62 = vsub.f32 %v12312_v9, %v12248_v61  ;;  %v854_v28 = vmul.f32 0.5987786, %v846_v57 }
 0x376   :  { %v832_v31 = vmax.f32 %v9814_v51, 0.0  ;;  %v833_v56 = vmax.f32 %v9815_v53, 0.0 }
 0x377   :  { %v764_v10 = vpop.f32.mrf.mxu2  ;;  %v793_v32 = vpop.f32.mrf.mxu3 }
 0x378   :  { %v765_v48 = vadd.f32 %v764_v10, %v12050_v40  ;;  %v794_v13 = vadd.f32 %v793_v32, %v12052_v41  ;;  %v12304_v34 = vsub.f32 %v808_v8, %v832_v31  ;;  %v12306_v4 = vsub.f32 %v809_v54, %v833_v56  ;;  %v12344_v56 = vld [vmem:[#allocation2] sm:$0xff] }
 0x379   :  { %v852_v31 = vmul.f32 0.5987786, %v844_v62  ;;  %v862_v10 = vadd.f32 %v854_v28, %v12308_v29 }
 0x37a   :  { %v9808_v55 = vadd.f32 -0.0042742956, %v765_v48  ;;  %v818_v26 = vsub.f32 0.0, %v765_v48  ;;  %v9809_v63 = vadd.f32 -0.0042742956, %v794_v13  ;;  %v819_v27 = vsub.f32 0.0, %v794_v13 }
 0x37b   :  { %v848_v39 = vsub.f32 %v12304_v34, %v12240_v38  ;;  %v849_v47 = vsub.f32 %v12306_v4, %v12242_v42  ;;  %v847_v38 = vsub.f32 %v12310_v36, %v12246_v50  ;;  %v845_v42 = vsub.f32 %v12316_v43, %v12252_v2  ;;  %v12350_v48 = vld [vmem:[#allocation2 + $0x8] sm:$0xff]  ;;  %v12356_v13 = vld [vmem:[#allocation2 + $0x10] sm:$0xff] }
 0x37c   :  { %v9816_v35 = vadd.f32 -0.0042742956, %v818_v26  ;;  %v9817_v14 = vadd.f32 -0.0042742956, %v819_v27  ;;  %v810_v7 = vmax.f32 %v9808_v55, 0.0  ;;  %v811_v37 = vmax.f32 %v9809_v63, 0.0 }
 0x37d   :  { %v856_v58 = vmul.f32 0.5987786, %v848_v39  ;;  %v857_v52 = vmul.f32 0.5987786, %v849_v47  ;;  %v855_v46 = vmul.f32 0.5987786, %v847_v38  ;;  %v860_v32 = vadd.f32 %v852_v31, %v12312_v9 }
 0x37e   :  { %v834_v30 = vmax.f32 %v9816_v35, 0.0  ;;  %v835_v25 = vmax.f32 %v9817_v14, 0.0  ;;  %v853_v61 = vmul.f32 0.5987786, %v845_v42 }
 0x37f   :  { %v864_v49 = vadd.f32 %v856_v58, %v12304_v34  ;;  %v865_v50 = vadd.f32 %v857_v52, %v12306_v4  ;;  %v863_v2 = vadd.f32 %v855_v46, %v12310_v36 }
 0x380   :  { %v12318_v44 = vsub.f32 %v810_v7, %v834_v30  ;;  %v12320_v45 = vsub.f32 %v811_v37, %v835_v25  ;;  %v861_v33 = vadd.f32 %v853_v61, %v12316_v43 }
 0x382   :  { %v850_v51 = vsub.f32 %v12318_v44, %v12254_v21  ;;  %v851_v53 = vsub.f32 %v12320_v45, %v12256_v23 }
 0x384   :  { %v858_v22 = vmul.f32 0.5987786, %v850_v51  ;;  %v859_v24 = vmul.f32 0.5987786, %v851_v53 }
 0x386   :  { %v866_v21 = vadd.f32 %v858_v22, %v12318_v44  ;;  %v867_v23 = vadd.f32 %v859_v24, %v12320_v45 }
 0x388   :  { %880 = vmatpush.msrb.mxu0 %v866_v21  ;;  %909 = vmatpush.msrb.mxu1 %v867_v23 }
 0x38a   :  { %881 = vmatpush.msrb.mxu0 %v864_v49  ;;  %910 = vmatpush.msrb.mxu1 %v865_v50 }
 0x38c   :  { %882 = vmatpush.msrb.mxu0 %v862_v10  ;;  %911 = vmatpush.msrb.mxu1 %v863_v2 }
 0x38e   :  { %883 = vmatpush.msrb.mxu0 %v860_v32  ;;  %912 = vmatpush.msrb.mxu1 %v861_v33 }
 0x38f   :  { %9818 = vmatmul.msk.f32.vlgmr.msrb.gmra.mxu0 %vm213_vm0, %v12344_v56  ;;  %9822 = vmatmul.msk.f32.vlgmr.msrb.gmra.mxu1 %vm213_vm0, %v12344_v56 }
 0x397   :  { %9819 = vmatmul.msk.f32.gmra.mxu0 %vm213_vm0, %v12350_v48  ;;  %9823 = vmatmul.msk.f32.gmra.mxu1 %vm213_vm0, %v12350_v48 }
 0x39f   :  { %9820 = vmatmul.msk.f32.gmra.mxu0 %vm213_vm0, %v12356_v13  ;;  %9824 = vmatmul.msk.f32.gmra.mxu1 %vm213_vm0, %v12356_v13 }
 0x3a7   :  { %9821 = vmatmul.msk.f32.gmra.mxu0 %vm213_vm0, %v12362_v18  ;;  %9825 = vmatmul.msk.f32.gmra.mxu1 %vm213_vm0, %v12362_v18 }
 0x40c   :  { %v885_v6 = vpop.f32.mrf.mxu0  ;;  %v914_v8 = vpop.f32.mrf.mxu1 }
 0x40d   :  { %v886_v27 = vadd.f32 %v885_v6, %v12032_v11  ;;  %v915_v3 = vadd.f32 %v914_v8, %v12034_v12 }
 0x40f   :  { %v942_v17 = vsub.f32 0.0, %v886_v27  ;;  %v943_v37 = vsub.f32 0.0, %v915_v3  ;;  %v9826_v38 = vadd.f32 -0.0042742956, %v886_v27  ;;  %v9827_v62 = vadd.f32 -0.0042742956, %v915_v3 }
 0x411   :  { %v9834_v58 = vadd.f32 -0.0042742956, %v942_v17  ;;  %v9835_v23 = vadd.f32 -0.0042742956, %v943_v37 }
 0x413   :  { %v958_v8 = vmax.f32 %v9834_v58, 0.0 }
 0x414   :  { %v888_v54 = vpop.f32.mrf.mxu0  ;;  %v917_v55 = vpop.f32.mrf.mxu1 }
 0x415   :  { %v889_v26 = vadd.f32 %v888_v54, %v12036_v15  ;;  %v918_v63 = vadd.f32 %v917_v55, %v12038_v16 }
 0x417   :  { %v944_v1 = vsub.f32 0.0, %v889_v26  ;;  %v945_v5 = vsub.f32 0.0, %v918_v63  ;;  %v9828_v22 = vadd.f32 -0.0042742956, %v889_v26  ;;  %v9829_v24 = vadd.f32 -0.0042742956, %v918_v63 }
 0x418   :  { %v959_v63 = vmax.f32 %v9835_v23, 0.0 }
 0x419   :  { %v9836_v25 = vadd.f32 -0.0042742956, %v944_v1  ;;  %v9837_v51 = vadd.f32 -0.0042742956, %v945_v5  ;;  %v936_v54 = vmax.f32 %v9828_v22, 0.0  ;;  %v937_v55 = vmax.f32 %v9829_v24, 0.0 }
 0x41a   :  { %v935_v1 = vmax.f32 %v9827_v62, 0.0 }
 0x41b   :  { %v960_v50 = vmax.f32 %v9836_v25, 0.0  ;;  %v961_v31 = vmax.f32 %v9837_v51, 0.0 }
 0x41c   :  { %v891_v59 = vpop.f32.mrf.mxu0  ;;  %v920_v60 = vpop.f32.mrf.mxu1 }
 0x41d   :  { %v892_v35 = vadd.f32 %v891_v59, %v12040_v19  ;;  %v921_v14 = vadd.f32 %v920_v60, %v12042_v20  ;;  %v934_v60 = vmax.f32 %v9826_v38, 0.0 }
 0x41f   :  { %v946_v7 = vsub.f32 0.0, %v892_v35  ;;  %v947_v30 = vsub.f32 0.0, %v921_v14  ;;  %v9830_v53 = vadd.f32 -0.0042742956, %v892_v35  ;;  %v9831_v57 = vadd.f32 -0.0042742956, %v921_v14 }
 0x420   :  { %v12380_v35 = vsub.f32 %v936_v54, %v960_v50  ;;  %v12382_v14 = vsub.f32 %v937_v55, %v961_v31  ;;  %v12384_v37 = vsub.f32 %v934_v60, %v958_v8 }
 0x421   :  { %v9838_v39 = vadd.f32 -0.0042742956, %v946_v7  ;;  %v9839_v47 = vadd.f32 -0.0042742956, %v947_v30  ;;  %v938_v61 = vmax.f32 %v9830_v53, 0.0  ;;  %v939_v10 = vmax.f32 %v9831_v57, 0.0 }
 0x422   :  { %v976_v58 = vsub.f32 %v12380_v35, %v12308_v29  ;;  %v974_v22 = vsub.f32 %v12384_v37, %v12312_v9 }
 0x423   :  { %v962_v52 = vmax.f32 %v9838_v39, 0.0  ;;  %v963_v28 = vmax.f32 %v9839_v47, 0.0  ;;  %v12388_v39 = vsub.f32 %v935_v1, %v959_v63 }
 0x424   :  { %v894_v42 = vpop.f32.mrf.mxu0  ;;  %v923_v21 = vpop.f32.mrf.mxu1 }
 0x425   :  { %v895_v46 = vadd.f32 %v894_v42, %v12050_v40  ;;  %v924_v49 = vadd.f32 %v923_v21, %v12052_v41  ;;  %v12376_v26 = vsub.f32 %v938_v61, %v962_v52  ;;  %v12378_v27 = vsub.f32 %v939_v10, %v963_v28 }
 0x426   :  { %v984_v21 = vmul.f32 0.64892334, %v976_v58  ;;  %v982_v28 = vmul.f32 0.64892334, %v974_v22 }
 0x427   :  { %v9832_v2 = vadd.f32 -0.0042742956, %v895_v46  ;;  %v948_v32 = vsub.f32 0.0, %v895_v46  ;;  %v9833_v33 = vadd.f32 -0.0042742956, %v924_v49  ;;  %v949_v6 = vsub.f32 0.0, %v924_v49 }
 0x428   :  { %v978_v25 = vsub.f32 %v12376_v26, %v12304_v34  ;;  %v979_v53 = vsub.f32 %v12378_v27, %v12306_v4  ;;  %v977_v34 = vsub.f32 %v12382_v14, %v12310_v36  ;;  %v975_v4 = vsub.f32 %v12388_v39, %v12316_v43 }
 0x429   :  { %v9840_v3 = vadd.f32 -0.0042742956, %v948_v32  ;;  %v9841_v59 = vadd.f32 -0.0042742956, %v949_v6  ;;  %v940_v5 = vmax.f32 %v9832_v2, 0.0  ;;  %v941_v7 = vmax.f32 %v9833_v33, 0.0 }
 0x42a   :  { %v986_v62 = vmul.f32 0.64892334, %v978_v25  ;;  %v987_v42 = vmul.f32 0.64892334, %v979_v53  ;;  %v985_v23 = vmul.f32 0.64892334, %v977_v34  ;;  %v992_v46 = vadd.f32 %v984_v21, %v12380_v35 }
 0x42b   :  { %v964_v17 = vmax.f32 %v9840_v3, 0.0  ;;  %v965_v30 = vmax.f32 %v9841_v59, 0.0  ;;  %v983_v9 = vmul.f32 0.64892334, %v975_v4  ;;  %v990_v49 = vadd.f32 %v982_v28, %v12384_v37 }
 0x42c   :  { %v994_v29 = vadd.f32 %v986_v62, %v12376_v26  ;;  %v995_v36 = vadd.f32 %v987_v42, %v12378_v27  ;;  %v993_v43 = vadd.f32 %v985_v23, %v12382_v14 }
 0x42d   :  { %v12390_v47 = vsub.f32 %v940_v5, %v964_v17  ;;  %v12392_v51 = vsub.f32 %v941_v7, %v965_v30  ;;  %v991_v50 = vadd.f32 %v983_v9, %v12388_v39 }
 0x42f   :  { %v980_v57 = vsub.f32 %v12390_v47, %v12318_v44  ;;  %v981_v38 = vsub.f32 %v12392_v51, %v12320_v45 }
 0x431   :  { %v988_v24 = vmul.f32 0.64892334, %v980_v57  ;;  %v989_v52 = vmul.f32 0.64892334, %v981_v38 }
 0x433   :  { %v996_v44 = vadd.f32 %v988_v24, %v12390_v47  ;;  %v997_v45 = vadd.f32 %v989_v52, %v12392_v51 }
 0x435   :  { %1010 = vmatpush.msrb.mxu2 %v996_v44  ;;  %1039 = vmatpush.msrb.mxu3 %v997_v45 }
 0x437   :  { %1011 = vmatpush.msrb.mxu2 %v994_v29  ;;  %1040 = vmatpush.msrb.mxu3 %v995_v36 }
 0x439   :  { %1012 = vmatpush.msrb.mxu2 %v992_v46  ;;  %1041 = vmatpush.msrb.mxu3 %v993_v43 }
 0x43b   :  { %1013 = vmatpush.msrb.mxu2 %v990_v49  ;;  %1042 = vmatpush.msrb.mxu3 %v991_v50 }
 0x43c   :  { %9842 = vmatmul.msk.f32.vlgmr.msrb.gmra.mxu2 %vm213_vm0, %v12344_v56  ;;  %9846 = vmatmul.msk.f32.vlgmr.msrb.gmra.mxu3 %vm213_vm0, %v12344_v56 }
 0x444   :  { %9843 = vmatmul.msk.f32.gmra.mxu2 %vm213_vm0, %v12350_v48  ;;  %9847 = vmatmul.msk.f32.gmra.mxu3 %vm213_vm0, %v12350_v48 }
 0x44c   :  { %9844 = vmatmul.msk.f32.gmra.mxu2 %vm213_vm0, %v12356_v13  ;;  %9848 = vmatmul.msk.f32.gmra.mxu3 %vm213_vm0, %v12356_v13 }
 0x454   :  { %9845 = vmatmul.msk.f32.gmra.mxu2 %vm213_vm0, %v12362_v18  ;;  %9849 = vmatmul.msk.f32.gmra.mxu3 %vm213_vm0, %v12362_v18 }
 0x4bf   :  { %v1015_v31 = vpop.f32.mrf.mxu2  ;;  %v1044_v61 = vpop.f32.mrf.mxu3 }
 0x4c0   :  { %v1016_v6 = vadd.f32 %v1015_v31, %v12032_v11  ;;  %v1045_v8 = vadd.f32 %v1044_v61, %v12034_v12 }
 0x4c2   :  { %v1072_v1 = vsub.f32 0.0, %v1016_v6  ;;  %v1073_v7 = vsub.f32 0.0, %v1045_v8  ;;  %v9850_v34 = vadd.f32 -0.0042742956, %v1016_v6  ;;  %v9851_v22 = vadd.f32 -0.0042742956, %v1045_v8 }
 0x4c4   :  { %v9858_v62 = vadd.f32 -0.0042742956, %v1072_v1  ;;  %v9859_v45 = vadd.f32 -0.0042742956, %v1073_v7 }
 0x4c6   :  { %v1088_v61 = vmax.f32 %v9858_v62, 0.0 }
 0x4c7   :  { %v1018_v10 = vpop.f32.mrf.mxu2  ;;  %v1047_v2 = vpop.f32.mrf.mxu3 }
 0x4c8   :  { %v1019_v32 = vadd.f32 %v1018_v10, %v12036_v15  ;;  %v1048_v33 = vadd.f32 %v1047_v2, %v12038_v16 }
 0x4ca   :  { %v1074_v63 = vsub.f32 0.0, %v1019_v32  ;;  %v1075_v60 = vsub.f32 0.0, %v1048_v33  ;;  %v9852_v24 = vadd.f32 -0.0042742956, %v1019_v32  ;;  %v9853_v52 = vadd.f32 -0.0042742956, %v1048_v33 }
 0x4cb   :  { %v1089_v33 = vmax.f32 %v9859_v45, 0.0 }
 0x4cc   :  { %v9860_v30 = vadd.f32 -0.0042742956, %v1074_v63  ;;  %v9861_v57 = vadd.f32 -0.0042742956, %v1075_v60  ;;  %v1066_v10 = vmax.f32 %v9852_v24, 0.0  ;;  %v1067_v2 = vmax.f32 %v9853_v52, 0.0 }
 0x4cd   :  { %v1065_v63 = vmax.f32 %v9851_v22, 0.0 }
 0x4ce   :  { %v1090_v36 = vmax.f32 %v9860_v30, 0.0  ;;  %v1091_v28 = vmax.f32 %v9861_v57, 0.0 }
 0x4cf   :  { %v1021_v54 = vpop.f32.mrf.mxu2  ;;  %v1050_v55 = vpop.f32.mrf.mxu3 }
 0x4d0   :  { %v1022_v3 = vadd.f32 %v1021_v54, %v12040_v19  ;;  %v1051_v59 = vadd.f32 %v1050_v55, %v12042_v20  ;;  %v1064_v55 = vmax.f32 %v9850_v34, 0.0 }
 0x4d2   :  { %v1076_v5 = vsub.f32 0.0, %v1022_v3  ;;  %v1077_v17 = vsub.f32 0.0, %v1051_v59  ;;  %v9854_v38 = vadd.f32 -0.0042742956, %v1022_v3  ;;  %v9855_v58 = vadd.f32 -0.0042742956, %v1051_v59 }
 0x4d3   :  { %v12444_v3 = vsub.f32 %v1066_v10, %v1090_v36  ;;  %v12446_v59 = vsub.f32 %v1067_v2, %v1091_v28  ;;  %v12448_v7 = vsub.f32 %v1064_v55, %v1088_v61 }
 0x4d4   :  { %v9862_v25 = vadd.f32 -0.0042742956, %v1076_v5  ;;  %v9863_v53 = vadd.f32 -0.0042742956, %v1077_v17  ;;  %v1068_v9 = vmax.f32 %v9854_v38, 0.0  ;;  %v1069_v46 = vmax.f32 %v9855_v58, 0.0 }
 0x4d5   :  { %v1106_v62 = vsub.f32 %v12444_v3, %v12380_v35  ;;  %v1104_v24 = vsub.f32 %v12448_v7, %v12384_v37 }
 0x4d6   :  { %v1092_v42 = vmax.f32 %v9862_v25, 0.0  ;;  %v1093_v21 = vmax.f32 %v9863_v53, 0.0  ;;  %v12452_v25 = vsub.f32 %v1065_v63, %v1089_v33 }
 0x4d7   :  { %v1024_v4 = vpop.f32.mrf.mxu2  ;;  %v1053_v44 = vpop.f32.mrf.mxu3 }
 0x4d8   :  { %v1025_v23 = vadd.f32 %v1024_v4, %v12050_v40  ;;  %v1054_v29 = vadd.f32 %v1053_v44, %v12052_v41  ;;  %v12440_v32 = vsub.f32 %v1068_v9, %v1092_v42  ;;  %v12442_v6 = vsub.f32 %v1069_v46, %v1093_v21 }
 0x4d9   :  { %v1114_v44 = vmul.f32 0.68764585, %v1106_v62  ;;  %v1112_v21 = vmul.f32 0.68764585, %v1104_v24 }
 0x4da   :  { %v9856_v43 = vadd.f32 -0.0042742956, %v1025_v23  ;;  %v1078_v49 = vsub.f32 0.0, %v1025_v23  ;;  %v9857_v50 = vadd.f32 -0.0042742956, %v1054_v29  ;;  %v1079_v31 = vsub.f32 0.0, %v1054_v29 }
 0x4db   :  { %v1108_v30 = vsub.f32 %v12440_v32, %v12376_v26  ;;  %v1109_v38 = vsub.f32 %v12442_v6, %v12378_v27  ;;  %v1107_v26 = vsub.f32 %v12446_v59, %v12382_v14  ;;  %v1105_v27 = vsub.f32 %v12452_v25, %v12388_v39 }
 0x4dc   :  { %v9864_v8 = vadd.f32 -0.0042742956, %v1078_v49  ;;  %v9865_v54 = vadd.f32 -0.0042742956, %v1079_v31  ;;  %v1070_v60 = vmax.f32 %v9856_v43, 0.0  ;;  %v1071_v5 = vmax.f32 %v9857_v50, 0.0 }
 0x4dd   :  { %v1116_v22 = vmul.f32 0.68764585, %v1108_v30  ;;  %v1117_v4 = vmul.f32 0.68764585, %v1109_v38  ;;  %v1115_v45 = vmul.f32 0.68764585, %v1107_v26  ;;  %v1122_v23 = vadd.f32 %v1114_v44, %v12444_v3 }
 0x4de   :  { %v1094_v1 = vmax.f32 %v9864_v8, 0.0  ;;  %v1095_v17 = vmax.f32 %v9865_v54, 0.0  ;;  %v1113_v37 = vmul.f32 0.68764585, %v1105_v27  ;;  %v1120_v29 = vadd.f32 %v1112_v21, %v12448_v7 }
 0x4df   :  { %v1124_v35 = vadd.f32 %v1116_v22, %v12440_v32  ;;  %v1125_v14 = vadd.f32 %v1117_v4, %v12442_v6  ;;  %v1123_v39 = vadd.f32 %v1115_v45, %v12446_v59 }
 0x4e0   :  { %v12454_v53 = vsub.f32 %v1070_v60, %v1094_v1  ;;  %v12456_v57 = vsub.f32 %v1071_v5, %v1095_v17  ;;  %v1121_v36 = vadd.f32 %v1113_v37, %v12452_v25 }
 0x4e2   :  { %v1110_v58 = vsub.f32 %v12454_v53, %v12390_v47  ;;  %v1111_v34 = vsub.f32 %v12456_v57, %v12392_v51 }
 0x4e4   :  { %v1118_v52 = vmul.f32 0.68764585, %v1110_v58  ;;  %v1119_v42 = vmul.f32 0.68764585, %v1111_v34 }
 0x4e6   :  { %v1126_v47 = vadd.f32 %v1118_v52, %v12454_v53  ;;  %v1127_v51 = vadd.f32 %v1119_v42, %v12456_v57 }
 0x4e8   :  { %1140 = vmatpush.msra.mxu0 %v1126_v47  ;;  %1169 = vmatpush.msra.mxu1 %v1127_v51 }
 0x4ea   :  { %1141 = vmatpush.msra.mxu0 %v1124_v35  ;;  %1170 = vmatpush.msra.mxu1 %v1125_v14 }
 0x4ec   :  { %1142 = vmatpush.msra.mxu0 %v1122_v23  ;;  %1171 = vmatpush.msra.mxu1 %v1123_v39 }
 0x4ee   :  { %1143 = vmatpush.msra.mxu0 %v1120_v29  ;;  %1172 = vmatpush.msra.mxu1 %v1121_v36 }
 0x4ef   :  { %9866 = vmatmul.msk.f32.vlgmr.msra.gmra.mxu0 %vm213_vm0, %v12344_v56  ;;  %9870 = vmatmul.msk.f32.vlgmr.msra.gmra.mxu1 %vm213_vm0, %v12344_v56 }
 0x4f7   :  { %9867 = vmatmul.msk.f32.gmra.mxu0 %vm213_vm0, %v12350_v48  ;;  %9871 = vmatmul.msk.f32.gmra.mxu1 %vm213_vm0, %v12350_v48 }
 0x4ff   :  { %9868 = vmatmul.msk.f32.gmra.mxu0 %vm213_vm0, %v12356_v13  ;;  %9872 = vmatmul.msk.f32.gmra.mxu1 %vm213_vm0, %v12356_v13 }
 0x507   :  { %9869 = vmatmul.msk.f32.gmra.mxu0 %vm213_vm0, %v12362_v18  ;;  %9873 = vmatmul.msk.f32.gmra.mxu1 %vm213_vm0, %v12362_v18 }
 0x56c   :  { %v1145_v28 = vpop.f32.mrf.mxu0  ;;  %v1174_v9 = vpop.f32.mrf.mxu1 }
 0x56d   :  { %v1146_v31 = vadd.f32 %v1145_v28, %v12032_v11  ;;  %v1175_v61 = vadd.f32 %v1174_v9, %v12034_v12 }
 0x56f   :  { %v1202_v63 = vsub.f32 0.0, %v1146_v31  ;;  %v1203_v5 = vsub.f32 0.0, %v1175_v61  ;;  %v9874_v26 = vadd.f32 -0.0042742956, %v1146_v31  ;;  %v9875_v24 = vadd.f32 -0.0042742956, %v1175_v61 }
 0x571   :  { %v9882_v22 = vadd.f32 -0.0042742956, %v1202_v63  ;;  %v9883_v51 = vadd.f32 -0.0042742956, %v1203_v5 }
 0x573   :  { %v1218_v9 = vmax.f32 %v9882_v22, 0.0 }
 0x574   :  { %v1148_v46 = vpop.f32.mrf.mxu0  ;;  %v1177_v43 = vpop.f32.mrf.mxu1 }
 0x575   :  { %v1149_v49 = vadd.f32 %v1148_v46, %v12036_v15  ;;  %v1178_v50 = vadd.f32 %v1177_v43, %v12038_v16 }
 0x577   :  { %v1204_v33 = vsub.f32 0.0, %v1149_v49  ;;  %v1205_v55 = vsub.f32 0.0, %v1178_v50  ;;  %v9876_v52 = vadd.f32 -0.0042742956, %v1149_v49  ;;  %v9877_v42 = vadd.f32 -0.0042742956, %v1178_v50 }
 0x578   :  { %v1219_v50 = vmax.f32 %v9883_v51, 0.0 }
 0x579   :  { %v9884_v17 = vadd.f32 -0.0042742956, %v1204_v33  ;;  %v9885_v58 = vadd.f32 -0.0042742956, %v1205_v55  ;;  %v1196_v46 = vmax.f32 %v9876_v52, 0.0  ;;  %v1197_v43 = vmax.f32 %v9877_v42, 0.0 }
 0x57a   :  { %v1195_v33 = vmax.f32 %v9875_v24, 0.0 }
 0x57b   :  { %v1220_v14 = vmax.f32 %v9884_v17, 0.0  ;;  %v1221_v21 = vmax.f32 %v9885_v58, 0.0 }
 0x57c   :  { %v1151_v10 = vpop.f32.mrf.mxu0  ;;  %v1180_v2 = vpop.f32.mrf.mxu1 }
 0x57d   :  { %v1152_v8 = vadd.f32 %v1151_v10, %v12040_v19  ;;  %v1181_v54 = vadd.f32 %v1180_v2, %v12042_v20  ;;  %v1194_v2 = vmax.f32 %v9874_v26, 0.0 }
 0x57f   :  { %v1206_v60 = vsub.f32 0.0, %v1152_v8  ;;  %v1207_v1 = vsub.f32 0.0, %v1181_v54  ;;  %v9878_v34 = vadd.f32 -0.0042742956, %v1152_v8  ;;  %v9879_v62 = vadd.f32 -0.0042742956, %v1181_v54 }
 0x580   :  { %v12508_v8 = vsub.f32 %v1196_v46, %v1220_v14  ;;  %v12510_v54 = vsub.f32 %v1197_v43, %v1221_v21  ;;  %v12512_v5 = vsub.f32 %v1194_v2, %v1218_v9 }
 0x581   :  { %v9886_v30 = vadd.f32 -0.0042742956, %v1206_v60  ;;  %v9887_v38 = vadd.f32 -0.0042742956, %v1207_v1  ;;  %v1198_v37 = vmax.f32 %v9878_v34, 0.0  ;;  %v1199_v23 = vmax.f32 %v9879_v62, 0.0 }
 0x582   :  { %v1236_v22 = vsub.f32 %v12508_v8, %v12444_v3  ;;  %v1234_v52 = vsub.f32 %v12512_v5, %v12448_v7 }
 0x583   :  { %v1222_v4 = vmax.f32 %v9886_v30, 0.0  ;;  %v1223_v44 = vmax.f32 %v9887_v38, 0.0  ;;  %v12516_v30 = vsub.f32 %v1195_v33, %v1219_v50 }
 0x584   :  { %v1154_v27 = vpop.f32.mrf.mxu0  ;;  %v1183_v47 = vpop.f32.mrf.mxu1 }
 0x585   :  { %v1155_v45 = vadd.f32 %v1154_v27, %v12050_v40  ;;  %v1184_v35 = vadd.f32 %v1183_v47, %v12052_v41  ;;  %v12504_v49 = vsub.f32 %v1198_v37, %v1222_v4  ;;  %v12506_v31 = vsub.f32 %v1199_v23, %v1223_v44 }
 0x586   :  { %v1244_v47 = vmul.f32 0.71849984, %v1236_v22  ;;  %v1242_v44 = vmul.f32 0.71849984, %v1234_v52 }
 0x587   :  { %v9880_v39 = vadd.f32 -0.0042742956, %v1155_v45  ;;  %v1208_v29 = vsub.f32 0.0, %v1155_v45  ;;  %v9881_v36 = vadd.f32 -0.0042742956, %v1184_v35  ;;  %v1209_v28 = vsub.f32 0.0, %v1184_v35 }
 0x588   :  { %v1238_v17 = vsub.f32 %v12504_v49, %v12440_v32  ;;  %v1239_v34 = vsub.f32 %v12506_v31, %v12442_v6  ;;  %v1237_v32 = vsub.f32 %v12510_v54, %v12446_v59  ;;  %v1235_v6 = vsub.f32 %v12516_v30, %v12452_v25 }
 0x589   :  { %v9888_v61 = vadd.f32 -0.0042742956, %v1208_v29  ;;  %v9889_v10 = vadd.f32 -0.0042742956, %v1209_v28  ;;  %v1200_v55 = vmax.f32 %v9880_v39, 0.0  ;;  %v1201_v60 = vmax.f32 %v9881_v36, 0.0 }
 0x58a   :  { %v1246_v24 = vmul.f32 0.71849984, %v1238_v17  ;;  %v1247_v27 = vmul.f32 0.71849984, %v1239_v34  ;;  %v1245_v51 = vmul.f32 0.71849984, %v1237_v32  ;;  %v1252_v45 = vadd.f32 %v1244_v47, %v12508_v8 }
 0x58b   :  { %v1224_v63 = vmax.f32 %v9888_v61, 0.0  ;;  %v1225_v1 = vmax.f32 %v9889_v10, 0.0  ;;  %v1243_v7 = vmul.f32 0.71849984, %v1235_v6  ;;  %v1250_v35 = vadd.f32 %v1242_v44, %v12512_v5 }
 0x58c   :  { %v1254_v3 = vadd.f32 %v1246_v24, %v12504_v49  ;;  %v1255_v59 = vadd.f32 %v1247_v27, %v12506_v31  ;;  %v1253_v25 = vadd.f32 %v1245_v51, %v12510_v54 }
 0x58d   :  { %v12518_v38 = vsub.f32 %v1200_v55, %v1224_v63  ;;  %v12520_v58 = vsub.f32 %v1201_v60, %v1225_v1  ;;  %v1251_v14 = vadd.f32 %v1243_v7, %v12516_v30 }
 0x58f   :  { %v1240_v62 = vsub.f32 %v12518_v38, %v12454_v53  ;;  %v1241_v26 = vsub.f32 %v12520_v58, %v12456_v57 }
 0x591   :  { %v1248_v42 = vmul.f32 0.71849984, %v1240_v62  ;;  %v1249_v4 = vmul.f32 0.71849984, %v1241_v26 }
 0x593   :  { %v1256_v53 = vadd.f32 %v1248_v42, %v12518_v38  ;;  %v1257_v57 = vadd.f32 %v1249_v4, %v12520_v58 }
 0x595   :  { %1270 = vmatpush.msra.mxu2 %v1256_v53  ;;  %1299 = vmatpush.msra.mxu3 %v1257_v57 }
 0x597   :  { %1271 = vmatpush.msra.mxu2 %v1254_v3  ;;  %1300 = vmatpush.msra.mxu3 %v1255_v59 }
 0x599   :  { %1272 = vmatpush.msra.mxu2 %v1252_v45  ;;  %1301 = vmatpush.msra.mxu3 %v1253_v25 }
 0x59b   :  { %1273 = vmatpush.msra.mxu2 %v1250_v35  ;;  %1302 = vmatpush.msra.mxu3 %v1251_v14 }
 0x59c   :  { %9890 = vmatmul.msk.f32.vlgmr.msra.gmra.mxu2 %vm213_vm0, %v12344_v56  ;;  %9894 = vmatmul.msk.f32.vlgmr.msra.gmra.mxu3 %vm213_vm0, %v12344_v56 }
 0x5a4   :  { %9891 = vmatmul.msk.f32.gmra.mxu2 %vm213_vm0, %v12350_v48  ;;  %9895 = vmatmul.msk.f32.gmra.mxu3 %vm213_vm0, %v12350_v48 }
 0x5ac   :  { %9892 = vmatmul.msk.f32.gmra.mxu2 %vm213_vm0, %v12356_v13  ;;  %9896 = vmatmul.msk.f32.gmra.mxu3 %vm213_vm0, %v12356_v13 }
 0x5b4   :  { %9893 = vmatmul.msk.f32.gmra.mxu2 %vm213_vm0, %v12362_v18  ;;  %9897 = vmatmul.msk.f32.gmra.mxu3 %vm213_vm0, %v12362_v18 }
 0x61f   :  { %v1275_v21 = vpop.f32.mrf.mxu2  ;;  %v1304_v37 = vpop.f32.mrf.mxu3 }
 0x620   :  { %v1276_v28 = vadd.f32 %v1275_v21, %v12032_v11  ;;  %v1305_v9 = vadd.f32 %v1304_v37, %v12034_v12 }
 0x622   :  { %v1332_v33 = vsub.f32 0.0, %v1276_v28  ;;  %v1333_v60 = vsub.f32 0.0, %v1305_v9  ;;  %v9898_v32 = vadd.f32 -0.0042742956, %v1276_v28  ;;  %v9899_v52 = vadd.f32 -0.0042742956, %v1305_v9 }
 0x624   :  { %v9906_v24 = vadd.f32 -0.0042742956, %v1332_v33  ;;  %v9907_v57 = vadd.f32 -0.0042742956, %v1333_v60 }
 0x626   :  { %v1348_v37 = vmax.f32 %v9906_v24, 0.0 }
 0x627   :  { %v1278_v23 = vpop.f32.mrf.mxu2  ;;  %v1307_v39 = vpop.f32.mrf.mxu3 }
 0x628   :  { %v1279_v29 = vadd.f32 %v1278_v23, %v12036_v15  ;;  %v1308_v36 = vadd.f32 %v1307_v39, %v12038_v16 }
 0x62a   :  { %v1334_v50 = vsub.f32 0.0, %v1279_v29  ;;  %v1335_v2 = vsub.f32 0.0, %v1308_v36  ;;  %v9900_v42 = vadd.f32 -0.0042742956, %v1279_v29  ;;  %v9901_v4 = vadd.f32 -0.0042742956, %v1308_v36 }
 0x62b   :  { %v1349_v36 = vmax.f32 %v9907_v57, 0.0 }
 0x62c   :  { %v9908_v1 = vadd.f32 -0.0042742956, %v1334_v50  ;;  %v9909_v62 = vadd.f32 -0.0042742956, %v1335_v2  ;;  %v1326_v23 = vmax.f32 %v9900_v42, 0.0  ;;  %v1327_v39 = vmax.f32 %v9901_v4, 0.0 }
 0x62d   :  { %v1325_v50 = vmax.f32 %v9899_v52, 0.0 }
 0x62e   :  { %v1350_v59 = vmax.f32 %v9908_v1, 0.0  ;;  %v1351_v44 = vmax.f32 %v9909_v62, 0.0 }
 0x62f   :  { %v1281_v46 = vpop.f32.mrf.mxu2  ;;  %v1310_v43 = vpop.f32.mrf.mxu3 }
 0x630   :  { %v1282_v61 = vadd.f32 %v1281_v46, %v12040_v19  ;;  %v1311_v10 = vadd.f32 %v1310_v43, %v12042_v20  ;;  %v1324_v43 = vmax.f32 %v9898_v32, 0.0 }
 0x632   :  { %v1336_v55 = vsub.f32 0.0, %v1282_v61  ;;  %v1337_v63 = vsub.f32 0.0, %v1311_v10  ;;  %v9902_v26 = vadd.f32 -0.0042742956, %v1282_v61  ;;  %v9903_v22 = vadd.f32 -0.0042742956, %v1311_v10 }
 0x633   :  { %v12572_v61 = vsub.f32 %v1326_v23, %v1350_v59  ;;  %v12574_v10 = vsub.f32 %v1327_v39, %v1351_v44  ;;  %v12576_v60 = vsub.f32 %v1324_v43, %v1348_v37 }
 0x634   :  { %v9910_v17 = vadd.f32 -0.0042742956, %v1336_v55  ;;  %v9911_v34 = vadd.f32 -0.0042742956, %v1337_v63  ;;  %v1328_v7 = vmax.f32 %v9902_v26, 0.0  ;;  %v1329_v45 = vmax.f32 %v9903_v22, 0.0 }
 0x635   :  { %v1366_v24 = vsub.f32 %v12572_v61, %v12508_v8  ;;  %v1364_v42 = vsub.f32 %v12576_v60, %v12512_v5 }
 0x636   :  { %v1352_v27 = vmax.f32 %v9910_v17, 0.0  ;;  %v1353_v47 = vmax.f32 %v9911_v34, 0.0  ;;  %v12580_v17 = vsub.f32 %v1325_v50, %v1349_v36 }
 0x637   :  { %v1284_v6 = vpop.f32.mrf.mxu2  ;;  %v1313_v53 = vpop.f32.mrf.mxu3 }
 0x638   :  { %v1285_v51 = vadd.f32 %v1284_v6, %v12050_v40  ;;  %v1314_v3 = vadd.f32 %v1313_v53, %v12052_v41  ;;  %v12568_v29 = vsub.f32 %v1328_v7, %v1352_v27  ;;  %v12570_v28 = vsub.f32 %v1329_v45, %v1353_v47 }
 0x639   :  { %v1374_v53 = vmul.f32 0.743691, %v1366_v24  ;;  %v1372_v47 = vmul.f32 0.743691, %v1364_v42 }
 0x63a   :  { %v9904_v25 = vadd.f32 -0.0042742956, %v1285_v51  ;;  %v1338_v35 = vsub.f32 0.0, %v1285_v51  ;;  %v9905_v14 = vadd.f32 -0.0042742956, %v1314_v3  ;;  %v1339_v21 = vsub.f32 0.0, %v1314_v3 }
 0x63b   :  { %v1368_v1 = vsub.f32 %v12568_v29, %v12504_v49  ;;  %v1369_v26 = vsub.f32 %v12570_v28, %v12506_v31  ;;  %v1367_v49 = vsub.f32 %v12574_v10, %v12510_v54  ;;  %v1365_v31 = vsub.f32 %v12580_v17, %v12516_v30 }
 0x63c   :  { %v9912_v9 = vadd.f32 -0.0042742956, %v1338_v35  ;;  %v9913_v46 = vadd.f32 -0.0042742956, %v1339_v21  ;;  %v1330_v2 = vmax.f32 %v9904_v25, 0.0  ;;  %v1331_v55 = vmax.f32 %v9905_v14, 0.0 }
 0x63d   :  { %v1376_v52 = vmul.f32 0.743691, %v1368_v1  ;;  %v1377_v6 = vmul.f32 0.743691, %v1369_v26  ;;  %v1375_v57 = vmul.f32 0.743691, %v1367_v49  ;;  %v1382_v51 = vadd.f32 %v1374_v53, %v12572_v61 }
 0x63e   :  { %v1354_v33 = vmax.f32 %v9912_v9, 0.0  ;;  %v1355_v63 = vmax.f32 %v9913_v46, 0.0  ;;  %v1373_v5 = vmul.f32 0.743691, %v1365_v31  ;;  %v1380_v3 = vadd.f32 %v1372_v47, %v12576_v60 }
 0x63f   :  { %v1384_v8 = vadd.f32 %v1376_v52, %v12568_v29  ;;  %v1385_v54 = vadd.f32 %v1377_v6, %v12570_v28  ;;  %v1383_v30 = vadd.f32 %v1375_v57, %v12574_v10 }
 0x640   :  { %v12582_v34 = vsub.f32 %v1330_v2, %v1354_v33  ;;  %v12584_v62 = vsub.f32 %v1331_v55, %v1355_v63  ;;  %v1381_v59 = vadd.f32 %v1373_v5, %v12580_v17 }
 0x642   :  { %v1370_v22 = vsub.f32 %v12582_v34, %v12518_v38  ;;  %v1371_v32 = vsub.f32 %v12584_v62, %v12520_v58 }
 0x644   :  { %v1378_v4 = vmul.f32 0.743691, %v1370_v22  ;;  %v1379_v27 = vmul.f32 0.743691, %v1371_v32 }
 0x646   :  { %v1386_v38 = vadd.f32 %v1378_v4, %v12582_v34  ;;  %v1387_v58 = vadd.f32 %v1379_v27, %v12584_v62 }
 0x648   :  { %1400 = vmatpush.msrb.mxu0 %v1386_v38  ;;  %1429 = vmatpush.msrb.mxu1 %v1387_v58 }
 0x64a   :  { %1401 = vmatpush.msrb.mxu0 %v1384_v8  ;;  %1430 = vmatpush.msrb.mxu1 %v1385_v54 }
 0x64c   :  { %1402 = vmatpush.msrb.mxu0 %v1382_v51  ;;  %1431 = vmatpush.msrb.mxu1 %v1383_v30 }
 0x64e   :  { %1403 = vmatpush.msrb.mxu0 %v1380_v3  ;;  %1432 = vmatpush.msrb.mxu1 %v1381_v59 }
 0x64f   :  { %9914 = vmatmul.msk.f32.vlgmr.msrb.gmra.mxu0 %vm213_vm0, %v12344_v56  ;;  %9918 = vmatmul.msk.f32.vlgmr.msrb.gmra.mxu1 %vm213_vm0, %v12344_v56 }
 0x657   :  { %9915 = vmatmul.msk.f32.gmra.mxu0 %vm213_vm0, %v12350_v48  ;;  %9919 = vmatmul.msk.f32.gmra.mxu1 %vm213_vm0, %v12350_v48 }
 0x65f   :  { %9916 = vmatmul.msk.f32.gmra.mxu0 %vm213_vm0, %v12356_v13  ;;  %9920 = vmatmul.msk.f32.gmra.mxu1 %vm213_vm0, %v12356_v13 }
 0x667   :  { %9917 = vmatmul.msk.f32.gmra.mxu0 %vm213_vm0, %v12362_v18  ;;  %9921 = vmatmul.msk.f32.gmra.mxu1 %vm213_vm0, %v12362_v18 }
 0x6cc   :  { %v1405_v44 = vpop.f32.mrf.mxu0  ;;  %v1434_v56 = vpop.f32.mrf.mxu1 }
 0x6cd   :  { %v1406_v35 = vadd.f32 %v1405_v44, %v12032_v11  ;;  %v1435_v14 = vadd.f32 %v1434_v56, %v12034_v12 }
 0x6cf   :  { %v1462_v36 = vsub.f32 0.0, %v1406_v35  ;;  %v1463_v43 = vsub.f32 0.0, %v1435_v14  ;;  %v9922_v26 = vadd.f32 -0.0042742956, %v1406_v35  ;;  %v9923_v32 = vadd.f32 -0.0042742956, %v1435_v14 }
 0x6d1   :  { %v9930_v22 = vadd.f32 -0.0042742956, %v1462_v36  ;;  %v9931_v27 = vadd.f32 -0.0042742956, %v1463_v43  ;;  %v1455_v35 = vmax.f32 %v9923_v32, 0.0 }
 0x6d3   :  { %v1478_v30 = vmax.f32 %v9930_v22, 0.0  ;;  %v1479_v56 = vmax.f32 %v9931_v27, 0.0 }
 0x6d4   :  { %v1408_v7 = vpop.f32.mrf.mxu0  ;;  %v1437_v45 = vpop.f32.mrf.mxu1 }
 0x6d5   :  { %v1409_v25 = vadd.f32 %v1408_v7, %v12036_v15  ;;  %v1438_v48 = vadd.f32 %v1437_v45, %v12038_v16 }
 0x6d7   :  { %v1464_v37 = vsub.f32 0.0, %v1409_v25  ;;  %v1465_v18 = vsub.f32 0.0, %v1438_v48  ;;  %v9924_v24 = vadd.f32 -0.0042742956, %v1409_v25  ;;  %v9925_v49 = vadd.f32 -0.0042742956, %v1438_v48 }
 0x6d8   :  { %v1454_v48 = vmax.f32 %v9922_v26, 0.0 }
 0x6d9   :  { %v9932_v50 = vadd.f32 -0.0042742956, %v1464_v37  ;;  %v9933_v55 = vadd.f32 -0.0042742956, %v1465_v18  ;;  %v1456_v3 = vmax.f32 %v9924_v24, 0.0  ;;  %v1457_v59 = vmax.f32 %v9925_v49, 0.0 }
 0x6da   :  { %v12640_v18 = vsub.f32 %v1454_v48, %v1478_v30 }
 0x6db   :  { %v1480_v58 = vmax.f32 %v9932_v50, 0.0  ;;  %v1481_v53 = vmax.f32 %v9933_v55, 0.0 }
 0x6dc   :  { %v1411_v21 = vpop.f32.mrf.mxu0  ;;  %v1440_v13 = vpop.f32.mrf.mxu1 }
 0x6dd   :  { %v1412_v23 = vadd.f32 %v1411_v21, %v12040_v19  ;;  %v1441_v39 = vadd.f32 %v1440_v13, %v12042_v20  ;;  %v12636_v14 = vsub.f32 %v1456_v3, %v1480_v58  ;;  %v12638_v21 = vsub.f32 %v1457_v59, %v1481_v53  ;;  %v12690_v58 = vld [vmem:[#allocation2 + $0x18] sm:$0xff] }
 0x6df   :  { %v1466_v9 = vsub.f32 0.0, %v1412_v23  ;;  %v1467_v46 = vsub.f32 0.0, %v1441_v39  ;;  %v9926_v63 = vadd.f32 -0.0042742956, %v1412_v23  ;;  %v9927_v1 = vadd.f32 -0.0042742956, %v1441_v39 }
 0x6e0   :  { %v1496_v55 = vsub.f32 %v12636_v14, %v12572_v61 }
 0x6e1   :  { %v9934_v2 = vadd.f32 -0.0042742956, %v1466_v9  ;;  %v9935_v33 = vadd.f32 -0.0042742956, %v1467_v46  ;;  %v1458_v57 = vmax.f32 %v9926_v63, 0.0  ;;  %v1459_v8 = vmax.f32 %v9927_v1, 0.0 }
 0x6e2   :  { %v12644_v9 = vsub.f32 %v1455_v35, %v1479_v56  ;;  %v1494_v1 = vsub.f32 %v12640_v18, %v12576_v60  ;;  %v1504_v24 = vmul.f32 0.7646647, %v1496_v55 }
 0x6e3   :  { %v1482_v52 = vmax.f32 %v9934_v2, 0.0  ;;  %v1483_v6 = vmax.f32 %v9935_v33, 0.0 }
 0x6e4   :  { %v1414_v42 = vpop.f32.mrf.mxu0  ;;  %v1443_v4 = vpop.f32.mrf.mxu1 }
 0x6e5   :  { %v1415_v31 = vadd.f32 %v1414_v42, %v12050_v40  ;;  %v1444_v38 = vadd.f32 %v1443_v4, %v12052_v41  ;;  %v12632_v44 = vsub.f32 %v1458_v57, %v1482_v52  ;;  %v12634_v7 = vsub.f32 %v1459_v8, %v1483_v6  ;;  %v12672_v6 = vld [vmem:[#allocation2] sm:$0xff] }
 0x6e6   :  { %v1502_v52 = vmul.f32 0.7646647, %v1494_v1  ;;  %v1512_v42 = vadd.f32 %v1504_v24, %v12636_v14 }
 0x6e7   :  { %v9928_v54 = vadd.f32 -0.0042742956, %v1415_v31  ;;  %v1468_v47 = vsub.f32 0.0, %v1415_v31  ;;  %v9929_v5 = vadd.f32 -0.0042742956, %v1444_v38  ;;  %v1469_v51 = vsub.f32 0.0, %v1444_v38 }
 0x6e8   :  { %v1498_v36 = vsub.f32 %v12632_v44, %v12568_v29  ;;  %v1499_v50 = vsub.f32 %v12634_v7, %v12570_v28  ;;  %v1497_v29 = vsub.f32 %v12638_v21, %v12574_v10  ;;  %v1495_v28 = vsub.f32 %v12644_v9, %v12580_v17  ;;  %v12678_v31 = vld [vmem:[#allocation2 + $0x8] sm:$0xff]  ;;  %v12684_v38 = vld [vmem:[#allocation2 + $0x10] sm:$0xff] }
 0x6e9   :  { %v9936_v45 = vadd.f32 -0.0042742956, %v1468_v47  ;;  %v9937_v25 = vadd.f32 -0.0042742956, %v1469_v51  ;;  %v1460_v13 = vmax.f32 %v9928_v54, 0.0  ;;  %v1461_v23 = vmax.f32 %v9929_v5, 0.0 }
 0x6ea   :  { %v1506_v63 = vmul.f32 0.7646647, %v1498_v36  ;;  %v1507_v32 = vmul.f32 0.7646647, %v1499_v50  ;;  %v1505_v49 = vmul.f32 0.7646647, %v1497_v29  ;;  %v1510_v4 = vadd.f32 %v1502_v52, %v12640_v18 }
 0x6eb   :  { %v1484_v37 = vmax.f32 %v9936_v45, 0.0  ;;  %v1485_v39 = vmax.f32 %v9937_v25, 0.0  ;;  %v1503_v60 = vmul.f32 0.7646647, %v1495_v28 }
 0x6ec   :  { %v1514_v61 = vadd.f32 %v1506_v63, %v12632_v44  ;;  %v1515_v10 = vadd.f32 %v1507_v32, %v12634_v7  ;;  %v1513_v17 = vadd.f32 %v1505_v49, %v12638_v21 }
 0x6ed   :  { %v12646_v46 = vsub.f32 %v1460_v13, %v1484_v37  ;;  %v12648_v43 = vsub.f32 %v1461_v23, %v1485_v39  ;;  %v1511_v27 = vadd.f32 %v1503_v60, %v12644_v9 }
 0x6ef   :  { %v1500_v2 = vsub.f32 %v12646_v46, %v12582_v34  ;;  %v1501_v33 = vsub.f32 %v12648_v43, %v12584_v62 }
 0x6f1   :  { %v1508_v26 = vmul.f32 0.7646647, %v1500_v2  ;;  %v1509_v22 = vmul.f32 0.7646647, %v1501_v33 }
 0x6f3   :  { %v1516_v34 = vadd.f32 %v1508_v26, %v12646_v46  ;;  %v1517_v62 = vadd.f32 %v1509_v22, %v12648_v43 }
 0x6f5   :  { %1530 = vmatpush.msrb.mxu2 %v1516_v34  ;;  %1559 = vmatpush.msrb.mxu3 %v1517_v62 }
 0x6f7   :  { %1531 = vmatpush.msrb.mxu2 %v1514_v61  ;;  %1560 = vmatpush.msrb.mxu3 %v1515_v10 }
 0x6f9   :  { %1532 = vmatpush.msrb.mxu2 %v1512_v42  ;;  %1561 = vmatpush.msrb.mxu3 %v1513_v17 }
 0x6fb   :  { %1533 = vmatpush.msrb.mxu2 %v1510_v4  ;;  %1562 = vmatpush.msrb.mxu3 %v1511_v27 }
 0x6fc   :  { %9938 = vmatmul.msk.f32.vlgmr.msrb.gmra.mxu2 %vm213_vm0, %v12672_v6  ;;  %9942 = vmatmul.msk.f32.vlgmr.msrb.gmra.mxu3 %vm213_vm0, %v12672_v6 }
 0x704   :  { %9939 = vmatmul.msk.f32.gmra.mxu2 %vm213_vm0, %v12678_v31  ;;  %9943 = vmatmul.msk.f32.gmra.mxu3 %vm213_vm0, %v12678_v31 }
 0x70c   :  { %9940 = vmatmul.msk.f32.gmra.mxu2 %vm213_vm0, %v12684_v38  ;;  %9944 = vmatmul.msk.f32.gmra.mxu3 %vm213_vm0, %v12684_v38 }
 0x714   :  { %9941 = vmatmul.msk.f32.gmra.mxu2 %vm213_vm0, %v12690_v58  ;;  %9945 = vmatmul.msk.f32.gmra.mxu3 %vm213_vm0, %v12690_v58 }
 0x77f   :  { %v1535_v53 = vpop.f32.mrf.mxu2  ;;  %v1564_v57 = vpop.f32.mrf.mxu3 }
 0x780   :  { %v1536_v51 = vadd.f32 %v1535_v53, %v12032_v11  ;;  %v1565_v30 = vadd.f32 %v1564_v57, %v12034_v12 }
 0x782   :  { %v1592_v35 = vsub.f32 0.0, %v1536_v51  ;;  %v1593_v23 = vsub.f32 0.0, %v1565_v30  ;;  %v9946_v29 = vadd.f32 -0.0042742956, %v1536_v51  ;;  %v9947_v1 = vadd.f32 -0.0042742956, %v1565_v30 }
 0x784   :  { %v9954_v63 = vadd.f32 -0.0042742956, %v1592_v35  ;;  %v9955_v62 = vadd.f32 -0.0042742956, %v1593_v23 }
 0x786   :  { %v1608_v57 = vmax.f32 %v9954_v63, 0.0 }
 0x787   :  { %v1538_v8 = vpop.f32.mrf.mxu2  ;;  %v1567_v54 = vpop.f32.mrf.mxu3 }
 0x788   :  { %v1539_v47 = vadd.f32 %v1538_v8, %v12036_v15  ;;  %v1568_v5 = vadd.f32 %v1567_v54, %v12038_v16 }
 0x78a   :  { %v1594_v56 = vsub.f32 0.0, %v1539_v47  ;;  %v1595_v48 = vsub.f32 0.0, %v1568_v5  ;;  %v9948_v26 = vadd.f32 -0.0042742956, %v1539_v47  ;;  %v9949_v22 = vadd.f32 -0.0042742956, %v1568_v5 }
 0x78b   :  { %v1609_v5 = vmax.f32 %v9955_v62, 0.0 }
 0x78c   :  { %v9956_v39 = vadd.f32 -0.0042742956, %v1594_v56  ;;  %v9957_v2 = vadd.f32 -0.0042742956, %v1595_v48  ;;  %v1586_v8 = vmax.f32 %v9948_v26, 0.0  ;;  %v1587_v54 = vmax.f32 %v9949_v22, 0.0 }
 0x78d   :  { %v1585_v56 = vmax.f32 %v9947_v1, 0.0 }
 0x78e   :  { %v1610_v10 = vmax.f32 %v9956_v39, 0.0  ;;  %v1611_v52 = vmax.f32 %v9957_v2, 0.0 }
 0x78f   :  { %v1541_v3 = vpop.f32.mrf.mxu2  ;;  %v1570_v59 = vpop.f32.mrf.mxu3 }
 0x790   :  { %v1542_v45 = vadd.f32 %v1541_v3, %v12040_v19  ;;  %v1571_v25 = vadd.f32 %v1570_v59, %v12042_v20  ;;  %v1584_v59 = vmax.f32 %v9946_v29, 0.0 }
 0x792   :  { %v1596_v13 = vsub.f32 0.0, %v1542_v45  ;;  %v1597_v37 = vsub.f32 0.0, %v1571_v25  ;;  %v9950_v33 = vadd.f32 -0.0042742956, %v1542_v45  ;;  %v9951_v55 = vadd.f32 -0.0042742956, %v1571_v25 }
 0x793   :  { %v12708_v45 = vsub.f32 %v1586_v8, %v1610_v10  ;;  %v12710_v25 = vsub.f32 %v1587_v54, %v1611_v52  ;;  %v12712_v23 = vsub.f32 %v1584_v59, %v1608_v57 }
 0x794   :  { %v9958_v36 = vadd.f32 -0.0042742956, %v1596_v13  ;;  %v9959_v50 = vadd.f32 -0.0042742956, %v1597_v37  ;;  %v1588_v60 = vmax.f32 %v9950_v33, 0.0  ;;  %v1589_v42 = vmax.f32 %v9951_v55, 0.0 }
 0x795   :  { %v1626_v63 = vsub.f32 %v12708_v45, %v12636_v14  ;;  %v1624_v26 = vsub.f32 %v12712_v23, %v12640_v18 }
 0x796   :  { %v1612_v32 = vmax.f32 %v9958_v36, 0.0  ;;  %v1613_v24 = vmax.f32 %v9959_v50, 0.0  ;;  %v12716_v36 = vsub.f32 %v1585_v56, %v1609_v5 }
 0x797   :  { %v1544_v28 = vpop.f32.mrf.mxu2  ;;  %v1573_v34 = vpop.f32.mrf.mxu3 }
 0x798   :  { %v1545_v49 = vadd.f32 %v1544_v28, %v12050_v40  ;;  %v1574_v61 = vadd.f32 %v1573_v34, %v12052_v41  ;;  %v12704_v47 = vsub.f32 %v1588_v60, %v1612_v32  ;;  %v12706_v51 = vsub.f32 %v1589_v42, %v1613_v24 }
 0x799   :  { %v1634_v34 = vmul.f32 0.78240925, %v1626_v63  ;;  %v1632_v24 = vmul.f32 0.78240925, %v1624_v26 }
 0x79a   :  { %v9952_v17 = vadd.f32 -0.0042742956, %v1545_v49  ;;  %v1598_v4 = vsub.f32 0.0, %v1545_v49  ;;  %v9953_v27 = vadd.f32 -0.0042742956, %v1574_v61  ;;  %v1599_v53 = vsub.f32 0.0, %v1574_v61 }
 0x79b   :  { %v1628_v39 = vsub.f32 %v12704_v47, %v12632_v44  ;;  %v1629_v33 = vsub.f32 %v12706_v51, %v12634_v7  ;;  %v1627_v44 = vsub.f32 %v12710_v25, %v12638_v21  ;;  %v1625_v7 = vsub.f32 %v12716_v36, %v12644_v9 }
 0x79c   :  { %v9960_v30 = vadd.f32 -0.0042742956, %v1598_v4  ;;  %v9961_v3 = vadd.f32 -0.0042742956, %v1599_v53  ;;  %v1590_v48 = vmax.f32 %v9952_v17, 0.0  ;;  %v1591_v13 = vmax.f32 %v9953_v27, 0.0 }
 0x79d   :  { %v1636_v1 = vmul.f32 0.78240925, %v1628_v39  ;;  %v1637_v28 = vmul.f32 0.78240925, %v1629_v33  ;;  %v1635_v62 = vmul.f32 0.78240925, %v1627_v44  ;;  %v1642_v49 = vadd.f32 %v1634_v34, %v12708_v45 }
 0x79e   :  { %v1614_v35 = vmax.f32 %v9960_v30, 0.0  ;;  %v1615_v37 = vmax.f32 %v9961_v3, 0.0  ;;  %v1633_v18 = vmul.f32 0.78240925, %v1625_v7  ;;  %v1640_v61 = vadd.f32 %v1632_v24, %v12712_v23 }
 0x79f   :  { %v1644_v14 = vadd.f32 %v1636_v1, %v12704_v47  ;;  %v1645_v21 = vadd.f32 %v1637_v28, %v12706_v51  ;;  %v1643_v9 = vadd.f32 %v1635_v62, %v12710_v25 }
 0x7a0   :  { %v12718_v50 = vsub.f32 %v1590_v48, %v1614_v35  ;;  %v12720_v2 = vsub.f32 %v1591_v13, %v1615_v37  ;;  %v1641_v10 = vadd.f32 %v1633_v18, %v12716_v36 }
 0x7a2   :  { %v1630_v55 = vsub.f32 %v12718_v50, %v12646_v46  ;;  %v1631_v29 = vsub.f32 %v12720_v2, %v12648_v43 }
 0x7a4   :  { %v1638_v22 = vmul.f32 0.78240925, %v1630_v55  ;;  %v1639_v32 = vmul.f32 0.78240925, %v1631_v29 }
 0x7a6   :  { %v1646_v46 = vadd.f32 %v1638_v22, %v12718_v50  ;;  %v1647_v43 = vadd.f32 %v1639_v32, %v12720_v2 }
 0x7a8   :  { %1660 = vmatpush.msra.mxu0 %v1646_v46  ;;  %1689 = vmatpush.msra.mxu1 %v1647_v43 }
 0x7aa   :  { %1661 = vmatpush.msra.mxu0 %v1644_v14  ;;  %1690 = vmatpush.msra.mxu1 %v1645_v21 }
 0x7ac   :  { %1662 = vmatpush.msra.mxu0 %v1642_v49  ;;  %1691 = vmatpush.msra.mxu1 %v1643_v9 }
 0x7ae   :  { %1663 = vmatpush.msra.mxu0 %v1640_v61  ;;  %1692 = vmatpush.msra.mxu1 %v1641_v10 }
 0x7af   :  { %9962 = vmatmul.msk.f32.vlgmr.msra.gmra.mxu0 %vm213_vm0, %v12672_v6  ;;  %9966 = vmatmul.msk.f32.vlgmr.msra.gmra.mxu1 %vm213_vm0, %v12672_v6 }
 0x7b7   :  { %9963 = vmatmul.msk.f32.gmra.mxu0 %vm213_vm0, %v12678_v31  ;;  %9967 = vmatmul.msk.f32.gmra.mxu1 %vm213_vm0, %v12678_v31 }
 0x7bf   :  { %9964 = vmatmul.msk.f32.gmra.mxu0 %vm213_vm0, %v12684_v38  ;;  %9968 = vmatmul.msk.f32.gmra.mxu1 %vm213_vm0, %v12684_v38 }
 0x7c7   :  { %9965 = vmatmul.msk.f32.gmra.mxu0 %vm213_vm0, %v12690_v58  ;;  %9969 = vmatmul.msk.f32.gmra.mxu1 %vm213_vm0, %v12690_v58 }
 0x82c   :  { %v1665_v52 = vpop.f32.mrf.mxu0  ;;  %v1694_v60 = vpop.f32.mrf.mxu1 }
 0x82d   :  { %v1666_v53 = vadd.f32 %v1665_v52, %v12032_v11  ;;  %v1695_v57 = vadd.f32 %v1694_v60, %v12034_v12 }
 0x82f   :  { %v1722_v56 = vsub.f32 0.0, %v1666_v53  ;;  %v1723_v13 = vsub.f32 0.0, %v1695_v57  ;;  %v9970_v44 = vadd.f32 -0.0042742956, %v1666_v53  ;;  %v9971_v26 = vadd.f32 -0.0042742956, %v1695_v57 }
 0x831   :  { %v9978_v1 = vadd.f32 -0.0042742956, %v1722_v56  ;;  %v9979_v43 = vadd.f32 -0.0042742956, %v1723_v13 }
 0x833   :  { %v1738_v60 = vmax.f32 %v9978_v1, 0.0 }
 0x834   :  { %v1668_v42 = vpop.f32.mrf.mxu0  ;;  %v1697_v17 = vpop.f32.mrf.mxu1 }
 0x835   :  { %v1669_v4 = vadd.f32 %v1668_v42, %v12036_v15  ;;  %v1698_v27 = vadd.f32 %v1697_v17, %v12038_v16 }
 0x837   :  { %v1724_v5 = vsub.f32 0.0, %v1669_v4  ;;  %v1725_v59 = vsub.f32 0.0, %v1698_v27  ;;  %v9972_v22 = vadd.f32 -0.0042742956, %v1669_v4  ;;  %v9973_v32 = vadd.f32 -0.0042742956, %v1698_v27 }
 0x838   :  { %v1739_v27 = vmax.f32 %v9979_v43, 0.0 }
 0x839   :  { %v9980_v37 = vadd.f32 -0.0042742956, %v1724_v5  ;;  %v9981_v55 = vadd.f32 -0.0042742956, %v1725_v59  ;;  %v1716_v42 = vmax.f32 %v9972_v22, 0.0  ;;  %v1717_v17 = vmax.f32 %v9973_v32, 0.0 }
 0x83a   :  { %v1715_v5 = vmax.f32 %v9971_v26, 0.0 }
 0x83b   :  { %v1740_v21 = vmax.f32 %v9980_v37, 0.0  ;;  %v1741_v24 = vmax.f32 %v9981_v55, 0.0 }
 0x83c   :  { %v1671_v8 = vpop.f32.mrf.mxu0  ;;  %v1700_v54 = vpop.f32.mrf.mxu1 }
 0x83d   :  { %v1672_v30 = vadd.f32 %v1671_v8, %v12040_v19  ;;  %v1701_v3 = vadd.f32 %v1700_v54, %v12042_v20  ;;  %v1714_v54 = vmax.f32 %v9970_v44, 0.0 }
 0x83f   :  { %v1726_v48 = vsub.f32 0.0, %v1672_v30  ;;  %v1727_v35 = vsub.f32 0.0, %v1701_v3  ;;  %v9974_v29 = vadd.f32 -0.0042742956, %v1672_v30  ;;  %v9975_v63 = vadd.f32 -0.0042742956, %v1701_v3 }
 0x840   :  { %v12772_v30 = vsub.f32 %v1716_v42, %v1740_v21  ;;  %v12774_v3 = vsub.f32 %v1717_v17, %v1741_v24  ;;  %v12776_v13 = vsub.f32 %v1714_v54, %v1738_v60 }
 0x841   :  { %v9982_v39 = vadd.f32 -0.0042742956, %v1726_v48  ;;  %v9983_v33 = vadd.f32 -0.0042742956, %v1727_v35  ;;  %v1718_v18 = vmax.f32 %v9974_v29, 0.0  ;;  %v1719_v49 = vmax.f32 %v9975_v63, 0.0 }
 0x842   :  { %v1756_v1 = vsub.f32 %v12772_v30, %v12708_v45  ;;  %v1754_v22 = vsub.f32 %v12776_v13, %v12712_v23 }
 0x843   :  { %v1742_v28 = vmax.f32 %v9982_v39, 0.0  ;;  %v1743_v34 = vmax.f32 %v9983_v33, 0.0  ;;  %v12780_v39 = vsub.f32 %v1715_v5, %v1739_v27 }
 0x844   :  { %v1674_v7 = vpop.f32.mrf.mxu0  ;;  %v1703_v46 = vpop.f32.mrf.mxu1 }
 0x845   :  { %v1675_v62 = vadd.f32 %v1674_v7, %v12050_v40  ;;  %v1704_v14 = vadd.f32 %v1703_v46, %v12052_v41  ;;  %v12768_v4 = vsub.f32 %v1718_v18, %v1742_v28  ;;  %v12770_v53 = vsub.f32 %v1719_v49, %v1743_v34 }
 0x846   :  { %v1764_v46 = vmul.f32 0.7976244, %v1756_v1  ;;  %v1762_v34 = vmul.f32 0.7976244, %v1754_v22 }
 0x847   :  { %v9976_v9 = vadd.f32 -0.0042742956, %v1675_v62  ;;  %v1728_v61 = vsub.f32 0.0, %v1675_v62  ;;  %v9977_v10 = vadd.f32 -0.0042742956, %v1704_v14  ;;  %v1729_v52 = vsub.f32 0.0, %v1704_v14 }
 0x848   :  { %v1758_v37 = vsub.f32 %v12768_v4, %v12704_v47  ;;  %v1759_v29 = vsub.f32 %v12770_v53, %v12706_v51  ;;  %v1757_v47 = vsub.f32 %v12774_v3, %v12710_v25  ;;  %v1755_v51 = vsub.f32 %v12780_v39, %v12716_v36 }
 0x849   :  { %v9984_v57 = vadd.f32 -0.0042742956, %v1728_v61  ;;  %v9985_v8 = vadd.f32 -0.0042742956, %v1729_v52  ;;  %v1720_v59 = vmax.f32 %v9976_v9, 0.0  ;;  %v1721_v48 = vmax.f32 %v9977_v10, 0.0 }
 0x84a   :  { %v1766_v26 = vmul.f32 0.7976244, %v1758_v37  ;;  %v1767_v7 = vmul.f32 0.7976244, %v1759_v29  ;;  %v1765_v43 = vmul.f32 0.7976244, %v1757_v47  ;;  %v1772_v62 = vadd.f32 %v1764_v46, %v12772_v30 }
 0x84b   :  { %v1744_v56 = vmax.f32 %v9984_v57, 0.0  ;;  %v1745_v35 = vmax.f32 %v9985_v8, 0.0  ;;  %v1763_v23 = vmul.f32 0.7976244, %v1755_v51  ;;  %v1770_v14 = vadd.f32 %v1762_v34, %v12776_v13 }
 0x84c   :  { %v1774_v45 = vadd.f32 %v1766_v26, %v12768_v4  ;;  %v1775_v25 = vadd.f32 %v1767_v7, %v12770_v53  ;;  %v1773_v36 = vadd.f32 %v1765_v43, %v12774_v3 }
 0x84d   :  { %v12782_v33 = vsub.f32 %v1720_v59, %v1744_v56  ;;  %v12784_v55 = vsub.f32 %v1721_v48, %v1745_v35  ;;  %v1771_v21 = vadd.f32 %v1763_v23, %v12780_v39 }
 0x84f   :  { %v1760_v63 = vsub.f32 %v12782_v33, %v12718_v50  ;;  %v1761_v44 = vsub.f32 %v12784_v55, %v12720_v2 }
 0x851   :  { %v1768_v32 = vmul.f32 0.7976244, %v1760_v63  ;;  %v1769_v28 = vmul.f32 0.7976244, %v1761_v44 }
 0x853   :  { %v1776_v50 = vadd.f32 %v1768_v32, %v12782_v33  ;;  %v1777_v2 = vadd.f32 %v1769_v28, %v12784_v55 }
 0x855   :  { %1790 = vmatpush.msra.mxu2 %v1776_v50  ;;  %1819 = vmatpush.msra.mxu3 %v1777_v2 }
 0x857   :  { %1791 = vmatpush.msra.mxu2 %v1774_v45  ;;  %1820 = vmatpush.msra.mxu3 %v1775_v25 }
 0x859   :  { %1792 = vmatpush.msra.mxu2 %v1772_v62  ;;  %1821 = vmatpush.msra.mxu3 %v1773_v36 }
 0x85b   :  { %1793 = vmatpush.msra.mxu2 %v1770_v14  ;;  %1822 = vmatpush.msra.mxu3 %v1771_v21 }
 0x85c   :  { %9986 = vmatmul.msk.f32.vlgmr.msra.gmra.mxu2 %vm213_vm0, %v12672_v6  ;;  %9990 = vmatmul.msk.f32.vlgmr.msra.gmra.mxu3 %vm213_vm0, %v12672_v6 }
 0x864   :  { %9987 = vmatmul.msk.f32.gmra.mxu2 %vm213_vm0, %v12678_v31  ;;  %9991 = vmatmul.msk.f32.gmra.mxu3 %vm213_vm0, %v12678_v31 }
 0x86c   :  { %9988 = vmatmul.msk.f32.gmra.mxu2 %vm213_vm0, %v12684_v38  ;;  %9992 = vmatmul.msk.f32.gmra.mxu3 %vm213_vm0, %v12684_v38 }
 0x874   :  { %9989 = vmatmul.msk.f32.gmra.mxu2 %vm213_vm0, %v12690_v58  ;;  %9993 = vmatmul.msk.f32.gmra.mxu3 %vm213_vm0, %v12690_v58 }
 0x8df   :  { %v1795_v24 = vpop.f32.mrf.mxu2  ;;  %v1824_v18 = vpop.f32.mrf.mxu3 }
 0x8e0   :  { %v1796_v52 = vadd.f32 %v1795_v24, %v12032_v11  ;;  %v1825_v60 = vadd.f32 %v1824_v18, %v12034_v12 }
 0x8e2   :  { %v1852_v5 = vsub.f32 0.0, %v1796_v52  ;;  %v1853_v48 = vsub.f32 0.0, %v1825_v60  ;;  %v9994_v47 = vadd.f32 -0.0042742956, %v1796_v52  ;;  %v9995_v22 = vadd.f32 -0.0042742956, %v1825_v60 }
 0x8e4   :  { %v10002_v26 = vadd.f32 -0.0042742956, %v1852_v5  ;;  %v10003_v2 = vadd.f32 -0.0042742956, %v1853_v48 }
 0x8e6   :  { %v1868_v18 = vmax.f32 %v10002_v26, 0.0 }
 0x8e7   :  { %v1798_v49 = vpop.f32.mrf.mxu2  ;;  %v1827_v9 = vpop.f32.mrf.mxu3 }
 0x8e8   :  { %v1799_v61 = vadd.f32 %v1798_v49, %v12036_v15  ;;  %v1828_v10 = vadd.f32 %v1827_v9, %v12038_v16 }
 0x8ea   :  { %v1854_v27 = vsub.f32 0.0, %v1799_v61  ;;  %v1855_v54 = vsub.f32 0.0, %v1828_v10  ;;  %v9996_v32 = vadd.f32 -0.0042742956, %v1799_v61  ;;  %v9997_v28 = vadd.f32 -0.0042742956, %v1828_v10 }
 0x8eb   :  { %v1869_v10 = vmax.f32 %v10003_v2, 0.0 }
 0x8ec   :  { %v10004_v35 = vadd.f32 -0.0042742956, %v1854_v27  ;;  %v10005_v63 = vadd.f32 -0.0042742956, %v1855_v54  ;;  %v1846_v49 = vmax.f32 %v9996_v32, 0.0  ;;  %v1847_v9 = vmax.f32 %v9997_v28, 0.0 }
 0x8ed   :  { %v1845_v27 = vmax.f32 %v9995_v22, 0.0 }
 0x8ee   :  { %v1870_v25 = vmax.f32 %v10004_v35, 0.0  ;;  %v1871_v34 = vmax.f32 %v10005_v63, 0.0 }
 0x8ef   :  { %v1801_v42 = vpop.f32.mrf.mxu2  ;;  %v1830_v17 = vpop.f32.mrf.mxu3 }
 0x8f0   :  { %v1802_v57 = vadd.f32 %v1801_v42, %v12040_v19  ;;  %v1831_v8 = vadd.f32 %v1830_v17, %v12042_v20  ;;  %v1844_v17 = vmax.f32 %v9994_v47, 0.0 }
 0x8f2   :  { %v1856_v59 = vsub.f32 0.0, %v1802_v57  ;;  %v1857_v56 = vsub.f32 0.0, %v1831_v8  ;;  %v9998_v44 = vadd.f32 -0.0042742956, %v1802_v57  ;;  %v9999_v1 = vadd.f32 -0.0042742956, %v1831_v8 }
 0x8f3   :  { %v12836_v57 = vsub.f32 %v1846_v49, %v1870_v25  ;;  %v12838_v8 = vsub.f32 %v1847_v9, %v1871_v34  ;;  %v12840_v48 = vsub.f32 %v1844_v17, %v1868_v18 }
 0x8f4   :  { %v10006_v37 = vadd.f32 -0.0042742956, %v1856_v59  ;;  %v10007_v29 = vadd.f32 -0.0042742956, %v1857_v56  ;;  %v1848_v23 = vmax.f32 %v9998_v44, 0.0  ;;  %v1849_v62 = vmax.f32 %v9999_v1, 0.0 }
 0x8f5   :  { %v1886_v26 = vsub.f32 %v12836_v57, %v12772_v30  ;;  %v1884_v32 = vsub.f32 %v12840_v48, %v12776_v13 }
 0x8f6   :  { %v1872_v7 = vmax.f32 %v10006_v37, 0.0  ;;  %v1873_v46 = vmax.f32 %v10007_v29, 0.0  ;;  %v12844_v37 = vsub.f32 %v1845_v27, %v1869_v10 }
 0x8f7   :  { %v1804_v51 = vpop.f32.mrf.mxu2  ;;  %v1833_v50 = vpop.f32.mrf.mxu3 }
 0x8f8   :  { %v1805_v43 = vadd.f32 %v1804_v51, %v12050_v40  ;;  %v1834_v45 = vadd.f32 %v1833_v50, %v12052_v41  ;;  %v12832_v61 = vsub.f32 %v1848_v23, %v1872_v7  ;;  %v12834_v52 = vsub.f32 %v1849_v62, %v1873_v46 }
 0x8f9   :  { %v1894_v50 = vmul.f32 0.81082, %v1886_v26  ;;  %v1892_v46 = vmul.f32 0.81082, %v1884_v32 }
 0x8fa   :  { %v10000_v36 = vadd.f32 -0.0042742956, %v1805_v43  ;;  %v1858_v14 = vsub.f32 0.0, %v1805_v43  ;;  %v10001_v21 = vadd.f32 -0.0042742956, %v1834_v45  ;;  %v1859_v24 = vsub.f32 0.0, %v1834_v45 }
 0x8fb   :  { %v1888_v35 = vsub.f32 %v12832_v61, %v12768_v4  ;;  %v1889_v44 = vsub.f32 %v12834_v52, %v12770_v53  ;;  %v1887_v4 = vsub.f32 %v12838_v8, %v12774_v3  ;;  %v1885_v53 = vsub.f32 %v12844_v37, %v12780_v39 }
 0x8fc   :  { %v10008_v60 = vadd.f32 -0.0042742956, %v1858_v14  ;;  %v10009_v42 = vadd.f32 -0.0042742956, %v1859_v24  ;;  %v1850_v54 = vmax.f32 %v10000_v36, 0.0  ;;  %v1851_v59 = vmax.f32 %v10001_v21, 0.0 }
 0x8fd   :  { %v1896_v22 = vmul.f32 0.81082, %v1888_v35  ;;  %v1897_v51 = vmul.f32 0.81082, %v1889_v44  ;;  %v1895_v2 = vmul.f32 0.81082, %v1887_v4  ;;  %v1902_v43 = vadd.f32 %v1894_v50, %v12836_v57 }
 0x8fe   :  { %v1874_v5 = vmax.f32 %v10008_v60, 0.0  ;;  %v1875_v56 = vmax.f32 %v10009_v42, 0.0  ;;  %v1893_v13 = vmul.f32 0.81082, %v1885_v53  ;;  %v1900_v45 = vadd.f32 %v1892_v46, %v12840_v48 }
 0x8ff   :  { %v1904_v30 = vadd.f32 %v1896_v22, %v12832_v61  ;;  %v1905_v3 = vadd.f32 %v1897_v51, %v12834_v52  ;;  %v1903_v39 = vadd.f32 %v1895_v2, %v12838_v8 }
 0x900   :  { %v12846_v29 = vsub.f32 %v1850_v54, %v1874_v5  ;;  %v12848_v63 = vsub.f32 %v1851_v59, %v1875_v56  ;;  %v1901_v25 = vadd.f32 %v1893_v13, %v12844_v37 }
 0x902   :  { %v1890_v1 = vsub.f32 %v12846_v29, %v12782_v33  ;;  %v1891_v47 = vsub.f32 %v12848_v63, %v12784_v55 }
 0x904   :  { %v1898_v28 = vmul.f32 0.81082, %v1890_v1  ;;  %v1899_v7 = vmul.f32 0.81082, %v1891_v47 }
 0x906   :  { %v1906_v33 = vadd.f32 %v1898_v28, %v12846_v29  ;;  %v1907_v55 = vadd.f32 %v1899_v7, %v12848_v63 }
 0x908   :  { %1920 = vmatpush.msrb.mxu0 %v1906_v33  ;;  %1949 = vmatpush.msrb.mxu1 %v1907_v55 }
 0x90a   :  { %1921 = vmatpush.msrb.mxu0 %v1904_v30  ;;  %1950 = vmatpush.msrb.mxu1 %v1905_v3 }
 0x90c   :  { %1922 = vmatpush.msrb.mxu0 %v1902_v43  ;;  %1951 = vmatpush.msrb.mxu1 %v1903_v39 }
 0x90e   :  { %1923 = vmatpush.msrb.mxu0 %v1900_v45  ;;  %1952 = vmatpush.msrb.mxu1 %v1901_v25 }
 0x90f   :  { %10010 = vmatmul.msk.f32.vlgmr.msrb.gmra.mxu0 %vm213_vm0, %v12672_v6  ;;  %10014 = vmatmul.msk.f32.vlgmr.msrb.gmra.mxu1 %vm213_vm0, %v12672_v6 }
 0x917   :  { %10011 = vmatmul.msk.f32.gmra.mxu0 %vm213_vm0, %v12678_v31  ;;  %10015 = vmatmul.msk.f32.gmra.mxu1 %vm213_vm0, %v12678_v31 }
 0x91f   :  { %10012 = vmatmul.msk.f32.gmra.mxu0 %vm213_vm0, %v12684_v38  ;;  %10016 = vmatmul.msk.f32.gmra.mxu1 %vm213_vm0, %v12684_v38 }
 0x927   :  { %10013 = vmatmul.msk.f32.gmra.mxu0 %vm213_vm0, %v12690_v58  ;;  %10017 = vmatmul.msk.f32.gmra.mxu1 %vm213_vm0, %v12690_v58 }
 0x98c   :  { %v1925_v34 = vpop.f32.mrf.mxu0  ;;  %v1954_v23 = vpop.f32.mrf.mxu1 }
 0x98d   :  { %v1926_v24 = vadd.f32 %v1925_v34, %v12032_v11  ;;  %v1955_v18 = vadd.f32 %v1954_v23, %v12034_v12 }
 0x98f   :  { %v1982_v27 = vsub.f32 0.0, %v1926_v24  ;;  %v1983_v59 = vsub.f32 0.0, %v1955_v18  ;;  %v10018_v4 = vadd.f32 -0.0042742956, %v1926_v24  ;;  %v10019_v32 = vadd.f32 -0.0042742956, %v1955_v18 }
 0x991   :  { %v10026_v22 = vadd.f32 -0.0042742956, %v1982_v27  ;;  %v10027_v55 = vadd.f32 -0.0042742956, %v1983_v59 }
 0x993   :  { %v1998_v23 = vmax.f32 %v10026_v22, 0.0 }
 0x994   :  { %v1928_v62 = vpop.f32.mrf.mxu0  ;;  %v1957_v36 = vpop.f32.mrf.mxu1 }
 0x995   :  { %v1929_v14 = vadd.f32 %v1928_v62, %v12036_v15  ;;  %v1958_v21 = vadd.f32 %v1957_v36, %v12038_v16 }
 0x997   :  { %v1984_v10 = vsub.f32 0.0, %v1929_v14  ;;  %v1985_v17 = vsub.f32 0.0, %v1958_v21  ;;  %v10020_v28 = vadd.f32 -0.0042742956, %v1929_v14  ;;  %v10021_v7 = vadd.f32 -0.0042742956, %v1958_v21 }
 0x998   :  { %v1999_v21 = vmax.f32 %v10027_v55, 0.0 }
 0x999   :  { %v10028_v56 = vadd.f32 -0.0042742956, %v1984_v10  ;;  %v10029_v1 = vadd.f32 -0.0042742956, %v1985_v17  ;;  %v1976_v62 = vmax.f32 %v10020_v28, 0.0  ;;  %v1977_v36 = vmax.f32 %v10021_v7, 0.0 }
 0x99a   :  { %v1975_v10 = vmax.f32 %v10019_v32, 0.0 }
 0x99b   :  { %v2000_v3 = vmax.f32 %v10028_v56, 0.0  ;;  %v2001_v46 = vmax.f32 %v10029_v1, 0.0 }
 0x99c   :  { %v1931_v49 = vpop.f32.mrf.mxu0  ;;  %v1960_v9 = vpop.f32.mrf.mxu1 }
 0x99d   :  { %v1932_v60 = vadd.f32 %v1931_v49, %v12040_v19  ;;  %v1961_v42 = vadd.f32 %v1960_v9, %v12042_v20  ;;  %v1974_v9 = vmax.f32 %v10018_v4, 0.0 }
 0x99f   :  { %v1986_v54 = vsub.f32 0.0, %v1932_v60  ;;  %v1987_v5 = vsub.f32 0.0, %v1961_v42  ;;  %v10022_v47 = vadd.f32 -0.0042742956, %v1932_v60  ;;  %v10023_v26 = vadd.f32 -0.0042742956, %v1961_v42 }
 0x9a0   :  { %v12900_v60 = vsub.f32 %v1976_v62, %v2000_v3  ;;  %v12902_v42 = vsub.f32 %v1977_v36, %v2001_v46  ;;  %v12904_v59 = vsub.f32 %v1974_v9, %v1998_v23 }
 0x9a1   :  { %v10030_v35 = vadd.f32 -0.0042742956, %v1986_v54  ;;  %v10031_v44 = vadd.f32 -0.0042742956, %v1987_v5  ;;  %v1978_v13 = vmax.f32 %v10022_v47, 0.0  ;;  %v1979_v43 = vmax.f32 %v10023_v26, 0.0 }
 0x9a2   :  { %v2016_v22 = vsub.f32 %v12900_v60, %v12836_v57  ;;  %v2014_v28 = vsub.f32 %v12904_v59, %v12840_v48 }
 0x9a3   :  { %v2002_v51 = vmax.f32 %v10030_v35, 0.0  ;;  %v2003_v50 = vmax.f32 %v10031_v44, 0.0  ;;  %v12908_v35 = vsub.f32 %v1975_v10, %v1999_v21 }
 0x9a4   :  { %v1934_v53 = vpop.f32.mrf.mxu0  ;;  %v1963_v33 = vpop.f32.mrf.mxu1 }
 0x9a5   :  { %v1935_v2 = vadd.f32 %v1934_v53, %v12050_v40  ;;  %v1964_v30 = vadd.f32 %v1963_v33, %v12052_v41  ;;  %v12896_v14 = vsub.f32 %v1978_v13, %v2002_v51  ;;  %v12898_v24 = vsub.f32 %v1979_v43, %v2003_v50 }
 0x9a6   :  { %v2024_v33 = vmul.f32 0.82237667, %v2016_v22  ;;  %v2022_v50 = vmul.f32 0.82237667, %v2014_v28 }
 0x9a7   :  { %v10024_v39 = vadd.f32 -0.0042742956, %v1935_v2  ;;  %v1988_v45 = vsub.f32 0.0, %v1935_v2  ;;  %v10025_v25 = vadd.f32 -0.0042742956, %v1964_v30  ;;  %v1989_v34 = vsub.f32 0.0, %v1964_v30 }
 0x9a8   :  { %v2018_v56 = vsub.f32 %v12896_v14, %v12832_v61  ;;  %v2019_v47 = vsub.f32 %v12898_v24, %v12834_v52  ;;  %v2017_v61 = vsub.f32 %v12902_v42, %v12838_v8  ;;  %v2015_v52 = vsub.f32 %v12908_v35, %v12844_v37 }
 0x9a9   :  { %v10032_v18 = vadd.f32 -0.0042742956, %v1988_v45  ;;  %v10033_v49 = vadd.f32 -0.0042742956, %v1989_v34  ;;  %v1980_v17 = vmax.f32 %v10024_v39, 0.0  ;;  %v1981_v54 = vmax.f32 %v10025_v25, 0.0 }
 0x9aa   :  { %v2026_v32 = vmul.f32 0.82237667, %v2018_v56  ;;  %v2027_v53 = vmul.f32 0.82237667, %v2019_v47  ;;  %v2025_v55 = vmul.f32 0.82237667, %v2017_v61  ;;  %v2032_v2 = vadd.f32 %v2024_v33, %v12900_v60 }
 0x9ab   :  { %v2004_v27 = vmax.f32 %v10032_v18, 0.0  ;;  %v2005_v5 = vmax.f32 %v10033_v49, 0.0  ;;  %v2023_v48 = vmul.f32 0.82237667, %v2015_v52  ;;  %v2030_v30 = vadd.f32 %v2022_v50, %v12904_v59 }
 0x9ac   :  { %v2034_v57 = vadd.f32 %v2026_v32, %v12896_v14  ;;  %v2035_v8 = vadd.f32 %v2027_v53, %v12898_v24  ;;  %v2033_v37 = vadd.f32 %v2025_v55, %v12902_v42 }
 0x9ad   :  { %v12910_v44 = vsub.f32 %v1980_v17, %v2004_v27  ;;  %v12912_v1 = vsub.f32 %v1981_v54, %v2005_v5  ;;  %v2031_v3 = vadd.f32 %v2023_v48, %v12908_v35 }
 0x9af   :  { %v2020_v26 = vsub.f32 %v12910_v44, %v12846_v29  ;;  %v2021_v4 = vsub.f32 %v12912_v1, %v12848_v63 }
 0x9b1   :  { %v2028_v7 = vmul.f32 0.82237667, %v2020_v26  ;;  %v2029_v51 = vmul.f32 0.82237667, %v2021_v4 }
 0x9b3   :  { %v2036_v29 = vadd.f32 %v2028_v7, %v12910_v44  ;;  %v2037_v63 = vadd.f32 %v2029_v51, %v12912_v1 }
 0x9b5   :  { %2050 = vmatpush.msrb.mxu2 %v2036_v29  ;;  %2079 = vmatpush.msrb.mxu3 %v2037_v63 }
 0x9b7   :  { %2051 = vmatpush.msrb.mxu2 %v2034_v57  ;;  %2080 = vmatpush.msrb.mxu3 %v2035_v8 }
 0x9b9   :  { %2052 = vmatpush.msrb.mxu2 %v2032_v2  ;;  %2081 = vmatpush.msrb.mxu3 %v2033_v37 }
 0x9bb   :  { %2053 = vmatpush.msrb.mxu2 %v2030_v30  ;;  %2082 = vmatpush.msrb.mxu3 %v2031_v3 }
 0x9bc   :  { %10034 = vmatmul.msk.f32.vlgmr.msrb.gmra.mxu2 %vm213_vm0, %v12672_v6  ;;  %10038 = vmatmul.msk.f32.vlgmr.msrb.gmra.mxu3 %vm213_vm0, %v12672_v6 }
 0x9c4   :  { %10035 = vmatmul.msk.f32.gmra.mxu2 %vm213_vm0, %v12678_v31  ;;  %10039 = vmatmul.msk.f32.gmra.mxu3 %vm213_vm0, %v12678_v31 }
 0x9cc   :  { %10036 = vmatmul.msk.f32.gmra.mxu2 %vm213_vm0, %v12684_v38  ;;  %10040 = vmatmul.msk.f32.gmra.mxu3 %vm213_vm0, %v12684_v38 }
 0x9d4   :  { %10037 = vmatmul.msk.f32.gmra.mxu2 %vm213_vm0, %v12690_v58  ;;  %10041 = vmatmul.msk.f32.gmra.mxu3 %vm213_vm0, %v12690_v58 }
 0xa3f   :  { %v2055_v46 = vpop.f32.mrf.mxu2  ;;  %v2084_v6 = vpop.f32.mrf.mxu3 }
 0xa40   :  { %v2056_v45 = vadd.f32 %v2055_v46, %v12032_v11  ;;  %v2085_v25 = vadd.f32 %v2084_v6, %v12034_v12 }
 0xa42   :  { %v2112_v21 = vsub.f32 0.0, %v2056_v45  ;;  %v2113_v9 = vsub.f32 0.0, %v2085_v25  ;;  %v10042_v47 = vadd.f32 -0.0042742956, %v2056_v45  ;;  %v10043_v4 = vadd.f32 -0.0042742956, %v2085_v25 }
 0xa44   :  { %v10050_v26 = vadd.f32 -0.0042742956, %v2112_v21  ;;  %v10051_v51 = vadd.f32 -0.0042742956, %v2113_v9  ;;  %v2105_v45 = vmax.f32 %v10043_v4, 0.0 }
 0xa46   :  { %v2128_v37 = vmax.f32 %v10050_v26, 0.0  ;;  %v2129_v6 = vmax.f32 %v10051_v51, 0.0 }
 0xa47   :  { %v2058_v13 = vpop.f32.mrf.mxu2  ;;  %v2087_v43 = vpop.f32.mrf.mxu3 }
 0xa48   :  { %v2059_v39 = vadd.f32 %v2058_v13, %v12036_v15  ;;  %v2088_v31 = vadd.f32 %v2087_v43, %v12038_v16 }
 0xa4a   :  { %v2114_v23 = vsub.f32 0.0, %v2059_v39  ;;  %v2115_v58 = vsub.f32 0.0, %v2088_v31  ;;  %v10044_v22 = vadd.f32 -0.0042742956, %v2059_v39  ;;  %v10045_v61 = vadd.f32 -0.0042742956, %v2088_v31 }
 0xa4b   :  { %v2104_v31 = vmax.f32 %v10042_v47, 0.0 }
 0xa4c   :  { %v10052_v10 = vadd.f32 -0.0042742956, %v2114_v23  ;;  %v10053_v54 = vadd.f32 -0.0042742956, %v2115_v58  ;;  %v2106_v30 = vmax.f32 %v10044_v22, 0.0  ;;  %v2107_v3 = vmax.f32 %v10045_v61, 0.0 }
 0xa4d   :  { %v12968_v58 = vsub.f32 %v2104_v31, %v2128_v37 }
 0xa4e   :  { %v2130_v63 = vmax.f32 %v10052_v10, 0.0  ;;  %v2131_v33 = vmax.f32 %v10053_v54, 0.0 }
 0xa4f   :  { %v2061_v34 = vpop.f32.mrf.mxu2  ;;  %v2090_v38 = vpop.f32.mrf.mxu3 }
 0xa50   :  { %v2062_v62 = vadd.f32 %v2061_v34, %v12040_v19  ;;  %v2091_v36 = vadd.f32 %v2090_v38, %v12042_v20  ;;  %v12964_v25 = vsub.f32 %v2106_v30, %v2130_v63  ;;  %v12966_v34 = vsub.f32 %v2107_v3, %v2131_v33  ;;  %v13018_v63 = vld [vmem:[#allocation2 + $0x18] sm:$0xff] }
 0xa52   :  { %v2116_v18 = vsub.f32 0.0, %v2062_v62  ;;  %v2117_v49 = vsub.f32 0.0, %v2091_v36  ;;  %v10046_v5 = vadd.f32 -0.0042742956, %v2062_v62  ;;  %v10047_v56 = vadd.f32 -0.0042742956, %v2091_v36 }
 0xa53   :  { %v2146_v54 = vsub.f32 %v12964_v25, %v12900_v60 }
 0xa54   :  { %v10054_v17 = vadd.f32 -0.0042742956, %v2116_v18  ;;  %v10055_v27 = vadd.f32 -0.0042742956, %v2117_v49  ;;  %v2108_v55 = vmax.f32 %v10046_v5, 0.0  ;;  %v2109_v57 = vmax.f32 %v10047_v56, 0.0 }
 0xa55   :  { %v12972_v18 = vsub.f32 %v2105_v45, %v2129_v6  ;;  %v2144_v56 = vsub.f32 %v12968_v58, %v12904_v59  ;;  %v2154_v22 = vmul.f32 0.8325844, %v2146_v54 }
 0xa56   :  { %v2132_v32 = vmax.f32 %v10054_v17, 0.0  ;;  %v2133_v53 = vmax.f32 %v10055_v27, 0.0 }
 0xa57   :  { %v2064_v28 = vpop.f32.mrf.mxu2  ;;  %v2093_v7 = vpop.f32.mrf.mxu3 }
 0xa58   :  { %v2065_v52 = vadd.f32 %v2064_v28, %v12050_v40  ;;  %v2094_v29 = vadd.f32 %v2093_v7, %v12052_v41  ;;  %v12960_v46 = vsub.f32 %v2108_v55, %v2132_v32  ;;  %v12962_v13 = vsub.f32 %v2109_v57, %v2133_v53  ;;  %v13000_v53 = vld [vmem:[#allocation2] sm:$0xff] }
 0xa59   :  { %v2152_v32 = vmul.f32 0.8325844, %v2144_v56  ;;  %v2162_v28 = vadd.f32 %v2154_v22, %v12964_v25 }
 0xa5a   :  { %v10048_v8 = vadd.f32 -0.0042742956, %v2065_v52  ;;  %v2118_v50 = vsub.f32 0.0, %v2065_v52  ;;  %v10049_v48 = vadd.f32 -0.0042742956, %v2094_v29  ;;  %v2119_v2 = vsub.f32 0.0, %v2094_v29 }
 0xa5b   :  { %v2148_v21 = vsub.f32 %v12960_v46, %v12896_v14  ;;  %v2149_v10 = vsub.f32 %v12962_v13, %v12898_v24  ;;  %v2147_v14 = vsub.f32 %v12966_v34, %v12902_v42  ;;  %v2145_v24 = vsub.f32 %v12972_v18, %v12908_v35  ;;  %v13006_v52 = vld [vmem:[#allocation2 + $0x8] sm:$0xff]  ;;  %v13012_v29 = vld [vmem:[#allocation2 + $0x10] sm:$0xff] }
 0xa5c   :  { %v10056_v43 = vadd.f32 -0.0042742956, %v2118_v50  ;;  %v10057_v39 = vadd.f32 -0.0042742956, %v2119_v2  ;;  %v2110_v38 = vmax.f32 %v10048_v8, 0.0  ;;  %v2111_v62 = vmax.f32 %v10049_v48, 0.0 }
 0xa5d   :  { %v2156_v5 = vmul.f32 0.8325844, %v2148_v21  ;;  %v2157_v4 = vmul.f32 0.8325844, %v2149_v10  ;;  %v2155_v61 = vmul.f32 0.8325844, %v2147_v14  ;;  %v2160_v7 = vadd.f32 %v2152_v32, %v12968_v58 }
 0xa5e   :  { %v2134_v23 = vmax.f32 %v10056_v43, 0.0  ;;  %v2135_v36 = vmax.f32 %v10057_v39, 0.0  ;;  %v2153_v59 = vmul.f32 0.8325844, %v2145_v24 }
 0xa5f   :  { %v2164_v60 = vadd.f32 %v2156_v5, %v12960_v46  ;;  %v2165_v42 = vadd.f32 %v2157_v4, %v12962_v13  ;;  %v2163_v35 = vadd.f32 %v2155_v61, %v12966_v34 }
 0xa60   :  { %v12974_v49 = vsub.f32 %v2110_v38, %v2134_v23  ;;  %v12976_v9 = vsub.f32 %v2111_v62, %v2135_v36  ;;  %v2161_v51 = vadd.f32 %v2153_v59, %v12972_v18 }
 0xa62   :  { %v2150_v17 = vsub.f32 %v12974_v49, %v12910_v44  ;;  %v2151_v27 = vsub.f32 %v12976_v9, %v12912_v1 }
 0xa64   :  { %v2158_v47 = vmul.f32 0.8325844, %v2150_v17  ;;  %v2159_v26 = vmul.f32 0.8325844, %v2151_v27 }
 0xa66   :  { %v2166_v44 = vadd.f32 %v2158_v47, %v12974_v49  ;;  %v2167_v1 = vadd.f32 %v2159_v26, %v12976_v9 }
 0xa68   :  { %2180 = vmatpush.msra.mxu0 %v2166_v44  ;;  %2209 = vmatpush.msra.mxu1 %v2167_v1 }
 0xa6a   :  { %2181 = vmatpush.msra.mxu0 %v2164_v60  ;;  %2210 = vmatpush.msra.mxu1 %v2165_v42 }
 0xa6c   :  { %2182 = vmatpush.msra.mxu0 %v2162_v28  ;;  %2211 = vmatpush.msra.mxu1 %v2163_v35 }
 0xa6e   :  { %2183 = vmatpush.msra.mxu0 %v2160_v7  ;;  %2212 = vmatpush.msra.mxu1 %v2161_v51 }
 0xa6f   :  { %10058 = vmatmul.msk.f32.vlgmr.msra.gmra.mxu0 %vm213_vm0, %v13000_v53  ;;  %10062 = vmatmul.msk.f32.vlgmr.msra.gmra.mxu1 %vm213_vm0, %v13000_v53 }
 0xa77   :  { %10059 = vmatmul.msk.f32.gmra.mxu0 %vm213_vm0, %v13006_v52  ;;  %10063 = vmatmul.msk.f32.gmra.mxu1 %vm213_vm0, %v13006_v52 }
 0xa7f   :  { %10060 = vmatmul.msk.f32.gmra.mxu0 %vm213_vm0, %v13012_v29  ;;  %10064 = vmatmul.msk.f32.gmra.mxu1 %vm213_vm0, %v13012_v29 }
 0xa87   :  { %10061 = vmatmul.msk.f32.gmra.mxu0 %vm213_vm0, %v13018_v63  ;;  %10065 = vmatmul.msk.f32.gmra.mxu1 %vm213_vm0, %v13018_v63 }
 0xaec   :  { %v2185_v33 = vpop.f32.mrf.mxu0  ;;  %v2214_v55 = vpop.f32.mrf.mxu1 }
 0xaed   :  { %v2186_v2 = vadd.f32 %v2185_v33, %v12032_v11  ;;  %v2215_v37 = vadd.f32 %v2214_v55, %v12034_v12 }
 0xaef   :  { %v2242_v45 = vsub.f32 0.0, %v2186_v2  ;;  %v2243_v62 = vsub.f32 0.0, %v2215_v37  ;;  %v10066_v14 = vadd.f32 -0.0042742956, %v2186_v2  ;;  %v10067_v56 = vadd.f32 -0.0042742956, %v2215_v37 }
 0xaf1   :  { %v10074_v5 = vadd.f32 -0.0042742956, %v2242_v45  ;;  %v10075_v1 = vadd.f32 -0.0042742956, %v2243_v62 }
 0xaf3   :  { %v2258_v55 = vmax.f32 %v10074_v5, 0.0 }
 0xaf4   :  { %v2188_v57 = vpop.f32.mrf.mxu0  ;;  %v2217_v8 = vpop.f32.mrf.mxu1 }
 0xaf5   :  { %v2189_v50 = vadd.f32 %v2188_v57, %v12036_v15  ;;  %v2218_v48 = vadd.f32 %v2217_v8, %v12038_v16 }
 0xaf7   :  { %v2244_v6 = vsub.f32 0.0, %v2189_v50  ;;  %v2245_v31 = vsub.f32 0.0, %v2218_v48  ;;  %v10068_v47 = vadd.f32 -0.0042742956, %v2189_v50  ;;  %v10069_v26 = vadd.f32 -0.0042742956, %v2218_v48 }
 0xaf8   :  { %v2259_v48 = vmax.f32 %v10075_v1, 0.0 }
 0xaf9   :  { %v10076_v36 = vadd.f32 -0.0042742956, %v2244_v6  ;;  %v10077_v17 = vadd.f32 -0.0042742956, %v2245_v31  ;;  %v2236_v57 = vmax.f32 %v10068_v47, 0.0  ;;  %v2237_v8 = vmax.f32 %v10069_v26, 0.0 }
 0xafa   :  { %v2235_v6 = vmax.f32 %v10067_v56, 0.0 }
 0xafb   :  { %v2260_v42 = vmax.f32 %v10076_v36, 0.0  ;;  %v2261_v32 = vmax.f32 %v10077_v17, 0.0 }
 0xafc   :  { %v2191_v30 = vpop.f32.mrf.mxu0  ;;  %v2220_v3 = vpop.f32.mrf.mxu1 }
 0xafd   :  { %v2192_v43 = vadd.f32 %v2191_v30, %v12040_v19  ;;  %v2221_v39 = vadd.f32 %v2220_v3, %v12042_v20  ;;  %v2234_v3 = vmax.f32 %v10066_v14, 0.0 }
 0xaff   :  { %v2246_v38 = vsub.f32 0.0, %v2192_v43  ;;  %v2247_v23 = vsub.f32 0.0, %v2221_v39  ;;  %v10070_v27 = vadd.f32 -0.0042742956, %v2192_v43  ;;  %v10071_v54 = vadd.f32 -0.0042742956, %v2221_v39 }
 0xb00   :  { %v13036_v43 = vsub.f32 %v2236_v57, %v2260_v42  ;;  %v13038_v39 = vsub.f32 %v2237_v8, %v2261_v32  ;;  %v13040_v62 = vsub.f32 %v2234_v3, %v2258_v55 }
 0xb01   :  { %v10078_v21 = vadd.f32 -0.0042742956, %v2246_v38  ;;  %v10079_v10 = vadd.f32 -0.0042742956, %v2247_v23  ;;  %v2238_v59 = vmax.f32 %v10070_v27, 0.0  ;;  %v2239_v28 = vmax.f32 %v10071_v54, 0.0 }
 0xb02   :  { %v2276_v5 = vsub.f32 %v13036_v43, %v12964_v25  ;;  %v2274_v47 = vsub.f32 %v13040_v62, %v12968_v58 }
 0xb03   :  { %v2262_v4 = vmax.f32 %v10078_v21, 0.0  ;;  %v2263_v22 = vmax.f32 %v10079_v10, 0.0  ;;  %v13044_v21 = vsub.f32 %v2235_v6, %v2259_v48 }
 0xb04   :  { %v2194_v24 = vpop.f32.mrf.mxu0  ;;  %v2223_v44 = vpop.f32.mrf.mxu1 }
 0xb05   :  { %v2195_v61 = vadd.f32 %v2194_v24, %v12050_v40  ;;  %v2224_v60 = vadd.f32 %v2223_v44, %v12052_v41  ;;  %v13032_v50 = vsub.f32 %v2238_v59, %v2262_v4  ;;  %v13034_v2 = vsub.f32 %v2239_v28, %v2263_v22 }
 0xb06   :  { %v2284_v44 = vmul.f32 0.84166825, %v2276_v5  ;;  %v2282_v22 = vmul.f32 0.84166825, %v2274_v47 }
 0xb07   :  { %v10072_v35 = vadd.f32 -0.0042742956, %v2195_v61  ;;  %v2248_v7 = vsub.f32 0.0, %v2195_v61  ;;  %v10073_v51 = vadd.f32 -0.0042742956, %v2224_v60  ;;  %v2249_v33 = vsub.f32 0.0, %v2224_v60 }
 0xb08   :  { %v2278_v36 = vsub.f32 %v13032_v50, %v12960_v46  ;;  %v2279_v27 = vsub.f32 %v13034_v2, %v12962_v13  ;;  %v2277_v46 = vsub.f32 %v13038_v39, %v12966_v34  ;;  %v2275_v13 = vsub.f32 %v13044_v21, %v12972_v18 }
 0xb09   :  { %v10080_v37 = vadd.f32 -0.0042742956, %v2248_v7  ;;  %v10081_v30 = vadd.f32 -0.0042742956, %v2249_v33  ;;  %v2240_v31 = vmax.f32 %v10072_v35, 0.0  ;;  %v2241_v38 = vmax.f32 %v10073_v51, 0.0 }
 0xb0a   :  { %v2286_v56 = vmul.f32 0.84166825, %v2278_v36  ;;  %v2287_v24 = vmul.f32 0.84166825, %v2279_v27  ;;  %v2285_v1 = vmul.f32 0.84166825, %v2277_v46  ;;  %v2292_v61 = vadd.f32 %v2284_v44, %v13036_v43 }
 0xb0b   :  { %v2264_v45 = vmax.f32 %v10080_v37, 0.0  ;;  %v2265_v23 = vmax.f32 %v10081_v30, 0.0  ;;  %v2283_v58 = vmul.f32 0.84166825, %v2275_v13  ;;  %v2290_v60 = vadd.f32 %v2282_v22, %v13040_v62 }
 0xb0c   :  { %v2294_v25 = vadd.f32 %v2286_v56, %v13032_v50  ;;  %v2295_v34 = vadd.f32 %v2287_v24, %v13034_v2  ;;  %v2293_v18 = vadd.f32 %v2285_v1, %v13038_v39 }
 0xb0d   :  { %v13046_v10 = vsub.f32 %v2240_v31, %v2264_v45  ;;  %v13048_v17 = vsub.f32 %v2241_v38, %v2265_v23  ;;  %v2291_v42 = vadd.f32 %v2283_v58, %v13044_v21 }
 0xb0f   :  { %v2280_v54 = vsub.f32 %v13046_v10, %v12974_v49  ;;  %v2281_v14 = vsub.f32 %v13048_v17, %v12976_v9 }
 0xb11   :  { %v2288_v26 = vmul.f32 0.84166825, %v2280_v54  ;;  %v2289_v4 = vmul.f32 0.84166825, %v2281_v14 }
 0xb13   :  { %v2296_v49 = vadd.f32 %v2288_v26, %v13046_v10  ;;  %v2297_v9 = vadd.f32 %v2289_v4, %v13048_v17 }
 0xb15   :  { %2310 = vmatpush.msra.mxu2 %v2296_v49  ;;  %2339 = vmatpush.msra.mxu3 %v2297_v9 }
 0xb17   :  { %2311 = vmatpush.msra.mxu2 %v2294_v25  ;;  %2340 = vmatpush.msra.mxu3 %v2295_v34 }
 0xb19   :  { %2312 = vmatpush.msra.mxu2 %v2292_v61  ;;  %2341 = vmatpush.msra.mxu3 %v2293_v18 }
 0xb1b   :  { %2313 = vmatpush.msra.mxu2 %v2290_v60  ;;  %2342 = vmatpush.msra.mxu3 %v2291_v42 }
 0xb1c   :  { %10082 = vmatmul.msk.f32.vlgmr.msra.gmra.mxu2 %vm213_vm0, %v13000_v53  ;;  %10086 = vmatmul.msk.f32.vlgmr.msra.gmra.mxu3 %vm213_vm0, %v13000_v53 }
 0xb24   :  { %10083 = vmatmul.msk.f32.gmra.mxu2 %vm213_vm0, %v13006_v52  ;;  %10087 = vmatmul.msk.f32.gmra.mxu3 %vm213_vm0, %v13006_v52 }
 0xb2c   :  { %10084 = vmatmul.msk.f32.gmra.mxu2 %vm213_vm0, %v13012_v29  ;;  %10088 = vmatmul.msk.f32.gmra.mxu3 %vm213_vm0, %v13012_v29 }
 0xb34   :  { %10085 = vmatmul.msk.f32.gmra.mxu2 %vm213_vm0, %v13018_v63  ;;  %10089 = vmatmul.msk.f32.gmra.mxu3 %vm213_vm0, %v13018_v63 }
 0xb9f   :  { %v2315_v32 = vpop.f32.mrf.mxu2  ;;  %v2344_v59 = vpop.f32.mrf.mxu3 }
 0xba0   :  { %v2316_v33 = vadd.f32 %v2315_v32, %v12032_v11  ;;  %v2345_v55 = vadd.f32 %v2344_v59, %v12034_v12 }
 0xba2   :  { %v2372_v6 = vsub.f32 0.0, %v2316_v33  ;;  %v2373_v38 = vsub.f32 0.0, %v2345_v55  ;;  %v10090_v46 = vadd.f32 -0.0042742956, %v2316_v33  ;;  %v10091_v47 = vadd.f32 -0.0042742956, %v2345_v55 }
 0xba4   :  { %v10098_v56 = vadd.f32 -0.0042742956, %v2372_v6  ;;  %v10099_v9 = vadd.f32 -0.0042742956, %v2373_v38 }
 0xba6   :  { %v2388_v59 = vmax.f32 %v10098_v56, 0.0 }
 0xba7   :  { %v2318_v28 = vpop.f32.mrf.mxu2  ;;  %v2347_v35 = vpop.f32.mrf.mxu3 }
 0xba8   :  { %v2319_v7 = vadd.f32 %v2318_v28, %v12036_v15  ;;  %v2348_v51 = vadd.f32 %v2347_v35, %v12038_v16 }
 0xbaa   :  { %v2374_v48 = vsub.f32 0.0, %v2319_v7  ;;  %v2375_v3 = vsub.f32 0.0, %v2348_v51  ;;  %v10092_v26 = vadd.f32 -0.0042742956, %v2319_v7  ;;  %v10093_v4 = vadd.f32 -0.0042742956, %v2348_v51 }
 0xbab   :  { %v2389_v51 = vmax.f32 %v10099_v9, 0.0 }
 0xbac   :  { %v10100_v23 = vadd.f32 -0.0042742956, %v2374_v48  ;;  %v10101_v54 = vadd.f32 -0.0042742956, %v2375_v3  ;;  %v2366_v28 = vmax.f32 %v10092_v26, 0.0  ;;  %v2367_v35 = vmax.f32 %v10093_v4, 0.0 }
 0xbad   :  { %v2365_v48 = vmax.f32 %v10091_v47, 0.0 }
 0xbae   :  { %v2390_v34 = vmax.f32 %v10100_v23, 0.0  ;;  %v2391_v22 = vmax.f32 %v10101_v54, 0.0 }
 0xbaf   :  { %v2321_v57 = vpop.f32.mrf.mxu2  ;;  %v2350_v8 = vpop.f32.mrf.mxu3 }
 0xbb0   :  { %v2322_v37 = vadd.f32 %v2321_v57, %v12040_v19  ;;  %v2351_v30 = vadd.f32 %v2350_v8, %v12042_v20  ;;  %v2364_v8 = vmax.f32 %v10090_v46, 0.0 }
 0xbb2   :  { %v2376_v31 = vsub.f32 0.0, %v2322_v37  ;;  %v2377_v45 = vsub.f32 0.0, %v2351_v30  ;;  %v10094_v14 = vadd.f32 -0.0042742956, %v2322_v37  ;;  %v10095_v5 = vadd.f32 -0.0042742956, %v2351_v30 }
 0xbb3   :  { %v13100_v37 = vsub.f32 %v2366_v28, %v2390_v34  ;;  %v13102_v30 = vsub.f32 %v2367_v35, %v2391_v22  ;;  %v13104_v38 = vsub.f32 %v2364_v8, %v2388_v59 }
 0xbb4   :  { %v10102_v36 = vadd.f32 -0.0042742956, %v2376_v31  ;;  %v10103_v27 = vadd.f32 -0.0042742956, %v2377_v45  ;;  %v2368_v58 = vmax.f32 %v10094_v14, 0.0  ;;  %v2369_v61 = vmax.f32 %v10095_v5, 0.0 }
 0xbb5   :  { %v2406_v56 = vsub.f32 %v13100_v37, %v13036_v43  ;;  %v2404_v26 = vsub.f32 %v13104_v38, %v13040_v62 }
 0xbb6   :  { %v2392_v24 = vmax.f32 %v10102_v36, 0.0  ;;  %v2393_v44 = vmax.f32 %v10103_v27, 0.0  ;;  %v13108_v36 = vsub.f32 %v2365_v48, %v2389_v51 }
 0xbb7   :  { %v2324_v13 = vpop.f32.mrf.mxu2  ;;  %v2353_v49 = vpop.f32.mrf.mxu3 }
 0xbb8   :  { %v2325_v1 = vadd.f32 %v2324_v13, %v12050_v40  ;;  %v2354_v25 = vadd.f32 %v2353_v49, %v12052_v41  ;;  %v13096_v7 = vsub.f32 %v2368_v58, %v2392_v24  ;;  %v13098_v33 = vsub.f32 %v2369_v61, %v2393_v44 }
 0xbb9   :  { %v2414_v49 = vmul.f32 0.84980553, %v2406_v56  ;;  %v2412_v44 = vmul.f32 0.84980553, %v2404_v26 }
 0xbba   :  { %v10096_v18 = vadd.f32 -0.0042742956, %v2325_v1  ;;  %v2378_v60 = vsub.f32 0.0, %v2325_v1  ;;  %v10097_v42 = vadd.f32 -0.0042742956, %v2354_v25  ;;  %v2379_v32 = vsub.f32 0.0, %v2354_v25 }
 0xbbb   :  { %v2408_v23 = vsub.f32 %v13096_v7, %v13032_v50  ;;  %v2409_v14 = vsub.f32 %v13098_v33, %v13034_v2  ;;  %v2407_v50 = vsub.f32 %v13102_v30, %v13038_v39  ;;  %v2405_v2 = vsub.f32 %v13108_v36, %v13044_v21 }
 0xbbc   :  { %v10104_v55 = vadd.f32 -0.0042742956, %v2378_v60  ;;  %v10105_v57 = vadd.f32 -0.0042742956, %v2379_v32  ;;  %v2370_v3 = vmax.f32 %v10096_v18, 0.0  ;;  %v2371_v31 = vmax.f32 %v10097_v42, 0.0 }
 0xbbd   :  { %v2416_v47 = vmul.f32 0.84980553, %v2408_v23  ;;  %v2417_v13 = vmul.f32 0.84980553, %v2409_v14  ;;  %v2415_v9 = vmul.f32 0.84980553, %v2407_v50  ;;  %v2422_v1 = vadd.f32 %v2414_v49, %v13100_v37 }
 0xbbe   :  { %v2394_v6 = vmax.f32 %v10104_v55, 0.0  ;;  %v2395_v45 = vmax.f32 %v10105_v57, 0.0  ;;  %v2413_v62 = vmul.f32 0.84980553, %v2405_v2  ;;  %v2420_v25 = vadd.f32 %v2412_v44, %v13104_v38 }
 0xbbf   :  { %v2424_v43 = vadd.f32 %v2416_v47, %v13096_v7  ;;  %v2425_v39 = vadd.f32 %v2417_v13, %v13098_v33  ;;  %v2423_v21 = vadd.f32 %v2415_v9, %v13102_v30 }
 0xbc0   :  { %v13110_v27 = vsub.f32 %v2370_v3, %v2394_v6  ;;  %v13112_v54 = vsub.f32 %v2371_v31, %v2395_v45  ;;  %v2421_v34 = vadd.f32 %v2413_v62, %v13108_v36 }
 0xbc2   :  { %v2410_v5 = vsub.f32 %v13110_v27, %v13046_v10  ;;  %v2411_v46 = vsub.f32 %v13112_v54, %v13048_v17 }
 0xbc4   :  { %v2418_v4 = vmul.f32 0.84980553, %v2410_v5  ;;  %v2419_v24 = vmul.f32 0.84980553, %v2411_v46 }
 0xbc6   :  { %v2426_v10 = vadd.f32 %v2418_v4, %v13110_v27  ;;  %v2427_v17 = vadd.f32 %v2419_v24, %v13112_v54 }
 0xbc8   :  { %2440 = vmatpush.msrb.mxu0 %v2426_v10  ;;  %2469 = vmatpush.msrb.mxu1 %v2427_v17 }
 0xbca   :  { %2441 = vmatpush.msrb.mxu0 %v2424_v43  ;;  %2470 = vmatpush.msrb.mxu1 %v2425_v39 }
 0xbcc   :  { %2442 = vmatpush.msrb.mxu0 %v2422_v1  ;;  %2471 = vmatpush.msrb.mxu1 %v2423_v21 }
 0xbce   :  { %2443 = vmatpush.msrb.mxu0 %v2420_v25  ;;  %2472 = vmatpush.msrb.mxu1 %v2421_v34 }
 0xbcf   :  { %10106 = vmatmul.msk.f32.vlgmr.msrb.gmra.mxu0 %vm213_vm0, %v13000_v53  ;;  %10110 = vmatmul.msk.f32.vlgmr.msrb.gmra.mxu1 %vm213_vm0, %v13000_v53 }
 0xbd7   :  { %10107 = vmatmul.msk.f32.gmra.mxu0 %vm213_vm0, %v13006_v52  ;;  %10111 = vmatmul.msk.f32.gmra.mxu1 %vm213_vm0, %v13006_v52 }
 0xbdf   :  { %10108 = vmatmul.msk.f32.gmra.mxu0 %vm213_vm0, %v13012_v29  ;;  %10112 = vmatmul.msk.f32.gmra.mxu1 %vm213_vm0, %v13012_v29 }
 0xbe7   :  { %10109 = vmatmul.msk.f32.gmra.mxu0 %vm213_vm0, %v13018_v63  ;;  %10113 = vmatmul.msk.f32.gmra.mxu1 %vm213_vm0, %v13018_v63 }
 0xc4c   :  { %v2445_v22 = vpop.f32.mrf.mxu0  ;;  %v2474_v58 = vpop.f32.mrf.mxu1 }
 0xc4d   :  { %v2446_v32 = vadd.f32 %v2445_v22, %v12032_v11  ;;  %v2475_v59 = vadd.f32 %v2474_v58, %v12034_v12 }
 0xc4f   :  { %v2502_v48 = vsub.f32 0.0, %v2446_v32  ;;  %v2503_v31 = vsub.f32 0.0, %v2475_v59  ;;  %v10114_v50 = vadd.f32 -0.0042742956, %v2446_v32  ;;  %v10115_v26 = vadd.f32 -0.0042742956, %v2475_v59 }
 0xc51   :  { %v10122_v47 = vadd.f32 -0.0042742956, %v2502_v48  ;;  %v10123_v17 = vadd.f32 -0.0042742956, %v2503_v31 }
 0xc53   :  { %v2518_v58 = vmax.f32 %v10122_v47, 0.0 }
 0xc54   :  { %v2448_v61 = vpop.f32.mrf.mxu0  ;;  %v2477_v18 = vpop.f32.mrf.mxu1 }
 0xc55   :  { %v2449_v60 = vadd.f32 %v2448_v61, %v12036_v15  ;;  %v2478_v42 = vadd.f32 %v2477_v18, %v12038_v16 }
 0xc57   :  { %v2504_v51 = vsub.f32 0.0, %v2449_v60  ;;  %v2505_v8 = vsub.f32 0.0, %v2478_v42  ;;  %v10116_v4 = vadd.f32 -0.0042742956, %v2449_v60  ;;  %v10117_v24 = vadd.f32 -0.0042742956, %v2478_v42 }
 0xc58   :  { %v2519_v42 = vmax.f32 %v10123_v17, 0.0 }
 0xc59   :  { %v10124_v45 = vadd.f32 -0.0042742956, %v2504_v51  ;;  %v10125_v5 = vadd.f32 -0.0042742956, %v2505_v8  ;;  %v2496_v61 = vmax.f32 %v10116_v4, 0.0  ;;  %v2497_v18 = vmax.f32 %v10117_v24, 0.0 }
 0xc5a   :  { %v2495_v51 = vmax.f32 %v10115_v26, 0.0 }
 0xc5b   :  { %v2520_v39 = vmax.f32 %v10124_v45, 0.0  ;;  %v2521_v44 = vmax.f32 %v10125_v5, 0.0 }
 0xc5c   :  { %v2451_v28 = vpop.f32.mrf.mxu0  ;;  %v2480_v35 = vpop.f32.mrf.mxu1 }
 0xc5d   :  { %v2452_v55 = vadd.f32 %v2451_v28, %v12040_v19  ;;  %v2481_v57 = vadd.f32 %v2480_v35, %v12042_v20  ;;  %v2494_v35 = vmax.f32 %v10114_v50, 0.0 }
 0xc5f   :  { %v2506_v3 = vsub.f32 0.0, %v2452_v55  ;;  %v2507_v6 = vsub.f32 0.0, %v2481_v57  ;;  %v10118_v46 = vadd.f32 -0.0042742956, %v2452_v55  ;;  %v10119_v56 = vadd.f32 -0.0042742956, %v2481_v57 }
 0xc60   :  { %v13164_v55 = vsub.f32 %v2496_v61, %v2520_v39  ;;  %v13166_v57 = vsub.f32 %v2497_v18, %v2521_v44  ;;  %v13168_v31 = vsub.f32 %v2494_v35, %v2518_v58 }
 0xc61   :  { %v10126_v23 = vadd.f32 -0.0042742956, %v2506_v3  ;;  %v10127_v14 = vadd.f32 -0.0042742956, %v2507_v6  ;;  %v2498_v62 = vmax.f32 %v10118_v46, 0.0  ;;  %v2499_v1 = vmax.f32 %v10119_v56, 0.0 }
 0xc62   :  { %v2536_v47 = vsub.f32 %v13164_v55, %v13100_v37  ;;  %v2534_v4 = vsub.f32 %v13168_v31, %v13104_v38 }
 0xc63   :  { %v2522_v13 = vmax.f32 %v10126_v23, 0.0  ;;  %v2523_v49 = vmax.f32 %v10127_v14, 0.0  ;;  %v13172_v23 = vsub.f32 %v2495_v51, %v2519_v42 }
 0xc64   :  { %v2454_v2 = vpop.f32.mrf.mxu0  ;;  %v2483_v10 = vpop.f32.mrf.mxu1 }
 0xc65   :  { %v2455_v9 = vadd.f32 %v2454_v2, %v12050_v40  ;;  %v2484_v43 = vadd.f32 %v2483_v10, %v12052_v41  ;;  %v13160_v60 = vsub.f32 %v2498_v62, %v2522_v13  ;;  %v13162_v32 = vsub.f32 %v2499_v1, %v2523_v49 }
 0xc66   :  { %v2544_v10 = vmul.f32 0.8571379, %v2536_v47  ;;  %v2542_v49 = vmul.f32 0.8571379, %v2534_v4 }
 0xc67   :  { %v10120_v21 = vadd.f32 -0.0042742956, %v2455_v9  ;;  %v2508_v25 = vsub.f32 0.0, %v2455_v9  ;;  %v10121_v34 = vadd.f32 -0.0042742956, %v2484_v43  ;;  %v2509_v22 = vsub.f32 0.0, %v2484_v43 }
 0xc68   :  { %v2538_v45 = vsub.f32 %v13160_v60, %v13096_v7  ;;  %v2539_v46 = vsub.f32 %v13162_v32, %v13098_v33  ;;  %v2537_v7 = vsub.f32 %v13166_v57, %v13102_v30  ;;  %v2535_v33 = vsub.f32 %v13172_v23, %v13108_v36 }
 0xc69   :  { %v10128_v59 = vadd.f32 -0.0042742956, %v2508_v25  ;;  %v10129_v28 = vadd.f32 -0.0042742956, %v2509_v22  ;;  %v2500_v8 = vmax.f32 %v10120_v21, 0.0  ;;  %v2501_v3 = vmax.f32 %v10121_v34, 0.0 }
 0xc6a   :  { %v2546_v26 = vmul.f32 0.8571379, %v2538_v45  ;;  %v2547_v2 = vmul.f32 0.8571379, %v2539_v46  ;;  %v2545_v17 = vmul.f32 0.8571379, %v2537_v7  ;;  %v2552_v9 = vadd.f32 %v2544_v10, %v13164_v55 }
 0xc6b   :  { %v2524_v48 = vmax.f32 %v10128_v59, 0.0  ;;  %v2525_v6 = vmax.f32 %v10129_v28, 0.0  ;;  %v2543_v38 = vmul.f32 0.8571379, %v2535_v33  ;;  %v2550_v43 = vadd.f32 %v2542_v49, %v13168_v31 }
 0xc6c   :  { %v2554_v37 = vadd.f32 %v2546_v26, %v13160_v60  ;;  %v2555_v30 = vadd.f32 %v2547_v2, %v13162_v32  ;;  %v2553_v36 = vadd.f32 %v2545_v17, %v13166_v57 }
 0xc6d   :  { %v13174_v14 = vsub.f32 %v2500_v8, %v2524_v48  ;;  %v13176_v5 = vsub.f32 %v2501_v3, %v2525_v6  ;;  %v2551_v39 = vadd.f32 %v2543_v38, %v13172_v23 }
 0xc6f   :  { %v2540_v56 = vsub.f32 %v13174_v14, %v13110_v27  ;;  %v2541_v50 = vsub.f32 %v13176_v5, %v13112_v54 }
 0xc71   :  { %v2548_v24 = vmul.f32 0.8571379, %v2540_v56  ;;  %v2549_v13 = vmul.f32 0.8571379, %v2541_v50 }
 0xc73   :  { %v2556_v27 = vadd.f32 %v2548_v24, %v13174_v14  ;;  %v2557_v54 = vadd.f32 %v2549_v13, %v13176_v5 }
 0xc75   :  { %2570 = vmatpush.msrb.mxu2 %v2556_v27  ;;  %2599 = vmatpush.msrb.mxu3 %v2557_v54 }
 0xc77   :  { %2571 = vmatpush.msrb.mxu2 %v2554_v37  ;;  %2600 = vmatpush.msrb.mxu3 %v2555_v30 }
 0xc79   :  { %2572 = vmatpush.msrb.mxu2 %v2552_v9  ;;  %2601 = vmatpush.msrb.mxu3 %v2553_v36 }
 0xc7b   :  { %2573 = vmatpush.msrb.mxu2 %v2550_v43  ;;  %2602 = vmatpush.msrb.mxu3 %v2551_v39 }
 0xc7c   :  { %10130 = vmatmul.msk.f32.vlgmr.msrb.gmra.mxu2 %vm213_vm0, %v13000_v53  ;;  %10134 = vmatmul.msk.f32.vlgmr.msrb.gmra.mxu3 %vm213_vm0, %v13000_v53 }
 0xc84   :  { %10131 = vmatmul.msk.f32.gmra.mxu2 %vm213_vm0, %v13006_v52  ;;  %10135 = vmatmul.msk.f32.gmra.mxu3 %vm213_vm0, %v13006_v52 }
 0xc8c   :  { %10132 = vmatmul.msk.f32.gmra.mxu2 %vm213_vm0, %v13012_v29  ;;  %10136 = vmatmul.msk.f32.gmra.mxu3 %vm213_vm0, %v13012_v29 }
 0xc94   :  { %10133 = vmatmul.msk.f32.gmra.mxu2 %vm213_vm0, %v13018_v63  ;;  %10137 = vmatmul.msk.f32.gmra.mxu3 %vm213_vm0, %v13018_v63 }
 0xcff   :  { %v2575_v44 = vpop.f32.mrf.mxu2  ;;  %v2604_v62 = vpop.f32.mrf.mxu3 }
 0xd00   :  { %v2576_v22 = vadd.f32 %v2575_v44, %v12032_v11  ;;  %v2605_v58 = vadd.f32 %v2604_v62, %v12034_v12 }
 0xd02   :  { %v2632_v51 = vsub.f32 0.0, %v2576_v22  ;;  %v2633_v3 = vsub.f32 0.0, %v2605_v58  ;;  %v10138_v7 = vadd.f32 -0.0042742956, %v2576_v22  ;;  %v10139_v4 = vadd.f32 -0.0042742956, %v2605_v58 }
 0xd04   :  { %v10146_v26 = vadd.f32 -0.0042742956, %v2632_v51  ;;  %v10147_v54 = vadd.f32 -0.0042742956, %v2633_v3 }
 0xd06   :  { %v2648_v62 = vmax.f32 %v10146_v26, 0.0 }
 0xd07   :  { %v2578_v1 = vpop.f32.mrf.mxu2  ;;  %v2607_v21 = vpop.f32.mrf.mxu3 }
 0xd08   :  { %v2579_v25 = vadd.f32 %v2578_v1, %v12036_v15  ;;  %v2608_v34 = vadd.f32 %v2607_v21, %v12038_v16 }
 0xd0a   :  { %v2634_v42 = vsub.f32 0.0, %v2579_v25  ;;  %v2635_v35 = vsub.f32 0.0, %v2608_v34  ;;  %v10140_v24 = vadd.f32 -0.0042742956, %v2579_v25  ;;  %v10141_v13 = vadd.f32 -0.0042742956, %v2608_v34 }
 0xd0b   :  { %v2649_v34 = vmax.f32 %v10147_v54, 0.0 }
 0xd0c   :  { %v10148_v6 = vadd.f32 -0.0042742956, %v2634_v42  ;;  %v10149_v56 = vadd.f32 -0.0042742956, %v2635_v35  ;;  %v2626_v1 = vmax.f32 %v10140_v24, 0.0  ;;  %v2627_v21 = vmax.f32 %v10141_v13, 0.0 }
 0xd0d   :  { %v2625_v42 = vmax.f32 %v10139_v4, 0.0 }
 0xd0e   :  { %v2650_v30 = vmax.f32 %v10148_v6, 0.0  ;;  %v2651_v49 = vmax.f32 %v10149_v56, 0.0 }
 0xd0f   :  { %v2581_v61 = vpop.f32.mrf.mxu2  ;;  %v2610_v18 = vpop.f32.mrf.mxu3 }
 0xd10   :  { %v2582_v59 = vadd.f32 %v2581_v61, %v12040_v19  ;;  %v2611_v28 = vadd.f32 %v2610_v18, %v12042_v20  ;;  %v2624_v18 = vmax.f32 %v10138_v7, 0.0 }
 0xd12   :  { %v2636_v8 = vsub.f32 0.0, %v2582_v59  ;;  %v2637_v48 = vsub.f32 0.0, %v2611_v28  ;;  %v10142_v50 = vadd.f32 -0.0042742956, %v2582_v59  ;;  %v10143_v47 = vadd.f32 -0.0042742956, %v2611_v28 }
 0xd13   :  { %v13228_v59 = vsub.f32 %v2626_v1, %v2650_v30  ;;  %v13230_v28 = vsub.f32 %v2627_v21, %v2651_v49  ;;  %v13232_v3 = vsub.f32 %v2624_v18, %v2648_v62 }
 0xd14   :  { %v10150_v45 = vadd.f32 -0.0042742956, %v2636_v8  ;;  %v10151_v46 = vadd.f32 -0.0042742956, %v2637_v48  ;;  %v2628_v38 = vmax.f32 %v10142_v50, 0.0  ;;  %v2629_v9 = vmax.f32 %v10143_v47, 0.0 }
 0xd15   :  { %v2666_v26 = vsub.f32 %v13228_v59, %v13164_v55  ;;  %v2664_v24 = vsub.f32 %v13232_v3, %v13168_v31 }
 0xd16   :  { %v2652_v2 = vmax.f32 %v10150_v45, 0.0  ;;  %v2653_v10 = vmax.f32 %v10151_v46, 0.0  ;;  %v13236_v45 = vsub.f32 %v2625_v42, %v2649_v34 }
 0xd17   :  { %v2584_v33 = vpop.f32.mrf.mxu2  ;;  %v2613_v27 = vpop.f32.mrf.mxu3 }
 0xd18   :  { %v2585_v17 = vadd.f32 %v2584_v33, %v12050_v40  ;;  %v2614_v37 = vadd.f32 %v2613_v27, %v12052_v41  ;;  %v13224_v25 = vsub.f32 %v2628_v38, %v2652_v2  ;;  %v13226_v22 = vsub.f32 %v2629_v9, %v2653_v10 }
 0xd19   :  { %v2674_v27 = vmul.f32 0.86378014, %v2666_v26  ;;  %v2672_v10 = vmul.f32 0.86378014, %v2664_v24 }
 0xd1a   :  { %v10144_v36 = vadd.f32 -0.0042742956, %v2585_v17  ;;  %v2638_v43 = vsub.f32 0.0, %v2585_v17  ;;  %v10145_v39 = vadd.f32 -0.0042742956, %v2614_v37  ;;  %v2639_v44 = vsub.f32 0.0, %v2614_v37 }
 0xd1b   :  { %v2668_v6 = vsub.f32 %v13224_v25, %v13160_v60  ;;  %v2669_v50 = vsub.f32 %v13226_v22, %v13162_v32  ;;  %v2667_v60 = vsub.f32 %v13230_v28, %v13166_v57  ;;  %v2665_v32 = vsub.f32 %v13236_v45, %v13172_v23 }
 0xd1c   :  { %v10152_v58 = vadd.f32 -0.0042742956, %v2638_v43  ;;  %v10153_v61 = vadd.f32 -0.0042742956, %v2639_v44  ;;  %v2630_v35 = vmax.f32 %v10144_v36, 0.0  ;;  %v2631_v8 = vmax.f32 %v10145_v39, 0.0 }
 0xd1d   :  { %v2676_v4 = vmul.f32 0.86378014, %v2668_v6  ;;  %v2677_v33 = vmul.f32 0.86378014, %v2669_v50  ;;  %v2675_v54 = vmul.f32 0.86378014, %v2667_v60  ;;  %v2682_v17 = vadd.f32 %v2674_v27, %v13228_v59 }
 0xd1e   :  { %v2654_v51 = vmax.f32 %v10152_v58, 0.0  ;;  %v2655_v48 = vmax.f32 %v10153_v61, 0.0  ;;  %v2673_v31 = vmul.f32 0.86378014, %v2665_v32  ;;  %v2680_v37 = vadd.f32 %v2672_v10, %v13232_v3 }
 0xd1f   :  { %v2684_v55 = vadd.f32 %v2676_v4, %v13224_v25  ;;  %v2685_v57 = vadd.f32 %v2677_v33, %v13226_v22  ;;  %v2683_v23 = vadd.f32 %v2675_v54, %v13230_v28 }
 0xd20   :  { %v13238_v46 = vsub.f32 %v2630_v35, %v2654_v51  ;;  %v13240_v56 = vsub.f32 %v2631_v8, %v2655_v48  ;;  %v2681_v30 = vadd.f32 %v2673_v31, %v13236_v45 }
 0xd22   :  { %v2670_v47 = vsub.f32 %v13238_v46, %v13174_v14  ;;  %v2671_v7 = vsub.f32 %v13240_v56, %v13176_v5 }
 0xd24   :  { %v2678_v13 = vmul.f32 0.86378014, %v2670_v47  ;;  %v2679_v2 = vmul.f32 0.86378014, %v2671_v7 }
 0xd26   :  { %v2686_v14 = vadd.f32 %v2678_v13, %v13238_v46  ;;  %v2687_v5 = vadd.f32 %v2679_v2, %v13240_v56 }
 0xd28   :  { %2700 = vmatpush.msra.mxu0 %v2686_v14  ;;  %2729 = vmatpush.msra.mxu1 %v2687_v5 }
 0xd2a   :  { %2701 = vmatpush.msra.mxu0 %v2684_v55  ;;  %2730 = vmatpush.msra.mxu1 %v2685_v57 }
 0xd2c   :  { %2702 = vmatpush.msra.mxu0 %v2682_v17  ;;  %2731 = vmatpush.msra.mxu1 %v2683_v23 }
 0xd2e   :  { %2703 = vmatpush.msra.mxu0 %v2680_v37  ;;  %2732 = vmatpush.msra.mxu1 %v2681_v30 }
 0xd2f   :  { %10154 = vmatmul.msk.f32.vlgmr.msra.gmra.mxu0 %vm213_vm0, %v13000_v53  ;;  %10158 = vmatmul.msk.f32.vlgmr.msra.gmra.mxu1 %vm213_vm0, %v13000_v53 }
 0xd37   :  { %10155 = vmatmul.msk.f32.gmra.mxu0 %vm213_vm0, %v13006_v52  ;;  %10159 = vmatmul.msk.f32.gmra.mxu1 %vm213_vm0, %v13006_v52 }
 0xd3f   :  { %10156 = vmatmul.msk.f32.gmra.mxu0 %vm213_vm0, %v13012_v29  ;;  %10160 = vmatmul.msk.f32.gmra.mxu1 %vm213_vm0, %v13012_v29 }
 0xd47   :  { %10157 = vmatmul.msk.f32.gmra.mxu0 %vm213_vm0, %v13018_v63  ;;  %10161 = vmatmul.msk.f32.gmra.mxu1 %vm213_vm0, %v13018_v63 }
 0xdac   :  { %v2705_v49 = vpop.f32.mrf.mxu0  ;;  %v2734_v53 = vpop.f32.mrf.mxu1 }
 0xdad   :  { %v2706_v43 = vadd.f32 %v2705_v49, %v12032_v11  ;;  %v2735_v39 = vadd.f32 %v2734_v53, %v12034_v12 }
 0xdaf   :  { %v2762_v34 = vsub.f32 0.0, %v2706_v43  ;;  %v2763_v18 = vsub.f32 0.0, %v2735_v39  ;;  %v10162_v50 = vadd.f32 -0.0042742956, %v2706_v43  ;;  %v10163_v7 = vadd.f32 -0.0042742956, %v2735_v39 }
 0xdb1   :  { %v10170_v47 = vadd.f32 -0.0042742956, %v2762_v34  ;;  %v10171_v2 = vadd.f32 -0.0042742956, %v2763_v18  ;;  %v2755_v43 = vmax.f32 %v10163_v7, 0.0 }
 0xdb3   :  { %v2778_v23 = vmax.f32 %v10170_v47, 0.0  ;;  %v2779_v53 = vmax.f32 %v10171_v2, 0.0 }
 0xdb4   :  { %v2708_v38 = vpop.f32.mrf.mxu0  ;;  %v2737_v9 = vpop.f32.mrf.mxu1 }
 0xdb5   :  { %v2709_v36 = vadd.f32 %v2708_v38, %v12036_v15  ;;  %v2738_v52 = vadd.f32 %v2737_v9, %v12038_v16 }
 0xdb7   :  { %v2764_v62 = vsub.f32 0.0, %v2709_v36  ;;  %v2765_v63 = vsub.f32 0.0, %v2738_v52  ;;  %v10164_v26 = vadd.f32 -0.0042742956, %v2709_v36  ;;  %v10165_v60 = vadd.f32 -0.0042742956, %v2738_v52 }
 0xdb8   :  { %v2754_v52 = vmax.f32 %v10162_v50, 0.0 }
 0xdb9   :  { %v10172_v42 = vadd.f32 -0.0042742956, %v2764_v62  ;;  %v10173_v8 = vadd.f32 -0.0042742956, %v2765_v63  ;;  %v2756_v37 = vmax.f32 %v10164_v26, 0.0  ;;  %v2757_v30 = vmax.f32 %v10165_v60, 0.0 }
 0xdba   :  { %v13296_v63 = vsub.f32 %v2754_v52, %v2778_v23 }
 0xdbb   :  { %v2780_v5 = vmax.f32 %v10172_v42, 0.0  ;;  %v2781_v27 = vmax.f32 %v10173_v8, 0.0 }
 0xdbc   :  { %v2711_v44 = vpop.f32.mrf.mxu0  ;;  %v2740_v29 = vpop.f32.mrf.mxu1 }
 0xdbd   :  { %v2712_v1 = vadd.f32 %v2711_v44, %v12040_v19  ;;  %v2741_v21 = vadd.f32 %v2740_v29, %v12042_v20  ;;  %v13292_v39 = vsub.f32 %v2756_v37, %v2780_v5  ;;  %v13294_v44 = vsub.f32 %v2757_v30, %v2781_v27  ;;  %v13346_v5 = vld [vmem:[#allocation2 + $0x18] sm:$0xff] }
 0xdbf   :  { %v2766_v58 = vsub.f32 0.0, %v2712_v1  ;;  %v2767_v61 = vsub.f32 0.0, %v2741_v21  ;;  %v10166_v48 = vadd.f32 -0.0042742956, %v2712_v1  ;;  %v10167_v6 = vadd.f32 -0.0042742956, %v2741_v21 }
 0xdc0   :  { %v2796_v8 = vsub.f32 %v13292_v39, %v13228_v59 }
 0xdc1   :  { %v10174_v35 = vadd.f32 -0.0042742956, %v2766_v58  ;;  %v10175_v51 = vadd.f32 -0.0042742956, %v2767_v61  ;;  %v2758_v54 = vmax.f32 %v10166_v48, 0.0  ;;  %v2759_v55 = vmax.f32 %v10167_v6, 0.0 }
 0xdc2   :  { %v13300_v58 = vsub.f32 %v2755_v43, %v2779_v53  ;;  %v2794_v6 = vsub.f32 %v13296_v63, %v13232_v3  ;;  %v2804_v26 = vmul.f32 0.8698258, %v2796_v8 }
 0xdc3   :  { %v2782_v4 = vmax.f32 %v10174_v35, 0.0  ;;  %v2783_v33 = vmax.f32 %v10175_v51, 0.0 }
 0xdc4   :  { %v2714_v24 = vpop.f32.mrf.mxu0  ;;  %v2743_v13 = vpop.f32.mrf.mxu1 }
 0xdc5   :  { %v2715_v32 = vadd.f32 %v2714_v24, %v12050_v40  ;;  %v2744_v14 = vadd.f32 %v2743_v13, %v12052_v41  ;;  %v13288_v49 = vsub.f32 %v2758_v54, %v2782_v4  ;;  %v13290_v38 = vsub.f32 %v2759_v55, %v2783_v33  ;;  %v13328_v33 = vld [vmem:[#allocation2] sm:$0xff] }
 0xdc6   :  { %v2802_v4 = vmul.f32 0.8698258, %v2794_v6  ;;  %v2812_v24 = vadd.f32 %v2804_v26, %v13292_v39 }
 0xdc7   :  { %v10168_v57 = vadd.f32 -0.0042742956, %v2715_v32  ;;  %v2768_v10 = vsub.f32 0.0, %v2715_v32  ;;  %v10169_v31 = vadd.f32 -0.0042742956, %v2744_v14  ;;  %v2769_v17 = vsub.f32 0.0, %v2744_v14 }
 0xdc8   :  { %v2798_v34 = vsub.f32 %v13288_v49, %v13224_v25  ;;  %v2799_v42 = vsub.f32 %v13290_v38, %v13226_v22  ;;  %v2797_v25 = vsub.f32 %v13294_v44, %v13230_v28  ;;  %v2795_v22 = vsub.f32 %v13300_v58, %v13236_v45  ;;  %v13334_v32 = vld [vmem:[#allocation2 + $0x8] sm:$0xff]  ;;  %v13340_v14 = vld [vmem:[#allocation2 + $0x10] sm:$0xff] }
 0xdc9   :  { %v10176_v9 = vadd.f32 -0.0042742956, %v2768_v10  ;;  %v10177_v36 = vadd.f32 -0.0042742956, %v2769_v17  ;;  %v2760_v29 = vmax.f32 %v10168_v57, 0.0  ;;  %v2761_v1 = vmax.f32 %v10169_v31, 0.0 }
 0xdca   :  { %v2806_v48 = vmul.f32 0.8698258, %v2798_v34  ;;  %v2807_v7 = vmul.f32 0.8698258, %v2799_v42  ;;  %v2805_v60 = vmul.f32 0.8698258, %v2797_v25  ;;  %v2810_v13 = vadd.f32 %v2802_v4, %v13296_v63 }
 0xdcb   :  { %v2784_v62 = vmax.f32 %v10176_v9, 0.0  ;;  %v2785_v21 = vmax.f32 %v10177_v36, 0.0  ;;  %v2803_v3 = vmul.f32 0.8698258, %v2795_v22 }
 0xdcc   :  { %v2814_v59 = vadd.f32 %v2806_v48, %v13288_v49  ;;  %v2815_v28 = vadd.f32 %v2807_v7, %v13290_v38  ;;  %v2813_v45 = vadd.f32 %v2805_v60, %v13294_v44 }
 0xdcd   :  { %v13302_v61 = vsub.f32 %v2760_v29, %v2784_v62  ;;  %v13304_v18 = vsub.f32 %v2761_v1, %v2785_v21  ;;  %v2811_v2 = vadd.f32 %v2803_v3, %v13300_v58 }
 0xdcf   :  { %v2800_v35 = vsub.f32 %v13302_v61, %v13238_v46  ;;  %v2801_v51 = vsub.f32 %v13304_v18, %v13240_v56 }
 0xdd1   :  { %v2808_v50 = vmul.f32 0.8698258, %v2800_v35  ;;  %v2809_v47 = vmul.f32 0.8698258, %v2801_v51 }
 0xdd3   :  { %v2816_v46 = vadd.f32 %v2808_v50, %v13302_v61  ;;  %v2817_v56 = vadd.f32 %v2809_v47, %v13304_v18 }
 0xdd5   :  { %2830 = vmatpush.msra.mxu2 %v2816_v46  ;;  %2859 = vmatpush.msra.mxu3 %v2817_v56 }
 0xdd7   :  { %2831 = vmatpush.msra.mxu2 %v2814_v59  ;;  %2860 = vmatpush.msra.mxu3 %v2815_v28 }
 0xdd9   :  { %2832 = vmatpush.msra.mxu2 %v2812_v24  ;;  %2861 = vmatpush.msra.mxu3 %v2813_v45 }
 0xddb   :  { %2833 = vmatpush.msra.mxu2 %v2810_v13  ;;  %2862 = vmatpush.msra.mxu3 %v2811_v2 }
 0xddc   :  { %10178 = vmatmul.msk.f32.vlgmr.msra.gmra.mxu2 %vm213_vm0, %v13328_v33  ;;  %10182 = vmatmul.msk.f32.vlgmr.msra.gmra.mxu3 %vm213_vm0, %v13328_v33 }
 0xde4   :  { %10179 = vmatmul.msk.f32.gmra.mxu2 %vm213_vm0, %v13334_v32  ;;  %10183 = vmatmul.msk.f32.gmra.mxu3 %vm213_vm0, %v13334_v32 }
 0xdec   :  { %10180 = vmatmul.msk.f32.gmra.mxu2 %vm213_vm0, %v13340_v14  ;;  %10184 = vmatmul.msk.f32.gmra.mxu3 %vm213_vm0, %v13340_v14 }
 0xdf4   :  { %10181 = vmatmul.msk.f32.gmra.mxu2 %vm213_vm0, %v13346_v5  ;;  %10185 = vmatmul.msk.f32.gmra.mxu3 %vm213_vm0, %v13346_v5 }
 0xe5f   :  { %v2835_v27 = vpop.f32.mrf.mxu2  ;;  %v2864_v54 = vpop.f32.mrf.mxu3 }
 0xe60   :  { %v2836_v17 = vadd.f32 %v2835_v27, %v12032_v11  ;;  %v2865_v23 = vadd.f32 %v2864_v54, %v12034_v12 }
 0xe62   :  { %v2892_v43 = vsub.f32 0.0, %v2836_v17  ;;  %v2893_v1 = vsub.f32 0.0, %v2865_v23  ;;  %v10186_v25 = vadd.f32 -0.0042742956, %v2836_v17  ;;  %v10187_v6 = vadd.f32 -0.0042742956, %v2865_v23 }
 0xe64   :  { %v10194_v48 = vadd.f32 -0.0042742956, %v2892_v43  ;;  %v10195_v56 = vadd.f32 -0.0042742956, %v2893_v1 }
 0xe66   :  { %v2908_v54 = vmax.f32 %v10194_v48, 0.0 }
 0xe67   :  { %v2838_v55 = vpop.f32.mrf.mxu2  ;;  %v2867_v57 = vpop.f32.mrf.mxu3 }
 0xe68   :  { %v2839_v10 = vadd.f32 %v2838_v55, %v12036_v15  ;;  %v2868_v31 = vadd.f32 %v2867_v57, %v12038_v16 }
 0xe6a   :  { %v2894_v53 = vsub.f32 0.0, %v2839_v10  ;;  %v2895_v52 = vsub.f32 0.0, %v2868_v31  ;;  %v10188_v50 = vadd.f32 -0.0042742956, %v2839_v10  ;;  %v10189_v47 = vadd.f32 -0.0042742956, %v2868_v31 }
 0xe6b   :  { %v2909_v31 = vmax.f32 %v10195_v56, 0.0 }
 0xe6c   :  { %v10196_v21 = vadd.f32 -0.0042742956, %v2894_v53  ;;  %v10197_v35 = vadd.f32 -0.0042742956, %v2895_v52  ;;  %v2886_v55 = vmax.f32 %v10188_v50, 0.0  ;;  %v2887_v57 = vmax.f32 %v10189_v47, 0.0 }
 0xe6d   :  { %v2885_v53 = vmax.f32 %v10187_v6, 0.0 }
 0xe6e   :  { %v2910_v28 = vmax.f32 %v10196_v21, 0.0  ;;  %v2911_v4 = vmax.f32 %v10197_v35, 0.0 }
 0xe6f   :  { %v2841_v37 = vpop.f32.mrf.mxu2  ;;  %v2870_v30 = vpop.f32.mrf.mxu3 }
 0xe70   :  { %v2842_v9 = vadd.f32 %v2841_v37, %v12040_v19  ;;  %v2871_v36 = vadd.f32 %v2870_v30, %v12042_v20  ;;  %v2884_v30 = vmax.f32 %v10186_v25, 0.0 }
 0xe72   :  { %v2896_v29 = vsub.f32 0.0, %v2842_v9  ;;  %v2897_v62 = vsub.f32 0.0, %v2871_v36  ;;  %v10190_v51 = vadd.f32 -0.0042742956, %v2842_v9  ;;  %v10191_v8 = vadd.f32 -0.0042742956, %v2871_v36 }
 0xe73   :  { %v13364_v9 = vsub.f32 %v2886_v55, %v2910_v28  ;;  %v13366_v36 = vsub.f32 %v2887_v57, %v2911_v4  ;;  %v13368_v1 = vsub.f32 %v2884_v30, %v2908_v54 }
 0xe74   :  { %v10198_v34 = vadd.f32 -0.0042742956, %v2896_v29  ;;  %v10199_v42 = vadd.f32 -0.0042742956, %v2897_v62  ;;  %v2888_v3 = vmax.f32 %v10190_v51, 0.0  ;;  %v2889_v24 = vmax.f32 %v10191_v8, 0.0 }
 0xe75   :  { %v2926_v48 = vsub.f32 %v13364_v9, %v13292_v39  ;;  %v2924_v50 = vsub.f32 %v13368_v1, %v13296_v63 }
 0xe76   :  { %v2912_v7 = vmax.f32 %v10198_v34, 0.0  ;;  %v2913_v26 = vmax.f32 %v10199_v42, 0.0  ;;  %v13372_v34 = vsub.f32 %v2885_v53, %v2909_v31 }
 0xe77   :  { %v2844_v22 = vpop.f32.mrf.mxu2  ;;  %v2873_v46 = vpop.f32.mrf.mxu3 }
 0xe78   :  { %v2845_v60 = vadd.f32 %v2844_v22, %v12050_v40  ;;  %v2874_v59 = vadd.f32 %v2873_v46, %v12052_v41  ;;  %v13360_v10 = vsub.f32 %v2888_v3, %v2912_v7  ;;  %v13362_v17 = vsub.f32 %v2889_v24, %v2913_v26 }
 0xe79   :  { %v2934_v46 = vmul.f32 0.8753523, %v2926_v48  ;;  %v2932_v26 = vmul.f32 0.8753523, %v2924_v50 }
 0xe7a   :  { %v10192_v45 = vadd.f32 -0.0042742956, %v2845_v60  ;;  %v2898_v13 = vsub.f32 0.0, %v2845_v60  ;;  %v10193_v2 = vadd.f32 -0.0042742956, %v2874_v59  ;;  %v2899_v27 = vsub.f32 0.0, %v2874_v59 }
 0xe7b   :  { %v2928_v21 = vsub.f32 %v13360_v10, %v13288_v49  ;;  %v2929_v51 = vsub.f32 %v13362_v17, %v13290_v38  ;;  %v2927_v49 = vsub.f32 %v13366_v36, %v13294_v44  ;;  %v2925_v38 = vsub.f32 %v13372_v34, %v13300_v58 }
 0xe7c   :  { %v10200_v23 = vadd.f32 -0.0042742956, %v2898_v13  ;;  %v10201_v37 = vadd.f32 -0.0042742956, %v2899_v27  ;;  %v2890_v52 = vmax.f32 %v10192_v45, 0.0  ;;  %v2891_v29 = vmax.f32 %v10193_v2, 0.0 }
 0xe7d   :  { %v2936_v6 = vmul.f32 0.8753523, %v2928_v21  ;;  %v2937_v22 = vmul.f32 0.8753523, %v2929_v51  ;;  %v2935_v56 = vmul.f32 0.8753523, %v2927_v49  ;;  %v2942_v60 = vadd.f32 %v2934_v46, %v13364_v9 }
 0xe7e   :  { %v2914_v43 = vmax.f32 %v10200_v23, 0.0  ;;  %v2915_v62 = vmax.f32 %v10201_v37, 0.0  ;;  %v2933_v63 = vmul.f32 0.8753523, %v2925_v38  ;;  %v2940_v59 = vadd.f32 %v2932_v26, %v13368_v1 }
 0xe7f   :  { %v2944_v39 = vadd.f32 %v2936_v6, %v13360_v10  ;;  %v2945_v44 = vadd.f32 %v2937_v22, %v13362_v17  ;;  %v2943_v58 = vadd.f32 %v2935_v56, %v13366_v36 }
 0xe80   :  { %v13374_v42 = vsub.f32 %v2890_v52, %v2914_v43  ;;  %v13376_v35 = vsub.f32 %v2891_v29, %v2915_v62  ;;  %v2941_v28 = vadd.f32 %v2933_v63, %v13372_v34 }
 0xe82   :  { %v2930_v8 = vsub.f32 %v13374_v42, %v13302_v61  ;;  %v2931_v25 = vsub.f32 %v13376_v35, %v13304_v18 }
 0xe84   :  { %v2938_v47 = vmul.f32 0.8753523, %v2930_v8  ;;  %v2939_v7 = vmul.f32 0.8753523, %v2931_v25 }
 0xe86   :  { %v2946_v61 = vadd.f32 %v2938_v47, %v13374_v42  ;;  %v2947_v18 = vadd.f32 %v2939_v7, %v13376_v35 }
 0xe88   :  { %2960 = vmatpush.msrb.mxu0 %v2946_v61  ;;  %2989 = vmatpush.msrb.mxu1 %v2947_v18 }
 0xe8a   :  { %2961 = vmatpush.msrb.mxu0 %v2944_v39  ;;  %2990 = vmatpush.msrb.mxu1 %v2945_v44 }
 0xe8c   :  { %2962 = vmatpush.msrb.mxu0 %v2942_v60  ;;  %2991 = vmatpush.msrb.mxu1 %v2943_v58 }
 0xe8e   :  { %2963 = vmatpush.msrb.mxu0 %v2940_v59  ;;  %2992 = vmatpush.msrb.mxu1 %v2941_v28 }
 0xe8f   :  { %10202 = vmatmul.msk.f32.vlgmr.msrb.gmra.mxu0 %vm213_vm0, %v13328_v33  ;;  %10206 = vmatmul.msk.f32.vlgmr.msrb.gmra.mxu1 %vm213_vm0, %v13328_v33 }
 0xe97   :  { %10203 = vmatmul.msk.f32.gmra.mxu0 %vm213_vm0, %v13334_v32  ;;  %10207 = vmatmul.msk.f32.gmra.mxu1 %vm213_vm0, %v13334_v32 }
 0xe9f   :  { %10204 = vmatmul.msk.f32.gmra.mxu0 %vm213_vm0, %v13340_v14  ;;  %10208 = vmatmul.msk.f32.gmra.mxu1 %vm213_vm0, %v13340_v14 }
 0xea7   :  { %10205 = vmatmul.msk.f32.gmra.mxu0 %vm213_vm0, %v13346_v5  ;;  %10209 = vmatmul.msk.f32.gmra.mxu1 %vm213_vm0, %v13346_v5 }
 0xf0c   :  { %v2965_v4 = vpop.f32.mrf.mxu0  ;;  %v2994_v3 = vpop.f32.mrf.mxu1 }
 0xf0d   :  { %v2966_v27 = vadd.f32 %v2965_v4, %v12032_v11  ;;  %v2995_v54 = vadd.f32 %v2994_v3, %v12034_v12 }
 0xf0f   :  { %v3022_v53 = vsub.f32 0.0, %v2966_v27  ;;  %v3023_v29 = vsub.f32 0.0, %v2995_v54  ;;  %v10210_v49 = vadd.f32 -0.0042742956, %v2966_v27  ;;  %v10211_v50 = vadd.f32 -0.0042742956, %v2995_v54 }
 0xf11   :  { %v10218_v6 = vadd.f32 -0.0042742956, %v3022_v53  ;;  %v10219_v18 = vadd.f32 -0.0042742956, %v3023_v29 }
 0xf13   :  { %v3038_v3 = vmax.f32 %v10218_v6, 0.0 }
 0xf14   :  { %v2968_v24 = vpop.f32.mrf.mxu0  ;;  %v2997_v45 = vpop.f32.mrf.mxu1 }
 0xf15   :  { %v2969_v13 = vadd.f32 %v2968_v24, %v12036_v15  ;;  %v2998_v2 = vadd.f32 %v2997_v45, %v12038_v16 }
 0xf17   :  { %v3024_v31 = vsub.f32 0.0, %v2969_v13  ;;  %v3025_v30 = vsub.f32 0.0, %v2998_v2  ;;  %v10212_v47 = vadd.f32 -0.0042742956, %v2969_v13  ;;  %v10213_v7 = vadd.f32 -0.0042742956, %v2998_v2 }
 0xf18   :  { %v3039_v2 = vmax.f32 %v10219_v18, 0.0 }
 0xf19   :  { %v10220_v62 = vadd.f32 -0.0042742956, %v3024_v31  ;;  %v10221_v8 = vadd.f32 -0.0042742956, %v3025_v30  ;;  %v3016_v24 = vmax.f32 %v10212_v47, 0.0  ;;  %v3017_v45 = vmax.f32 %v10213_v7, 0.0 }
 0xf1a   :  { %v3015_v31 = vmax.f32 %v10211_v50, 0.0 }
 0xf1b   :  { %v3040_v44 = vmax.f32 %v10220_v62, 0.0  ;;  %v3041_v26 = vmax.f32 %v10221_v8, 0.0 }
 0xf1c   :  { %v2971_v55 = vpop.f32.mrf.mxu0  ;;  %v3000_v57 = vpop.f32.mrf.mxu1 }
 0xf1d   :  { %v2972_v23 = vadd.f32 %v2971_v55, %v12040_v19  ;;  %v3001_v37 = vadd.f32 %v3000_v57, %v12042_v20  ;;  %v3014_v57 = vmax.f32 %v10210_v49, 0.0 }
 0xf1f   :  { %v3026_v52 = vsub.f32 0.0, %v2972_v23  ;;  %v3027_v43 = vsub.f32 0.0, %v3001_v37  ;;  %v10214_v25 = vadd.f32 -0.0042742956, %v2972_v23  ;;  %v10215_v48 = vadd.f32 -0.0042742956, %v3001_v37 }
 0xf20   :  { %v13428_v23 = vsub.f32 %v3016_v24, %v3040_v44  ;;  %v13430_v37 = vsub.f32 %v3017_v45, %v3041_v26  ;;  %v13432_v29 = vsub.f32 %v3014_v57, %v3038_v3 }
 0xf21   :  { %v10222_v21 = vadd.f32 -0.0042742956, %v3026_v52  ;;  %v10223_v51 = vadd.f32 -0.0042742956, %v3027_v43  ;;  %v3018_v63 = vmax.f32 %v10214_v25, 0.0  ;;  %v3019_v60 = vmax.f32 %v10215_v48, 0.0 }
 0xf22   :  { %v3056_v6 = vsub.f32 %v13428_v23, %v13364_v9  ;;  %v3054_v47 = vsub.f32 %v13432_v29, %v13368_v1 }
 0xf23   :  { %v3042_v22 = vmax.f32 %v10222_v21, 0.0  ;;  %v3043_v46 = vmax.f32 %v10223_v51, 0.0  ;;  %v13436_v21 = vsub.f32 %v3015_v31, %v3039_v2 }
 0xf24   :  { %v2974_v38 = vpop.f32.mrf.mxu0  ;;  %v3003_v61 = vpop.f32.mrf.mxu1 }
 0xf25   :  { %v2975_v56 = vadd.f32 %v2974_v38, %v12050_v40  ;;  %v3004_v39 = vadd.f32 %v3003_v61, %v12052_v41  ;;  %v13424_v13 = vsub.f32 %v3018_v63, %v3042_v22  ;;  %v13426_v27 = vsub.f32 %v3019_v60, %v3043_v46 }
 0xf26   :  { %v3064_v61 = vmul.f32 0.8804243, %v3056_v6  ;;  %v3062_v46 = vmul.f32 0.8804243, %v3054_v47 }
 0xf27   :  { %v10216_v58 = vadd.f32 -0.0042742956, %v2975_v56  ;;  %v3028_v59 = vsub.f32 0.0, %v2975_v56  ;;  %v10217_v28 = vadd.f32 -0.0042742956, %v3004_v39  ;;  %v3029_v4 = vsub.f32 0.0, %v3004_v39 }
 0xf28   :  { %v3058_v62 = vsub.f32 %v13424_v13, %v13360_v10  ;;  %v3059_v25 = vsub.f32 %v13426_v27, %v13362_v17  ;;  %v3057_v10 = vsub.f32 %v13430_v37, %v13366_v36  ;;  %v3055_v17 = vsub.f32 %v13436_v21, %v13372_v34 }
 0xf29   :  { %v10224_v54 = vadd.f32 -0.0042742956, %v3028_v59  ;;  %v10225_v55 = vadd.f32 -0.0042742956, %v3029_v4  ;;  %v3020_v30 = vmax.f32 %v10216_v58, 0.0  ;;  %v3021_v52 = vmax.f32 %v10217_v28, 0.0 }
 0xf2a   :  { %v3066_v50 = vmul.f32 0.8804243, %v3058_v62  ;;  %v3067_v38 = vmul.f32 0.8804243, %v3059_v25  ;;  %v3065_v18 = vmul.f32 0.8804243, %v3057_v10  ;;  %v3072_v56 = vadd.f32 %v3064_v61, %v13428_v23 }
 0xf2b   :  { %v3044_v53 = vmax.f32 %v10224_v54, 0.0  ;;  %v3045_v43 = vmax.f32 %v10225_v55, 0.0  ;;  %v3063_v1 = vmul.f32 0.8804243, %v3055_v17  ;;  %v3070_v39 = vadd.f32 %v3062_v46, %v13432_v29 }
 0xf2c   :  { %v3074_v9 = vadd.f32 %v3066_v50, %v13424_v13  ;;  %v3075_v36 = vadd.f32 %v3067_v38, %v13426_v27  ;;  %v3073_v34 = vadd.f32 %v3065_v18, %v13430_v37 }
 0xf2d   :  { %v13438_v51 = vsub.f32 %v3020_v30, %v3044_v53  ;;  %v13440_v8 = vsub.f32 %v3021_v52, %v3045_v43  ;;  %v3071_v44 = vadd.f32 %v3063_v1, %v13436_v21 }
 0xf2f   :  { %v3060_v48 = vsub.f32 %v13438_v51, %v13374_v42  ;;  %v3061_v49 = vsub.f32 %v13440_v8, %v13376_v35 }
 0xf31   :  { %v3068_v7 = vmul.f32 0.8804243, %v3060_v48  ;;  %v3069_v22 = vmul.f32 0.8804243, %v3061_v49 }
 0xf33   :  { %v3076_v42 = vadd.f32 %v3068_v7, %v13438_v51  ;;  %v3077_v35 = vadd.f32 %v3069_v22, %v13440_v8 }
 0xf35   :  { %3090 = vmatpush.msrb.mxu2 %v3076_v42  ;;  %3119 = vmatpush.msrb.mxu3 %v3077_v35 }
 0xf37   :  { %3091 = vmatpush.msrb.mxu2 %v3074_v9  ;;  %3120 = vmatpush.msrb.mxu3 %v3075_v36 }
 0xf39   :  { %3092 = vmatpush.msrb.mxu2 %v3072_v56  ;;  %3121 = vmatpush.msrb.mxu3 %v3073_v34 }
 0xf3b   :  { %3093 = vmatpush.msrb.mxu2 %v3070_v39  ;;  %3122 = vmatpush.msrb.mxu3 %v3071_v44 }
 0xf3c   :  { %10226 = vmatmul.msk.f32.vlgmr.msrb.gmra.mxu2 %vm213_vm0, %v13328_v33  ;;  %10230 = vmatmul.msk.f32.vlgmr.msrb.gmra.mxu3 %vm213_vm0, %v13328_v33 }
 0xf44   :  { %10227 = vmatmul.msk.f32.gmra.mxu2 %vm213_vm0, %v13334_v32  ;;  %10231 = vmatmul.msk.f32.gmra.mxu3 %vm213_vm0, %v13334_v32 }
 0xf4c   :  { %10228 = vmatmul.msk.f32.gmra.mxu2 %vm213_vm0, %v13340_v14  ;;  %10232 = vmatmul.msk.f32.gmra.mxu3 %vm213_vm0, %v13340_v14 }
 0xf54   :  { %10229 = vmatmul.msk.f32.gmra.mxu2 %vm213_vm0, %v13346_v5  ;;  %10233 = vmatmul.msk.f32.gmra.mxu3 %vm213_vm0, %v13346_v5 }
 0xfbf   :  { %v3095_v26 = vpop.f32.mrf.mxu2  ;;  %v3124_v63 = vpop.f32.mrf.mxu3 }
 0xfc0   :  { %v3096_v4 = vadd.f32 %v3095_v26, %v12032_v11  ;;  %v3125_v3 = vadd.f32 %v3124_v63, %v12034_v12 }
 0xfc2   :  { %v3152_v31 = vsub.f32 0.0, %v3096_v4  ;;  %v3153_v52 = vsub.f32 0.0, %v3125_v3  ;;  %v10234_v10 = vadd.f32 -0.0042742956, %v3096_v4  ;;  %v10235_v47 = vadd.f32 -0.0042742956, %v3125_v3 }
 0xfc4   :  { %v10242_v50 = vadd.f32 -0.0042742956, %v3152_v31  ;;  %v10243_v35 = vadd.f32 -0.0042742956, %v3153_v52 }
 0xfc6   :  { %v3168_v63 = vmax.f32 %v10242_v50, 0.0 }
 0xfc7   :  { %v3098_v60 = vpop.f32.mrf.mxu2  ;;  %v3127_v58 = vpop.f32.mrf.mxu3 }
 0xfc8   :  { %v3099_v59 = vadd.f32 %v3098_v60, %v12036_v15  ;;  %v3128_v28 = vadd.f32 %v3127_v58, %v12038_v16 }
 0xfca   :  { %v3154_v2 = vsub.f32 0.0, %v3099_v59  ;;  %v3155_v57 = vsub.f32 0.0, %v3128_v28  ;;  %v10236_v7 = vadd.f32 -0.0042742956, %v3099_v59  ;;  %v10237_v22 = vadd.f32 -0.0042742956, %v3128_v28 }
 0xfcb   :  { %v3169_v28 = vmax.f32 %v10243_v35, 0.0 }
 0xfcc   :  { %v10244_v43 = vadd.f32 -0.0042742956, %v3154_v2  ;;  %v10245_v48 = vadd.f32 -0.0042742956, %v3155_v57  ;;  %v3146_v60 = vmax.f32 %v10236_v7, 0.0  ;;  %v3147_v58 = vmax.f32 %v10237_v22, 0.0 }
 0xfcd   :  { %v3145_v2 = vmax.f32 %v10235_v47, 0.0 }
 0xfce   :  { %v3170_v36 = vmax.f32 %v10244_v43, 0.0  ;;  %v3171_v46 = vmax.f32 %v10245_v48, 0.0 }
 0xfcf   :  { %v3101_v24 = vpop.f32.mrf.mxu2  ;;  %v3130_v45 = vpop.f32.mrf.mxu3 }
 0xfd0   :  { %v3102_v54 = vadd.f32 %v3101_v24, %v12040_v19  ;;  %v3131_v55 = vadd.f32 %v3130_v45, %v12042_v20  ;;  %v3144_v45 = vmax.f32 %v10234_v10, 0.0 }
 0xfd2   :  { %v3156_v30 = vsub.f32 0.0, %v3102_v54  ;;  %v3157_v53 = vsub.f32 0.0, %v3131_v55  ;;  %v10238_v49 = vadd.f32 -0.0042742956, %v3102_v54  ;;  %v10239_v6 = vadd.f32 -0.0042742956, %v3131_v55 }
 0xfd3   :  { %v13492_v54 = vsub.f32 %v3146_v60, %v3170_v36  ;;  %v13494_v55 = vsub.f32 %v3147_v58, %v3171_v46  ;;  %v13496_v52 = vsub.f32 %v3144_v45, %v3168_v63 }
 0xfd4   :  { %v10246_v62 = vadd.f32 -0.0042742956, %v3156_v30  ;;  %v10247_v25 = vadd.f32 -0.0042742956, %v3157_v53  ;;  %v3148_v1 = vmax.f32 %v10238_v49, 0.0  ;;  %v3149_v56 = vmax.f32 %v10239_v6, 0.0 }
 0xfd5   :  { %v3186_v50 = vsub.f32 %v13492_v54, %v13428_v23  ;;  %v3184_v7 = vsub.f32 %v13496_v52, %v13432_v29 }
 0xfd6   :  { %v3172_v38 = vmax.f32 %v10246_v62, 0.0  ;;  %v3173_v61 = vmax.f32 %v10247_v25, 0.0  ;;  %v13500_v62 = vsub.f32 %v3145_v2, %v3169_v28 }
 0xfd7   :  { %v3104_v17 = vpop.f32.mrf.mxu2  ;;  %v3133_v42 = vpop.f32.mrf.mxu3 }
 0xfd8   :  { %v3105_v18 = vadd.f32 %v3104_v17, %v12050_v40  ;;  %v3134_v9 = vadd.f32 %v3133_v42, %v12052_v41  ;;  %v13488_v59 = vsub.f32 %v3148_v1, %v3172_v38  ;;  %v13490_v4 = vsub.f32 %v3149_v56, %v3173_v61 }
 0xfd9   :  { %v3194_v42 = vmul.f32 0.8850959, %v3186_v50  ;;  %v3192_v61 = vmul.f32 0.8850959, %v3184_v7 }
 0xfda   :  { %v10240_v34 = vadd.f32 -0.0042742956, %v3105_v18  ;;  %v3158_v39 = vsub.f32 0.0, %v3105_v18  ;;  %v10241_v44 = vadd.f32 -0.0042742956, %v3134_v9  ;;  %v3159_v26 = vsub.f32 0.0, %v3134_v9 }
 0xfdb   :  { %v3188_v43 = vsub.f32 %v13488_v59, %v13424_v13  ;;  %v3189_v49 = vsub.f32 %v13490_v4, %v13426_v27  ;;  %v3187_v13 = vsub.f32 %v13494_v55, %v13430_v37  ;;  %v3185_v27 = vsub.f32 %v13500_v62, %v13436_v21 }
 0xfdc   :  { %v10248_v3 = vadd.f32 -0.0042742956, %v3158_v39  ;;  %v10249_v24 = vadd.f32 -0.0042742956, %v3159_v26  ;;  %v3150_v57 = vmax.f32 %v10240_v34, 0.0  ;;  %v3151_v30 = vmax.f32 %v10241_v44, 0.0 }
 0xfdd   :  { %v3196_v47 = vmul.f32 0.8850959, %v3188_v43  ;;  %v3197_v17 = vmul.f32 0.8850959, %v3189_v49  ;;  %v3195_v35 = vmul.f32 0.8850959, %v3187_v13  ;;  %v3202_v18 = vadd.f32 %v3194_v42, %v13492_v54 }
 0xfde   :  { %v3174_v31 = vmax.f32 %v10248_v3, 0.0  ;;  %v3175_v53 = vmax.f32 %v10249_v24, 0.0  ;;  %v3193_v29 = vmul.f32 0.8850959, %v3185_v27  ;;  %v3200_v9 = vadd.f32 %v3192_v61, %v13496_v52 }
 0xfdf   :  { %v3204_v23 = vadd.f32 %v3196_v47, %v13488_v59  ;;  %v3205_v37 = vadd.f32 %v3197_v17, %v13490_v4  ;;  %v3203_v21 = vadd.f32 %v3195_v35, %v13494_v55 }
 0xfe0   :  { %v13502_v25 = vsub.f32 %v3150_v57, %v3174_v31  ;;  %v13504_v48 = vsub.f32 %v3151_v30, %v3175_v53  ;;  %v3201_v36 = vadd.f32 %v3193_v29, %v13500_v62 }
 0xfe2   :  { %v3190_v6 = vsub.f32 %v13502_v25, %v13438_v51  ;;  %v3191_v10 = vsub.f32 %v13504_v48, %v13440_v8 }
 0xfe4   :  { %v3198_v22 = vmul.f32 0.8850959, %v3190_v6  ;;  %v3199_v38 = vmul.f32 0.8850959, %v3191_v10 }
 0xfe6   :  { %v3206_v51 = vadd.f32 %v3198_v22, %v13502_v25  ;;  %v3207_v8 = vadd.f32 %v3199_v38, %v13504_v48 }
 0xfe8   :  { %3220 = vmatpush.msra.mxu0 %v3206_v51  ;;  %3249 = vmatpush.msra.mxu1 %v3207_v8 }
 0xfea   :  { %3221 = vmatpush.msra.mxu0 %v3204_v23  ;;  %3250 = vmatpush.msra.mxu1 %v3205_v37 }
 0xfec   :  { %3222 = vmatpush.msra.mxu0 %v3202_v18  ;;  %3251 = vmatpush.msra.mxu1 %v3203_v21 }
 0xfee   :  { %3223 = vmatpush.msra.mxu0 %v3200_v9  ;;  %3252 = vmatpush.msra.mxu1 %v3201_v36 }
 0xfef   :  { %10250 = vmatmul.msk.f32.vlgmr.msra.gmra.mxu0 %vm213_vm0, %v13328_v33  ;;  %10254 = vmatmul.msk.f32.vlgmr.msra.gmra.mxu1 %vm213_vm0, %v13328_v33 }
 0xff7   :  { %10251 = vmatmul.msk.f32.gmra.mxu0 %vm213_vm0, %v13334_v32  ;;  %10255 = vmatmul.msk.f32.gmra.mxu1 %vm213_vm0, %v13334_v32 }
 0xfff   :  { %10252 = vmatmul.msk.f32.gmra.mxu0 %vm213_vm0, %v13340_v14  ;;  %10256 = vmatmul.msk.f32.gmra.mxu1 %vm213_vm0, %v13340_v14 }
0x1007   :  { %10253 = vmatmul.msk.f32.gmra.mxu0 %vm213_vm0, %v13346_v5  ;;  %10257 = vmatmul.msk.f32.gmra.mxu1 %vm213_vm0, %v13346_v5 }
0x106c   :  { %v3225_v46 = vpop.f32.mrf.mxu0  ;;  %v3254_v1 = vpop.f32.mrf.mxu1 }
0x106d   :  { %v3226_v26 = vadd.f32 %v3225_v46, %v12032_v11  ;;  %v3255_v63 = vadd.f32 %v3254_v1, %v12034_v12 }
0x106f   :  { %v3282_v2 = vsub.f32 0.0, %v3226_v26  ;;  %v3283_v30 = vsub.f32 0.0, %v3255_v63  ;;  %v10258_v13 = vadd.f32 -0.0042742956, %v3226_v26  ;;  %v10259_v7 = vadd.f32 -0.0042742956, %v3255_v63 }
0x1071   :  { %v10266_v47 = vadd.f32 -0.0042742956, %v3282_v2  ;;  %v10267_v8 = vadd.f32 -0.0042742956, %v3283_v30 }
0x1073   :  { %v3298_v1 = vmax.f32 %v10266_v47, 0.0 }
0x1074   :  { %v3228_v56 = vpop.f32.mrf.mxu0  ;;  %v3257_v34 = vpop.f32.mrf.mxu1 }
0x1075   :  { %v3229_v39 = vadd.f32 %v3228_v56, %v12036_v15  ;;  %v3258_v44 = vadd.f32 %v3257_v34, %v12038_v16 }
0x1077   :  { %v3284_v28 = vsub.f32 0.0, %v3229_v39  ;;  %v3285_v45 = vsub.f32 0.0, %v3258_v44  ;;  %v10260_v22 = vadd.f32 -0.0042742956, %v3229_v39  ;;  %v10261_v38 = vadd.f32 -0.0042742956, %v3258_v44 }
0x1078   :  { %v3299_v44 = vmax.f32 %v10267_v8, 0.0 }
0x1079   :  { %v10268_v53 = vadd.f32 -0.0042742956, %v3284_v28  ;;  %v10269_v6 = vadd.f32 -0.0042742956, %v3285_v45  ;;  %v3276_v56 = vmax.f32 %v10260_v22, 0.0  ;;  %v3277_v34 = vmax.f32 %v10261_v38, 0.0 }
0x107a   :  { %v3275_v28 = vmax.f32 %v10259_v7, 0.0 }
0x107b   :  { %v3300_v37 = vmax.f32 %v10268_v53, 0.0  ;;  %v3301_v61 = vmax.f32 %v10269_v6, 0.0 }
0x107c   :  { %v3231_v60 = vpop.f32.mrf.mxu0  ;;  %v3260_v58 = vpop.f32.mrf.mxu1 }
0x107d   :  { %v3232_v3 = vadd.f32 %v3231_v60, %v12040_v19  ;;  %v3261_v24 = vadd.f32 %v3260_v58, %v12042_v20  ;;  %v3274_v58 = vmax.f32 %v10258_v13, 0.0 }
0x107f   :  { %v3286_v57 = vsub.f32 0.0, %v3232_v3  ;;  %v3287_v31 = vsub.f32 0.0, %v3261_v24  ;;  %v10262_v10 = vadd.f32 -0.0042742956, %v3232_v3  ;;  %v10263_v50 = vadd.f32 -0.0042742956, %v3261_v24 }
0x1080   :  { %v13556_v3 = vsub.f32 %v3276_v56, %v3300_v37  ;;  %v13558_v24 = vsub.f32 %v3277_v34, %v3301_v61  ;;  %v13560_v30 = vsub.f32 %v3274_v58, %v3298_v1 }
0x1081   :  { %v10270_v43 = vadd.f32 -0.0042742956, %v3286_v57  ;;  %v10271_v49 = vadd.f32 -0.0042742956, %v3287_v31  ;;  %v3278_v29 = vmax.f32 %v10262_v10, 0.0  ;;  %v3279_v18 = vmax.f32 %v10263_v50, 0.0 }
0x1082   :  { %v3316_v47 = vsub.f32 %v13556_v3, %v13492_v54  ;;  %v3314_v22 = vsub.f32 %v13560_v30, %v13496_v52 }
0x1083   :  { %v3302_v17 = vmax.f32 %v10270_v43, 0.0  ;;  %v3303_v42 = vmax.f32 %v10271_v49, 0.0  ;;  %v13564_v43 = vsub.f32 %v3275_v28, %v3299_v44 }
0x1084   :  { %v3234_v27 = vpop.f32.mrf.mxu0  ;;  %v3263_v51 = vpop.f32.mrf.mxu1 }
0x1085   :  { %v3235_v35 = vadd.f32 %v3234_v27, %v12050_v40  ;;  %v3264_v23 = vadd.f32 %v3263_v51, %v12052_v41  ;;  %v13552_v39 = vsub.f32 %v3278_v29, %v3302_v17  ;;  %v13554_v26 = vsub.f32 %v3279_v18, %v3303_v42 }
0x1086   :  { %v3324_v51 = vmul.f32 0.889413, %v3316_v47  ;;  %v3322_v42 = vmul.f32 0.889413, %v3314_v22 }
0x1087   :  { %v10264_v21 = vadd.f32 -0.0042742956, %v3235_v35  ;;  %v3288_v9 = vsub.f32 0.0, %v3235_v35  ;;  %v10265_v36 = vadd.f32 -0.0042742956, %v3264_v23  ;;  %v3289_v46 = vsub.f32 0.0, %v3264_v23 }
0x1088   :  { %v3318_v53 = vsub.f32 %v13552_v39, %v13488_v59  ;;  %v3319_v10 = vsub.f32 %v13554_v26, %v13490_v4  ;;  %v3317_v59 = vsub.f32 %v13558_v24, %v13494_v55  ;;  %v3315_v4 = vsub.f32 %v13564_v43, %v13500_v62 }
0x1089   :  { %v10272_v63 = vadd.f32 -0.0042742956, %v3288_v9  ;;  %v10273_v60 = vadd.f32 -0.0042742956, %v3289_v46  ;;  %v3280_v45 = vmax.f32 %v10264_v21, 0.0  ;;  %v3281_v57 = vmax.f32 %v10265_v36, 0.0 }
0x108a   :  { %v3326_v7 = vmul.f32 0.889413, %v3318_v53  ;;  %v3327_v27 = vmul.f32 0.889413, %v3319_v10  ;;  %v3325_v8 = vmul.f32 0.889413, %v3317_v59  ;;  %v3332_v35 = vadd.f32 %v3324_v51, %v13556_v3 }
0x108b   :  { %v3304_v2 = vmax.f32 %v10272_v63, 0.0  ;;  %v3305_v31 = vmax.f32 %v10273_v60, 0.0  ;;  %v3323_v52 = vmul.f32 0.889413, %v3315_v4  ;;  %v3330_v23 = vadd.f32 %v3322_v42, %v13560_v30 }
0x108c   :  { %v3334_v54 = vadd.f32 %v3326_v7, %v13552_v39  ;;  %v3335_v55 = vadd.f32 %v3327_v27, %v13554_v26  ;;  %v3333_v62 = vadd.f32 %v3325_v8, %v13558_v24 }
0x108d   :  { %v13566_v49 = vsub.f32 %v3280_v45, %v3304_v2  ;;  %v13568_v6 = vsub.f32 %v3281_v57, %v3305_v31  ;;  %v3331_v37 = vadd.f32 %v3323_v52, %v13564_v43 }
0x108f   :  { %v3320_v50 = vsub.f32 %v13566_v49, %v13502_v25  ;;  %v3321_v13 = vsub.f32 %v13568_v6, %v13504_v48 }
0x1091   :  { %v3328_v38 = vmul.f32 0.889413, %v3320_v50  ;;  %v3329_v17 = vmul.f32 0.889413, %v3321_v13 }
0x1093   :  { %v3336_v25 = vadd.f32 %v3328_v38, %v13566_v49  ;;  %v3337_v48 = vadd.f32 %v3329_v17, %v13568_v6 }
0x1095   :  { %3350 = vmatpush.msra.mxu2 %v3336_v25  ;;  %3379 = vmatpush.msra.mxu3 %v3337_v48 }
0x1097   :  { %3351 = vmatpush.msra.mxu2 %v3334_v54  ;;  %3380 = vmatpush.msra.mxu3 %v3335_v55 }
0x1099   :  { %3352 = vmatpush.msra.mxu2 %v3332_v35  ;;  %3381 = vmatpush.msra.mxu3 %v3333_v62 }
0x109b   :  { %3353 = vmatpush.msra.mxu2 %v3330_v23  ;;  %3382 = vmatpush.msra.mxu3 %v3331_v37 }
0x109c   :  { %10274 = vmatmul.msk.f32.vlgmr.msra.gmra.mxu2 %vm213_vm0, %v13328_v33  ;;  %10278 = vmatmul.msk.f32.vlgmr.msra.gmra.mxu3 %vm213_vm0, %v13328_v33 }
0x10a4   :  { %10275 = vmatmul.msk.f32.gmra.mxu2 %vm213_vm0, %v13334_v32  ;;  %10279 = vmatmul.msk.f32.gmra.mxu3 %vm213_vm0, %v13334_v32 }
0x10ac   :  { %10276 = vmatmul.msk.f32.gmra.mxu2 %vm213_vm0, %v13340_v14  ;;  %10280 = vmatmul.msk.f32.gmra.mxu3 %vm213_vm0, %v13340_v14 }
0x10b4   :  { %10277 = vmatmul.msk.f32.gmra.mxu2 %vm213_vm0, %v13346_v5  ;;  %10281 = vmatmul.msk.f32.gmra.mxu3 %vm213_vm0, %v13346_v5 }
0x111f   :  { %v3355_v61 = vpop.f32.mrf.mxu2  ;;  %v3384_v33 = vpop.f32.mrf.mxu3 }
0x1120   :  { %v3356_v9 = vadd.f32 %v3355_v61, %v12032_v11  ;;  %v3385_v36 = vadd.f32 %v3384_v33, %v12034_v12 }
0x1122   :  { %v3412_v44 = vsub.f32 0.0, %v3356_v9  ;;  %v3413_v58 = vsub.f32 0.0, %v3385_v36  ;;  %v10282_v10 = vadd.f32 -0.0042742956, %v3356_v9  ;;  %v10283_v13 = vadd.f32 -0.0042742956, %v3385_v36 }
0x1124   :  { %v10290_v50 = vadd.f32 -0.0042742956, %v3412_v44  ;;  %v10291_v17 = vadd.f32 -0.0042742956, %v3413_v58  ;;  %v3405_v9 = vmax.f32 %v10283_v13, 0.0 }
0x1126   :  { %v3428_v62 = vmax.f32 %v10290_v50, 0.0  ;;  %v3429_v33 = vmax.f32 %v10291_v17, 0.0 }
0x1127   :  { %v3358_v29 = vpop.f32.mrf.mxu2  ;;  %v3387_v18 = vpop.f32.mrf.mxu3 }
0x1128   :  { %v3359_v21 = vadd.f32 %v3358_v29, %v12036_v15  ;;  %v3388_v32 = vadd.f32 %v3387_v18, %v12038_v16 }
0x112a   :  { %v3414_v1 = vsub.f32 0.0, %v3359_v21  ;;  %v3415_v5 = vsub.f32 0.0, %v3388_v32  ;;  %v10284_v47 = vadd.f32 -0.0042742956, %v3359_v21  ;;  %v10285_v59 = vadd.f32 -0.0042742956, %v3388_v32 }
0x112b   :  { %v3404_v32 = vmax.f32 %v10282_v10, 0.0 }
0x112c   :  { %v10292_v28 = vadd.f32 -0.0042742956, %v3414_v1  ;;  %v10293_v57 = vadd.f32 -0.0042742956, %v3415_v5  ;;  %v3406_v23 = vmax.f32 %v10284_v47, 0.0  ;;  %v3407_v37 = vmax.f32 %v10285_v59, 0.0 }
0x112d   :  { %v13624_v5 = vsub.f32 %v3404_v32, %v3428_v62 }
0x112e   :  { %v3430_v48 = vmax.f32 %v10292_v28, 0.0  ;;  %v3431_v51 = vmax.f32 %v10293_v57, 0.0 }
0x112f   :  { %v3361_v46 = vpop.f32.mrf.mxu2  ;;  %v3390_v14 = vpop.f32.mrf.mxu3 }
0x1130   :  { %v3362_v56 = vadd.f32 %v3361_v46, %v12040_v19  ;;  %v3391_v34 = vadd.f32 %v3390_v14, %v12042_v20  ;;  %v13620_v36 = vsub.f32 %v3406_v23, %v3430_v48  ;;  %v13622_v46 = vsub.f32 %v3407_v37, %v3431_v51  ;;  %v13674_v48 = vld [vmem:[#allocation2 + $0x18] sm:$0xff] }
0x1132   :  { %v3416_v63 = vsub.f32 0.0, %v3362_v56  ;;  %v3417_v60 = vsub.f32 0.0, %v3391_v34  ;;  %v10286_v31 = vadd.f32 -0.0042742956, %v3362_v56  ;;  %v10287_v53 = vadd.f32 -0.0042742956, %v3391_v34 }
0x1133   :  { %v3446_v57 = vsub.f32 %v13620_v36, %v13556_v3 }
0x1134   :  { %v10294_v45 = vadd.f32 -0.0042742956, %v3416_v63  ;;  %v10295_v2 = vadd.f32 -0.0042742956, %v3417_v60  ;;  %v3408_v8 = vmax.f32 %v10286_v31, 0.0  ;;  %v3409_v54 = vmax.f32 %v10287_v53, 0.0 }
0x1135   :  { %v13628_v63 = vsub.f32 %v3405_v9, %v3429_v33  ;;  %v3444_v53 = vsub.f32 %v13624_v5, %v13560_v30  ;;  %v3454_v47 = vmul.f32 0.89341474, %v3446_v57 }
0x1136   :  { %v3432_v7 = vmax.f32 %v10294_v45, 0.0  ;;  %v3433_v27 = vmax.f32 %v10295_v2, 0.0 }
0x1137   :  { %v3364_v22 = vpop.f32.mrf.mxu2  ;;  %v3393_v38 = vpop.f32.mrf.mxu3 }
0x1138   :  { %v3365_v4 = vadd.f32 %v3364_v22, %v12050_v40  ;;  %v3394_v25 = vadd.f32 %v3393_v38, %v12052_v41  ;;  %v13616_v61 = vsub.f32 %v3408_v8, %v3432_v7  ;;  %v13618_v29 = vsub.f32 %v3409_v54, %v3433_v27  ;;  %v13656_v27 = vld [vmem:[#allocation2] sm:$0xff] }
0x1139   :  { %v3452_v7 = vmul.f32 0.89341474, %v3444_v53  ;;  %v3462_v22 = vadd.f32 %v3454_v47, %v13620_v36 }
0x113a   :  { %v10288_v55 = vadd.f32 -0.0042742956, %v3365_v4  ;;  %v3418_v42 = vsub.f32 0.0, %v3365_v4  ;;  %v10289_v52 = vadd.f32 -0.0042742956, %v3394_v25  ;;  %v3419_v35 = vsub.f32 0.0, %v3394_v25 }
0x113b   :  { %v3448_v44 = vsub.f32 %v13616_v61, %v13552_v39  ;;  %v3449_v28 = vsub.f32 %v13618_v29, %v13554_v26  ;;  %v3447_v39 = vsub.f32 %v13622_v46, %v13558_v24  ;;  %v3445_v26 = vsub.f32 %v13628_v63, %v13564_v43  ;;  %v13662_v4 = vld [vmem:[#allocation2 + $0x8] sm:$0xff]  ;;  %v13668_v25 = vld [vmem:[#allocation2 + $0x10] sm:$0xff] }
0x113c   :  { %v10296_v18 = vadd.f32 -0.0042742956, %v3418_v42  ;;  %v10297_v21 = vadd.f32 -0.0042742956, %v3419_v35  ;;  %v3410_v14 = vmax.f32 %v10288_v55, 0.0  ;;  %v3411_v56 = vmax.f32 %v10289_v52, 0.0 }
0x113d   :  { %v3456_v31 = vmul.f32 0.89341474, %v3448_v44  ;;  %v3457_v13 = vmul.f32 0.89341474, %v3449_v28  ;;  %v3455_v59 = vmul.f32 0.89341474, %v3447_v39  ;;  %v3460_v38 = vadd.f32 %v3452_v7, %v13624_v5 }
0x113e   :  { %v3434_v1 = vmax.f32 %v10296_v18, 0.0  ;;  %v3435_v34 = vmax.f32 %v10297_v21, 0.0  ;;  %v3453_v30 = vmul.f32 0.89341474, %v3445_v26 }
0x113f   :  { %v3464_v3 = vadd.f32 %v3456_v31, %v13616_v61  ;;  %v3465_v24 = vadd.f32 %v3457_v13, %v13618_v29  ;;  %v3463_v43 = vadd.f32 %v3455_v59, %v13622_v46 }
0x1140   :  { %v13630_v60 = vsub.f32 %v3410_v14, %v3434_v1  ;;  %v13632_v58 = vsub.f32 %v3411_v56, %v3435_v34  ;;  %v3461_v17 = vadd.f32 %v3453_v30, %v13628_v63 }
0x1142   :  { %v3450_v45 = vsub.f32 %v13630_v60, %v13566_v49  ;;  %v3451_v2 = vsub.f32 %v13632_v58, %v13568_v6 }
0x1144   :  { %v3458_v10 = vmul.f32 0.89341474, %v3450_v45  ;;  %v3459_v50 = vmul.f32 0.89341474, %v3451_v2 }
0x1146   :  { %v3466_v49 = vadd.f32 %v3458_v10, %v13630_v60  ;;  %v3467_v6 = vadd.f32 %v3459_v50, %v13632_v58 }
0x1148   :  { %3480 = vmatpush.msrb.mxu0 %v3466_v49  ;;  %3509 = vmatpush.msrb.mxu1 %v3467_v6 }
0x114a   :  { %3481 = vmatpush.msrb.mxu0 %v3464_v3  ;;  %3510 = vmatpush.msrb.mxu1 %v3465_v24 }
0x114c   :  { %3482 = vmatpush.msrb.mxu0 %v3462_v22  ;;  %3511 = vmatpush.msrb.mxu1 %v3463_v43 }
0x114e   :  { %3483 = vmatpush.msrb.mxu0 %v3460_v38  ;;  %3512 = vmatpush.msrb.mxu1 %v3461_v17 }
0x114f   :  { %10298 = vmatmul.msk.f32.vlgmr.msrb.gmra.mxu0 %vm213_vm0, %v13656_v27  ;;  %10302 = vmatmul.msk.f32.vlgmr.msrb.gmra.mxu1 %vm213_vm0, %v13656_v27 }
0x1157   :  { %10299 = vmatmul.msk.f32.gmra.mxu0 %vm213_vm0, %v13662_v4  ;;  %10303 = vmatmul.msk.f32.gmra.mxu1 %vm213_vm0, %v13662_v4 }
0x115f   :  { %10300 = vmatmul.msk.f32.gmra.mxu0 %vm213_vm0, %v13668_v25  ;;  %10304 = vmatmul.msk.f32.gmra.mxu1 %vm213_vm0, %v13668_v25 }
0x1167   :  { %10301 = vmatmul.msk.f32.gmra.mxu0 %vm213_vm0, %v13674_v48  ;;  %10305 = vmatmul.msk.f32.gmra.mxu1 %vm213_vm0, %v13674_v48 }
0x11cc   :  { %v3485_v51 = vpop.f32.mrf.mxu0  ;;  %v3514_v8 = vpop.f32.mrf.mxu1 }
0x11cd   :  { %v3486_v35 = vadd.f32 %v3485_v51, %v12032_v11  ;;  %v3515_v62 = vadd.f32 %v3514_v8, %v12034_v12 }
0x11cf   :  { %v3542_v9 = vsub.f32 0.0, %v3486_v35  ;;  %v3543_v56 = vsub.f32 0.0, %v3515_v62  ;;  %v10306_v39 = vadd.f32 -0.0042742956, %v3486_v35  ;;  %v10307_v53 = vadd.f32 -0.0042742956, %v3515_v62 }
0x11d1   :  { %v10314_v31 = vadd.f32 -0.0042742956, %v3542_v9  ;;  %v10315_v6 = vadd.f32 -0.0042742956, %v3543_v56 }
0x11d3   :  { %v3558_v8 = vmax.f32 %v10314_v31, 0.0 }
0x11d4   :  { %v3488_v54 = vpop.f32.mrf.mxu0  ;;  %v3517_v55 = vpop.f32.mrf.mxu1 }
0x11d5   :  { %v3489_v42 = vadd.f32 %v3488_v54, %v12036_v15  ;;  %v3518_v52 = vadd.f32 %v3517_v55, %v12038_v16 }
0x11d7   :  { %v3544_v33 = vsub.f32 0.0, %v3489_v42  ;;  %v3545_v32 = vsub.f32 0.0, %v3518_v52  ;;  %v10308_v10 = vadd.f32 -0.0042742956, %v3489_v42  ;;  %v10309_v50 = vadd.f32 -0.0042742956, %v3518_v52 }
0x11d8   :  { %v3559_v52 = vmax.f32 %v10315_v6, 0.0 }
0x11d9   :  { %v10316_v34 = vadd.f32 -0.0042742956, %v3544_v33  ;;  %v10317_v45 = vadd.f32 -0.0042742956, %v3545_v32  ;;  %v3536_v54 = vmax.f32 %v10308_v10, 0.0  ;;  %v3537_v55 = vmax.f32 %v10309_v50, 0.0 }
0x11da   :  { %v3535_v33 = vmax.f32 %v10307_v53, 0.0 }
0x11db   :  { %v3560_v24 = vmax.f32 %v10316_v34, 0.0  ;;  %v3561_v7 = vmax.f32 %v10317_v45, 0.0 }
0x11dc   :  { %v3491_v23 = vpop.f32.mrf.mxu0  ;;  %v3520_v37 = vpop.f32.mrf.mxu1 }
0x11dd   :  { %v3492_v18 = vadd.f32 %v3491_v23, %v12040_v19  ;;  %v3521_v21 = vadd.f32 %v3520_v37, %v12042_v20  ;;  %v3534_v37 = vmax.f32 %v10306_v39, 0.0 }
0x11df   :  { %v3546_v14 = vsub.f32 0.0, %v3492_v18  ;;  %v3547_v1 = vsub.f32 0.0, %v3521_v21  ;;  %v10310_v2 = vadd.f32 -0.0042742956, %v3492_v18  ;;  %v10311_v57 = vadd.f32 -0.0042742956, %v3521_v21 }
0x11e0   :  { %v13692_v18 = vsub.f32 %v3536_v54, %v3560_v24  ;;  %v13694_v21 = vsub.f32 %v3537_v55, %v3561_v7  ;;  %v13696_v56 = vsub.f32 %v3534_v37, %v3558_v8 }
0x11e1   :  { %v10318_v44 = vadd.f32 -0.0042742956, %v3546_v14  ;;  %v10319_v28 = vadd.f32 -0.0042742956, %v3547_v1  ;;  %v3538_v30 = vmax.f32 %v10310_v2, 0.0  ;;  %v3539_v22 = vmax.f32 %v10311_v57, 0.0 }
0x11e2   :  { %v3576_v31 = vsub.f32 %v13692_v18, %v13620_v36  ;;  %v3574_v10 = vsub.f32 %v13696_v56, %v13624_v5 }
0x11e3   :  { %v3562_v13 = vmax.f32 %v10318_v44, 0.0  ;;  %v3563_v47 = vmax.f32 %v10319_v28, 0.0  ;;  %v13700_v44 = vsub.f32 %v3535_v33, %v3559_v52 }
0x11e4   :  { %v3494_v26 = vpop.f32.mrf.mxu0  ;;  %v3523_v49 = vpop.f32.mrf.mxu1 }
0x11e5   :  { %v3495_v59 = vadd.f32 %v3494_v26, %v12050_v40  ;;  %v3524_v3 = vadd.f32 %v3523_v49, %v12052_v41  ;;  %v13688_v42 = vsub.f32 %v3538_v30, %v3562_v13  ;;  %v13690_v35 = vsub.f32 %v3539_v22, %v3563_v47 }
0x11e6   :  { %v3584_v49 = vmul.f32 0.89713454, %v3576_v31  ;;  %v3582_v47 = vmul.f32 0.89713454, %v3574_v10 }
0x11e7   :  { %v10312_v43 = vadd.f32 -0.0042742956, %v3495_v59  ;;  %v3548_v38 = vsub.f32 0.0, %v3495_v59  ;;  %v10313_v17 = vadd.f32 -0.0042742956, %v3524_v3  ;;  %v3549_v51 = vsub.f32 0.0, %v3524_v3 }
0x11e8   :  { %v3578_v34 = vsub.f32 %v13688_v42, %v13616_v61  ;;  %v3579_v2 = vsub.f32 %v13690_v35, %v13618_v29  ;;  %v3577_v61 = vsub.f32 %v13694_v21, %v13622_v46  ;;  %v3575_v29 = vsub.f32 %v13700_v44, %v13628_v63 }
0x11e9   :  { %v10320_v62 = vadd.f32 -0.0042742956, %v3548_v38  ;;  %v10321_v23 = vadd.f32 -0.0042742956, %v3549_v51  ;;  %v3540_v32 = vmax.f32 %v10312_v43, 0.0  ;;  %v3541_v14 = vmax.f32 %v10313_v17, 0.0 }
0x11ea   :  { %v3586_v53 = vmul.f32 0.89713454, %v3578_v34  ;;  %v3587_v26 = vmul.f32 0.89713454, %v3579_v2  ;;  %v3585_v6 = vmul.f32 0.89713454, %v3577_v61  ;;  %v3592_v59 = vadd.f32 %v3584_v49, %v13692_v18 }
0x11eb   :  { %v3564_v9 = vmax.f32 %v10320_v62, 0.0  ;;  %v3565_v1 = vmax.f32 %v10321_v23, 0.0  ;;  %v3583_v5 = vmul.f32 0.89713454, %v3575_v29  ;;  %v3590_v3 = vadd.f32 %v3582_v47, %v13696_v56 }
0x11ec   :  { %v3594_v36 = vadd.f32 %v3586_v53, %v13688_v42  ;;  %v3595_v46 = vadd.f32 %v3587_v26, %v13690_v35  ;;  %v3593_v63 = vadd.f32 %v3585_v6, %v13694_v21 }
0x11ed   :  { %v13702_v28 = vsub.f32 %v3540_v32, %v3564_v9  ;;  %v13704_v45 = vsub.f32 %v3541_v14, %v3565_v1  ;;  %v3591_v24 = vadd.f32 %v3583_v5, %v13700_v44 }
0x11ef   :  { %v3580_v57 = vsub.f32 %v13702_v28, %v13630_v60  ;;  %v3581_v39 = vsub.f32 %v13704_v45, %v13632_v58 }
0x11f1   :  { %v3588_v50 = vmul.f32 0.89713454, %v3580_v57  ;;  %v3589_v13 = vmul.f32 0.89713454, %v3581_v39 }
0x11f3   :  { %v3596_v60 = vadd.f32 %v3588_v50, %v13702_v28  ;;  %v3597_v58 = vadd.f32 %v3589_v13, %v13704_v45 }
0x11f5   :  { %3610 = vmatpush.msrb.mxu2 %v3596_v60  ;;  %3639 = vmatpush.msrb.mxu3 %v3597_v58 }
0x11f7   :  { %3611 = vmatpush.msrb.mxu2 %v3594_v36  ;;  %3640 = vmatpush.msrb.mxu3 %v3595_v46 }
0x11f9   :  { %3612 = vmatpush.msrb.mxu2 %v3592_v59  ;;  %3641 = vmatpush.msrb.mxu3 %v3593_v63 }
0x11fb   :  { %3613 = vmatpush.msrb.mxu2 %v3590_v3  ;;  %3642 = vmatpush.msrb.mxu3 %v3591_v24 }
0x11fc   :  { %10322 = vmatmul.msk.f32.vlgmr.msrb.gmra.mxu2 %vm213_vm0, %v13656_v27  ;;  %10326 = vmatmul.msk.f32.vlgmr.msrb.gmra.mxu3 %vm213_vm0, %v13656_v27 }
0x1204   :  { %10323 = vmatmul.msk.f32.gmra.mxu2 %vm213_vm0, %v13662_v4  ;;  %10327 = vmatmul.msk.f32.gmra.mxu3 %vm213_vm0, %v13662_v4 }
0x120c   :  { %10324 = vmatmul.msk.f32.gmra.mxu2 %vm213_vm0, %v13668_v25  ;;  %10328 = vmatmul.msk.f32.gmra.mxu3 %vm213_vm0, %v13668_v25 }
0x1214   :  { %10325 = vmatmul.msk.f32.gmra.mxu2 %vm213_vm0, %v13674_v48  ;;  %10329 = vmatmul.msk.f32.gmra.mxu3 %vm213_vm0, %v13674_v48 }
0x127f   :  { %v3615_v7 = vpop.f32.mrf.mxu2  ;;  %v3644_v30 = vpop.f32.mrf.mxu3 }
0x1280   :  { %v3616_v51 = vadd.f32 %v3615_v7, %v12032_v11  ;;  %v3645_v8 = vadd.f32 %v3644_v30, %v12034_v12 }
0x1282   :  { %v3672_v33 = vsub.f32 0.0, %v3616_v51  ;;  %v3673_v14 = vsub.f32 0.0, %v3645_v8  ;;  %v10330_v61 = vadd.f32 -0.0042742956, %v3616_v51  ;;  %v10331_v10 = vadd.f32 -0.0042742956, %v3645_v8 }
0x1284   :  { %v10338_v53 = vadd.f32 -0.0042742956, %v3672_v33  ;;  %v10339_v58 = vadd.f32 -0.0042742956, %v3673_v14 }
0x1286   :  { %v3688_v30 = vmax.f32 %v10338_v53, 0.0 }
0x1287   :  { %v3618_v22 = vpop.f32.mrf.mxu2  ;;  %v3647_v43 = vpop.f32.mrf.mxu3 }
0x1288   :  { %v3619_v38 = vadd.f32 %v3618_v22, %v12036_v15  ;;  %v3648_v17 = vadd.f32 %v3647_v43, %v12038_v16 }
0x128a   :  { %v3674_v52 = vsub.f32 0.0, %v3619_v38  ;;  %v3675_v37 = vsub.f32 0.0, %v3648_v17  ;;  %v10332_v50 = vadd.f32 -0.0042742956, %v3619_v38  ;;  %v10333_v13 = vadd.f32 -0.0042742956, %v3648_v17 }
0x128b   :  { %v3689_v17 = vmax.f32 %v10339_v58, 0.0 }
0x128c   :  { %v10340_v1 = vadd.f32 -0.0042742956, %v3674_v52  ;;  %v10341_v57 = vadd.f32 -0.0042742956, %v3675_v37  ;;  %v3666_v22 = vmax.f32 %v10332_v50, 0.0  ;;  %v3667_v43 = vmax.f32 %v10333_v13, 0.0 }
0x128d   :  { %v3665_v52 = vmax.f32 %v10331_v10, 0.0 }
0x128e   :  { %v3690_v46 = vmax.f32 %v10340_v1, 0.0  ;;  %v3691_v47 = vmax.f32 %v10341_v57, 0.0 }
0x128f   :  { %v3621_v54 = vpop.f32.mrf.mxu2  ;;  %v3650_v55 = vpop.f32.mrf.mxu3 }
0x1290   :  { %v3622_v62 = vadd.f32 %v3621_v54, %v12040_v19  ;;  %v3651_v23 = vadd.f32 %v3650_v55, %v12042_v20  ;;  %v3664_v55 = vmax.f32 %v10330_v61, 0.0 }
0x1292   :  { %v3676_v32 = vsub.f32 0.0, %v3622_v62  ;;  %v3677_v9 = vsub.f32 0.0, %v3651_v23  ;;  %v10334_v39 = vadd.f32 -0.0042742956, %v3622_v62  ;;  %v10335_v31 = vadd.f32 -0.0042742956, %v3651_v23 }
0x1293   :  { %v13756_v62 = vsub.f32 %v3666_v22, %v3690_v46  ;;  %v13758_v23 = vsub.f32 %v3667_v43, %v3691_v47  ;;  %v13760_v14 = vsub.f32 %v3664_v55, %v3688_v30 }
0x1294   :  { %v10342_v34 = vadd.f32 -0.0042742956, %v3676_v32  ;;  %v10343_v2 = vadd.f32 -0.0042742956, %v3677_v9  ;;  %v3668_v5 = vmax.f32 %v10334_v39, 0.0  ;;  %v3669_v59 = vmax.f32 %v10335_v31, 0.0 }
0x1295   :  { %v3706_v53 = vsub.f32 %v13756_v62, %v13692_v18  ;;  %v3704_v50 = vsub.f32 %v13760_v14, %v13696_v56 }
0x1296   :  { %v3692_v26 = vmax.f32 %v10342_v34, 0.0  ;;  %v3693_v49 = vmax.f32 %v10343_v2, 0.0  ;;  %v13764_v34 = vsub.f32 %v3665_v52, %v3689_v17 }
0x1297   :  { %v3624_v29 = vpop.f32.mrf.mxu2  ;;  %v3653_v60 = vpop.f32.mrf.mxu3 }
0x1298   :  { %v3625_v6 = vadd.f32 %v3624_v29, %v12050_v40  ;;  %v3654_v36 = vadd.f32 %v3653_v60, %v12052_v41  ;;  %v13752_v38 = vsub.f32 %v3668_v5, %v3692_v26  ;;  %v13754_v51 = vsub.f32 %v3669_v59, %v3693_v49 }
0x1299   :  { %v3714_v60 = vmul.f32 0.90060145, %v3706_v53  ;;  %v3712_v49 = vmul.f32 0.90060145, %v3704_v50 }
0x129a   :  { %v10336_v63 = vadd.f32 -0.0042742956, %v3625_v6  ;;  %v3678_v3 = vsub.f32 0.0, %v3625_v6  ;;  %v10337_v24 = vadd.f32 -0.0042742956, %v3654_v36  ;;  %v3679_v7 = vsub.f32 0.0, %v3654_v36 }
0x129b   :  { %v3708_v1 = vsub.f32 %v13752_v38, %v13688_v42  ;;  %v3709_v39 = vsub.f32 %v13754_v51, %v13690_v35  ;;  %v3707_v42 = vsub.f32 %v13758_v23, %v13694_v21  ;;  %v3705_v35 = vsub.f32 %v13764_v34, %v13700_v44 }
0x129c   :  { %v10344_v8 = vadd.f32 -0.0042742956, %v3678_v3  ;;  %v10345_v54 = vadd.f32 -0.0042742956, %v3679_v7  ;;  %v3670_v37 = vmax.f32 %v10336_v63, 0.0  ;;  %v3671_v32 = vmax.f32 %v10337_v24, 0.0 }
0x129d   :  { %v3716_v10 = vmul.f32 0.90060145, %v3708_v1  ;;  %v3717_v29 = vmul.f32 0.90060145, %v3709_v39  ;;  %v3715_v58 = vmul.f32 0.90060145, %v3707_v42  ;;  %v3722_v6 = vadd.f32 %v3714_v60, %v13756_v62 }
0x129e   :  { %v3694_v33 = vmax.f32 %v10344_v8, 0.0  ;;  %v3695_v9 = vmax.f32 %v10345_v54, 0.0  ;;  %v3713_v56 = vmul.f32 0.90060145, %v3705_v35  ;;  %v3720_v36 = vadd.f32 %v3712_v49, %v13760_v14 }
0x129f   :  { %v3724_v18 = vadd.f32 %v3716_v10, %v13752_v38  ;;  %v3725_v21 = vadd.f32 %v3717_v29, %v13754_v51  ;;  %v3723_v44 = vadd.f32 %v3715_v58, %v13758_v23 }
0x12a0   :  { %v13766_v2 = vsub.f32 %v3670_v37, %v3694_v33  ;;  %v13768_v57 = vsub.f32 %v3671_v32, %v3695_v9  ;;  %v3721_v46 = vadd.f32 %v3713_v56, %v13764_v34 }
0x12a2   :  { %v3710_v31 = vsub.f32 %v13766_v2, %v13702_v28  ;;  %v3711_v61 = vsub.f32 %v13768_v57, %v13704_v45 }
0x12a4   :  { %v3718_v13 = vmul.f32 0.90060145, %v3710_v31  ;;  %v3719_v26 = vmul.f32 0.90060145, %v3711_v61 }
0x12a6   :  { %v3726_v28 = vadd.f32 %v3718_v13, %v13766_v2  ;;  %v3727_v45 = vadd.f32 %v3719_v26, %v13768_v57 }
0x12a8   :  { %3740 = vmatpush.msra.mxu0 %v3726_v28  ;;  %3769 = vmatpush.msra.mxu1 %v3727_v45 }
0x12aa   :  { %3741 = vmatpush.msra.mxu0 %v3724_v18  ;;  %3770 = vmatpush.msra.mxu1 %v3725_v21 }
0x12ac   :  { %3742 = vmatpush.msra.mxu0 %v3722_v6  ;;  %3771 = vmatpush.msra.mxu1 %v3723_v44 }
0x12ae   :  { %3743 = vmatpush.msra.mxu0 %v3720_v36  ;;  %3772 = vmatpush.msra.mxu1 %v3721_v46 }
0x12af   :  { %10346 = vmatmul.msk.f32.vlgmr.msra.gmra.mxu0 %vm213_vm0, %v13656_v27  ;;  %10350 = vmatmul.msk.f32.vlgmr.msra.gmra.mxu1 %vm213_vm0, %v13656_v27 }
0x12b7   :  { %10347 = vmatmul.msk.f32.gmra.mxu0 %vm213_vm0, %v13662_v4  ;;  %10351 = vmatmul.msk.f32.gmra.mxu1 %vm213_vm0, %v13662_v4 }
0x12bf   :  { %10348 = vmatmul.msk.f32.gmra.mxu0 %vm213_vm0, %v13668_v25  ;;  %10352 = vmatmul.msk.f32.gmra.mxu1 %vm213_vm0, %v13668_v25 }
0x12c7   :  { %10349 = vmatmul.msk.f32.gmra.mxu0 %vm213_vm0, %v13674_v48  ;;  %10353 = vmatmul.msk.f32.gmra.mxu1 %vm213_vm0, %v13674_v48 }
0x132c   :  { %v3745_v47 = vpop.f32.mrf.mxu0  ;;  %v3774_v5 = vpop.f32.mrf.mxu1 }
0x132d   :  { %v3746_v7 = vadd.f32 %v3745_v47, %v12032_v11  ;;  %v3775_v30 = vadd.f32 %v3774_v5, %v12034_v12 }
0x132f   :  { %v3802_v52 = vsub.f32 0.0, %v3746_v7  ;;  %v3803_v32 = vsub.f32 0.0, %v3775_v30  ;;  %v10354_v42 = vadd.f32 -0.0042742956, %v3746_v7  ;;  %v10355_v50 = vadd.f32 -0.0042742956, %v3775_v30 }
0x1331   :  { %v10362_v10 = vadd.f32 -0.0042742956, %v3802_v52  ;;  %v10363_v45 = vadd.f32 -0.0042742956, %v3803_v32 }
0x1333   :  { %v3818_v5 = vmax.f32 %v10362_v10, 0.0 }
0x1334   :  { %v3748_v59 = vpop.f32.mrf.mxu0  ;;  %v3777_v63 = vpop.f32.mrf.mxu1 }
0x1335   :  { %v3749_v3 = vadd.f32 %v3748_v59, %v12036_v15  ;;  %v3778_v24 = vadd.f32 %v3777_v63, %v12038_v16 }
0x1337   :  { %v3804_v17 = vsub.f32 0.0, %v3749_v3  ;;  %v3805_v55 = vsub.f32 0.0, %v3778_v24  ;;  %v10356_v13 = vadd.f32 -0.0042742956, %v3749_v3  ;;  %v10357_v26 = vadd.f32 -0.0042742956, %v3778_v24 }
0x1338   :  { %v3819_v24 = vmax.f32 %v10363_v45, 0.0 }
0x1339   :  { %v10364_v9 = vadd.f32 -0.0042742956, %v3804_v17  ;;  %v10365_v31 = vadd.f32 -0.0042742956, %v3805_v55  ;;  %v3796_v59 = vmax.f32 %v10356_v13, 0.0  ;;  %v3797_v63 = vmax.f32 %v10357_v26, 0.0 }
0x133a   :  { %v3795_v17 = vmax.f32 %v10355_v50, 0.0 }
0x133b   :  { %v3820_v21 = vmax.f32 %v10364_v9, 0.0  ;;  %v3821_v49 = vmax.f32 %v10365_v31, 0.0 }
0x133c   :  { %v3751_v22 = vpop.f32.mrf.mxu0  ;;  %v3780_v43 = vpop.f32.mrf.mxu1 }
0x133d   :  { %v3752_v8 = vadd.f32 %v3751_v22, %v12040_v19  ;;  %v3781_v54 = vadd.f32 %v3780_v43, %v12042_v20  ;;  %v3794_v43 = vmax.f32 %v10354_v42, 0.0 }
0x133f   :  { %v3806_v37 = vsub.f32 0.0, %v3752_v8  ;;  %v3807_v33 = vsub.f32 0.0, %v3781_v54  ;;  %v10358_v61 = vadd.f32 -0.0042742956, %v3752_v8  ;;  %v10359_v53 = vadd.f32 -0.0042742956, %v3781_v54 }
0x1340   :  { %v13820_v8 = vsub.f32 %v3796_v59, %v3820_v21  ;;  %v13822_v54 = vsub.f32 %v3797_v63, %v3821_v49  ;;  %v13824_v32 = vsub.f32 %v3794_v43, %v3818_v5 }
0x1341   :  { %v10366_v1 = vadd.f32 -0.0042742956, %v3806_v37  ;;  %v10367_v39 = vadd.f32 -0.0042742956, %v3807_v33  ;;  %v3798_v56 = vmax.f32 %v10358_v61, 0.0  ;;  %v3799_v6 = vmax.f32 %v10359_v53, 0.0 }
0x1342   :  { %v3836_v10 = vsub.f32 %v13820_v8, %v13756_v62  ;;  %v3834_v13 = vsub.f32 %v13824_v32, %v13760_v14 }
0x1343   :  { %v3822_v29 = vmax.f32 %v10366_v1, 0.0  ;;  %v3823_v60 = vmax.f32 %v10367_v39, 0.0  ;;  %v13828_v1 = vsub.f32 %v3795_v17, %v3819_v24 }
0x1344   :  { %v3754_v35 = vpop.f32.mrf.mxu0  ;;  %v3783_v28 = vpop.f32.mrf.mxu1 }
0x1345   :  { %v3755_v58 = vadd.f32 %v3754_v35, %v12050_v40  ;;  %v3784_v18 = vadd.f32 %v3783_v28, %v12052_v41  ;;  %v13816_v3 = vsub.f32 %v3798_v56, %v3822_v29  ;;  %v13818_v7 = vsub.f32 %v3799_v6, %v3823_v60 }
0x1346   :  { %v3844_v28 = vmul.f32 0.9038404, %v3836_v10  ;;  %v3842_v60 = vmul.f32 0.9038404, %v3834_v13 }
0x1347   :  { %v10360_v44 = vadd.f32 -0.0042742956, %v3755_v58  ;;  %v3808_v36 = vsub.f32 0.0, %v3755_v58  ;;  %v10361_v46 = vadd.f32 -0.0042742956, %v3784_v18  ;;  %v3809_v47 = vsub.f32 0.0, %v3784_v18 }
0x1348   :  { %v3838_v9 = vsub.f32 %v13816_v3, %v13752_v38  ;;  %v3839_v61 = vsub.f32 %v13818_v7, %v13754_v51  ;;  %v3837_v38 = vsub.f32 %v13822_v54, %v13758_v23  ;;  %v3835_v51 = vsub.f32 %v13828_v1, %v13764_v34 }
0x1349   :  { %v10368_v30 = vadd.f32 -0.0042742956, %v3808_v36  ;;  %v10369_v22 = vadd.f32 -0.0042742956, %v3809_v47  ;;  %v3800_v55 = vmax.f32 %v10360_v44, 0.0  ;;  %v3801_v37 = vmax.f32 %v10361_v46, 0.0 }
0x134a   :  { %v3846_v50 = vmul.f32 0.9038404, %v3838_v9  ;;  %v3847_v35 = vmul.f32 0.9038404, %v3839_v61  ;;  %v3845_v45 = vmul.f32 0.9038404, %v3837_v38  ;;  %v3852_v58 = vadd.f32 %v3844_v28, %v13820_v8 }
0x134b   :  { %v3824_v52 = vmax.f32 %v10368_v30, 0.0  ;;  %v3825_v33 = vmax.f32 %v10369_v22, 0.0  ;;  %v3843_v14 = vmul.f32 0.9038404, %v3835_v51  ;;  %v3850_v18 = vadd.f32 %v3842_v60, %v13824_v32 }
0x134c   :  { %v3854_v62 = vadd.f32 %v3846_v50, %v13816_v3  ;;  %v3855_v23 = vadd.f32 %v3847_v35, %v13818_v7  ;;  %v3853_v34 = vadd.f32 %v3845_v45, %v13822_v54 }
0x134d   :  { %v13830_v39 = vsub.f32 %v3800_v55, %v3824_v52  ;;  %v13832_v31 = vsub.f32 %v3801_v37, %v3825_v33  ;;  %v3851_v21 = vadd.f32 %v3843_v14, %v13828_v1 }
0x134f   :  { %v3840_v53 = vsub.f32 %v13830_v39, %v13766_v2  ;;  %v3841_v42 = vsub.f32 %v13832_v31, %v13768_v57 }
0x1351   :  { %v3848_v26 = vmul.f32 0.9038404, %v3840_v53  ;;  %v3849_v29 = vmul.f32 0.9038404, %v3841_v42 }
0x1353   :  { %v3856_v2 = vadd.f32 %v3848_v26, %v13830_v39  ;;  %v3857_v57 = vadd.f32 %v3849_v29, %v13832_v31 }
0x1355   :  { %3870 = vmatpush.msra.mxu2 %v3856_v2  ;;  %3899 = vmatpush.msra.mxu3 %v3857_v57 }
0x1357   :  { %3871 = vmatpush.msra.mxu2 %v3854_v62  ;;  %3900 = vmatpush.msra.mxu3 %v3855_v23 }
0x1359   :  { %3872 = vmatpush.msra.mxu2 %v3852_v58  ;;  %3901 = vmatpush.msra.mxu3 %v3853_v34 }
0x135b   :  { %3873 = vmatpush.msra.mxu2 %v3850_v18  ;;  %3902 = vmatpush.msra.mxu3 %v3851_v21 }
0x135c   :  { %10370 = vmatmul.msk.f32.vlgmr.msra.gmra.mxu2 %vm213_vm0, %v13656_v27  ;;  %10374 = vmatmul.msk.f32.vlgmr.msra.gmra.mxu3 %vm213_vm0, %v13656_v27 }
0x1364   :  { %10371 = vmatmul.msk.f32.gmra.mxu2 %vm213_vm0, %v13662_v4  ;;  %10375 = vmatmul.msk.f32.gmra.mxu3 %vm213_vm0, %v13662_v4 }
0x136c   :  { %10372 = vmatmul.msk.f32.gmra.mxu2 %vm213_vm0, %v13668_v25  ;;  %10376 = vmatmul.msk.f32.gmra.mxu3 %vm213_vm0, %v13668_v25 }
0x1374   :  { %10373 = vmatmul.msk.f32.gmra.mxu2 %vm213_vm0, %v13674_v48  ;;  %10377 = vmatmul.msk.f32.gmra.mxu3 %vm213_vm0, %v13674_v48 }
0x13df   :  { %v3875_v49 = vpop.f32.mrf.mxu2  ;;  %v3904_v56 = vpop.f32.mrf.mxu3 }
0x13e0   :  { %v3876_v47 = vadd.f32 %v3875_v49, %v12032_v11  ;;  %v3905_v5 = vadd.f32 %v3904_v56, %v12034_v12 }
0x13e2   :  { %v3932_v17 = vsub.f32 0.0, %v3876_v47  ;;  %v3933_v37 = vsub.f32 0.0, %v3905_v5  ;;  %v10378_v38 = vadd.f32 -0.0042742956, %v3876_v47  ;;  %v10379_v13 = vadd.f32 -0.0042742956, %v3905_v5 }
0x13e4   :  { %v10386_v50 = vadd.f32 -0.0042742956, %v3932_v17  ;;  %v10387_v57 = vadd.f32 -0.0042742956, %v3933_v37 }
0x13e6   :  { %v3948_v56 = vmax.f32 %v10386_v50, 0.0 }
0x13e7   :  { %v3878_v6 = vpop.f32.mrf.mxu2  ;;  %v3907_v44 = vpop.f32.mrf.mxu3 }
0x13e8   :  { %v3879_v36 = vadd.f32 %v3878_v6, %v12036_v15  ;;  %v3908_v46 = vadd.f32 %v3907_v44, %v12038_v16 }
0x13ea   :  { %v3934_v24 = vsub.f32 0.0, %v3879_v36  ;;  %v3935_v43 = vsub.f32 0.0, %v3908_v46  ;;  %v10380_v26 = vadd.f32 -0.0042742956, %v3879_v36  ;;  %v10381_v29 = vadd.f32 -0.0042742956, %v3908_v46 }
0x13eb   :  { %v3949_v46 = vmax.f32 %v10387_v57, 0.0 }
0x13ec   :  { %v10388_v33 = vadd.f32 -0.0042742956, %v3934_v24  ;;  %v10389_v53 = vadd.f32 -0.0042742956, %v3935_v43  ;;  %v3926_v6 = vmax.f32 %v10380_v26, 0.0  ;;  %v3927_v44 = vmax.f32 %v10381_v29, 0.0 }
0x13ed   :  { %v3925_v24 = vmax.f32 %v10379_v13, 0.0 }
0x13ee   :  { %v3950_v23 = vmax.f32 %v10388_v33, 0.0  ;;  %v3951_v60 = vmax.f32 %v10389_v53, 0.0 }
0x13ef   :  { %v3881_v59 = vpop.f32.mrf.mxu2  ;;  %v3910_v63 = vpop.f32.mrf.mxu3 }
0x13f0   :  { %v3882_v30 = vadd.f32 %v3881_v59, %v12040_v19  ;;  %v3911_v22 = vadd.f32 %v3910_v63, %v12042_v20  ;;  %v3924_v63 = vmax.f32 %v10378_v38, 0.0 }
0x13f2   :  { %v3936_v55 = vsub.f32 0.0, %v3882_v30  ;;  %v3937_v52 = vsub.f32 0.0, %v3911_v22  ;;  %v10382_v42 = vadd.f32 -0.0042742956, %v3882_v30  ;;  %v10383_v10 = vadd.f32 -0.0042742956, %v3911_v22 }
0x13f3   :  { %v3958_v30 = vsub.f32 %v3926_v6, %v3950_v23  ;;  %v3959_v22 = vsub.f32 %v3927_v44, %v3951_v60  ;;  %v3956_v33 = vsub.f32 %v3924_v63, %v3948_v56 }
0x13f4   :  { %v10390_v9 = vadd.f32 -0.0042742956, %v3936_v55  ;;  %v10391_v61 = vadd.f32 -0.0042742956, %v3937_v52  ;;  %v3928_v14 = vmax.f32 %v10382_v42, 0.0  ;;  %v3929_v58 = vmax.f32 %v10383_v10, 0.0 }
0x13f5   :  { %v3957_v42 = vsub.f32 %v3925_v24, %v3949_v46  ;;  %v3966_v38 = vsub.f32 %v3958_v30, %v13820_v8  ;;  %v3967_v13 = vsub.f32 %v3959_v22, %v13822_v54  ;;  %v3964_v29 = vsub.f32 %v3956_v33, %v13824_v32 }
0x13f6   :  { %v3952_v35 = vmax.f32 %v10390_v9, 0.0  ;;  %v3953_v28 = vmax.f32 %v10391_v61, 0.0 }
0x13f7   :  { %v3884_v51 = vpop.f32.mrf.mxu2  ;;  %v3913_v2 = vpop.f32.mrf.mxu3 }
0x13f8   :  { %v3885_v45 = vadd.f32 %v3884_v51, %v12050_v40  ;;  %v3914_v62 = vadd.f32 %v3913_v2, %v12052_v41  ;;  %v3960_v36 = vsub.f32 %v3928_v14, %v3952_v35  ;;  %v3961_v59 = vsub.f32 %v3929_v58, %v3953_v28 }
0x13f9   :  { %v3965_v2 = vsub.f32 %v3957_v42, %v13828_v1 }
0x13fa   :  { %v10384_v34 = vadd.f32 -0.0042742956, %v3885_v45  ;;  %v3938_v18 = vsub.f32 0.0, %v3885_v45  ;;  %v10385_v21 = vadd.f32 -0.0042742956, %v3914_v62  ;;  %v3939_v49 = vsub.f32 0.0, %v3914_v62 }
0x13fb   :  { %v3968_v37 = vsub.f32 %v3960_v36, %v13816_v3  ;;  %v3969_v53 = vsub.f32 %v3961_v59, %v13818_v7  ;;  %v3974_v7 = vmul.f32 0.90687346, %v3966_v38  ;;  %v3975_v45 = vmul.f32 0.90687346, %v3967_v13 }
0x13fc   :  { %v10392_v47 = vadd.f32 -0.0042742956, %v3938_v18  ;;  %v10393_v5 = vadd.f32 -0.0042742956, %v3939_v49  ;;  %v3930_v43 = vmax.f32 %v10384_v34, 0.0  ;;  %v3931_v55 = vmax.f32 %v10385_v21, 0.0 }
0x13fd   :  { %v3976_v26 = vmul.f32 0.90687346, %v3968_v37  ;;  %v3977_v3 = vmul.f32 0.90687346, %v3969_v53  ;;  %v3972_v62 = vmul.f32 0.90687346, %v3964_v29  ;;  %v3982_v54 = vadd.f32 %v3974_v7, %v3958_v30 }
0x13fe   :  { %v3954_v17 = vmax.f32 %v10392_v47, 0.0  ;;  %v3955_v52 = vmax.f32 %v10393_v5, 0.0  ;;  %v3973_v8 = vmul.f32 0.90687346, %v3965_v2  ;;  %v3983_v23 = vadd.f32 %v3975_v45, %v3959_v22 }
0x13ff   :  { %v3980_v32 = vadd.f32 %v3972_v62, %v3956_v33 }
0x1400   :  { %v3962_v9 = vsub.f32 %v3930_v43, %v3954_v17  ;;  %v3963_v61 = vsub.f32 %v3931_v55, %v3955_v52  ;;  %v3981_v60 = vadd.f32 %v3973_v8, %v3957_v42 }
0x1402   :  { %v3970_v10 = vsub.f32 %v3962_v9, %v13830_v39  ;;  %v3971_v50 = vsub.f32 %v3963_v61, %v13832_v31  ;;  %v3984_v39 = vadd.f32 %v3976_v26, %v3960_v36  ;;  %v3985_v31 = vadd.f32 %v3977_v3, %v3961_v59 }
0x1404   :  { %v3978_v35 = vmul.f32 0.90687346, %v3970_v10  ;;  %v3979_v51 = vmul.f32 0.90687346, %v3971_v50 }
0x1406   :  { %v3986_v57 = vadd.f32 %v3978_v35, %v3962_v9  ;;  %v3987_v28 = vadd.f32 %v3979_v51, %v3963_v61 }
0x1408   :  { %4000 = vmatpush.msrb.mxu0 %v3986_v57  ;;  %4029 = vmatpush.msrb.mxu1 %v3987_v28 }
0x140a   :  { %4001 = vmatpush.msrb.mxu0 %v3984_v39  ;;  %4030 = vmatpush.msrb.mxu1 %v3985_v31 }
0x140c   :  { %4002 = vmatpush.msrb.mxu0 %v3982_v54  ;;  %4031 = vmatpush.msrb.mxu1 %v3983_v23 }
0x140e   :  { %4003 = vmatpush.msrb.mxu0 %v3980_v32  ;;  %4032 = vmatpush.msrb.mxu1 %v3981_v60 }
0x140f   :  { %10394 = vmatmul.msk.f32.vlgmr.msrb.gmra.mxu0 %vm213_vm0, %v13656_v27  ;;  %10398 = vmatmul.msk.f32.vlgmr.msrb.gmra.mxu1 %vm213_vm0, %v13656_v27 }
0x1417   :  { %10395 = vmatmul.msk.f32.gmra.mxu0 %vm213_vm0, %v13662_v4  ;;  %10399 = vmatmul.msk.f32.gmra.mxu1 %vm213_vm0, %v13662_v4 }
0x141f   :  { %10396 = vmatmul.msk.f32.gmra.mxu0 %vm213_vm0, %v13668_v25  ;;  %10400 = vmatmul.msk.f32.gmra.mxu1 %vm213_vm0, %v13668_v25 }
0x1427   :  { %10397 = vmatmul.msk.f32.gmra.mxu0 %vm213_vm0, %v13674_v48  ;;  %10401 = vmatmul.msk.f32.gmra.mxu1 %vm213_vm0, %v13674_v48 }
0x148c   :  { %v4005_v1 = vpop.f32.mrf.mxu0  ;;  %v4034_v27 = vpop.f32.mrf.mxu1 }
0x148d   :  { %v4006_v14 = vadd.f32 %v4005_v1, %v12032_v11  ;;  %v4035_v58 = vadd.f32 %v4034_v27, %v12034_v12 }
0x148f   :  { %v10402_v34 = vadd.f32 -0.0042742956, %v4006_v14  ;;  %v4062_v4 = vsub.f32 0.0, %v4006_v14  ;;  %v10403_v18 = vadd.f32 -0.0042742956, %v4035_v58  ;;  %v4063_v21 = vsub.f32 0.0, %v4035_v58 }
0x1491   :  { %v10410_v49 = vadd.f32 -0.0042742956, %v4062_v4  ;;  %v10411_v56 = vadd.f32 -0.0042742956, %v4063_v21  ;;  %v4054_v6 = vmax.f32 %v10402_v34, 0.0  ;;  %v4055_v44 = vmax.f32 %v10403_v18, 0.0 }
0x1493   :  { %v4078_v25 = vmax.f32 %v10410_v49, 0.0  ;;  %v4079_v36 = vmax.f32 %v10411_v56, 0.0  ;;  %v11479_v56 = vld [vmem:[#allocation7 + $0x38] sm:$0xff] }
0x1494   :  { %v4008_v46 = vpop.f32.mrf.mxu0  ;;  %v4037_v47 = vpop.f32.mrf.mxu1 }
0x1495   :  { %v4009_v48 = vadd.f32 %v4008_v46, %v12036_v15  ;;  %v4038_v5 = vadd.f32 %v4037_v47, %v12038_v16  ;;  %v13908_v59 = vsub.f32 %v4054_v6, %v4078_v25  ;;  %v13910_v11 = vsub.f32 %v4055_v44, %v4079_v36  ;;  %v11461_v36 = vld [vmem:[#allocation7 + $0x18] sm:$0xff]  ;;  %v11460_v47 = vld [vmem:[#allocation7 + $0x10] sm:$0xff] }
0x1496   :  { %v11880_v44 = vmov 1.0|1.0  }
0x1497   :  { %v10404_v12 = vadd.f32 -0.0042742956, %v4009_v48  ;;  %v4064_v63 = vsub.f32 0.0, %v4009_v48  ;;  %v10405_v24 = vadd.f32 -0.0042742956, %v4038_v5  ;;  %v4065_v30 = vsub.f32 0.0, %v4038_v5  ;;  %4118 = vst [vmem:[%s15728_s9] sm:$0xff] %v13908_v59 }
0x1498   :  { %vm4094_vm2 = vcmp.ne.f32.partialorder %v13908_v59, 0.0  ;;  %vm4095_vm3 = vcmp.ne.f32.partialorder %v13910_v11, 0.0  ;;  %4119 = vst [vmem:[%s15728_s9 + $0x8] sm:$0xff] %v13910_v11  ;;  %v11453_v48 = vld [vmem:[#allocation5 + $0x38] sm:$0xff]  ;;  %v11444_v5 = vld [vmem:[#allocation5] sm:$0xff] }
0x1499   :  { %v10412_v15 = vadd.f32 -0.0042742956, %v4064_v63  ;;  %v10413_v16 = vadd.f32 -0.0042742956, %v4065_v30  ;;  %v10418_v22 = vsel %vm4094_vm2, 1.0, %v11879_v0  ;;  %v10419_v43 = vsel %vm4095_vm3, 1.0, %v11879_v0 }
0x149a   :  { %v4056_v17 = vmax.f32 %v10404_v12, 0.0  ;;  %v4057_v52 = vmax.f32 %v10405_v24, 0.0  ;;  %4126 = vst [vmem:[%s15729_s10] sm:$0xff] %v10418_v22  ;;  %v11454_v12 = vld [vmem:[#allocation5 + $0x40] sm:$0xff]  ;;  %v11445_v63 = vld [vmem:[#allocation5 + $0x8] sm:$0xff]  ;;  %v11457_v30 = vld [vmem:[#allocation5 + $0x58] sm:$0xff] }
0x149b   :  { %v4080_v55 = vmax.f32 %v10412_v15, 0.0  ;;  %v4081_v37 = vmax.f32 %v10413_v16, 0.0  ;;  %4127 = vst [vmem:[%s15729_s10 + $0x8] sm:$0xff] %v10419_v43  ;;  %v11448_v24 = vld [vmem:[#allocation5 + $0x20] sm:$0xff]  ;;  %v11455_v15 = vld [vmem:[#allocation5 + $0x48] sm:$0xff]  ;;  %v11446_v16 = vld [vmem:[#allocation5 + $0x10] sm:$0xff] }
0x149c   :  { %v4011_v33 = vpop.f32.mrf.mxu0  ;;  %v4040_v9 = vpop.f32.mrf.mxu1  ;;  %v11449_v22 = vld [vmem:[#allocation5 + $0x28] sm:$0xff]  ;;  %v11458_v43 = vld [vmem:[#allocation5 + $0x60] sm:$0xff] }
0x149d   :  { %v4012_v61 = vadd.f32 %v4011_v33, %v12040_v19  ;;  %v4041_v53 = vadd.f32 %v4040_v9, %v12042_v20  ;;  %v13936_v42 = vsub.f32 %v4056_v17, %v4080_v55  ;;  %v13938_v10 = vsub.f32 %v4057_v52, %v4081_v37  ;;  %v10454_v17 = vld [vmem:[#allocation5 + $0x30] sm:$0xf]  ;;  %v11450_v55 = vld [vmem:[#allocation5 + $0x30] sm:$0x30]  ;;  %v10486_v37 = vld [vmem:[#allocation5 + $0x68] sm:$0xf] }
0x149e   :  { %v10455_v52 = vor.u32 %v11450_v55, %v10454_v17  ;;  %v11459_v33 = vld [vmem:[#allocation5 + $0x68] sm:$0x30] }
0x149f   :  { %v10406_v50 = vadd.f32 -0.0042742956, %v4012_v61  ;;  %v4066_v38 = vsub.f32 0.0, %v4012_v61  ;;  %v10407_v13 = vadd.f32 -0.0042742956, %v4041_v53  ;;  %v4067_v26 = vsub.f32 0.0, %v4041_v53 }
0x14a0   :  { %vm4096_vm4 = vcmp.ne.f32.partialorder %v13936_v42, 0.0  ;;  %4120 = vst [vmem:[%s15728_s9 + $0x10] sm:$0xff] %v13936_v42  ;;  %vm4097_vm5 = vcmp.ne.f32.partialorder %v13938_v10, 0.0  ;;  %v10487_v9 = vor.u32 %v11459_v33, %v10486_v37  ;;  %v11462_v61 = vld [vmem:[#allocation5 + $0x70] sm:$0xff]  ;;  %v11463_v53 = vld [vmem:[#allocation5 + $0x78] sm:$0xff] }
0x14a1   :  { %v10414_v19 = vadd.f32 -0.0042742956, %v4066_v38  ;;  %v10415_v29 = vadd.f32 -0.0042742956, %v4067_v26  ;;  %v10420_v20 = vsel %vm4096_vm4, 1.0, %v11879_v0  ;;  %v10421_v35 = vsel %vm4097_vm5, 1.0, %v11879_v0  ;;  %vm13956_vm6 = vmpackc.low %vm4097_vm5, %vm4095_vm3 }
0x14a2   :  { %4121 = vst [vmem:[%s15728_s9 + $0x18] sm:$0xff] %v13938_v10  ;;  %v4058_v3 = vmax.f32 %v10406_v50, 0.0  ;;  %v4059_v57 = vmax.f32 %v10407_v13, 0.0  ;;  %vm14033_vm13 = vmpackc.low %vm4096_vm4, %vm4094_vm2  ;;  %v11451_v50 = vld [vmem:[#allocation7] sm:$0xff]  ;;  %v11465_v38 = vld [vmem:[#allocation5 + $0x88] sm:$0xff] }
0x14a3   :  { %v4082_v2 = vmax.f32 %v10414_v19, 0.0  ;;  %v4083_v28 = vmax.f32 %v10415_v29, 0.0  ;;  %4128 = vst [vmem:[%s15729_s10 + $0x10] sm:$0xff] %v10420_v20  ;;  %v11466_v20 = vld [vmem:[#allocation5 + $0x90] sm:$0xff] }
0x14a4   :  { %v4014_v7 = vpop.f32.mrf.mxu0  ;;  %v4043_v45 = vpop.f32.mrf.mxu1  ;;  %4129 = vst [vmem:[%s15729_s10 + $0x18] sm:$0xff] %v10421_v35  ;;  %v11482_v37 = vld [vmem:[#allocation5 + $0xf0] sm:$0xff] }
0x14a5   :  { %v4015_v39 = vadd.f32 %v4014_v7, %v12050_v40  ;;  %v4044_v31 = vadd.f32 %v4043_v45, %v12052_v41  ;;  %v4090_v62 = vsub.f32 %v4058_v3, %v4082_v2  ;;  %v4091_v8 = vsub.f32 %v4059_v57, %v4083_v28 }
0x14a7   :  { %v10408_v54 = vadd.f32 -0.0042742956, %v4015_v39  ;;  %v4068_v23 = vsub.f32 0.0, %v4015_v39  ;;  %v10409_v32 = vadd.f32 -0.0042742956, %v4044_v31  ;;  %v4069_v60 = vsub.f32 0.0, %v4044_v31 }
0x14a8   :  { %vm4098_vm7 = vcmp.ne.f32.partialorder %v4090_v62, 0.0  ;;  %4122 = vst [vmem:[%s15728_s9 + $0x20] sm:$0xff] %v4090_v62  ;;  %vm4099_vm8 = vcmp.ne.f32.partialorder %v4091_v8, 0.0  ;;  %v11467_v31 = vld [vmem:[#allocation5 + $0x98] sm:$0xff] }
0x14a9   :  { %v10416_v1 = vadd.f32 -0.0042742956, %v4068_v23  ;;  %v10417_v27 = vadd.f32 -0.0042742956, %v4069_v60  ;;  %v10422_v14 = vsel %vm4098_vm7, 1.0, %v11879_v0  ;;  %v10423_v40 = vsel %vm4099_vm8, 1.0, %v11879_v0 }
0x14aa   :  { %4123 = vst [vmem:[%s15728_s9 + $0x28] sm:$0xff] %v4091_v8  ;;  %v4060_v41 = vmax.f32 %v10408_v54, 0.0  ;;  %v4061_v34 = vmax.f32 %v10409_v32, 0.0 }
0x14ab   :  { %v4084_v58 = vmax.f32 %v10416_v1, 0.0  ;;  %v4085_v4 = vmax.f32 %v10417_v27, 0.0  ;;  %4130 = vst [vmem:[%s15729_s10 + $0x20] sm:$0xff] %v10422_v14  ;;  %v10548_v27 = vld [vmem:[#allocation5 + $0xa0] sm:$0xf] }
0x14ac   :  { %4131 = vst [vmem:[%s15729_s10 + $0x28] sm:$0xff] %v10423_v40  ;;  %v11468_v14 = vld [vmem:[#allocation5 + $0xa0] sm:$0x30] }
0x14ad   :  { %v4092_v18 = vsub.f32 %v4060_v41, %v4084_v58  ;;  %v4093_v21 = vsub.f32 %v4061_v34, %v4085_v4  ;;  %v10549_v58 = vor.u32 %v11468_v14, %v10548_v27 }
0x14af   :  { %4124 = vst [vmem:[%s15728_s9 + $0x30] sm:$0xff] %v4092_v18  ;;  %4150 = vmatpush.msrb.mxu2 %v4092_v18  ;;  %4170 = vmatpush.msrb.mxu3 %v4093_v21  ;;  %vm4100_vm9 = vcmp.ne.f32.partialorder %v4092_v18, 0.0  ;;  %vm4101_vm10 = vcmp.ne.f32.partialorder %v4093_v21, 0.0 }
0x14b0   :  { %4125 = vst [vmem:[%s15728_s9 + $0x38] sm:$0xff] %v4093_v21  ;;  %v10424_v49 = vsel %vm4100_vm9, 1.0, %v11879_v0  ;;  %vm13992_vm11 = vmpackc.low %vm4100_vm9, %vm4098_vm7  ;;  %v10425_v6 = vsel %vm4101_vm10, 1.0, %v11879_v0  ;;  %v4134_v0 = vld [vmem:[%s15722_s3] sm:$0xff]  ;;  %s9667_s3 = sshll.u32 %s11881_s26, 4  ;;  %s9668_s3 = int_to_ptr.vmem [resolvable:$true] %s9667_s3 }
0x14b1   :  { %4132 = vst [vmem:[%s15729_s10 + $0x30] sm:$0xff] %v10424_v49  ;;  %4151 = vmatpush.msrb.mxu2 %v4090_v62  ;;  %4171 = vmatpush.msrb.mxu3 %v4091_v8  ;;  %vm14001_vm12 = vmpackc.low %vm4101_vm10, %vm4099_vm8 }
0x14b2   :  { %4133 = vst [vmem:[%s15729_s10 + $0x38] sm:$0xff] %v10425_v6  ;;  %10457 = vmatpush.bf16.xpose.msk.msra.mxu0 %vm13992_vm11, %v11880_v44  ;;  %10489 = vmatpush.bf16.xpose.msk.msra.mxu1 %vm13992_vm11, %v11880_v44 }
0x14b3   :  { %4152 = vmatpush.msrb.mxu2 %v13936_v42  ;;  %4172 = vmatpush.msrb.mxu3 %v13938_v10  ;;  %v11464_v42 = vld [vmem:[#allocation5 + $0x80] sm:$0xff] }
0x14b4   :  { %v11452_v10 = vld [vmem:[#allocation7 + $0x8] sm:$0xff] }
0x14b5   :  { %4153 = vmatpush.msrb.mxu2 %v13908_v59  ;;  %4173 = vmatpush.msrb.mxu3 %v13910_v11  ;;  %v11447_v59 = vld [vmem:[#allocation5 + $0x18] sm:$0xff]  ;;  %v11456_v11 = vld [vmem:[#allocation5 + $0x50] sm:$0xff] }
0x14b6   :  { %10426 = vmatmul.msk.f32.vlgmr.msrb.gmra.mxu2 %vm213_vm0, %v4134_v0  ;;  %10427 = vmatmul.msk.f32.vlgmr.msrb.gmra.mxu3 %vm213_vm0, %v4134_v0  ;;  %v11470_v0 = vld [vmem:[#allocation7 + $0x28] sm:$0xff] }
0x14b7   :  { %11638 = vmatpush.bf16.xpose.msk.msra.mxu2 %vm13992_vm11, %v11880_v44  ;;  %11640 = vmatpush.bf16.xpose.msk.msra.mxu3 %vm13992_vm11, %v11880_v44 }
0x14ba   :  { %10459 = vmatpush.bf16.xpose.msk.msra.mxu0 %vm14033_vm13, %v11880_v44  ;;  %10491 = vmatpush.bf16.xpose.msk.msra.mxu1 %vm14033_vm13, %v11880_v44 }
0x14bf   :  { %11639 = vmatpush.bf16.xpose.msk.msra.mxu2 %vm14033_vm13, %v11880_v44  ;;  %11641 = vmatpush.bf16.xpose.msk.msra.mxu3 %vm14033_vm13, %v11880_v44 }
0x14c1   :  { %4358 = vmatmul.bf16.vlgmr.msra.gmra.mxu1 %v11453_v48  ;;  %4246 = vmatmul.bf16.vlgmr.msra.gmra.mxu0 %v11444_v5  ;;  %v11469_v48 = vld [vmem:[#allocation7 + $0x20] sm:$0xff] }
0x14c2   :  { %4445 = vmatpush.bf16.msrb.mxu0 %v11461_v36  ;;  %4522 = vmatpush.bf16.msrb.mxu1 %v11452_v10 }
0x14c6   :  { %4446 = vmatpush.bf16.msrb.mxu0 %v11460_v47  ;;  %4261 = vmatmul.bf16.vlgmr.msra.gmra.mxu2 %v11447_v59  ;;  %v11480_v47 = vld [vmem:[#allocation5 + $0xe0] sm:$0xff] }
0x14c7   :  { %10551 = vmatpush.bf16.xpose.msk.msrb.mxu2 %vm13992_vm11, %v11880_v44  ;;  %4373 = vmatmul.bf16.vlgmr.msra.gmra.mxu3 %v11456_v11 }
0x14c8   :  { %4523 = vmatpush.bf16.msrb.mxu1 %v11451_v50  ;;  %4712 = vmatpush.bf16.msrb.mxu3 %v11470_v0  ;;  %v11483_v50 = vld [vmem:[#allocation5 + $0xf8] sm:$0xff]  ;;  %v11498_v0 = vld [vmem:[#allocation5 + $0x150] sm:$0xff] }
0x14ca   :  { %10598 = vmatpush.bf16.xpose.msk.msra.mxu0 %vm13992_vm11, %v11880_v44 }
0x14cc   :  { %4713 = vmatpush.bf16.msrb.mxu3 %v11469_v48  ;;  %4916 = vmatpush.bf16.msra.mxu1 %v11479_v56 }
0x14cf   :  { %10553 = vmatpush.bf16.xpose.msk.msrb.mxu2 %vm14033_vm13, %v11880_v44 }
0x14d1   :  { %4363 = vmatmul.bf16.gmra.mxu1 %v11454_v12  ;;  %4251 = vmatmul.bf16.gmra.mxu0 %v11445_v63 }
0x14d2   :  { %10600 = vmatpush.bf16.xpose.msk.msra.mxu0 %vm14033_vm13, %v11880_v44 }
0x14d6   :  { %4266 = vmatmul.bf16.gmra.mxu2 %v11448_v24 }
0x14d7   :  { %10645 = vmatpush.bf16.xpose.msk.msra.mxu2 %vm13992_vm11, %v11880_v44  ;;  %4378 = vmatmul.bf16.gmra.mxu3 %v11457_v30  ;;  %v11481_v30 = vld [vmem:[#allocation5 + $0xe8] sm:$0xff] }
0x14df   :  { %10647 = vmatpush.bf16.xpose.msk.msra.mxu2 %vm14033_vm13, %v11880_v44 }
0x14e1   :  { %4368 = vmatmul.bf16.gmra.mxu1 %v11455_v15  ;;  %4256 = vmatmul.bf16.gmra.mxu0 %v11446_v16 }
0x14e6   :  { %4271 = vmatmul.bf16.gmra.mxu2 %v11449_v22 }
0x14e7   :  { %4383 = vmatmul.bf16.gmra.mxu3 %v11458_v43 }
0x14f6   :  { %4276 = vmatmul.bf16.gmra.mxu2 %v10455_v52 }
0x14f7   :  { %4388 = vmatmul.bf16.gmra.mxu3 %v10487_v9 }
0x1506   :  { %4625 = vmatmul.bf16.vlgmr.msrb.gmra.mxu2 %v11462_v61 }
0x1507   :  { %10739 = vmatpush.bf16.xpose.msk.msrb.mxu2 %vm13992_vm11, %v11880_v44 }
0x150f   :  { %10741 = vmatpush.bf16.xpose.msk.msrb.mxu2 %vm14033_vm13, %v11880_v44 }
0x1516   :  { %4630 = vmatmul.bf16.gmra.mxu2 %v11463_v53 }
0x1526   :  { %4635 = vmatmul.bf16.gmra.mxu2 %v11464_v42 }
0x1536   :  { %4640 = vmatmul.bf16.gmra.mxu2 %v11465_v38 }
0x1539   :  { %v4155_v13 = vpop.f32.mrf.mxu2  ;;  %v4175_v29 = vpop.f32.mrf.mxu3 }
0x153a   :  { %4178 = vst [vmem:[#allocation13] sm:$0xff] %v4155_v13 }
0x153b   :  { %4179 = vst [vmem:[#allocation13 + $0x8] sm:$0xff] %v4175_v29 }
0x153c   :  { %9672 = dma.vmem_to_hbm [thread:$0]  %s9668_s3, 256, %s9670_s28, [#allocation4]  }
0x153e   :  { %v4359_v26 = vpop.f32.mrf.mxu1  ;;  %v4247_v19 = vpop.f32.mrf.mxu0 }
0x1546   :  { %4645 = vmatmul.bf16.gmra.mxu2 %v11466_v20  ;;  %v4361_v35 = vpop.f32.mrf.mxu1  ;;  %v4249_v3 = vpop.f32.mrf.mxu0 }
0x1547   :  { %v4394_v2 = vpack.c.bf16 %v4361_v35, %v4359_v26  ;;  %v4282_v57 = vpack.c.bf16 %v4249_v3, %v4247_v19  ;;  %v11484_v35 = vld [vmem:[#allocation5 + $0x100] sm:$0xff]  ;;  %v11471_v3 = vld [vmem:[#allocation5 + $0xa8] sm:$0xff] }
0x1549   :  { %v4262_v28 = vpop.f32.mrf.mxu2  ;;  %10500 = vmatmul.msk.bf16.vlgmr.msrb.gmra.mxu0 %vm213_vm0, %v4394_v2  ;;  %10515 = vmatmul.msk.bf16.vlgmr.msrb.gmra.mxu1 %vm213_vm0, %v4282_v57 }
0x154a   :  { %10692 = vmatpush.bf16.xpose.msk.msrb.mxu0 %vm13992_vm11, %v11880_v44  ;;  %v4374_v60 = vpop.f32.mrf.mxu3 }
0x154e   :  { %v4364_v7 = vpop.f32.mrf.mxu1  ;;  %v4252_v45 = vpop.f32.mrf.mxu0 }
0x1551   :  { %v4264_v39 = vpop.f32.mrf.mxu2 }
0x1552   :  { %10694 = vmatpush.bf16.xpose.msk.msrb.mxu0 %vm14033_vm13, %v11880_v44  ;;  %v4376_v6 = vpop.f32.mrf.mxu3  ;;  %v4285_v59 = vpack.c.bf16 %v4264_v39, %v4262_v28 }
0x1553   :  { %v4397_v11 = vpack.c.bf16 %v4376_v6, %v4374_v60  ;;  %v11486_v60 = vld [vmem:[#allocation5 + $0x110] sm:$0x30] }
0x1556   :  { %4650 = vmatmul.bf16.gmra.mxu2 %v11467_v31  ;;  %v4366_v62 = vpop.f32.mrf.mxu1  ;;  %v4254_v8 = vpop.f32.mrf.mxu0 }
0x1557   :  { %v4395_v54 = vpack.c.bf16 %v4366_v62, %v4364_v7  ;;  %v4283_v23 = vpack.c.bf16 %v4254_v8, %v4252_v45  ;;  %v11485_v7 = vld [vmem:[#allocation5 + $0x108] sm:$0xff]  ;;  %v11472_v45 = vld [vmem:[#allocation5 + $0xb0] sm:$0xff]  ;;  %v11488_v62 = vld [vmem:[#allocation7 + $0x48] sm:$0xff] }
0x1558   :  { %5120 = vmatpush.bf16.msra.mxu3 %v11488_v62 }
0x1559   :  { %v4267_v32 = vpop.f32.mrf.mxu2  ;;  %10501 = vmatmul.msk.bf16.gmra.mxu0 %vm213_vm0, %v4395_v54  ;;  %10516 = vmatmul.msk.bf16.gmra.mxu1 %vm213_vm0, %v4283_v23 }
0x155a   :  { %v4379_v5 = vpop.f32.mrf.mxu3 }
0x155e   :  { %v4369_v1 = vpop.f32.mrf.mxu1  ;;  %v4257_v40 = vpop.f32.mrf.mxu0 }
0x1561   :  { %v4269_v41 = vpop.f32.mrf.mxu2 }
0x1562   :  { %v4381_v63 = vpop.f32.mrf.mxu3  ;;  %v4286_v15 = vpack.c.bf16 %v4269_v41, %v4267_v32  ;;  %v10642_v32 = vld [vmem:[#allocation5 + $0x110] sm:$0xf] }
0x1563   :  { %v4398_v22 = vpack.c.bf16 %v4381_v63, %v4379_v5  ;;  %v10643_v14 = vor.u32 %v11486_v60, %v10642_v32 }
0x1566   :  { %4655 = vmatmul.bf16.gmra.mxu2 %v10549_v58  ;;  %v4371_v34 = vpop.f32.mrf.mxu1  ;;  %v4259_v4 = vpop.f32.mrf.mxu0 }
0x1567   :  { %v4396_v18 = vpack.c.bf16 %v4371_v34, %v4369_v1  ;;  %v4284_v21 = vpack.c.bf16 %v4259_v4, %v4257_v40  ;;  %v11473_v40 = vld [vmem:[#allocation5 + $0xb8] sm:$0xff] }
0x1569   :  { %v4272_v49 = vpop.f32.mrf.mxu2  ;;  %10502 = vmatmul.msk.bf16.gmra.mxu0 %vm213_vm0, %v4396_v18  ;;  %10517 = vmatmul.msk.bf16.gmra.mxu1 %vm213_vm0, %v4284_v21 }
0x156a   :  { %v4384_v16 = vpop.f32.mrf.mxu3 }
0x1571   :  { %v4274_v36 = vpop.f32.mrf.mxu2 }
0x1572   :  { %v4386_v55 = vpop.f32.mrf.mxu3  ;;  %v4287_v33 = vpack.c.bf16 %v4274_v36, %v4272_v49  ;;  %v11487_v36 = vld [vmem:[#allocation7 + $0x40] sm:$0xff] }
0x1573   :  { %v4399_v9 = vpack.c.bf16 %v4386_v55, %v4384_v16  ;;  %5121 = vmatpush.bf16.msra.mxu3 %v11487_v36  ;;  %v11475_v16 = vld [vmem:[#allocation5 + $0xc8] sm:$0xff] }
0x1576   :  { %5033 = vmatmul.bf16.vlgmr.msra.gmra.mxu2 %v11480_v47  ;;  %v11474_v47 = vld [vmem:[#allocation5 + $0xc0] sm:$0xff] }
0x1577   :  { %10833 = vmatpush.bf16.xpose.msk.msra.mxu2 %vm13992_vm11, %v11880_v44 }
0x1579   :  { %v4277_v12 = vpop.f32.mrf.mxu2  ;;  %10503 = vmatmul.msk.bf16.gmra.mxu0 %vm213_vm0, %v4397_v11  ;;  %10518 = vmatmul.msk.bf16.gmra.mxu1 %vm213_vm0, %v4285_v59 }
0x157a   :  { %v4389_v53 = vpop.f32.mrf.mxu3 }
0x157f   :  { %10835 = vmatpush.bf16.xpose.msk.msra.mxu2 %vm14033_vm13, %v11880_v44 }
0x1581   :  { %v4279_v24 = vpop.f32.mrf.mxu2 }
0x1582   :  { %v4391_v38 = vpop.f32.mrf.mxu3  ;;  %v4288_v13 = vpack.c.bf16 %v4279_v24, %v4277_v12 }
0x1583   :  { %v4400_v26 = vpack.c.bf16 %v4391_v38, %v4389_v53  ;;  %v11478_v53 = vld [vmem:[#allocation7 + $0x30] sm:$0xff] }
0x1584   :  { %4917 = vmatpush.bf16.msra.mxu1 %v11478_v53 }
0x1586   :  { %5038 = vmatmul.bf16.gmra.mxu2 %v11481_v30 }
0x1589   :  { %v4626_v43 = vpop.f32.mrf.mxu2  ;;  %10504 = vmatmul.msk.bf16.gmra.mxu0 %vm213_vm0, %v4398_v22  ;;  %10519 = vmatmul.msk.bf16.gmra.mxu1 %vm213_vm0, %v4286_v15  ;;  %v11499_v15 = vld [vmem:[#allocation5 + $0x158] sm:$0xff] }
0x1591   :  { %v4628_v17 = vpop.f32.mrf.mxu2 }
0x1592   :  { %v4661_v52 = vpack.c.bf16 %v4628_v17, %v4626_v43 }
0x1594   :  { %10562 = vmatmul.msk.bf16.vlgmr.msrb.gmra.mxu3 %vm213_vm0, %v4661_v52 }
0x1596   :  { %5043 = vmatmul.bf16.gmra.mxu2 %v11482_v37 }
0x1599   :  { %v4631_v61 = vpop.f32.mrf.mxu2  ;;  %10505 = vmatmul.msk.bf16.gmra.mxu0 %vm213_vm0, %v4399_v9  ;;  %10520 = vmatmul.msk.bf16.gmra.mxu1 %vm213_vm0, %v4287_v33 }
0x15a1   :  { %v4633_v42 = vpop.f32.mrf.mxu2 }
0x15a2   :  { %v4662_v10 = vpack.c.bf16 %v4633_v42, %v4631_v61  ;;  %v11500_v61 = vld [vmem:[#allocation5 + $0x160] sm:$0xff]  ;;  %v11476_v42 = vld [vmem:[#allocation5 + $0xd0] sm:$0xff] }
0x15a4   :  { %10563 = vmatmul.msk.bf16.gmra.mxu3 %vm213_vm0, %v4662_v10 }
0x15a6   :  { %5048 = vmatmul.bf16.gmra.mxu2 %v11483_v50 }
0x15a9   :  { %v4636_v19 = vpop.f32.mrf.mxu2  ;;  %10506 = vmatmul.msk.bf16.gmra.mxu0 %vm213_vm0, %v4400_v26  ;;  %10521 = vmatmul.msk.bf16.gmra.mxu1 %vm213_vm0, %v4288_v13 }
0x15b1   :  { %v4638_v29 = vpop.f32.mrf.mxu2 }
0x15b2   :  { %v4663_v20 = vpack.c.bf16 %v4638_v29, %v4636_v19 }
0x15b4   :  { %10564 = vmatmul.msk.bf16.gmra.mxu3 %vm213_vm0, %v4663_v20 }
0x15b6   :  { %5053 = vmatmul.bf16.gmra.mxu2 %v11484_v35  ;;  %v11501_v35 = vld [vmem:[#allocation5 + $0x168] sm:$0xff] }
0x15b9   :  { %v4641_v2 = vpop.f32.mrf.mxu2  ;;  %4829 = vmatmul.bf16.vlgmr.msra.gmra.mxu0 %v11471_v3  ;;  %v10595_v3 = vld [vmem:[#allocation5 + $0xd8] sm:$0xf] }
0x15ba   :  { %10786 = vmatpush.bf16.xpose.msk.msra.mxu0 %vm13992_vm11, %v11880_v44 }
0x15c1   :  { %v4643_v57 = vpop.f32.mrf.mxu2 }
0x15c2   :  { %v4664_v28 = vpack.c.bf16 %v4643_v57, %v4641_v2  ;;  %10788 = vmatpush.bf16.xpose.msk.msra.mxu0 %vm14033_vm13, %v11880_v44  ;;  %v11477_v2 = vld [vmem:[#allocation5 + $0xd8] sm:$0x30] }
0x15c3   :  { %v10596_v57 = vor.u32 %v11477_v2, %v10595_v3  ;;  %v11505_v2 = vld [vmem:[#allocation7 + $0x60] sm:$0xff] }
0x15c4   :  { %10565 = vmatmul.msk.bf16.gmra.mxu3 %vm213_vm0, %v4664_v28 }
0x15c6   :  { %5058 = vmatmul.bf16.gmra.mxu2 %v11485_v7  ;;  %v4448_v39 = vpop.f32.mrf.mxu0  ;;  %v4525_v31 = vpop.f32.mrf.mxu1 }
0x15c7   :  { %v14109_v8 = vadd.f32 %v4525_v31, %v4448_v39 }
0x15c9   :  { %v4646_v54 = vpop.f32.mrf.mxu2  ;;  %4834 = vmatmul.bf16.gmra.mxu0 %v11472_v45 }
0x15ce   :  { %v14111_v23 = vpop.f32.mrf.mxu0  ;;  %v14113_v46 = vpop.f32.mrf.mxu1 }
0x15d1   :  { %v4648_v1 = vpop.f32.mrf.mxu2 }
0x15d2   :  { %v4665_v27 = vpack.c.bf16 %v4648_v1, %v4646_v54  ;;  %v4528_v54 = vadd.f32 %v14113_v46, %v14111_v23 }
0x15d4   :  { %10566 = vmatmul.msk.bf16.gmra.mxu3 %vm213_vm0, %v4665_v27 }
0x15d6   :  { %5063 = vmatmul.bf16.gmra.mxu2 %v10643_v14  ;;  %v4453_v41 = vpop.f32.mrf.mxu0  ;;  %v4530_v58 = vpop.f32.mrf.mxu1 }
0x15d7   :  { %v14116_v34 = vadd.f32 %v4530_v58, %v4453_v41 }
0x15d9   :  { %v4651_v4 = vpop.f32.mrf.mxu2  ;;  %4839 = vmatmul.bf16.gmra.mxu0 %v11473_v40  ;;  %v11502_v40 = vld [vmem:[#allocation5 + $0x170] sm:$0xff] }
0x15de   :  { %v14118_v18 = vpop.f32.mrf.mxu0  ;;  %v14120_v21 = vpop.f32.mrf.mxu1 }
0x15e1   :  { %v4653_v49 = vpop.f32.mrf.mxu2 }
0x15e2   :  { %v4666_v6 = vpack.c.bf16 %v4653_v49, %v4651_v4 }
0x15e4   :  { %10567 = vmatmul.msk.bf16.gmra.mxu3 %vm213_vm0, %v4666_v6  ;;  %v4533_v6 = vadd.f32 %v14120_v21, %v14118_v18  ;;  %v11497_v18 = vld [vmem:[#allocation7 + $0x58] sm:$0xff] }
0x15e5   :  { %5324 = vmatpush.bf16.msrb.mxu1 %v11497_v18 }
0x15e6   :  { %5441 = vmatmul.bf16.vlgmr.msrb.gmra.mxu2 %v11498_v0  ;;  %v4458_v48 = vpop.f32.mrf.mxu0  ;;  %v4535_v5 = vpop.f32.mrf.mxu1 }
0x15e7   :  { %v14123_v59 = vadd.f32 %v4535_v5, %v4458_v48 }
0x15e9   :  { %v4656_v11 = vpop.f32.mrf.mxu2  ;;  %4844 = vmatmul.bf16.gmra.mxu0 %v11474_v47 }
0x15ee   :  { %v14125_v12 = vpop.f32.mrf.mxu0  ;;  %v14127_v63 = vpop.f32.mrf.mxu1 }
0x15ef   :  { %v4538_v21 = vadd.f32 %v14127_v63, %v14125_v12 }
0x15f1   :  { %v4658_v24 = vpop.f32.mrf.mxu2 }
0x15f2   :  { %v4667_v30 = vpack.c.bf16 %v4658_v24, %v4656_v11  ;;  %v11503_v11 = vld [vmem:[#allocation5 + $0x178] sm:$0xff] }
0x15f4   :  { %10568 = vmatmul.msk.bf16.gmra.mxu3 %vm213_vm0, %v4667_v30 }
0x15f6   :  { %5446 = vmatmul.bf16.gmra.mxu2 %v11499_v15  ;;  %v4463_v22 = vpop.f32.mrf.mxu0  ;;  %v4540_v43 = vpop.f32.mrf.mxu1  ;;  %v11506_v15 = vld [vmem:[#allocation7 + $0x68] sm:$0xff] }
0x15f7   :  { %v14130_v17 = vadd.f32 %v4540_v43, %v4463_v22  ;;  %5528 = vmatpush.bf16.msrb.mxu3 %v11506_v15  ;;  %v11528_v15 = vld [vmem:[#allocation8 + $0x18] sm:$0xff] }
0x15f9   :  { %v5034_v55 = vpop.f32.mrf.mxu2  ;;  %4849 = vmatmul.bf16.gmra.mxu0 %v11475_v16 }
0x15fb   :  { %5529 = vmatpush.bf16.msrb.mxu3 %v11505_v2 }
0x15fe   :  { %v14132_v52 = vpop.f32.mrf.mxu0  ;;  %v14134_v37 = vpop.f32.mrf.mxu1 }
0x1601   :  { %v5036_v33 = vpop.f32.mrf.mxu2 }
0x1602   :  { %v5069_v9 = vpack.c.bf16 %v5036_v33, %v5034_v55  ;;  %v10736_v33 = vld [vmem:[#allocation5 + $0x180] sm:$0xf] }
0x1604   :  { %10656 = vmatmul.msk.bf16.vlgmr.msra.gmra.mxu3 %vm213_vm0, %v5069_v9  ;;  %v11504_v9 = vld [vmem:[#allocation5 + $0x180] sm:$0x30] }
0x1606   :  { %5451 = vmatmul.bf16.gmra.mxu2 %v11500_v61  ;;  %v4468_v10 = vpop.f32.mrf.mxu0  ;;  %v4545_v50 = vpop.f32.mrf.mxu1 }
0x1607   :  { %v14137_v38 = vadd.f32 %v4545_v50, %v4468_v10  ;;  %v10737_v10 = vor.u32 %v11504_v9, %v10736_v33  ;;  %v11491_v50 = vld [vmem:[#allocation5 + $0x128] sm:$0xff]  ;;  %v11527_v33 = vld [vmem:[#allocation8 + $0x10] sm:$0xff] }
0x1609   :  { %v5039_v13 = vpop.f32.mrf.mxu2  ;;  %4854 = vmatmul.bf16.gmra.mxu0 %v11476_v42 }
0x160e   :  { %v14139_v26 = vpop.f32.mrf.mxu0  ;;  %v14141_v19 = vpop.f32.mrf.mxu1 }
0x1611   :  { %v5041_v29 = vpop.f32.mrf.mxu2 }
0x1612   :  { %v5070_v20 = vpack.c.bf16 %v5041_v29, %v5039_v13 }
0x1614   :  { %10657 = vmatmul.msk.bf16.gmra.mxu3 %vm213_vm0, %v5070_v20  ;;  %v4543_v20 = vadd.f32 %v14134_v37, %v14132_v52 }
0x1616   :  { %5456 = vmatmul.bf16.gmra.mxu2 %v11501_v35  ;;  %v4473_v28 = vpop.f32.mrf.mxu0  ;;  %v4550_v39 = vpop.f32.mrf.mxu1 }
0x1617   :  { %v4715_v7 = vpop.f32.mrf.mxu3  ;;  %v14147_v62 = vadd.f32 %v4550_v39, %v4473_v28 }
0x1618   :  { %v14145_v45 = vadd.f32 %v4715_v7, %v14109_v8  ;;  %v11489_v8 = vld [vmem:[#allocation5 + $0x118] sm:$0xff]  ;;  %v11524_v7 = vld [vmem:[#allocation7 + $0x88] sm:$0xff] }
0x1619   :  { %v5044_v31 = vpop.f32.mrf.mxu2  ;;  %4859 = vmatmul.bf16.gmra.mxu0 %v10596_v57  ;;  %5936 = vmatpush.bf16.msra.mxu3 %v11524_v7 }
0x161e   :  { %v14151_v56 = vpop.f32.mrf.mxu0  ;;  %v14155_v1 = vpop.f32.mrf.mxu1 }
0x161f   :  { %v4717_v32 = vpop.f32.mrf.mxu3 }
0x1620   :  { %v14153_v60 = vadd.f32 %v4717_v32, %v4528_v54  ;;  %v11516_v54 = vld [vmem:[#allocation5 + $0x1c0] sm:$0xff]  ;;  %v11492_v32 = vld [vmem:[#allocation5 + $0x130] sm:$0xff] }
0x1621   :  { %v5046_v27 = vpop.f32.mrf.mxu2 }
0x1622   :  { %v5071_v14 = vpack.c.bf16 %v5046_v27, %v5044_v31 }
0x1624   :  { %10658 = vmatmul.msk.bf16.gmra.mxu3 %vm213_vm0, %v5071_v14 }
0x1626   :  { %5461 = vmatmul.bf16.gmra.mxu2 %v11502_v40  ;;  %v4478_v41 = vpop.f32.mrf.mxu0  ;;  %v4555_v23 = vpop.f32.mrf.mxu1  ;;  %v11532_v40 = vld [vmem:[#allocation8 + $0x38] sm:$0xff] }
0x1627   :  { %v4720_v58 = vpop.f32.mrf.mxu3  ;;  %v14161_v49 = vadd.f32 %v4555_v23, %v4478_v41 }
0x1628   :  { %v14159_v4 = vadd.f32 %v4720_v58, %v14116_v34  ;;  %v11490_v34 = vld [vmem:[#allocation5 + $0x120] sm:$0xff] }
0x1629   :  { %v5049_v46 = vpop.f32.mrf.mxu2  ;;  %5237 = vmatmul.bf16.vlgmr.msrb.gmra.mxu0 %v11489_v8  ;;  %v4548_v8 = vadd.f32 %v14141_v19, %v14139_v26  ;;  %v11529_v19 = vld [vmem:[#allocation8 + $0x20] sm:$0xff] }
0x162a   :  { %6197 = vmatpush.bf16.msrb.mxu0 %v11532_v40 }
0x162e   :  { %v14165_v0 = vpop.f32.mrf.mxu0 }
0x162f   :  { %v4722_v36 = vpop.f32.mrf.mxu3 }
0x1630   :  { %v14167_v47 = vadd.f32 %v4722_v36, %v4533_v6  ;;  %v11531_v6 = vld [vmem:[#allocation8 + $0x30] sm:$0xff] }
0x1631   :  { %v5051_v48 = vpop.f32.mrf.mxu2  ;;  %6198 = vmatpush.bf16.msrb.mxu0 %v11531_v6 }
0x1632   :  { %v5072_v5 = vpack.c.bf16 %v5051_v48, %v5049_v46 }
0x1634   :  { %10659 = vmatmul.msk.bf16.gmra.mxu3 %vm213_vm0, %v5072_v5  ;;  %v11517_v5 = vld [vmem:[#allocation5 + $0x1c8] sm:$0xff] }
0x1636   :  { %5466 = vmatmul.bf16.gmra.mxu2 %v11503_v11  ;;  %v4830_v24 = vpop.f32.mrf.mxu0  ;;  %v11493_v11 = vld [vmem:[#allocation5 + $0x138] sm:$0xff] }
0x1637   :  { %v4725_v30 = vpop.f32.mrf.mxu3 }
0x1638   :  { %v14171_v16 = vadd.f32 %v4725_v30, %v14123_v59 }
0x1639   :  { %v5054_v22 = vpop.f32.mrf.mxu2  ;;  %5242 = vmatmul.bf16.gmra.mxu0 %v11490_v34 }
0x163e   :  { %v4832_v43 = vpop.f32.mrf.mxu0 }
0x163f   :  { %v4727_v55 = vpop.f32.mrf.mxu3  ;;  %v4865_v61 = vpack.c.bf16 %v4832_v43, %v4830_v24 }
0x1640   :  { %v14175_v53 = vadd.f32 %v4727_v55, %v4538_v21 }
0x1641   :  { %v5056_v42 = vpop.f32.mrf.mxu2  ;;  %10609 = vmatmul.msk.bf16.vlgmr.msra.gmra.mxu1 %vm213_vm0, %v4865_v61 }
0x1642   :  { %v5073_v59 = vpack.c.bf16 %v5056_v42, %v5054_v22  ;;  %v4553_v22 = vadd.f32 %v14155_v1, %v14151_v56  ;;  %v11496_v42 = vld [vmem:[#allocation7 + $0x50] sm:$0xff]  ;;  %v11494_v56 = vld [vmem:[#allocation5 + $0x140] sm:$0xff] }
0x1643   :  { %5325 = vmatpush.bf16.msrb.mxu1 %v11496_v42 }
0x1644   :  { %10660 = vmatmul.msk.bf16.gmra.mxu3 %vm213_vm0, %v5073_v59  ;;  %v11526_v59 = vld [vmem:[#allocation8 + $0x8] sm:$0xff] }
0x1646   :  { %5471 = vmatmul.bf16.gmra.mxu2 %v10737_v10  ;;  %v4835_v13 = vpop.f32.mrf.mxu0 }
0x1647   :  { %v4730_v29 = vpop.f32.mrf.mxu3 }
0x1648   :  { %v14180_v12 = vadd.f32 %v4730_v29, %v14130_v17  ;;  %v11523_v17 = vld [vmem:[#allocation7 + $0x80] sm:$0xff] }
0x1649   :  { %v5059_v63 = vpop.f32.mrf.mxu2  ;;  %5247 = vmatmul.bf16.gmra.mxu0 %v11491_v50  ;;  %5937 = vmatpush.bf16.msra.mxu3 %v11523_v17  ;;  %v11525_v50 = vld [vmem:[#allocation8] sm:$0xff] }
0x164e   :  { %v4837_v35 = vpop.f32.mrf.mxu0 }
0x164f   :  { %v4732_v3 = vpop.f32.mrf.mxu3  ;;  %v4866_v57 = vpack.c.bf16 %v4837_v35, %v4835_v13 }
0x1650   :  { %v14184_v28 = vadd.f32 %v4732_v3, %v4543_v20 }
0x1651   :  { %v5061_v39 = vpop.f32.mrf.mxu2  ;;  %10610 = vmatmul.msk.bf16.gmra.mxu1 %vm213_vm0, %v4866_v57 }
0x1652   :  { %v5074_v31 = vpack.c.bf16 %v5061_v39, %v5059_v63  ;;  %v4557_v63 = vpop.f32.mrf.mxu1  ;;  %v11519_v39 = vld [vmem:[#allocation5 + $0x1d8] sm:$0xff] }
0x1653   :  { %v4558_v20 = vadd.f32 %v4557_v63, %v14165_v0 }
0x1654   :  { %10661 = vmatmul.msk.bf16.gmra.mxu3 %vm213_vm0, %v5074_v31  ;;  %v10689_v31 = vld [vmem:[#allocation5 + $0x148] sm:$0xf] }
0x1656   :  { %5849 = vmatmul.bf16.vlgmr.msra.gmra.mxu2 %v11516_v54  ;;  %v4840_v52 = vpop.f32.mrf.mxu0  ;;  %v11495_v54 = vld [vmem:[#allocation5 + $0x148] sm:$0x30] }
0x1657   :  { %v4735_v37 = vpop.f32.mrf.mxu3  ;;  %v10690_v17 = vor.u32 %v11495_v54, %v10689_v31 }
0x1658   :  { %v14189_v27 = vadd.f32 %v4735_v37, %v14137_v38  ;;  %v11530_v38 = vld [vmem:[#allocation8 + $0x28] sm:$0xff] }
0x1659   :  { %v5064_v14 = vpop.f32.mrf.mxu2  ;;  %5252 = vmatmul.bf16.gmra.mxu0 %v11492_v32 }
0x165a   :  { %6199 = vmatpush.bf16.msrb.mxu0 %v11530_v38 }
0x165e   :  { %v4842_v41 = vpop.f32.mrf.mxu0  ;;  %6200 = vmatpush.bf16.msrb.mxu0 %v11529_v19  ;;  %v11508_v19 = vld [vmem:[#allocation5 + $0x190] sm:$0xff] }
0x165f   :  { %v4737_v58 = vpop.f32.mrf.mxu3  ;;  %v4867_v23 = vpack.c.bf16 %v4842_v41, %v4840_v52 }
0x1660   :  { %v14193_v46 = vadd.f32 %v4737_v58, %v4548_v8  ;;  %v11520_v8 = vld [vmem:[#allocation5 + $0x1e0] sm:$0xff]  ;;  %v11507_v58 = vld [vmem:[#allocation5 + $0x188] sm:$0xff] }
0x1661   :  { %v5066_v36 = vpop.f32.mrf.mxu2  ;;  %10611 = vmatmul.msk.bf16.gmra.mxu1 %vm213_vm0, %v4867_v23 }
0x1662   :  { %v5075_v48 = vpack.c.bf16 %v5066_v36, %v5064_v14  ;;  %6201 = vmatpush.bf16.msrb.mxu0 %v11528_v15 }
0x1664   :  { %10662 = vmatmul.msk.bf16.gmra.mxu3 %vm213_vm0, %v5075_v48 }
0x1666   :  { %5854 = vmatmul.bf16.gmra.mxu2 %v11517_v5  ;;  %v4845_v34 = vpop.f32.mrf.mxu0  ;;  %6202 = vmatpush.bf16.msrb.mxu0 %v11527_v33  ;;  %v11522_v33 = vld [vmem:[#allocation5 + $0x1f0] sm:$0x30] }
0x1667   :  { %v4740_v26 = vpop.f32.mrf.mxu3 }
0x1668   :  { %v14198_v24 = vadd.f32 %v4740_v26, %v14147_v62  ;;  %v11518_v62 = vld [vmem:[#allocation5 + $0x1d0] sm:$0xff] }
0x1669   :  { %v5442_v30 = vpop.f32.mrf.mxu2  ;;  %5257 = vmatmul.bf16.gmra.mxu0 %v11493_v11 }
0x166a   :  { %6203 = vmatpush.bf16.msrb.mxu0 %v11526_v59 }
0x166e   :  { %v4847_v18 = vpop.f32.mrf.mxu0  ;;  %6204 = vmatpush.bf16.msrb.mxu0 %v11525_v50 }
0x166f   :  { %v4742_v21 = vpop.f32.mrf.mxu3  ;;  %v4868_v43 = vpack.c.bf16 %v4847_v18, %v4845_v34  ;;  %v11521_v34 = vld [vmem:[#allocation5 + $0x1e8] sm:$0xff] }
0x1670   :  { %v14202_v55 = vadd.f32 %v4742_v21, %v4553_v22  ;;  %v11515_v22 = vld [vmem:[#allocation7 + $0x78] sm:$0xff] }
0x1671   :  { %v5444_v9 = vpop.f32.mrf.mxu2  ;;  %10612 = vmatmul.msk.bf16.gmra.mxu1 %vm213_vm0, %v4868_v43  ;;  %v10830_v43 = vld [vmem:[#allocation5 + $0x1f0] sm:$0xf] }
0x1672   :  { %v5477_v61 = vpack.c.bf16 %v5444_v9, %v5442_v30  ;;  %5732 = vmatpush.bf16.msra.mxu1 %v11515_v22  ;;  %v10831_v42 = vor.u32 %v11522_v33, %v10830_v43  ;;  %v11514_v22 = vld [vmem:[#allocation7 + $0x70] sm:$0xff] }
0x1674   :  { %10750 = vmatmul.msk.bf16.vlgmr.msrb.gmra.mxu3 %vm213_vm0, %v5477_v61 }
0x1675   :  { %10958 = vmatpush.bf16.xpose.msk.msrb.mxu3 %vm14001_vm12, %v11880_v44 }
0x1676   :  { %5859 = vmatmul.bf16.gmra.mxu2 %v11518_v62  ;;  %v4850_v1 = vpop.f32.mrf.mxu0  ;;  %5733 = vmatpush.bf16.msra.mxu1 %v11514_v22 }
0x1677   :  { %v4745_v10 = vpop.f32.mrf.mxu3 }
0x1678   :  { %v14210_v13 = vadd.f32 %v4745_v10, %v14161_v49 }
0x1679   :  { %v5447_v29 = vpop.f32.mrf.mxu2  ;;  %5262 = vmatmul.bf16.gmra.mxu0 %v11494_v56  ;;  %v11509_v56 = vld [vmem:[#allocation5 + $0x198] sm:$0xff] }
0x167d   :  { %10960 = vmatpush.bf16.xpose.msk.msrb.mxu3 %vm13956_vm6, %v11880_v44 }
0x167e   :  { %v4852_v35 = vpop.f32.mrf.mxu0 }
0x167f   :  { %v4747_v3 = vpop.f32.mrf.mxu3  ;;  %v4869_v2 = vpack.c.bf16 %v4852_v35, %v4850_v1 }
0x1680   :  { %v14216_v57 = vadd.f32 %v4747_v3, %v4558_v20 }
0x1681   :  { %v5449_v7 = vpop.f32.mrf.mxu2  ;;  %10613 = vmatmul.msk.bf16.gmra.mxu1 %vm213_vm0, %v4869_v2 }
0x1682   :  { %v5478_v49 = vpack.c.bf16 %v5449_v7, %v5447_v29 }
0x1684   :  { %10751 = vmatmul.msk.bf16.gmra.mxu3 %vm213_vm0, %v5478_v49 }
0x1686   :  { %5864 = vmatmul.bf16.gmra.mxu2 %v11519_v39  ;;  %v4855_v32 = vpop.f32.mrf.mxu0  ;;  %v11510_v39 = vld [vmem:[#allocation5 + $0x1a0] sm:$0xff] }
0x1687   :  { %v5123_v41 = vpop.f32.mrf.mxu3 }
0x1689   :  { %v5452_v52 = vpop.f32.mrf.mxu2  ;;  %5267 = vmatmul.bf16.gmra.mxu0 %v10690_v17 }
0x168e   :  { %v4857_v0 = vpop.f32.mrf.mxu0 }
0x168f   :  { %v4870_v37 = vpack.c.bf16 %v4857_v0, %v4855_v32  ;;  %v5125_v36 = vpop.f32.mrf.mxu3 }
0x1691   :  { %v5454_v14 = vpop.f32.mrf.mxu2  ;;  %10614 = vmatmul.msk.bf16.gmra.mxu1 %vm213_vm0, %v4870_v37 }
0x1692   :  { %v5479_v40 = vpack.c.bf16 %v5454_v14, %v5452_v52 }
0x1694   :  { %10752 = vmatmul.msk.bf16.gmra.mxu3 %vm213_vm0, %v5479_v40 }
0x1696   :  { %5869 = vmatmul.bf16.gmra.mxu2 %v11520_v8  ;;  %v4860_v23 = vpop.f32.mrf.mxu0 }
0x1697   :  { %v5128_v26 = vpop.f32.mrf.mxu3 }
0x1699   :  { %v5457_v6 = vpop.f32.mrf.mxu2  ;;  %5645 = vmatmul.bf16.vlgmr.msra.gmra.mxu0 %v11507_v58 }
0x169a   :  { %10990 = vmatpush.bf16.xpose.msk.msra.mxu0 %vm14001_vm12, %v11880_v44 }
0x169e   :  { %v4862_v48 = vpop.f32.mrf.mxu0 }
0x169f   :  { %v4871_v5 = vpack.c.bf16 %v4862_v48, %v4860_v23  ;;  %v5130_v18 = vpop.f32.mrf.mxu3 }
0x16a1   :  { %v5459_v38 = vpop.f32.mrf.mxu2  ;;  %10615 = vmatmul.msk.bf16.gmra.mxu1 %vm213_vm0, %v4871_v5 }
0x16a2   :  { %v5480_v11 = vpack.c.bf16 %v5459_v38, %v5457_v6  ;;  %10992 = vmatpush.bf16.xpose.msk.msra.mxu0 %vm13956_vm6, %v11880_v44 }
0x16a4   :  { %10753 = vmatmul.msk.bf16.gmra.mxu3 %vm213_vm0, %v5480_v11 }
0x16a6   :  { %5874 = vmatmul.bf16.gmra.mxu2 %v11521_v34  ;;  %v5238_v30 = vpop.f32.mrf.mxu0 }
0x16a7   :  { %v5133_v59 = vpop.f32.mrf.mxu3 }
0x16a9   :  { %v5462_v15 = vpop.f32.mrf.mxu2  ;;  %5650 = vmatmul.bf16.gmra.mxu0 %v11508_v19 }
0x16ae   :  { %v5240_v21 = vpop.f32.mrf.mxu0 }
0x16af   :  { %v5273_v9 = vpack.c.bf16 %v5240_v21, %v5238_v30  ;;  %v5135_v50 = vpop.f32.mrf.mxu3 }
0x16b1   :  { %v5464_v61 = vpop.f32.mrf.mxu2  ;;  %10703 = vmatmul.msk.bf16.vlgmr.msrb.gmra.mxu1 %vm213_vm0, %v5273_v9 }
0x16b2   :  { %v5481_v62 = vpack.c.bf16 %v5464_v61, %v5462_v15 }
0x16b4   :  { %10754 = vmatmul.msk.bf16.gmra.mxu3 %vm213_vm0, %v5481_v62 }
0x16b6   :  { %5879 = vmatmul.bf16.gmra.mxu2 %v10831_v42  ;;  %v5243_v1 = vpop.f32.mrf.mxu0 }
0x16b7   :  { %v5138_v49 = vpop.f32.mrf.mxu3 }
0x16b9   :  { %v5467_v10 = vpop.f32.mrf.mxu2  ;;  %5655 = vmatmul.bf16.gmra.mxu0 %v11509_v56 }
0x16be   :  { %v4919_v29 = vpop.f32.mrf.mxu1  ;;  %v5245_v63 = vpop.f32.mrf.mxu0 }
0x16bf   :  { %v4954_v20 = vadd.f32 %v4919_v29, %v14145_v45  ;;  %v5274_v35 = vpack.c.bf16 %v5245_v63, %v5243_v1  ;;  %v5140_v45 = vpop.f32.mrf.mxu3 }
0x16c1   :  { %v5469_v3 = vpop.f32.mrf.mxu2  ;;  %10704 = vmatmul.msk.bf16.gmra.mxu1 %vm213_vm0, %v5274_v35  ;;  %v14234_v7 = vadd.f32 %v5123_v41, %v4954_v20  ;;  %v11513_v20 = vld [vmem:[#allocation5 + $0x1b8] sm:$0x30] }
0x16c2   :  { %v5482_v2 = vpack.c.bf16 %v5469_v3, %v5467_v10 }
0x16c4   :  { %10755 = vmatmul.msk.bf16.gmra.mxu3 %vm213_vm0, %v5482_v2 }
0x16c6   :  { %v4921_v31 = vpop.f32.mrf.mxu1  ;;  %v5248_v54 = vpop.f32.mrf.mxu0 }
0x16c7   :  { %v4955_v17 = vadd.f32 %v4921_v31, %v14153_v60  ;;  %v5143_v23 = vpop.f32.mrf.mxu3  ;;  %v11511_v60 = vld [vmem:[#allocation5 + $0x1a8] sm:$0xff] }
0x16c9   :  { %v5472_v32 = vpop.f32.mrf.mxu2  ;;  %5660 = vmatmul.bf16.gmra.mxu0 %v11510_v39  ;;  %v14238_v52 = vadd.f32 %v5125_v36, %v4955_v17 }
0x16ce   :  { %v4924_v0 = vpop.f32.mrf.mxu1  ;;  %v5250_v37 = vpop.f32.mrf.mxu0 }
0x16cf   :  { %v4956_v14 = vadd.f32 %v4924_v0, %v14159_v4  ;;  %v5275_v40 = vpack.c.bf16 %v5250_v37, %v5248_v54  ;;  %v5145_v4 = vpop.f32.mrf.mxu3 }
0x16d1   :  { %v5474_v8 = vpop.f32.mrf.mxu2  ;;  %10705 = vmatmul.msk.bf16.gmra.mxu1 %vm213_vm0, %v5275_v40  ;;  %v14242_v58 = vadd.f32 %v5128_v26, %v4956_v14 }
0x16d2   :  { %v5483_v41 = vpack.c.bf16 %v5474_v8, %v5472_v32 }
0x16d4   :  { %10756 = vmatmul.msk.bf16.gmra.mxu3 %vm213_vm0, %v5483_v41 }
0x16d6   :  { %v4926_v6 = vpop.f32.mrf.mxu1  ;;  %v5253_v48 = vpop.f32.mrf.mxu0 }
0x16d7   :  { %v4957_v36 = vadd.f32 %v4926_v6, %v14167_v47  ;;  %v5148_v43 = vpop.f32.mrf.mxu3  ;;  %v11512_v47 = vld [vmem:[#allocation5 + $0x1b0] sm:$0xff] }
0x16d9   :  { %v5850_v5 = vpop.f32.mrf.mxu2  ;;  %5665 = vmatmul.bf16.gmra.mxu0 %v11511_v60  ;;  %v14246_v38 = vadd.f32 %v5130_v18, %v4957_v36 }
0x16de   :  { %v4929_v11 = vpop.f32.mrf.mxu1  ;;  %v5255_v34 = vpop.f32.mrf.mxu0 }
0x16df   :  { %v4958_v19 = vadd.f32 %v4929_v11, %v14171_v16  ;;  %v5276_v30 = vpack.c.bf16 %v5255_v34, %v5253_v48  ;;  %v5150_v62 = vpop.f32.mrf.mxu3 }
0x16e1   :  { %v5852_v26 = vpop.f32.mrf.mxu2  ;;  %10706 = vmatmul.msk.bf16.gmra.mxu1 %vm213_vm0, %v5276_v30  ;;  %v14250_v21 = vadd.f32 %v5133_v59, %v4958_v19 }
0x16e2   :  { %v5885_v15 = vpack.c.bf16 %v5852_v26, %v5850_v5 }
0x16e4   :  { %10844 = vmatmul.msk.bf16.vlgmr.msra.gmra.mxu3 %vm213_vm0, %v5885_v15 }
0x16e5   :  { %11052 = vmatpush.bf16.xpose.msk.msra.mxu3 %vm14001_vm12, %v11880_v44 }
0x16e6   :  { %v4931_v18 = vpop.f32.mrf.mxu1  ;;  %v5258_v33 = vpop.f32.mrf.mxu0 }
0x16e7   :  { %v4959_v16 = vadd.f32 %v4931_v18, %v14175_v53  ;;  %v10783_v53 = vld [vmem:[#allocation5 + $0x1b8] sm:$0xf] }
0x16e8   :  { %v10784_v35 = vor.u32 %v11513_v20, %v10783_v53 }
0x16e9   :  { %v5855_v9 = vpop.f32.mrf.mxu2  ;;  %5670 = vmatmul.bf16.gmra.mxu0 %v11512_v47  ;;  %v14257_v61 = vadd.f32 %v5135_v50, %v4959_v16  ;;  %v5153_v50 = vpop.f32.mrf.mxu3 }
0x16ed   :  { %11054 = vmatpush.bf16.xpose.msk.msra.mxu3 %vm13956_vm6, %v11880_v44 }
0x16ee   :  { %v4934_v42 = vpop.f32.mrf.mxu1  ;;  %v5260_v59 = vpop.f32.mrf.mxu0 }
0x16ef   :  { %v4960_v56 = vadd.f32 %v4934_v42, %v14180_v12  ;;  %v5277_v1 = vpack.c.bf16 %v5260_v59, %v5258_v33 }
0x16f1   :  { %v5857_v10 = vpop.f32.mrf.mxu2  ;;  %10707 = vmatmul.msk.bf16.gmra.mxu1 %vm213_vm0, %v5277_v1  ;;  %v14264_v63 = vadd.f32 %v5138_v49, %v4960_v56  ;;  %v5155_v54 = vpop.f32.mrf.mxu3 }
0x16f2   :  { %v5886_v29 = vpack.c.bf16 %v5857_v10, %v5855_v9 }
0x16f4   :  { %10845 = vmatmul.msk.bf16.gmra.mxu3 %vm213_vm0, %v5886_v29 }
0x16f6   :  { %v4936_v3 = vpop.f32.mrf.mxu1  ;;  %v5263_v2 = vpop.f32.mrf.mxu0 }
0x16f7   :  { %v4961_v39 = vadd.f32 %v4936_v3, %v14184_v28 }
0x16f9   :  { %v5860_v31 = vpop.f32.mrf.mxu2  ;;  %5675 = vmatmul.bf16.gmra.mxu0 %v10784_v35  ;;  %v14268_v12 = vadd.f32 %v5140_v45, %v4961_v39  ;;  %v5531_v8 = vpop.f32.mrf.mxu3 }
0x16fe   :  { %v4939_v17 = vpop.f32.mrf.mxu1  ;;  %v5265_v32 = vpop.f32.mrf.mxu0 }
0x16ff   :  { %v4962_v49 = vadd.f32 %v4939_v17, %v14189_v27  ;;  %v5278_v0 = vpack.c.bf16 %v5265_v32, %v5263_v2 }
0x1701   :  { %v5862_v37 = vpop.f32.mrf.mxu2  ;;  %10708 = vmatmul.msk.bf16.gmra.mxu1 %vm213_vm0, %v5278_v0  ;;  %v14272_v40 = vadd.f32 %v5143_v23, %v4962_v49  ;;  %v5533_v48 = vpop.f32.mrf.mxu3 }
0x1702   :  { %v5887_v14 = vpack.c.bf16 %v5862_v37, %v5860_v31 }
0x1704   :  { %10846 = vmatmul.msk.bf16.gmra.mxu3 %vm213_vm0, %v5887_v14 }
0x1706   :  { %v4941_v28 = vpop.f32.mrf.mxu1  ;;  %v5268_v41 = vpop.f32.mrf.mxu0 }
0x1707   :  { %v4963_v45 = vadd.f32 %v4941_v28, %v14193_v46 }
0x1709   :  { %v5865_v60 = vpop.f32.mrf.mxu2  ;;  %v14276_v6 = vadd.f32 %v5145_v4, %v4963_v45  ;;  %v5536_v30 = vpop.f32.mrf.mxu3 }
0x170e   :  { %v4944_v36 = vpop.f32.mrf.mxu1  ;;  %v5270_v27 = vpop.f32.mrf.mxu0 }
0x170f   :  { %v4964_v5 = vadd.f32 %v4944_v36, %v14198_v24  ;;  %v5279_v11 = vpack.c.bf16 %v5270_v27, %v5268_v41 }
0x1711   :  { %v5867_v34 = vpop.f32.mrf.mxu2  ;;  %10709 = vmatmul.msk.bf16.gmra.mxu1 %vm213_vm0, %v5279_v11  ;;  %v14280_v19 = vadd.f32 %v5148_v43, %v4964_v5  ;;  %v5538_v47 = vpop.f32.mrf.mxu3 }
0x1712   :  { %v5888_v23 = vpack.c.bf16 %v5867_v34, %v5865_v60 }
0x1714   :  { %10847 = vmatmul.msk.bf16.gmra.mxu3 %vm213_vm0, %v5888_v23  ;;  %v11541_v23 = vld [vmem:[#allocation5] sm:$0xff] }
0x1716   :  { %v4946_v26 = vpop.f32.mrf.mxu1  ;;  %v5646_v46 = vpop.f32.mrf.mxu0 }
0x1717   :  { %v4965_v4 = vadd.f32 %v4946_v26, %v14202_v55 }
0x1719   :  { %v5870_v15 = vpop.f32.mrf.mxu2  ;;  %v14284_v22 = vadd.f32 %v5150_v62, %v4965_v4  ;;  %v5541_v59 = vpop.f32.mrf.mxu3 }
0x171e   :  { %v4949_v18 = vpop.f32.mrf.mxu1  ;;  %v5648_v24 = vpop.f32.mrf.mxu0 }
0x171f   :  { %v4966_v33 = vadd.f32 %v4949_v18, %v14210_v13  ;;  %v5681_v16 = vpack.c.bf16 %v5648_v24, %v5646_v46 }
0x1721   :  { %v5872_v9 = vpop.f32.mrf.mxu2  ;;  %10797 = vmatmul.msk.bf16.vlgmr.msra.gmra.mxu1 %vm213_vm0, %v5681_v16  ;;  %v14288_v42 = vadd.f32 %v5153_v50, %v4966_v33  ;;  %v5543_v29 = vpop.f32.mrf.mxu3  ;;  %v11542_v16 = vld [vmem:[#allocation5 + $0x8] sm:$0xff] }
0x1722   :  { %v5889_v43 = vpack.c.bf16 %v5872_v9, %v5870_v15 }
0x1724   :  { %10848 = vmatmul.msk.bf16.gmra.mxu3 %vm213_vm0, %v5889_v43 }
0x1726   :  { %v4951_v56 = vpop.f32.mrf.mxu1  ;;  %v5651_v55 = vpop.f32.mrf.mxu0 }
0x1727   :  { %v4967_v62 = vadd.f32 %v4951_v56, %v14216_v57 }
0x1729   :  { %v5875_v1 = vpop.f32.mrf.mxu2  ;;  %v14292_v10 = vadd.f32 %v5155_v54, %v4967_v62  ;;  %v5546_v39 = vpop.f32.mrf.mxu3 }
0x172e   :  { %v5327_v53 = vpop.f32.mrf.mxu1  ;;  %v5653_v13 = vpop.f32.mrf.mxu0 }
0x172f   :  { %v5362_v20 = vadd.f32 %v5327_v53, %v14234_v7  ;;  %v5682_v35 = vpack.c.bf16 %v5653_v13, %v5651_v55  ;;  %v11543_v13 = vld [vmem:[#allocation5 + $0x10] sm:$0xff] }
0x1731   :  { %v5877_v3 = vpop.f32.mrf.mxu2  ;;  %10798 = vmatmul.msk.bf16.gmra.mxu1 %vm213_vm0, %v5682_v35  ;;  %v14296_v2 = vadd.f32 %v5531_v8, %v5362_v20  ;;  %v5548_v49 = vpop.f32.mrf.mxu3 }
0x1732   :  { %v5890_v50 = vpack.c.bf16 %v5877_v3, %v5875_v1 }
0x1734   :  { %10849 = vmatmul.msk.bf16.gmra.mxu3 %vm213_vm0, %v5890_v50 }
0x1736   :  { %v5329_v31 = vpop.f32.mrf.mxu1  ;;  %v5656_v57 = vpop.f32.mrf.mxu0 }
0x1737   :  { %v5363_v54 = vadd.f32 %v5329_v31, %v14238_v52 }
0x1739   :  { %v5880_v17 = vpop.f32.mrf.mxu2  ;;  %v14300_v32 = vadd.f32 %v5533_v48, %v5363_v54  ;;  %v5551_v45 = vpop.f32.mrf.mxu3 }
0x173e   :  { %v5332_v0 = vpop.f32.mrf.mxu1  ;;  %v5658_v7 = vpop.f32.mrf.mxu0 }
0x173f   :  { %v5364_v37 = vadd.f32 %v5332_v0, %v14242_v58  ;;  %v5683_v14 = vpack.c.bf16 %v5658_v7, %v5656_v57 }
0x1741   :  { %v5882_v28 = vpop.f32.mrf.mxu2  ;;  %10799 = vmatmul.msk.bf16.gmra.mxu1 %vm213_vm0, %v5683_v14  ;;  %v14304_v41 = vadd.f32 %v5536_v30, %v5364_v37  ;;  %v5553_v27 = vpop.f32.mrf.mxu3 }
0x1742   :  { %v5891_v8 = vpack.c.bf16 %v5882_v28, %v5880_v17 }
0x1744   :  { %10850 = vmatmul.msk.bf16.gmra.mxu3 %vm213_vm0, %v5891_v8 }
0x1746   :  { %v5334_v60 = vpop.f32.mrf.mxu1  ;;  %v5661_v52 = vpop.f32.mrf.mxu0 }
0x1747   :  { %v5365_v48 = vadd.f32 %v5334_v60, %v14246_v38 }
0x1749   :  { %v14308_v36 = vadd.f32 %v5538_v47, %v5365_v48  ;;  %v5556_v26 = vpop.f32.mrf.mxu3 }
0x174e   :  { %v5337_v5 = vpop.f32.mrf.mxu1  ;;  %v5663_v11 = vpop.f32.mrf.mxu0 }
0x174f   :  { %v5366_v58 = vadd.f32 %v5337_v5, %v14250_v21  ;;  %v5684_v34 = vpack.c.bf16 %v5663_v11, %v5661_v52 }
0x1751   :  { %10800 = vmatmul.msk.bf16.gmra.mxu1 %vm213_vm0, %v5684_v34  ;;  %v14312_v30 = vadd.f32 %v5541_v59, %v5366_v58  ;;  %v5558_v47 = vpop.f32.mrf.mxu3  ;;  %v11546_v58 = vld [vmem:[#allocation5 + $0x28] sm:$0xff] }
0x1754   :  { %6994 = vmatmul.bf16.vlgmr.msrb.gmra.mxu3 %v11541_v23 }
0x1755   :  { %11146 = vmatpush.bf16.xpose.msk.msrb.mxu3 %vm14001_vm12, %v11880_v44 }
0x1756   :  { %v5339_v38 = vpop.f32.mrf.mxu1  ;;  %v5666_v46 = vpop.f32.mrf.mxu0 }
0x1757   :  { %v5367_v4 = vadd.f32 %v5339_v38, %v14257_v61 }
0x1759   :  { %v14318_v15 = vadd.f32 %v5543_v29, %v5367_v4  ;;  %v5561_v43 = vpop.f32.mrf.mxu3  ;;  %v11547_v4 = vld [vmem:[#allocation5 + $0x30] sm:$0x30] }
0x175d   :  { %11148 = vmatpush.bf16.xpose.msk.msrb.mxu3 %vm13956_vm6, %v11880_v44 }
0x175e   :  { %v5342_v21 = vpop.f32.mrf.mxu1  ;;  %v5668_v18 = vpop.f32.mrf.mxu0 }
0x175f   :  { %v5368_v24 = vadd.f32 %v5342_v21, %v14264_v63  ;;  %v5685_v33 = vpack.c.bf16 %v5668_v18, %v5666_v46 }
0x1761   :  { %10801 = vmatmul.msk.bf16.gmra.mxu1 %vm213_vm0, %v5685_v33  ;;  %v14325_v9 = vadd.f32 %v5546_v39, %v5368_v24  ;;  %v5563_v62 = vpop.f32.mrf.mxu3 }
0x1764   :  { %6999 = vmatmul.bf16.gmra.mxu3 %v11542_v16 }
0x1766   :  { %v5344_v61 = vpop.f32.mrf.mxu1  ;;  %v5671_v59 = vpop.f32.mrf.mxu0 }
0x1767   :  { %v5369_v56 = vadd.f32 %v5344_v61, %v14268_v12 }
0x1769   :  { %v14328_v55 = vadd.f32 %v5548_v49, %v5369_v56  ;;  %v5939_v35 = vpop.f32.mrf.mxu3 }
0x176e   :  { %v5347_v1 = vpop.f32.mrf.mxu1  ;;  %v5673_v29 = vpop.f32.mrf.mxu0 }
0x176f   :  { %v5370_v53 = vadd.f32 %v5347_v1, %v14272_v40  ;;  %v5686_v63 = vpack.c.bf16 %v5673_v29, %v5671_v59  ;;  %v11544_v40 = vld [vmem:[#allocation5 + $0x18] sm:$0xff]  ;;  %v11559_v1 = vld [vmem:[#allocation5 + $0x70] sm:$0xff] }
0x1771   :  { %10802 = vmatmul.msk.bf16.gmra.mxu1 %vm213_vm0, %v5686_v63  ;;  %v14332_v20 = vadd.f32 %v5551_v45, %v5370_v53  ;;  %v5941_v49 = vpop.f32.mrf.mxu3  ;;  %v11545_v45 = vld [vmem:[#allocation5 + $0x20] sm:$0xff] }
0x1774   :  { %7004 = vmatmul.bf16.gmra.mxu3 %v11543_v13 }
0x1776   :  { %v5349_v3 = vpop.f32.mrf.mxu1  ;;  %v5676_v50 = vpop.f32.mrf.mxu0 }
0x1777   :  { %v5371_v39 = vadd.f32 %v5349_v3, %v14276_v6 }
0x1779   :  { %v14335_v12 = vadd.f32 %v5553_v27, %v5371_v39  ;;  %v5944_v14 = vpop.f32.mrf.mxu3 }
0x177e   :  { %v5352_v31 = vpop.f32.mrf.mxu1  ;;  %v5678_v57 = vpop.f32.mrf.mxu0 }
0x177f   :  { %v5372_v54 = vadd.f32 %v5352_v31, %v14280_v19  ;;  %v5687_v17 = vpack.c.bf16 %v5678_v57, %v5676_v50  ;;  %v11560_v50 = vld [vmem:[#allocation5 + $0x78] sm:$0xff] }
0x1781   :  { %10803 = vmatmul.msk.bf16.gmra.mxu1 %vm213_vm0, %v5687_v17  ;;  %v14339_v0 = vadd.f32 %v5556_v26, %v5372_v54  ;;  %v5946_v19 = vpop.f32.mrf.mxu3 }
0x1784   :  { %7009 = vmatmul.bf16.gmra.mxu3 %v11544_v40 }
0x1786   :  { %v5354_v7 = vpop.f32.mrf.mxu1 }
0x1787   :  { %v5373_v37 = vadd.f32 %v5354_v7, %v14284_v22 }
0x1789   :  { %v14342_v28 = vadd.f32 %v5558_v47, %v5373_v37  ;;  %v5949_v5 = vpop.f32.mrf.mxu3 }
0x178e   :  { %v5357_v6 = vpop.f32.mrf.mxu1 }
0x178f   :  { %v5374_v8 = vadd.f32 %v5357_v6, %v14288_v42 }
0x1791   :  { %v14345_v60 = vadd.f32 %v5561_v43, %v5374_v8  ;;  %v5951_v26 = vpop.f32.mrf.mxu3 }
0x1794   :  { %7014 = vmatmul.bf16.gmra.mxu3 %v11545_v45 }
0x1796   :  { %v5359_v52 = vpop.f32.mrf.mxu1 }
0x1797   :  { %v5375_v48 = vadd.f32 %v5359_v52, %v14292_v10  ;;  %v10955_v10 = vld [vmem:[#allocation5 + $0x30] sm:$0xf] }
0x1798   :  { %v10956_v18 = vor.u32 %v11547_v4, %v10955_v10 }
0x1799   :  { %v14348_v27 = vadd.f32 %v5563_v62, %v5375_v48  ;;  %v5954_v24 = vpop.f32.mrf.mxu3 }
0x179e   :  { %v5735_v11 = vpop.f32.mrf.mxu1 }
0x179f   :  { %v5770_v22 = vadd.f32 %v5735_v11, %v14296_v2 }
0x17a1   :  { %v14351_v34 = vadd.f32 %v5939_v35, %v5770_v22  ;;  %v5956_v59 = vpop.f32.mrf.mxu3  ;;  %v11562_v22 = vld [vmem:[#allocation5 + $0x88] sm:$0xff] }
0x17a4   :  { %7019 = vmatmul.bf16.gmra.mxu3 %v11546_v58 }
0x17a6   :  { %v5737_v23 = vpop.f32.mrf.mxu1 }
0x17a7   :  { %v5771_v42 = vadd.f32 %v5737_v23, %v14300_v32 }
0x17a9   :  { %v14354_v38 = vadd.f32 %v5941_v49, %v5771_v42  ;;  %v5959_v53 = vpop.f32.mrf.mxu3 }
0x17ab   :  { %v5988_v46 = vadd.f32 %v14354_v38, %v14351_v34 }
0x17ae   :  { %v5740_v47 = vpop.f32.mrf.mxu1 }
0x17af   :  { %v5772_v21 = vadd.f32 %v5740_v47, %v14304_v41 }
0x17b1   :  { %v14359_v2 = vadd.f32 %v5944_v14, %v5772_v21  ;;  %v5961_v39 = vpop.f32.mrf.mxu3  ;;  %v11561_v14 = vld [vmem:[#allocation5 + $0x80] sm:$0xff] }
0x17b3   :  { %v5989_v33 = vadd.f32 %v5988_v46, %v14359_v2 }
0x17b4   :  { %7024 = vmatmul.bf16.gmra.mxu3 %v10956_v18 }
0x17b6   :  { %v5742_v16 = vpop.f32.mrf.mxu1 }
0x17b7   :  { %v5773_v32 = vadd.f32 %v5742_v16, %v14308_v36 }
0x17b9   :  { %v14363_v43 = vadd.f32 %v5946_v19, %v5773_v32  ;;  %v5964_v40 = vpop.f32.mrf.mxu3 }
0x17bb   :  { %v5990_v61 = vadd.f32 %v5989_v33, %v14363_v43 }
0x17be   :  { %v5745_v56 = vpop.f32.mrf.mxu1 }
0x17bf   :  { %v5774_v62 = vadd.f32 %v5745_v56, %v14312_v30  ;;  %v11564_v56 = vld [vmem:[#allocation5 + $0x98] sm:$0xff] }
0x17c1   :  { %v14367_v41 = vadd.f32 %v5949_v5, %v5774_v62 }
0x17c3   :  { %v5991_v29 = vadd.f32 %v5990_v61, %v14367_v41 }
0x17c4   :  { %7370 = vmatmul.bf16.vlgmr.msra.gmra.mxu3 %v11559_v1 }
0x17c5   :  { %11240 = vmatpush.bf16.xpose.msk.msra.mxu3 %vm14001_vm12, %v11880_v44 }
0x17c6   :  { %v5747_v36 = vpop.f32.mrf.mxu1 }
0x17c7   :  { %v5775_v63 = vadd.f32 %v5747_v36, %v14318_v15 }
0x17c9   :  { %v14374_v13 = vadd.f32 %v5951_v26, %v5775_v63  ;;  %v11049_v63 = vld [vmem:[#allocation5 + $0xa0] sm:$0xf] }
0x17cb   :  { %v5992_v35 = vadd.f32 %v5991_v29, %v14374_v13 }
0x17cd   :  { %11242 = vmatpush.bf16.xpose.msk.msra.mxu3 %vm13956_vm6, %v11880_v44 }
0x17ce   :  { %v5750_v30 = vpop.f32.mrf.mxu1 }
0x17cf   :  { %v5776_v3 = vadd.f32 %v5750_v30, %v14325_v9  ;;  %v5966_v9 = vpop.f32.mrf.mxu3 }
0x17d1   :  { %v14381_v31 = vadd.f32 %v5954_v24, %v5776_v3 }
0x17d3   :  { %v5993_v57 = vadd.f32 %v5992_v35, %v14381_v31  ;;  %v11565_v35 = vld [vmem:[#allocation5 + $0xa0] sm:$0x30] }
0x17d4   :  { %7375 = vmatmul.bf16.gmra.mxu3 %v11560_v50  ;;  %v11050_v30 = vor.u32 %v11565_v35, %v11049_v63 }
0x17d6   :  { %v5752_v54 = vpop.f32.mrf.mxu1 }
0x17d7   :  { %v5777_v15 = vadd.f32 %v5752_v54, %v14328_v55  ;;  %v5969_v5 = vpop.f32.mrf.mxu3 }
0x17d9   :  { %v5981_v17 = vadd.f32 %v5956_v59, %v5777_v15 }
0x17db   :  { %v5994_v49 = vadd.f32 %v5993_v57, %v5981_v17 }
0x17de   :  { %v5755_v7 = vpop.f32.mrf.mxu1 }
0x17df   :  { %v5778_v37 = vadd.f32 %v5755_v7, %v14332_v20  ;;  %v5971_v26 = vpop.f32.mrf.mxu3 }
0x17e1   :  { %v5982_v6 = vadd.f32 %v5959_v53, %v5778_v37 }
0x17e3   :  { %v5995_v8 = vadd.f32 %v5994_v49, %v5982_v6 }
0x17e4   :  { %7380 = vmatmul.bf16.gmra.mxu3 %v11561_v14 }
0x17e6   :  { %v5757_v45 = vpop.f32.mrf.mxu1 }
0x17e7   :  { %v5779_v19 = vadd.f32 %v5757_v45, %v14335_v12  ;;  %v11563_v12 = vld [vmem:[#allocation5 + $0x90] sm:$0xff]  ;;  %v14390_v21 = vpop.f32.mrf.mxu3 }
0x17e9   :  { %v5983_v52 = vadd.f32 %v5961_v39, %v5779_v19 }
0x17eb   :  { %v5996_v48 = vadd.f32 %v5995_v8, %v5983_v52 }
0x17ee   :  { %v5760_v11 = vpop.f32.mrf.mxu1 }
0x17ef   :  { %v5780_v55 = vadd.f32 %v5760_v11, %v14339_v0  ;;  %v14393_v32 = vpop.f32.mrf.mxu3 }
0x17f1   :  { %v5984_v58 = vadd.f32 %v5964_v40, %v5780_v55 }
0x17f3   :  { %v5997_v23 = vadd.f32 %v5996_v48, %v5984_v58 }
0x17f4   :  { %7385 = vmatmul.bf16.gmra.mxu3 %v11562_v22 }
0x17f6   :  { %v5762_v42 = vpop.f32.mrf.mxu1 }
0x17f7   :  { %v5781_v20 = vadd.f32 %v5762_v42, %v14342_v28  ;;  %v14396_v1 = vpop.f32.mrf.mxu3  ;;  %v11577_v42 = vld [vmem:[#allocation5 + $0xe0] sm:$0xff] }
0x17f9   :  { %v5985_v46 = vadd.f32 %v5966_v9, %v5781_v20 }
0x17fb   :  { %v5998_v10 = vadd.f32 %v5997_v23, %v5985_v46 }
0x17fe   :  { %v5765_v4 = vpop.f32.mrf.mxu1 }
0x17ff   :  { %v5782_v47 = vadd.f32 %v5765_v4, %v14345_v60  ;;  %v14421_v49 = vpop.f32.mrf.mxu3 }
0x1801   :  { %v5986_v18 = vadd.f32 %v5969_v5, %v5782_v47 }
0x1803   :  { %v5999_v24 = vadd.f32 %v5998_v10, %v5986_v18 }
0x1804   :  { %7390 = vmatmul.bf16.gmra.mxu3 %v11563_v12 }
0x1806   :  { %v5767_v0 = vpop.f32.mrf.mxu1 }
0x1807   :  { %v5783_v33 = vadd.f32 %v5767_v0, %v14348_v27  ;;  %v14443_v19 = vpop.f32.mrf.mxu3 }
0x1809   :  { %v5987_v16 = vadd.f32 %v5971_v26, %v5783_v33 }
0x180b   :  { %v6001_v28 = vsel %vm6000_vm14, %v5987_v16, 0.0 }
0x180c   :  { %v6002_v61 = vadd.f32 %v6001_v28, %v5999_v24 }
0x180e   :  { %v6003_v59 = vrot.slane %v6002_v61, 4 }
0x1810   :  { %v6004_v62 = vadd.f32 %v6003_v59, %v6002_v61 }
0x1812   :  { %v6005_v60 = vrot.slane %v6004_v62, 2 }
0x1814   :  { %7395 = vmatmul.bf16.gmra.mxu3 %v11564_v56  ;;  %v6006_v29 = vadd.f32 %v6005_v60, %v6004_v62  ;;  %v7031_v56 = vpack.c.bf16 %v14421_v49, %v14396_v1 }
0x1816   :  { %v6007_v53 = vrot.slane %v6006_v29, 1 }
0x1818   :  { %v6008_v36 = vadd.f32 %v6007_v53, %v6006_v29 }
0x181a   :  { %v6009_v27 = vmul.f32 0.009259259, %v6008_v36 }
0x181c   :  { %v14399_v3 = vsub.f32 %v14351_v34, %v6009_v27  ;;  %v14402_v50 = vsub.f32 %v14354_v38, %v6009_v27  ;;  %v14405_v39 = vsub.f32 %v14359_v2, %v6009_v27  ;;  %v14408_v57 = vsub.f32 %v14363_v43, %v6009_v27 }
0x181d   :  { %v14411_v54 = vsub.f32 %v14367_v41, %v6009_v27  ;;  %v14414_v15 = vsub.f32 %v14374_v13, %v6009_v27  ;;  %v14417_v40 = vsub.f32 %v14381_v31, %v6009_v27  ;;  %v14419_v34 = vsub.f32 %v5981_v17, %v6009_v27 }
0x181e   :  { %v14423_v38 = vsub.f32 %v5982_v6, %v6009_v27  ;;  %v14425_v2 = vsub.f32 %v5983_v52, %v6009_v27  ;;  %v14427_v7 = vsub.f32 %v5984_v58, %v6009_v27  ;;  %v14429_v43 = vsub.f32 %v5985_v46, %v6009_v27  ;;  %v14455_v46 = vpop.f32.mrf.mxu3 }
0x181f   :  { %v14431_v41 = vsub.f32 %v5986_v18, %v6009_v27  ;;  %v6023_v37 = vsub.f32 %v5987_v16, %v6009_v27  ;;  %v6024_v13 = vmul.f32 %v14399_v3, %v14399_v3  ;;  %v6025_v31 = vmul.f32 %v14402_v50, %v14402_v50 }
0x1820   :  { %v6026_v17 = vmul.f32 %v14405_v39, %v14405_v39  ;;  %v6027_v6 = vmul.f32 %v14408_v57, %v14408_v57  ;;  %v6028_v9 = vmul.f32 %v14411_v54, %v14411_v54  ;;  %v6029_v52 = vmul.f32 %v14414_v15, %v14414_v15 }
0x1821   :  { %v6038_v14 = vadd.f32 %v6025_v31, %v6024_v13  ;;  %v6030_v5 = vmul.f32 %v14417_v40, %v14417_v40  ;;  %v6031_v55 = vmul.f32 %v14419_v34, %v14419_v34  ;;  %v6032_v58 = vmul.f32 %v14423_v38, %v14423_v38 }
0x1822   :  { %v6033_v20 = vmul.f32 %v14425_v2, %v14425_v2  ;;  %v6034_v10 = vmul.f32 %v14427_v7, %v14427_v7  ;;  %v6035_v47 = vmul.f32 %v14429_v43, %v14429_v43  ;;  %v6037_v18 = vmul.f32 %v6023_v37, %v6023_v37 }
0x1823   :  { %v6039_v8 = vadd.f32 %v6038_v14, %v6026_v17  ;;  %v6036_v24 = vmul.f32 %v14431_v41, %v14431_v41  ;;  %v7032_v1 = vpack.c.bf16 %v14455_v46, %v14443_v19 }
0x1824   :  { %7400 = vmatmul.bf16.gmra.mxu3 %v11050_v30  ;;  %v6050_v16 = vsel %vm6000_vm14, %v6037_v18, 0.0 }
0x1825   :  { %v6040_v45 = vadd.f32 %v6039_v8, %v6027_v6 }
0x1827   :  { %v6041_v48 = vadd.f32 %v6040_v45, %v6028_v9 }
0x1829   :  { %v6042_v11 = vadd.f32 %v6041_v48, %v6029_v52 }
0x182b   :  { %v6043_v22 = vadd.f32 %v6042_v11, %v6030_v5 }
0x182d   :  { %v6044_v23 = vadd.f32 %v6043_v22, %v6031_v55 }
0x182f   :  { %v6045_v26 = vadd.f32 %v6044_v23, %v6032_v58 }
0x1831   :  { %v6046_v4 = vadd.f32 %v6045_v26, %v6033_v20 }
0x1833   :  { %v6047_v12 = vadd.f32 %v6046_v4, %v6034_v10 }
0x1834   :  { %7774 = vmatmul.bf16.vlgmr.msrb.gmra.mxu3 %v11577_v42 }
0x1835   :  { %11334 = vmatpush.bf16.xpose.msk.msrb.mxu3 %vm14001_vm12, %v11880_v44  ;;  %v6048_v0 = vadd.f32 %v6047_v12, %v6035_v47 }
0x1837   :  { %v6049_v33 = vadd.f32 %v6048_v0, %v6036_v24 }
0x1839   :  { %v6051_v28 = vadd.f32 %v6050_v16, %v6049_v33 }
0x183b   :  { %v6052_v61 = vrot.slane %v6051_v28, 4 }
0x183d   :  { %11336 = vmatpush.bf16.xpose.msk.msrb.mxu3 %vm13956_vm6, %v11880_v44  ;;  %v6053_v59 = vadd.f32 %v6052_v61, %v6051_v28 }
0x183f   :  { %v6054_v62 = vrot.slane %v6053_v59, 2 }
0x1841   :  { %v6055_v60 = vadd.f32 %v6054_v62, %v6053_v59 }
0x1843   :  { %v6056_v29 = vrot.slane %v6055_v60, 1 }
0x1845   :  { %v6057_v53 = vadd.f32 %v6056_v29, %v6055_v60 }
0x1847   :  { %v6058_v36 = vmul.f32 0.009259259, %v6057_v53 }
0x1849   :  { %v6059_v63 = vadd.f32 1e-05, %v6058_v36 }
0x184b   :  { %11655 = vrsqrt.f32 %v6059_v63  ;;  %vm6066_vm1 = vweird.f32 %v6059_v63 }
0x1851   :  { %v11656_v35 = vpop.eup %11655 }
0x1852   :  { %v6061_v27 = vmul.f32 %v11656_v35, %v6059_v63  ;;  %vm6067_vm15 = vweird.f32 %v11656_v35 }
0x1853   :  { %vm6068_vm2 = vmor %vm6066_vm1, %vm6067_vm15 }
0x1854   :  { %v6062_v30 = vmul.f32 %v11656_v35, %v6061_v27 }
0x1856   :  { %v6063_v13 = vmul.f32 0.5, %v6062_v30 }
0x1858   :  { %v6064_v31 = vsub.f32 1.5, %v6063_v13 }
0x185a   :  { %v6065_v17 = vmul.f32 %v11656_v35, %v6064_v31 }
0x185c   :  { %v6069_v14 = vsel %vm6068_vm2, %v11656_v35, %v6065_v17 }
0x185d   :  { %v6083_v6 = vmul.f32 %v6069_v14, %v6023_v37  ;;  %v6070_v8 = vmul.f32 %v6069_v14, %v14399_v3  ;;  %v6071_v9 = vmul.f32 %v6069_v14, %v14402_v50  ;;  %v6072_v45 = vmul.f32 %v6069_v14, %v14405_v39 }
0x185e   :  { %v6073_v52 = vmul.f32 %v6069_v14, %v14408_v57  ;;  %v6074_v48 = vmul.f32 %v6069_v14, %v14411_v54  ;;  %v6075_v5 = vmul.f32 %v6069_v14, %v14414_v15  ;;  %v6076_v11 = vmul.f32 %v6069_v14, %v14417_v40 }
0x185f   :  { %vm6084_vm3 = vcmp.ge.f32.partialorder %v6070_v8, 0.0  ;;  %vm6085_vm4 = vcmp.ge.f32.partialorder %v6071_v9, 0.0  ;;  %v6098_v55 = vmul.f32 0.01, %v6070_v8  ;;  %v6099_v22 = vmul.f32 0.01, %v6071_v9 }
0x1860   :  { %vm6086_vm5 = vcmp.ge.f32.partialorder %v6072_v45, 0.0  ;;  %vm6087_vm7 = vcmp.ge.f32.partialorder %v6073_v52, 0.0  ;;  %v6100_v37 = vmul.f32 0.01, %v6072_v45  ;;  %v6101_v3 = vmul.f32 0.01, %v6073_v52 }
0x1861   :  { %v6112_v58 = vsel %vm6084_vm3, %v6070_v8, %v6098_v55  ;;  %v6113_v50 = vsel %vm6085_vm4, %v6071_v9, %v6099_v22  ;;  %vm6088_vm8 = vcmp.ge.f32.partialorder %v6074_v48, 0.0  ;;  %vm6089_vm9 = vcmp.ge.f32.partialorder %v6075_v5, 0.0 }
0x1862   :  { %v6126_v39 = vpack.c.bf16 %v6113_v50, %v6112_v58  ;;  %v6114_v57 = vsel %vm6086_vm5, %v6072_v45, %v6100_v37  ;;  %v6115_v23 = vsel %vm6087_vm7, %v6073_v52, %v6101_v3  ;;  %v6102_v54 = vmul.f32 0.01, %v6074_v48 }
0x1863   :  { %v6127_v42 = vpack.c.bf16 %v6115_v23, %v6114_v57  ;;  %v6103_v15 = vmul.f32 0.01, %v6075_v5  ;;  %v6077_v40 = vmul.f32 %v6069_v14, %v14419_v34  ;;  %vm6090_vm10 = vcmp.ge.f32.partialorder %v6076_v11, 0.0 }
0x1864   :  { %6205 = vmatmul.bf16.vlgmr.msrb.gmra.mxu0 %v6126_v39  ;;  %v6116_v20 = vsel %vm6088_vm8, %v6074_v48, %v6102_v54  ;;  %v6104_v26 = vmul.f32 0.01, %v6076_v11  ;;  %v6082_v0 = vmul.f32 %v6069_v14, %v14431_v41  ;;  %vm6097_vm15 = vcmp.ge.f32.partialorder %v6083_v6, 0.0 }
0x1865   :  { %v6117_v10 = vsel %vm6089_vm9, %v6075_v5, %v6103_v15  ;;  %vm6091_vm11 = vcmp.ge.f32.partialorder %v6077_v40, 0.0  ;;  %v6105_v4 = vmul.f32 0.01, %v6077_v40  ;;  %v6111_v16 = vmul.f32 0.01, %v6083_v6 }
0x1866   :  { %v6128_v47 = vpack.c.bf16 %v6117_v10, %v6116_v20  ;;  %v6118_v12 = vsel %vm6090_vm10, %v6076_v11, %v6104_v26  ;;  %vm6096_vm13 = vcmp.ge.f32.partialorder %v6082_v0, 0.0  ;;  %v6110_v33 = vmul.f32 0.01, %v6082_v0 }
0x1867   :  { %v6119_v18 = vsel %vm6091_vm11, %v6077_v40, %v6105_v4  ;;  %v6125_v61 = vsel %vm6097_vm15, %v6083_v6, %v6111_v16  ;;  %v6078_v59 = vmul.f32 %v6069_v14, %v14423_v38  ;;  %v6079_v62 = vmul.f32 %v6069_v14, %v14425_v2 }
0x1868   :  { %v6129_v24 = vpack.c.bf16 %v6119_v18, %v6118_v12  ;;  %v6124_v28 = vsel %vm6096_vm13, %v6082_v0, %v6110_v33  ;;  %v6080_v63 = vmul.f32 %v6069_v14, %v14427_v7  ;;  %v6081_v35 = vmul.f32 %v6069_v14, %v14429_v43 }
0x1869   :  { %v6132_v34 = vpack.c.bf16 %v6125_v61, %v6124_v28  ;;  %v6106_v60 = vmul.f32 0.01, %v6078_v59  ;;  %v6107_v29 = vmul.f32 0.01, %v6079_v62  ;;  %vm6092_vm1 = vcmp.ge.f32.partialorder %v6078_v59, 0.0 }
0x186a   :  { %vm6093_vm2 = vcmp.ge.f32.partialorder %v6079_v62, 0.0  ;;  %v6108_v27 = vmul.f32 0.01, %v6080_v63  ;;  %v6109_v30 = vmul.f32 0.01, %v6081_v35  ;;  %vm6094_vm3 = vcmp.ge.f32.partialorder %v6080_v63, 0.0 }
0x186b   :  { %v6120_v53 = vsel %vm6092_vm1, %v6078_v59, %v6106_v60  ;;  %v6121_v41 = vsel %vm6093_vm2, %v6079_v62, %v6107_v29  ;;  %vm6095_vm4 = vcmp.ge.f32.partialorder %v6081_v35, 0.0  ;;  %vm6241_vm5 = vcmask 523264  }
0x186c   :  { %v6130_v36 = vpack.c.bf16 %v6121_v41, %v6120_v53  ;;  %v6122_v13 = vsel %vm6094_vm3, %v6080_v63, %v6108_v27  ;;  %v6123_v38 = vsel %vm6095_vm4, %v6081_v35, %v6109_v30  ;;  %vm6267_vm7 = vcmask 519168  }
0x186d   :  { %v6131_v31 = vpack.c.bf16 %v6123_v38, %v6122_v13 }
0x1874   :  { %6210 = vmatmul.bf16.gmra.mxu0 %v6127_v42 }
0x1884   :  { %6215 = vmatmul.bf16.gmra.mxu0 %v6128_v47 }
0x1894   :  { %6220 = vmatmul.bf16.gmra.mxu0 %v6129_v24 }
0x18a4   :  { %6225 = vmatmul.bf16.gmra.mxu0 %v6130_v36 }
0x18b4   :  { %6230 = vmatmul.bf16.gmra.mxu0 %v6131_v31 }
0x18c4   :  { %6235 = vmatmul.bf16.gmra.mxu0 %v6132_v34 }
0x18e1   :  { %v6206_v2 = vpop.f32.mrf.mxu0 }
0x18e2   :  { %v6242_v11 = vsel %vm6241_vm5, %v6206_v2, 0.0 }
0x18e9   :  { %v6208_v17 = vpop.f32.mrf.mxu0 }
0x18ea   :  { %v6243_v14 = vsel %vm6241_vm5, %v6208_v17, 0.0 }
0x18eb   :  { %v6244_v22 = vadd.f32 %v6243_v14, %v6242_v11 }
0x18f1   :  { %v6211_v6 = vpop.f32.mrf.mxu0 }
0x18f2   :  { %v6245_v55 = vsel %vm6241_vm5, %v6211_v6, 0.0 }
0x18f3   :  { %v6246_v3 = vadd.f32 %v6245_v55, %v6244_v22 }
0x18f9   :  { %v6213_v8 = vpop.f32.mrf.mxu0 }
0x18fa   :  { %v6247_v37 = vsel %vm6241_vm5, %v6213_v8, 0.0 }
0x18fb   :  { %v6248_v50 = vadd.f32 %v6247_v37, %v6246_v3 }
0x1901   :  { %v6216_v9 = vpop.f32.mrf.mxu0 }
0x1902   :  { %v6249_v58 = vsel %vm6241_vm5, %v6216_v9, 0.0 }
0x1903   :  { %v6250_v57 = vadd.f32 %v6249_v58, %v6248_v50 }
0x1909   :  { %v6218_v45 = vpop.f32.mrf.mxu0 }
0x190a   :  { %v6251_v39 = vsel %vm6241_vm5, %v6218_v45, 0.0 }
0x190b   :  { %v6252_v42 = vadd.f32 %v6251_v39, %v6250_v57 }
0x1911   :  { %v6221_v52 = vpop.f32.mrf.mxu0 }
0x1912   :  { %v6253_v54 = vsel %vm6241_vm5, %v6221_v52, 0.0 }
0x1913   :  { %v6254_v40 = vadd.f32 %v6253_v54, %v6252_v42 }
0x1919   :  { %v6223_v48 = vpop.f32.mrf.mxu0 }
0x191a   :  { %v6255_v15 = vsel %vm6241_vm5, %v6223_v48, 0.0 }
0x191b   :  { %v6256_v26 = vadd.f32 %v6255_v15, %v6254_v40 }
0x1921   :  { %v14485_v7 = vpop.f32.mrf.mxu0 }
0x1922   :  { %v6257_v20 = vsel %vm6241_vm5, %v14485_v7, 0.0 }
0x1923   :  { %v6258_v4 = vadd.f32 %v6257_v20, %v6256_v26 }
0x1929   :  { %v14487_v43 = vpop.f32.mrf.mxu0 }
0x192a   :  { %v6259_v10 = vsel %vm6241_vm5, %v14487_v43, 0.0 }
0x192b   :  { %v6260_v18 = vadd.f32 %v6259_v10, %v6258_v4 }
0x1931   :  { %v14490_v5 = vpop.f32.mrf.mxu0 }
0x1932   :  { %v6261_v12 = vsel %vm6241_vm5, %v14490_v5, 0.0 }
0x1933   :  { %v6262_v0 = vadd.f32 %v6261_v12, %v6260_v18 }
0x1939   :  { %v6233_v23 = vpop.f32.mrf.mxu0 }
0x193a   :  { %v6263_v24 = vsel %vm6241_vm5, %v6233_v23, 0.0 }
0x193b   :  { %v6264_v16 = vadd.f32 %v6263_v24, %v6262_v0 }
0x1941   :  { %v6236_v47 = vpop.f32.mrf.mxu0 }
0x1942   :  { %v6265_v33 = vsel %vm6241_vm5, %v6236_v47, 0.0 }
0x1943   :  { %v6266_v28 = vadd.f32 %v6265_v33, %v6264_v16 }
0x1949   :  { %v6238_v61 = vpop.f32.mrf.mxu0 }
0x194a   :  { %v6268_v34 = vsel %vm6267_vm7, %v6238_v61, 0.0 }
0x194b   :  { %v6269_v59 = vadd.f32 %v6268_v34, %v6266_v28 }
0x194d   :  { %v6270_v62 = vrot.slane %v6269_v59, 4 }
0x194f   :  { %v6271_v60 = vadd.f32 %v6270_v62, %v6269_v59 }
0x1951   :  { %v6272_v29 = vrot.slane %v6271_v60, 2 }
0x1953   :  { %v6273_v53 = vadd.f32 %v6272_v29, %v6271_v60  ;;  %v11550_v29 = vld [vmem:[#allocation5 + $0x38] sm:$0xff] }
0x1954   :  { %7105 = vmatmul.bf16.vlgmr.msra.gmra.mxu0 %v11550_v29 }
0x1955   :  { %v6274_v41 = vrot.slane %v6273_v53, 1 }
0x1957   :  { %v6275_v36 = vadd.f32 %v6274_v41, %v6273_v53 }
0x1959   :  { %v6276_v63 = vmul.f32 0.009259259, %v6275_v36 }
0x195b   :  { %v14508_v35 = vsub.f32 %v6206_v2, %v6276_v63  ;;  %v14510_v27 = vsub.f32 %v6208_v17, %v6276_v63  ;;  %v14512_v30 = vsub.f32 %v6211_v6, %v6276_v63  ;;  %v14514_v13 = vsub.f32 %v6213_v8, %v6276_v63 }
0x195c   :  { %v14520_v14 = vsub.f32 %v6216_v9, %v6276_v63  ;;  %v14524_v55 = vsub.f32 %v6218_v45, %v6276_v63  ;;  %v14530_v22 = vsub.f32 %v6221_v52, %v6276_v63  ;;  %v14535_v58 = vsub.f32 %v6223_v48, %v6276_v63 }
0x195d   :  { %v6291_v38 = vmul.f32 %v14508_v35, %v14508_v35  ;;  %v6292_v31 = vmul.f32 %v14510_v27, %v14510_v27  ;;  %v6293_v11 = vmul.f32 %v14512_v30, %v14512_v30  ;;  %v6294_v2 = vmul.f32 %v14514_v13, %v14514_v13 }
0x195e   :  { %v6295_v37 = vmul.f32 %v14520_v14, %v14520_v14  ;;  %v6296_v45 = vmul.f32 %v14524_v55, %v14524_v55  ;;  %v14541_v57 = vsub.f32 %v14485_v7, %v6276_v63  ;;  %v6297_v52 = vmul.f32 %v14530_v22, %v14530_v22 }
0x195f   :  { %v6305_v17 = vsel %vm6241_vm5, %v6291_v38, 0.0  ;;  %v6306_v6 = vsel %vm6241_vm5, %v6292_v31, 0.0  ;;  %v6308_v9 = vsel %vm6241_vm5, %v6293_v11, 0.0  ;;  %v6310_v50 = vsel %vm6241_vm5, %v6294_v2, 0.0  ;;  %v11536_v11 = vld [vmem:[#allocation10 + $0x18] sm:$0xff] }
0x1960   :  { %v6307_v8 = vadd.f32 %v6306_v6, %v6305_v17  ;;  %v6312_v54 = vsel %vm6241_vm5, %v6295_v37, 0.0  ;;  %v14547_v15 = vsub.f32 %v14487_v43, %v6276_v63  ;;  %v6298_v48 = vmul.f32 %v14535_v58, %v14535_v58  ;;  %6470 = vmatpush.bf16.msrb.mxu1 %v11536_v11  ;;  %v11535_v6 = vld [vmem:[#allocation10 + $0x10] sm:$0xff]  ;;  %v11534_v37 = vld [vmem:[#allocation10 + $0x8] sm:$0xff] }
0x1961   :  { %v6314_v40 = vsel %vm6241_vm5, %v6296_v45, 0.0  ;;  %v14553_v26 = vsub.f32 %v14490_v5, %v6276_v63  ;;  %v6299_v7 = vmul.f32 %v14541_v57, %v14541_v57  ;;  %v6316_v10 = vsel %vm6241_vm5, %v6297_v52, 0.0 }
0x1962   :  { %v6309_v3 = vadd.f32 %v6308_v9, %v6307_v8  ;;  %v14558_v12 = vsub.f32 %v6233_v23, %v6276_v63  ;;  %v6300_v43 = vmul.f32 %v14547_v15, %v14547_v15  ;;  %v6318_v18 = vsel %vm6241_vm5, %v6298_v48, 0.0 }
0x1963   :  { %v14563_v0 = vsub.f32 %v6236_v47, %v6276_v63  ;;  %v6301_v5 = vmul.f32 %v14553_v26, %v14553_v26  ;;  %v6320_v33 = vsel %vm6241_vm5, %v6299_v7, 0.0  ;;  %v6290_v28 = vsub.f32 %v6238_v61, %v6276_v63 }
0x1964   :  { %v6311_v39 = vadd.f32 %v6310_v50, %v6309_v3  ;;  %v6302_v34 = vmul.f32 %v14558_v12, %v14558_v12  ;;  %v6322_v23 = vsel %vm6241_vm5, %v6300_v43, 0.0  ;;  %6471 = vmatpush.bf16.msrb.mxu1 %v11535_v6  ;;  %v11551_v3 = vld [vmem:[#allocation5 + $0x40] sm:$0xff]  ;;  %v11533_v50 = vld [vmem:[#allocation10] sm:$0xff] }
0x1965   :  { %v6303_v62 = vmul.f32 %v14563_v0, %v14563_v0  ;;  %v6324_v60 = vsel %vm6241_vm5, %v6301_v5, 0.0  ;;  %v6304_v53 = vmul.f32 %v6290_v28, %v6290_v28  ;;  %7110 = vmatmul.bf16.gmra.mxu0 %v11551_v3 }
0x1966   :  { %v6313_v42 = vadd.f32 %v6312_v54, %v6311_v39  ;;  %v6326_v41 = vsel %vm6241_vm5, %v6302_v34, 0.0  ;;  %v11558_v39 = vld [vmem:[#allocation7 + $0x18] sm:$0xff] }
0x1967   :  { %v6328_v61 = vsel %vm6241_vm5, %v6303_v62, 0.0  ;;  %v6330_v38 = vsel %vm6267_vm7, %v6304_v53, 0.0 }
0x1968   :  { %v6315_v20 = vadd.f32 %v6314_v40, %v6313_v42  ;;  %6472 = vmatpush.bf16.msrb.mxu1 %v11534_v37  ;;  %v11557_v42 = vld [vmem:[#allocation7 + $0x10] sm:$0xff] }
0x196a   :  { %v6317_v4 = vadd.f32 %v6316_v10, %v6315_v20  ;;  %v11552_v20 = vld [vmem:[#allocation5 + $0x48] sm:$0xff] }
0x196c   :  { %v6319_v24 = vadd.f32 %v6318_v18, %v6317_v4  ;;  %6473 = vmatpush.bf16.msrb.mxu1 %v11533_v50 }
0x196e   :  { %v6321_v16 = vadd.f32 %v6320_v33, %v6319_v24 }
0x1970   :  { %v6323_v59 = vadd.f32 %v6322_v23, %v6321_v16  ;;  %7191 = vmatpush.bf16.msra.mxu1 %v11558_v39 }
0x1972   :  { %v6325_v47 = vadd.f32 %v6324_v60, %v6323_v59  ;;  %v11553_v59 = vld [vmem:[#allocation5 + $0x50] sm:$0xff] }
0x1974   :  { %v6327_v36 = vadd.f32 %v6326_v41, %v6325_v47  ;;  %7192 = vmatpush.bf16.msra.mxu1 %v11557_v42 }
0x1975   :  { %7115 = vmatmul.bf16.gmra.mxu0 %v11552_v20 }
0x1976   :  { %v6329_v63 = vadd.f32 %v6328_v61, %v6327_v36 }
0x1978   :  { %v6331_v31 = vadd.f32 %v6330_v38, %v6329_v63 }
0x197a   :  { %v6332_v2 = vrot.slane %v6331_v31, 4 }
0x197c   :  { %v6333_v17 = vadd.f32 %v6332_v2, %v6331_v31  ;;  %v11554_v31 = vld [vmem:[#allocation5 + $0x58] sm:$0xff] }
0x197e   :  { %v6334_v8 = vrot.slane %v6333_v17, 2 }
0x1980   :  { %v6335_v9 = vadd.f32 %v6334_v8, %v6333_v17 }
0x1982   :  { %v6336_v45 = vrot.slane %v6335_v9, 1 }
0x1984   :  { %v6337_v52 = vadd.f32 %v6336_v45, %v6335_v9  ;;  %v11555_v9 = vld [vmem:[#allocation5 + $0x60] sm:$0xff] }
0x1985   :  { %7120 = vmatmul.bf16.gmra.mxu0 %v11553_v59 }
0x1986   :  { %v6338_v54 = vmul.f32 0.009259259, %v6337_v52  ;;  %v11556_v52 = vld [vmem:[#allocation5 + $0x68] sm:$0x30] }
0x1988   :  { %v6339_v48 = vadd.f32 1e-05, %v6338_v54 }
0x198a   :  { %11657 = vrsqrt.f32 %v6339_v48  ;;  %vm6346_vm9 = vweird.f32 %v6339_v48 }
0x1990   :  { %v11658_v40 = vpop.eup %11657 }
0x1991   :  { %v6341_v7 = vmul.f32 %v11658_v40, %v6339_v48  ;;  %vm6347_vm8 = vweird.f32 %v11658_v40 }
0x1992   :  { %vm6348_vm10 = vmor %vm6346_vm9, %vm6347_vm8 }
0x1993   :  { %v6342_v10 = vmul.f32 %v11658_v40, %v6341_v7 }
0x1995   :  { %v6343_v4 = vmul.f32 0.5, %v6342_v10  ;;  %7125 = vmatmul.bf16.gmra.mxu0 %v11554_v31 }
0x1997   :  { %v6344_v43 = vsub.f32 1.5, %v6343_v4 }
0x1999   :  { %v6345_v18 = vmul.f32 %v11658_v40, %v6344_v43 }
0x199b   :  { %v14577_v24 = vsel %vm6348_vm10, %v11658_v40, %v6345_v18 }
0x199c   :  { %v6363_v5 = vmul.f32 %v14577_v24, %v6290_v28  ;;  %v6350_v33 = vmul.f32 %v14577_v24, %v14508_v35  ;;  %v6351_v16 = vmul.f32 %v14577_v24, %v14510_v27  ;;  %v6362_v35 = vmul.f32 %v14577_v24, %v14563_v0 }
0x199d   :  { %v6352_v27 = vmul.f32 %v14577_v24, %v14512_v30  ;;  %v6353_v28 = vmul.f32 %v14577_v24, %v14514_v13  ;;  %v6354_v13 = vmul.f32 %v14577_v24, %v14520_v14  ;;  %v6355_v2 = vmul.f32 %v14577_v24, %v14524_v55  ;;  %v10987_v55 = vld [vmem:[#allocation5 + $0x68] sm:$0xf] }
0x199e   :  { %vm6364_vm11 = vcmp.ge.f32.partialorder %v6350_v33, 0.0  ;;  %vm6365_vm13 = vcmp.ge.f32.partialorder %v6351_v16, 0.0  ;;  %v6378_v34 = vmul.f32 0.01, %v6350_v33  ;;  %v6379_v23 = vmul.f32 0.01, %v6351_v16 }
0x199f   :  { %v6391_v29 = vmul.f32 0.01, %v6363_v5  ;;  %vm6377_vm15 = vcmp.ge.f32.partialorder %v6363_v5, 0.0  ;;  %vm6376_vm1 = vcmp.ge.f32.partialorder %v6362_v35, 0.0  ;;  %v6390_v53 = vmul.f32 0.01, %v6362_v35 }
0x19a0   :  { %v6392_v62 = vsel %vm6364_vm11, %v6350_v33, %v6378_v34  ;;  %v6393_v60 = vsel %vm6365_vm13, %v6351_v16, %v6379_v23  ;;  %v6380_v36 = vmul.f32 0.01, %v6352_v27  ;;  %v6381_v61 = vmul.f32 0.01, %v6353_v28 }
0x19a1   :  { %v6406_v47 = vpack.c.bf16 %v6393_v60, %v6392_v62  ;;  %v14594_v41 = vsel %vm6377_vm15, %v6363_v5, %v6391_v29  ;;  %v6404_v63 = vsel %vm6376_vm1, %v6362_v35, %v6390_v53  ;;  %vm6366_vm2 = vcmp.ge.f32.partialorder %v6352_v27, 0.0 }
0x19a2   :  { %vm6367_vm3 = vcmp.ge.f32.partialorder %v6353_v28, 0.0  ;;  %v6412_v38 = vpack.c.bf16 %v14594_v41, %v6404_v63  ;;  %v6394_v0 = vsel %vm6366_vm2, %v6352_v27, %v6380_v36  ;;  %v6382_v17 = vmul.f32 0.01, %v6354_v13 }
0x19a3   :  { %10899 = vmatmul.msk.bf16.vlgmr.msrb.gmra.mxu1 %vm6241_vm5, %v6406_v47  ;;  %v6395_v30 = vsel %vm6367_vm3, %v6353_v28, %v6381_v61  ;;  %v6383_v6 = vmul.f32 0.01, %v6355_v2  ;;  %vm6368_vm4 = vcmp.ge.f32.partialorder %v6354_v13, 0.0  ;;  %vm6369_vm8 = vcmp.ge.f32.partialorder %v6355_v2, 0.0 }
0x19a4   :  { %11099 = vmatpush.bf16.xpose.msk.msrb.mxu1 %vm14001_vm12, %v11880_v44  ;;  %v6407_v11 = vpack.c.bf16 %v6395_v30, %v6394_v0  ;;  %v6396_v8 = vsel %vm6368_vm4, %v6354_v13, %v6382_v17  ;;  %v6356_v45 = vmul.f32 %v14577_v24, %v14530_v22  ;;  %v6357_v14 = vmul.f32 %v14577_v24, %v14535_v58 }
0x19a5   :  { %v6397_v37 = vsel %vm6369_vm8, %v6355_v2, %v6383_v6  ;;  %7130 = vmatmul.bf16.gmra.mxu0 %v11555_v9  ;;  %v10988_v48 = vor.u32 %v11556_v52, %v10987_v55  ;;  %v6358_v20 = vmul.f32 %v14577_v24, %v14541_v57  ;;  %v6359_v22 = vmul.f32 %v14577_v24, %v14547_v15 }
0x19a6   :  { %v6408_v3 = vpack.c.bf16 %v6397_v37, %v6396_v8  ;;  %v6384_v50 = vmul.f32 0.01, %v6356_v45  ;;  %v6385_v39 = vmul.f32 0.01, %v6357_v14  ;;  %vm6370_vm9 = vcmp.ge.f32.partialorder %v6356_v45, 0.0 }
0x19a7   :  { %vm6371_vm10 = vcmp.ge.f32.partialorder %v6357_v14, 0.0  ;;  %v6386_v58 = vmul.f32 0.01, %v6358_v20  ;;  %v6387_v7 = vmul.f32 0.01, %v6359_v22  ;;  %vm6372_vm11 = vcmp.ge.f32.partialorder %v6358_v20, 0.0 }
0x19a8   :  { %v6398_v54 = vsel %vm6370_vm9, %v6356_v45, %v6384_v50  ;;  %v6399_v42 = vsel %vm6371_vm10, %v6357_v14, %v6385_v39  ;;  %vm6373_vm13 = vcmp.ge.f32.partialorder %v6359_v22, 0.0  ;;  %v6360_v18 = vmul.f32 %v14577_v24, %v14553_v26 }
0x19a9   :  { %v6409_v40 = vpack.c.bf16 %v6399_v42, %v6398_v54  ;;  %v6400_v10 = vsel %vm6372_vm11, %v6358_v20, %v6386_v58  ;;  %v6401_v4 = vsel %vm6373_vm13, %v6359_v22, %v6387_v7  ;;  %v6361_v5 = vmul.f32 %v14577_v24, %v14558_v12 }
0x19aa   :  { %v6410_v43 = vpack.c.bf16 %v6401_v4, %v6400_v10  ;;  %v6388_v33 = vmul.f32 0.01, %v6360_v18  ;;  %vm6374_vm15 = vcmp.ge.f32.partialorder %v6360_v18, 0.0 }
0x19ab   :  { %v6389_v57 = vmul.f32 0.01, %v6361_v5  ;;  %vm6375_vm1 = vcmp.ge.f32.partialorder %v6361_v5, 0.0 }
0x19ac   :  { %11101 = vmatpush.bf16.xpose.msk.msrb.mxu1 %vm13956_vm6, %v11880_v44  ;;  %v6402_v15 = vsel %vm6374_vm15, %v6360_v18, %v6388_v33 }
0x19ad   :  { %v6403_v16 = vsel %vm6375_vm1, %v6361_v5, %v6389_v57  ;;  %v11568_v57 = vld [vmem:[#allocation5 + $0xa8] sm:$0xff] }
0x19ae   :  { %v6411_v23 = vpack.c.bf16 %v6403_v16, %v6402_v15 }
0x19b3   :  { %10900 = vmatmul.msk.bf16.gmra.mxu1 %vm6241_vm5, %v6407_v11 }
0x19b5   :  { %7135 = vmatmul.bf16.gmra.mxu0 %v10988_v48 }
0x19c3   :  { %10901 = vmatmul.msk.bf16.gmra.mxu1 %vm6241_vm5, %v6408_v3 }
0x19d1   :  { %v7106_v34 = vpop.f32.mrf.mxu0 }
0x19d3   :  { %10902 = vmatmul.msk.bf16.gmra.mxu1 %vm6241_vm5, %v6409_v40 }
0x19d9   :  { %v7108_v59 = vpop.f32.mrf.mxu0 }
0x19da   :  { %v7141_v47 = vpack.c.bf16 %v7108_v59, %v7106_v34 }
0x19e2   :  { %v7111_v62 = vpop.f32.mrf.mxu0 }
0x19e3   :  { %10903 = vmatmul.msk.bf16.gmra.mxu1 %vm6241_vm5, %v6410_v43 }
0x19ea   :  { %v7113_v60 = vpop.f32.mrf.mxu0 }
0x19eb   :  { %v7142_v24 = vpack.c.bf16 %v7113_v60, %v7111_v62 }
0x19f2   :  { %v7116_v26 = vpop.f32.mrf.mxu0 }
0x19f3   :  { %10904 = vmatmul.msk.bf16.gmra.mxu1 %vm6241_vm5, %v6411_v23 }
0x19fa   :  { %v7118_v12 = vpop.f32.mrf.mxu0 }
0x19fb   :  { %v7143_v28 = vpack.c.bf16 %v7118_v12, %v7116_v26 }
0x1a02   :  { %v7121_v35 = vpop.f32.mrf.mxu0 }
0x1a03   :  { %10905 = vmatmul.msk.bf16.gmra.mxu1 %vm6241_vm5, %v6412_v38 }
0x1a0a   :  { %v7123_v41 = vpop.f32.mrf.mxu0 }
0x1a0b   :  { %v7144_v63 = vpack.c.bf16 %v7123_v41, %v7121_v35 }
0x1a12   :  { %v7126_v61 = vpop.f32.mrf.mxu0 }
0x1a13   :  { %11001 = vmatmul.msk.bf16.vlgmr.msra.gmra.mxu1 %vm213_vm0, %v7141_v47 }
0x1a14   :  { %11193 = vmatpush.bf16.xpose.msk.msra.mxu1 %vm14001_vm12, %v11880_v44 }
0x1a1a   :  { %v7128_v0 = vpop.f32.mrf.mxu0 }
0x1a1b   :  { %v7145_v11 = vpack.c.bf16 %v7128_v0, %v7126_v61 }
0x1a1c   :  { %11195 = vmatpush.bf16.xpose.msk.msra.mxu1 %vm13956_vm6, %v11880_v44 }
0x1a20   :  { %v14629_v29 = vpop.f32.mrf.mxu1 }
0x1a21   :  { %v6510_v39 = vsel %vm6241_vm5, %v14629_v29, 0.0 }
0x1a22   :  { %v7131_v31 = vpop.f32.mrf.mxu0 }
0x1a23   :  { %11002 = vmatmul.msk.bf16.gmra.mxu1 %vm213_vm0, %v7142_v24 }
0x1a28   :  { %v14632_v27 = vpop.f32.mrf.mxu1 }
0x1a29   :  { %v6511_v45 = vsel %vm6241_vm5, %v14632_v27, 0.0 }
0x1a2a   :  { %v7133_v17 = vpop.f32.mrf.mxu0  ;;  %v6512_v52 = vadd.f32 %v6511_v45, %v6510_v39 }
0x1a2b   :  { %v7146_v6 = vpack.c.bf16 %v7133_v17, %v7131_v31 }
0x1a30   :  { %v14634_v53 = vpop.f32.mrf.mxu1 }
0x1a31   :  { %v6513_v55 = vsel %vm6241_vm5, %v14634_v53, 0.0 }
0x1a32   :  { %v7136_v37 = vpop.f32.mrf.mxu0  ;;  %v6514_v42 = vadd.f32 %v6513_v55, %v6512_v52 }
0x1a33   :  { %11003 = vmatmul.msk.bf16.gmra.mxu1 %vm213_vm0, %v7143_v28 }
0x1a38   :  { %v14637_v36 = vpop.f32.mrf.mxu1 }
0x1a39   :  { %v6515_v54 = vsel %vm6241_vm5, %v14637_v36, 0.0 }
0x1a3a   :  { %v7138_v3 = vpop.f32.mrf.mxu0  ;;  %v6516_v40 = vadd.f32 %v6515_v54, %v6514_v42 }
0x1a3b   :  { %v7147_v14 = vpack.c.bf16 %v7138_v3, %v7136_v37 }
0x1a40   :  { %v14639_v38 = vpop.f32.mrf.mxu1 }
0x1a41   :  { %v6517_v48 = vsel %vm6241_vm5, %v14639_v38, 0.0 }
0x1a42   :  { %v6518_v22 = vadd.f32 %v6517_v48, %v6516_v40 }
0x1a43   :  { %11004 = vmatmul.msk.bf16.gmra.mxu1 %vm213_vm0, %v7144_v63 }
0x1a48   :  { %v14642_v30 = vpop.f32.mrf.mxu1 }
0x1a49   :  { %v6519_v20 = vsel %vm6241_vm5, %v14642_v30, 0.0 }
0x1a4a   :  { %v6520_v10 = vadd.f32 %v6519_v20, %v6518_v22 }
0x1a50   :  { %v14644_v13 = vpop.f32.mrf.mxu1 }
0x1a51   :  { %v6521_v7 = vsel %vm6241_vm5, %v14644_v13, 0.0 }
0x1a52   :  { %v6522_v43 = vadd.f32 %v6521_v7, %v6520_v10 }
0x1a53   :  { %11005 = vmatmul.msk.bf16.gmra.mxu1 %vm213_vm0, %v7145_v11 }
0x1a58   :  { %v14647_v2 = vpop.f32.mrf.mxu1 }
0x1a59   :  { %v6523_v4 = vsel %vm6241_vm5, %v14647_v2, 0.0 }
0x1a5a   :  { %v6524_v5 = vadd.f32 %v6523_v4, %v6522_v43 }
0x1a60   :  { %v14649_v8 = vpop.f32.mrf.mxu1 }
0x1a61   :  { %v6525_v18 = vsel %vm6241_vm5, %v14649_v8, 0.0 }
0x1a62   :  { %v6526_v15 = vadd.f32 %v6525_v18, %v6524_v5 }
0x1a63   :  { %11006 = vmatmul.msk.bf16.gmra.mxu1 %vm213_vm0, %v7146_v6 }
0x1a68   :  { %v14652_v9 = vpop.f32.mrf.mxu1 }
0x1a69   :  { %v6527_v33 = vsel %vm6241_vm5, %v14652_v9, 0.0 }
0x1a6a   :  { %v6528_v23 = vadd.f32 %v6527_v33, %v6526_v15 }
0x1a70   :  { %v14656_v50 = vpop.f32.mrf.mxu1 }
0x1a71   :  { %v6529_v34 = vsel %vm6241_vm5, %v14656_v50, 0.0 }
0x1a72   :  { %v6530_v62 = vadd.f32 %v6529_v34, %v6528_v23 }
0x1a73   :  { %11007 = vmatmul.msk.bf16.gmra.mxu1 %vm213_vm0, %v7147_v14 }
0x1a78   :  { %v14669_v58 = vpop.f32.mrf.mxu1 }
0x1a79   :  { %v6531_v59 = vsel %vm6241_vm5, %v14669_v58, 0.0 }
0x1a7a   :  { %v6532_v47 = vadd.f32 %v6531_v59, %v6530_v62 }
0x1a80   :  { %v6505_v16 = vpop.f32.mrf.mxu1 }
0x1a81   :  { %v6533_v60 = vsel %vm6241_vm5, %v6505_v16, 0.0 }
0x1a82   :  { %v6534_v26 = vadd.f32 %v6533_v60, %v6532_v47 }
0x1a83   :  { %7572 = vmatmul.bf16.vlgmr.msrb.gmra.mxu1 %v11568_v57 }
0x1a84   :  { %11287 = vmatpush.bf16.xpose.msk.msrb.mxu1 %vm14001_vm12, %v11880_v44 }
0x1a88   :  { %v6507_v12 = vpop.f32.mrf.mxu1 }
0x1a89   :  { %v6535_v24 = vsel %vm6267_vm7, %v6507_v12, 0.0 }
0x1a8a   :  { %v6536_v35 = vadd.f32 %v6535_v24, %v6534_v26 }
0x1a8c   :  { %v6537_v28 = vrot.slane %v6536_v35, 4  ;;  %11289 = vmatpush.bf16.xpose.msk.msrb.mxu1 %vm13956_vm6, %v11880_v44 }
0x1a8e   :  { %v6538_v41 = vadd.f32 %v6537_v28, %v6536_v35 }
0x1a90   :  { %v6539_v61 = vrot.slane %v6538_v41, 2 }
0x1a92   :  { %v6540_v63 = vadd.f32 %v6539_v61, %v6538_v41 }
0x1a94   :  { %v6541_v0 = vrot.slane %v6540_v63, 1 }
0x1a96   :  { %v6542_v31 = vadd.f32 %v6541_v0, %v6540_v63 }
0x1a98   :  { %v6543_v25 = vmul.f32 0.009259259, %v6542_v31  ;;  %v11540_v31 = vld [vmem:[#allocation11 + $0x18] sm:$0xff] }
0x1a99   :  { %6737 = vmatpush.bf16.msrb.mxu2 %v11540_v31 }
0x1a9a   :  { %v14692_v11 = vsub.f32 %v14629_v29, %v6543_v25  ;;  %v14695_v17 = vsub.f32 %v14632_v27, %v6543_v25  ;;  %v14698_v6 = vsub.f32 %v14634_v53, %v6543_v25  ;;  %v14701_v37 = vsub.f32 %v14637_v36, %v6543_v25 }
0x1a9b   :  { %v14708_v3 = vsub.f32 %v14639_v38, %v6543_v25  ;;  %v14713_v27 = vsub.f32 %v14642_v30, %v6543_v25  ;;  %v14720_v39 = vsub.f32 %v14644_v13, %v6543_v25  ;;  %v14726_v30 = vsub.f32 %v14647_v2, %v6543_v25 }
0x1a9c   :  { %v6558_v51 = vmul.f32 %v14692_v11, %v14692_v11  ;;  %v6559_v44 = vmul.f32 %v14695_v17, %v14695_v17  ;;  %v6560_v29 = vmul.f32 %v14698_v6, %v14698_v6  ;;  %v6561_v53 = vmul.f32 %v14701_v37, %v14701_v37 }
0x1a9d   :  { %v6562_v38 = vmul.f32 %v14708_v3, %v14708_v3  ;;  %v6563_v54 = vmul.f32 %v14713_v27, %v14713_v27  ;;  %v14732_v40 = vsub.f32 %v14649_v8, %v6543_v25  ;;  %v6564_v13 = vmul.f32 %v14720_v39, %v14720_v39 }
0x1a9e   :  { %v6572_v36 = vsel %vm6241_vm5, %v6558_v51, 0.0  ;;  %v6573_v45 = vsel %vm6241_vm5, %v6559_v44, 0.0  ;;  %v6575_v55 = vsel %vm6241_vm5, %v6560_v29, 0.0  ;;  %v6577_v42 = vsel %vm6241_vm5, %v6561_v53, 0.0  ;;  %v11539_v44 = vld [vmem:[#allocation11 + $0x10] sm:$0xff]  ;;  %v11538_v53 = vld [vmem:[#allocation11 + $0x8] sm:$0xff] }
0x1a9f   :  { %v6574_v14 = vadd.f32 %v6573_v45, %v6572_v36  ;;  %v6579_v20 = vsel %vm6241_vm5, %v6562_v38, 0.0  ;;  %v14738_v7 = vsub.f32 %v14652_v9, %v6543_v25  ;;  %v6565_v2 = vmul.f32 %v14726_v30, %v14726_v30  ;;  %6738 = vmatpush.bf16.msrb.mxu2 %v11539_v44 }
0x1aa0   :  { %v6581_v10 = vsel %vm6241_vm5, %v6563_v54, 0.0  ;;  %v14744_v43 = vsub.f32 %v14656_v50, %v6543_v25  ;;  %v6566_v8 = vmul.f32 %v14732_v40, %v14732_v40  ;;  %v6583_v18 = vsel %vm6241_vm5, %v6564_v13, 0.0  ;;  %v11549_v13 = vld [vmem:[#allocation7 + $0x8] sm:$0xff] }
0x1aa1   :  { %v6576_v52 = vadd.f32 %v6575_v55, %v6574_v14  ;;  %v14750_v33 = vsub.f32 %v14669_v58, %v6543_v25  ;;  %v6567_v9 = vmul.f32 %v14738_v7, %v14738_v7  ;;  %v6585_v57 = vsel %vm6241_vm5, %v6565_v2, 0.0  ;;  %v11537_v14 = vld [vmem:[#allocation11] sm:$0xff] }
0x1aa2   :  { %v14755_v34 = vsub.f32 %v6505_v16, %v6543_v25  ;;  %v6568_v50 = vmul.f32 %v14744_v43, %v14744_v43  ;;  %v6587_v23 = vsel %vm6241_vm5, %v6566_v8, 0.0  ;;  %v6557_v62 = vsub.f32 %v6507_v12, %v6543_v25 }
0x1aa3   :  { %v6578_v48 = vadd.f32 %v6577_v42, %v6576_v52  ;;  %v6569_v60 = vmul.f32 %v14750_v33, %v14750_v33  ;;  %v6589_v58 = vsel %vm6241_vm5, %v6567_v9, 0.0  ;;  %6739 = vmatpush.bf16.msrb.mxu2 %v11538_v53 }
0x1aa4   :  { %v6570_v26 = vmul.f32 %v14755_v34, %v14755_v34  ;;  %v6591_v24 = vsel %vm6241_vm5, %v6568_v50, 0.0  ;;  %v6571_v35 = vmul.f32 %v6557_v62, %v6557_v62 }
0x1aa5   :  { %v6580_v22 = vadd.f32 %v6579_v20, %v6578_v48  ;;  %v6593_v28 = vsel %vm6241_vm5, %v6569_v60, 0.0  ;;  %v14777_v60 = vpop.f32.mrf.mxu3 }
0x1aa6   :  { %v6595_v61 = vsel %vm6241_vm5, %v6570_v26, 0.0  ;;  %v6597_v12 = vsel %vm6267_vm7, %v6571_v35, 0.0 }
0x1aa7   :  { %v6582_v4 = vadd.f32 %v6581_v10, %v6580_v22  ;;  %6740 = vmatpush.bf16.msrb.mxu2 %v11537_v14 }
0x1aa9   :  { %v6584_v5 = vadd.f32 %v6583_v18, %v6582_v4 }
0x1aab   :  { %v6586_v15 = vadd.f32 %v6585_v57, %v6584_v5  ;;  %7268 = vmatpush.bf16.msra.mxu2 %v11549_v13 }
0x1aad   :  { %v6588_v59 = vadd.f32 %v6587_v23, %v6586_v15  ;;  %v11567_v23 = vld [vmem:[#allocation7 + $0x28] sm:$0xff] }
0x1aae   :  { %7456 = vmatpush.bf16.msrb.mxu0 %v11567_v23 }
0x1aaf   :  { %v6590_v47 = vadd.f32 %v6589_v58, %v6588_v59 }
0x1ab1   :  { %v6592_v16 = vadd.f32 %v6591_v24, %v6590_v47 }
0x1ab3   :  { %v6594_v41 = vadd.f32 %v6593_v28, %v6592_v16 }
0x1ab5   :  { %v6596_v63 = vadd.f32 %v6595_v61, %v6594_v41  ;;  %v14791_v41 = vpop.f32.mrf.mxu3 }
0x1ab7   :  { %v6598_v0 = vadd.f32 %v6597_v12, %v6596_v63 }
0x1ab9   :  { %v6599_v25 = vrot.slane %v6598_v0, 4 }
0x1abb   :  { %v6600_v51 = vadd.f32 %v6599_v25, %v6598_v0 }
0x1abd   :  { %v6601_v29 = vrot.slane %v6600_v51, 2  ;;  %v14800_v12 = vpop.f32.mrf.mxu3 }
0x1abf   :  { %v6602_v36 = vadd.f32 %v6601_v29, %v6600_v51 }
0x1ac1   :  { %v6603_v45 = vrot.slane %v6602_v36, 1 }
0x1ac3   :  { %v6604_v38 = vadd.f32 %v6603_v45, %v6602_v36 }
0x1ac5   :  { %v6605_v55 = vmul.f32 0.009259259, %v6604_v38  ;;  %v14802_v29 = vpop.f32.mrf.mxu3 }
0x1ac6   :  { %v7034_v53 = vpack.c.bf16 %v14802_v29, %v14800_v12  ;;  %v11597_v29 = vld [vmem:[#allocation5 + $0x160] sm:$0xff] }
0x1ac7   :  { %v6606_v52 = vadd.f32 1e-05, %v6605_v55 }
0x1ac9   :  { %11659 = vrsqrt.f32 %v6606_v52  ;;  %vm6613_vm12 = vweird.f32 %v6606_v52 }
0x1acd   :  { %v14811_v36 = vpop.f32.mrf.mxu3 }
0x1acf   :  { %v11660_v54 = vpop.eup %11659 }
0x1ad0   :  { %v6608_v42 = vmul.f32 %v11660_v54, %v6606_v52  ;;  %vm6614_vm6 = vweird.f32 %v11660_v54 }
0x1ad1   :  { %vm6615_vm2 = vmor %vm6613_vm12, %vm6614_vm6 }
0x1ad2   :  { %v6609_v48 = vmul.f32 %v11660_v54, %v6608_v42  ;;  %v11548_v42 = vld [vmem:[#allocation7] sm:$0xff] }
0x1ad3   :  { %7269 = vmatpush.bf16.msra.mxu2 %v11548_v42 }
0x1ad4   :  { %v6610_v20 = vmul.f32 0.5, %v6609_v48  ;;  %v11566_v48 = vld [vmem:[#allocation7 + $0x20] sm:$0xff] }
0x1ad5   :  { %7457 = vmatpush.bf16.msrb.mxu0 %v11566_v48  ;;  %v11582_v48 = vld [vmem:[#allocation5 + $0x108] sm:$0xff] }
0x1ad6   :  { %v6611_v22 = vsub.f32 1.5, %v6610_v20 }
0x1ad8   :  { %v6612_v2 = vmul.f32 %v11660_v54, %v6611_v22 }
0x1ada   :  { %v14769_v10 = vsel %vm6615_vm2, %v11660_v54, %v6612_v2  ;;  %v14813_v54 = vpop.f32.mrf.mxu3 }
0x1adb   :  { %v6630_v4 = vmul.f32 %v14769_v10, %v6557_v62  ;;  %v6617_v8 = vmul.f32 %v14769_v10, %v14692_v11  ;;  %v6618_v18 = vmul.f32 %v14769_v10, %v14695_v17  ;;  %v6629_v11 = vmul.f32 %v14769_v10, %v14755_v34 }
0x1adc   :  { %v6619_v17 = vmul.f32 %v14769_v10, %v14698_v6  ;;  %v6620_v62 = vmul.f32 %v14769_v10, %v14701_v37  ;;  %v7033_v37 = vpack.c.bf16 %v14791_v41, %v14777_v60  ;;  %v6621_v61 = vmul.f32 %v14769_v10, %v14708_v3 }
0x1add   :  { %vm6631_vm3 = vcmp.ge.f32.partialorder %v6617_v8, 0.0  ;;  %vm6632_vm4 = vcmp.ge.f32.partialorder %v6618_v18, 0.0  ;;  %v6645_v5 = vmul.f32 0.01, %v6617_v8  ;;  %v6646_v9 = vmul.f32 0.01, %v6618_v18 }
0x1ade   :  { %v6658_v59 = vmul.f32 0.01, %v6630_v4  ;;  %vm6644_vm8 = vcmp.ge.f32.partialorder %v6630_v4, 0.0  ;;  %vm6643_vm9 = vcmp.ge.f32.partialorder %v6629_v11, 0.0  ;;  %v6657_v58 = vmul.f32 0.01, %v6629_v11 }
0x1adf   :  { %v6659_v57 = vsel %vm6631_vm3, %v6617_v8, %v6645_v5  ;;  %v6660_v15 = vsel %vm6632_vm4, %v6618_v18, %v6646_v9  ;;  %v6647_v26 = vmul.f32 0.01, %v6619_v17  ;;  %v6648_v24 = vmul.f32 0.01, %v6620_v62  ;;  %v14826_v9 = vpop.f32.mrf.mxu1 }
0x1ae0   :  { %v6673_v50 = vpack.c.bf16 %v6660_v15, %v6659_v57  ;;  %v14785_v47 = vsel %vm6644_vm8, %v6630_v4, %v6658_v59  ;;  %v14787_v16 = vsel %vm6643_vm9, %v6629_v11, %v6657_v58  ;;  %vm6633_vm10 = vcmp.ge.f32.partialorder %v6619_v17, 0.0  ;;  %v11569_v57 = vld [vmem:[#allocation5 + $0xb0] sm:$0xff] }
0x1ae1   :  { %vm6634_vm11 = vcmp.ge.f32.partialorder %v6620_v62, 0.0  ;;  %v6679_v35 = vpack.c.bf16 %v14785_v47, %v14787_v16  ;;  %v6661_v34 = vsel %vm6633_vm10, %v6619_v17, %v6647_v26  ;;  %v6622_v63 = vmul.f32 %v14769_v10, %v14713_v27  ;;  %7577 = vmatmul.bf16.gmra.mxu1 %v11569_v57  ;;  %v11585_v16 = vld [vmem:[#allocation7 + $0x48] sm:$0xff] }
0x1ae2   :  { %10922 = vmatmul.msk.bf16.vlgmr.msrb.gmra.mxu2 %vm6241_vm5, %v6673_v50  ;;  %v6662_v28 = vsel %vm6634_vm11, %v6620_v62, %v6648_v24  ;;  %v6649_v0 = vmul.f32 0.01, %v6621_v61  ;;  %vm6635_vm13 = vcmp.ge.f32.partialorder %v6621_v61, 0.0  ;;  %v6623_v3 = vmul.f32 %v14769_v10, %v14720_v39  ;;  %v14822_v2 = vpop.f32.mrf.mxu3  ;;  %7860 = vmatpush.bf16.msra.mxu0 %v11585_v16 }
0x1ae3   :  { %v6674_v6 = vpack.c.bf16 %v6662_v28, %v6661_v34  ;;  %v6650_v31 = vmul.f32 0.01, %v6622_v63  ;;  %vm6636_vm15 = vcmp.ge.f32.partialorder %v6622_v63, 0.0  ;;  %v6624_v27 = vmul.f32 %v14769_v10, %v14726_v30 }
0x1ae4   :  { %v6663_v25 = vsel %vm6635_vm13, %v6621_v61, %v6649_v0  ;;  %v6651_v45 = vmul.f32 0.01, %v6623_v3  ;;  %vm6637_vm1 = vcmp.ge.f32.partialorder %v6623_v3, 0.0  ;;  %v7035_v39 = vpack.c.bf16 %v14813_v54, %v14811_v36 }
0x1ae5   :  { %v6664_v51 = vsel %vm6636_vm15, %v6622_v63, %v6650_v31  ;;  %v6652_v14 = vmul.f32 0.01, %v6624_v27  ;;  %vm6638_vm6 = vcmp.ge.f32.partialorder %v6624_v27, 0.0  ;;  %v6625_v30 = vmul.f32 %v14769_v10, %v14732_v40  ;;  %v11580_v31 = vld [vmem:[#allocation5 + $0xf8] sm:$0xff] }
0x1ae6   :  { %v6675_v44 = vpack.c.bf16 %v6664_v51, %v6663_v25  ;;  %v6665_v38 = vsel %vm6637_vm1, %v6623_v3, %v6651_v45  ;;  %v6626_v13 = vmul.f32 %v14769_v10, %v14738_v7  ;;  %v11578_v7 = vld [vmem:[#allocation5 + $0xe8] sm:$0xff]  ;;  %v6627_v15 = vmul.f32 %v14769_v10, %v14744_v43  ;;  %v11570_v43 = vld [vmem:[#allocation5 + $0xb8] sm:$0xff]  ;;  %v11571_v25 = vld [vmem:[#allocation5 + $0xc0] sm:$0xff] }
0x1ae7   :  { %v6666_v55 = vsel %vm6638_vm6, %v6624_v27, %v6652_v14  ;;  %v6653_v20 = vmul.f32 0.01, %v6625_v30  ;;  %vm6639_vm12 = vcmp.ge.f32.partialorder %v6625_v30, 0.0  ;;  %7779 = vmatmul.bf16.gmra.mxu3 %v11578_v7  ;;  %v6628_v50 = vmul.f32 %v14769_v10, %v14750_v33  ;;  %v14835_v11 = vpop.f32.mrf.mxu1  ;;  %v11576_v51 = vld [vmem:[#allocation7 + $0x38] sm:$0xff]  ;;  %v11581_v14 = vld [vmem:[#allocation5 + $0x100] sm:$0xff] }
0x1ae8   :  { %v6676_v52 = vpack.c.bf16 %v6666_v55, %v6665_v38  ;;  %v6654_v22 = vmul.f32 0.01, %v6626_v13  ;;  %vm6640_vm2 = vcmp.ge.f32.partialorder %v6626_v13, 0.0  ;;  %v6655_v23 = vmul.f32 0.01, %v6627_v15  ;;  %7658 = vmatpush.bf16.msrb.mxu2 %v11576_v51  ;;  %v11572_v38 = vld [vmem:[#allocation5 + $0xc8] sm:$0xff] }
0x1ae9   :  { %v6667_v4 = vsel %vm6639_vm12, %v6625_v30, %v6653_v20  ;;  %v6656_v59 = vmul.f32 0.01, %v6628_v50  ;;  %vm6641_vm3 = vcmp.ge.f32.partialorder %v6627_v15, 0.0  ;;  %vm6642_vm4 = vcmp.ge.f32.partialorder %v6628_v50, 0.0  ;;  %v11587_v51 = vld [vmem:[#allocation5 + $0x120] sm:$0xff] }
0x1aea   :  { %v6668_v8 = vsel %vm6640_vm2, %v6626_v13, %v6654_v22  ;;  %v14824_v5 = vpop.f32.mrf.mxu3  ;;  %v6669_v62 = vsel %vm6641_vm3, %v6627_v15, %v6655_v23  ;;  %v7030_v27 = vpack.c.bf16 %v14393_v32, %v14390_v21  ;;  %v11573_v13 = vld [vmem:[#allocation5 + $0xd0] sm:$0xff]  ;;  %v11096_v15 = vld [vmem:[#allocation5 + $0xd8] sm:$0xf] }
0x1aeb   :  { %v6677_v18 = vpack.c.bf16 %v6668_v8, %v6667_v4  ;;  %v7036_v40 = vpack.c.bf16 %v14824_v5, %v14822_v2  ;;  %v6670_v58 = vsel %vm6642_vm4, %v6628_v50, %v6656_v59  ;;  %v11143_v8 = vld [vmem:[#allocation5 + $0x110] sm:$0xf]  ;;  %v11574_v50 = vld [vmem:[#allocation5 + $0xd8] sm:$0x30] }
0x1aec   :  { %v6678_v26 = vpack.c.bf16 %v6670_v58, %v6669_v62  ;;  %v11097_v23 = vor.u32 %v11574_v50, %v11096_v15  ;;  %v11575_v58 = vld [vmem:[#allocation7 + $0x30] sm:$0xff] }
0x1aed   :  { %7659 = vmatpush.bf16.msrb.mxu2 %v11575_v58 }
0x1aef   :  { %v14837_v24 = vpop.f32.mrf.mxu1 }
0x1af1   :  { %7582 = vmatmul.bf16.gmra.mxu1 %v11570_v43  ;;  %v11586_v43 = vld [vmem:[#allocation5 + $0x118] sm:$0xff] }
0x1af2   :  { %10923 = vmatmul.msk.bf16.gmra.mxu2 %vm6241_vm5, %v6674_v6  ;;  %v7371_v17 = vpop.f32.mrf.mxu3  ;;  %v11579_v6 = vld [vmem:[#allocation5 + $0xf0] sm:$0xff] }
0x1af7   :  { %7784 = vmatmul.bf16.gmra.mxu3 %v11579_v6  ;;  %v14841_v33 = vpop.f32.mrf.mxu1  ;;  %v11584_v6 = vld [vmem:[#allocation7 + $0x40] sm:$0xff] }
0x1af8   :  { %7861 = vmatpush.bf16.msra.mxu0 %v11584_v6 }
0x1afa   :  { %v7373_v34 = vpop.f32.mrf.mxu3 }
0x1afb   :  { %v7406_v28 = vpack.c.bf16 %v7373_v34, %v7371_v17  ;;  %v11595_v34 = vld [vmem:[#allocation5 + $0x150] sm:$0xff] }
0x1afd   :  { %11063 = vmatmul.msk.bf16.vlgmr.msrb.gmra.mxu0 %vm213_vm0, %v7406_v28 }
0x1aff   :  { %v14843_v61 = vpop.f32.mrf.mxu1 }
0x1b01   :  { %7587 = vmatmul.bf16.gmra.mxu1 %v11571_v25 }
0x1b02   :  { %10924 = vmatmul.msk.bf16.gmra.mxu2 %vm6241_vm5, %v6675_v44  ;;  %v7376_v10 = vpop.f32.mrf.mxu3 }
0x1b07   :  { %7789 = vmatmul.bf16.gmra.mxu3 %v11580_v31  ;;  %v14850_v44 = vpop.f32.mrf.mxu1 }
0x1b0a   :  { %v7378_v63 = vpop.f32.mrf.mxu3 }
0x1b0b   :  { %v7407_v0 = vpack.c.bf16 %v7378_v63, %v7376_v10 }
0x1b0d   :  { %11064 = vmatmul.msk.bf16.gmra.mxu0 %vm213_vm0, %v7407_v0  ;;  %v11596_v0 = vld [vmem:[#allocation5 + $0x158] sm:$0xff] }
0x1b0f   :  { %v14854_v45 = vpop.f32.mrf.mxu1 }
0x1b11   :  { %7592 = vmatmul.bf16.gmra.mxu1 %v11572_v38 }
0x1b12   :  { %10925 = vmatmul.msk.bf16.gmra.mxu2 %vm6241_vm5, %v6676_v52  ;;  %v7381_v3 = vpop.f32.mrf.mxu3 }
0x1b17   :  { %7794 = vmatmul.bf16.gmra.mxu3 %v11581_v14  ;;  %v14858_v52 = vpop.f32.mrf.mxu1 }
0x1b1a   :  { %v7383_v47 = vpop.f32.mrf.mxu3 }
0x1b1f   :  { %v14864_v32 = vpop.f32.mrf.mxu1 }
0x1b21   :  { %7597 = vmatmul.bf16.gmra.mxu1 %v11573_v13 }
0x1b22   :  { %10926 = vmatmul.msk.bf16.gmra.mxu2 %vm6241_vm5, %v6677_v18  ;;  %v7386_v55 = vpop.f32.mrf.mxu3  ;;  %v11583_v18 = vld [vmem:[#allocation5 + $0x110] sm:$0x30] }
0x1b23   :  { %v11144_v57 = vor.u32 %v11583_v18, %v11143_v8 }
0x1b27   :  { %7799 = vmatmul.bf16.gmra.mxu3 %v11582_v48  ;;  %v14871_v4 = vpop.f32.mrf.mxu1 }
0x1b2a   :  { %v7388_v42 = vpop.f32.mrf.mxu3 }
0x1b2b   :  { %v7409_v21 = vpack.c.bf16 %v7388_v42, %v7386_v55 }
0x1b2f   :  { %v14879_v59 = vpop.f32.mrf.mxu1 }
0x1b31   :  { %7602 = vmatmul.bf16.gmra.mxu1 %v11097_v23 }
0x1b32   :  { %10927 = vmatmul.msk.bf16.gmra.mxu2 %vm6241_vm5, %v6678_v26  ;;  %v7391_v20 = vpop.f32.mrf.mxu3 }
0x1b37   :  { %7804 = vmatmul.bf16.gmra.mxu3 %v11144_v57  ;;  %v14887_v62 = vpop.f32.mrf.mxu1 }
0x1b3a   :  { %v7393_v49 = vpop.f32.mrf.mxu3 }
0x1b3f   :  { %v14892_v63 = vpop.f32.mrf.mxu1 }
0x1b41   :  { %7976 = vmatmul.bf16.vlgmr.msra.gmra.mxu1 %v11586_v43 }
0x1b42   :  { %10928 = vmatmul.msk.bf16.gmra.mxu2 %vm6241_vm5, %v6679_v35  ;;  %v7408_v35 = vpack.c.bf16 %v7383_v47, %v7381_v3  ;;  %v7396_v17 = vpop.f32.mrf.mxu3 }
0x1b44   :  { %11065 = vmatmul.msk.bf16.gmra.mxu0 %vm213_vm0, %v7408_v35  ;;  %v11588_v35 = vld [vmem:[#allocation5 + $0x128] sm:$0xff] }
0x1b47   :  { %8178 = vmatmul.bf16.vlgmr.msra.gmra.mxu3 %v11595_v34  ;;  %v14903_v25 = vpop.f32.mrf.mxu1 }
0x1b4a   :  { %v7398_v46 = vpop.f32.mrf.mxu3 }
0x1b4b   :  { %v7411_v26 = vpack.c.bf16 %v7398_v46, %v7396_v17  ;;  %v11589_v17 = vld [vmem:[#allocation5 + $0x130] sm:$0xff] }
0x1b4f   :  { %v7573_v47 = vpop.f32.mrf.mxu1 }
0x1b51   :  { %7981 = vmatmul.bf16.gmra.mxu1 %v11587_v51 }
0x1b52   :  { %11016 = vmatmul.msk.bf16.vlgmr.msra.gmra.mxu2 %vm213_vm0, %v7030_v27  ;;  %v7401_v10 = vpop.f32.mrf.mxu3 }
0x1b54   :  { %11066 = vmatmul.msk.bf16.gmra.mxu0 %vm213_vm0, %v7409_v21 }
0x1b57   :  { %8183 = vmatmul.bf16.gmra.mxu3 %v11596_v0  ;;  %v7575_v14 = vpop.f32.mrf.mxu1 }
0x1b5a   :  { %v7403_v41 = vpop.f32.mrf.mxu3 }
0x1b5f   :  { %v7578_v36 = vpop.f32.mrf.mxu1 }
0x1b61   :  { %7986 = vmatmul.bf16.gmra.mxu1 %v11588_v35 }
0x1b62   :  { %11017 = vmatmul.msk.bf16.gmra.mxu2 %vm213_vm0, %v7031_v56  ;;  %v7410_v56 = vpack.c.bf16 %v7393_v49, %v7391_v20  ;;  %v7775_v3 = vpop.f32.mrf.mxu3  ;;  %v11598_v49 = vld [vmem:[#allocation5 + $0x168] sm:$0xff] }
0x1b64   :  { %11067 = vmatmul.msk.bf16.gmra.mxu0 %vm213_vm0, %v7410_v56  ;;  %v7608_v56 = vpack.c.bf16 %v7575_v14, %v7573_v47  ;;  %v11599_v47 = vld [vmem:[#allocation5 + $0x170] sm:$0xff] }
0x1b65   :  { %v14866_v30 = vpop.f32.mrf.mxu2 }
0x1b67   :  { %8188 = vmatmul.bf16.gmra.mxu3 %v11597_v29  ;;  %v7580_v48 = vpop.f32.mrf.mxu1 }
0x1b6a   :  { %v7777_v16 = vpop.f32.mrf.mxu3 }
0x1b6b   :  { %v7810_v12 = vpack.c.bf16 %v7777_v16, %v7775_v3  ;;  %v7609_v16 = vpack.c.bf16 %v7580_v48, %v7578_v36 }
0x1b6d   :  { %v14869_v22 = vpop.f32.mrf.mxu2 }
0x1b6e   :  { %v6777_v55 = vadd.f32 %v14869_v22, %v14866_v30 }
0x1b6f   :  { %v7583_v57 = vpop.f32.mrf.mxu1 }
0x1b71   :  { %7991 = vmatmul.bf16.gmra.mxu1 %v11589_v17 }
0x1b72   :  { %11018 = vmatmul.msk.bf16.gmra.mxu2 %vm213_vm0, %v7032_v1  ;;  %v7780_v54 = vpop.f32.mrf.mxu3 }
0x1b74   :  { %11068 = vmatmul.msk.bf16.gmra.mxu0 %vm213_vm0, %v7411_v26 }
0x1b75   :  { %v14876_v7 = vpop.f32.mrf.mxu2 }
0x1b76   :  { %v6778_v42 = vadd.f32 %v6777_v55, %v14876_v7 }
0x1b77   :  { %8193 = vmatmul.bf16.gmra.mxu3 %v11598_v49  ;;  %v7585_v43 = vpop.f32.mrf.mxu1 }
0x1b7a   :  { %v7459_v13 = vpop.f32.mrf.mxu0  ;;  %v7782_v2 = vpop.f32.mrf.mxu3 }
0x1b7b   :  { %v7811_v5 = vpack.c.bf16 %v7782_v2, %v7780_v54 }
0x1b7d   :  { %v14881_v19 = vpop.f32.mrf.mxu2 }
0x1b7e   :  { %v6779_v21 = vadd.f32 %v6778_v42, %v14881_v19  ;;  %v11590_v42 = vld [vmem:[#allocation5 + $0x138] sm:$0xff] }
0x1b7f   :  { %v14947_v35 = vpop.f32.mrf.mxu1 }
0x1b81   :  { %7996 = vmatmul.bf16.gmra.mxu1 %v11590_v42 }
0x1b82   :  { %11019 = vmatmul.msk.bf16.gmra.mxu2 %vm213_vm0, %v7033_v37  ;;  %v7412_v37 = vpack.c.bf16 %v7403_v41, %v7401_v10  ;;  %v7461_v15 = vpop.f32.mrf.mxu0  ;;  %v7785_v46 = vpop.f32.mrf.mxu3 }
0x1b84   :  { %11069 = vmatmul.msk.bf16.gmra.mxu0 %vm213_vm0, %v7412_v37 }
0x1b85   :  { %v14889_v28 = vpop.f32.mrf.mxu2 }
0x1b86   :  { %v6780_v20 = vadd.f32 %v6779_v21, %v14889_v28 }
0x1b87   :  { %8198 = vmatmul.bf16.gmra.mxu3 %v11599_v47 }
0x1b8a   :  { %v7464_v6 = vpop.f32.mrf.mxu0  ;;  %v7787_v37 = vpop.f32.mrf.mxu3 }
0x1b8b   :  { %v7812_v51 = vpack.c.bf16 %v7787_v37, %v7785_v46  ;;  %v7610_v46 = vpack.c.bf16 %v7585_v43, %v7583_v57  ;;  %v11591_v37 = vld [vmem:[#allocation5 + $0x140] sm:$0xff] }
0x1b8d   :  { %v14894_v60 = vpop.f32.mrf.mxu2 }
0x1b91   :  { %8001 = vmatmul.bf16.gmra.mxu1 %v11591_v37  ;;  %v11190_v37 = vld [vmem:[#allocation5 + $0x148] sm:$0xf] }
0x1b92   :  { %11020 = vmatmul.msk.bf16.gmra.mxu2 %vm213_vm0, %v7034_v53  ;;  %v14949_v14 = vpop.f32.mrf.mxu0  ;;  %v7790_v21 = vpop.f32.mrf.mxu3 }
0x1b94   :  { %11157 = vmatmul.msk.bf16.vlgmr.msra.gmra.mxu0 %vm213_vm0, %v7810_v12 }
0x1b95   :  { %v14900_v31 = vpop.f32.mrf.mxu2 }
0x1b9d   :  { %v14905_v27 = vpop.f32.mrf.mxu2 }
0x1ba2   :  { %11021 = vmatmul.msk.bf16.gmra.mxu2 %vm213_vm0, %v7035_v39 }
0x1ba4   :  { %11158 = vmatmul.msk.bf16.gmra.mxu0 %vm213_vm0, %v7811_v5 }
0x1ba5   :  { %v14911_v53 = vpop.f32.mrf.mxu2 }
0x1bad   :  { %v14914_v38 = vpop.f32.mrf.mxu2 }
0x1bb2   :  { %11022 = vmatmul.msk.bf16.gmra.mxu2 %vm213_vm0, %v7036_v40  ;;  %v6781_v40 = vadd.f32 %v6780_v20, %v14894_v60 }
0x1bb4   :  { %v6782_v8 = vadd.f32 %v6781_v40, %v14900_v31  ;;  %11159 = vmatmul.msk.bf16.gmra.mxu0 %vm213_vm0, %v7812_v51  ;;  %v7590_v40 = vpop.f32.mrf.mxu1 }
0x1bb5   :  { %v14920_v39 = vpop.f32.mrf.mxu2 }
0x1bb6   :  { %v6783_v18 = vadd.f32 %v6782_v8, %v14905_v27 }
0x1bb8   :  { %v6784_v50 = vadd.f32 %v6783_v18, %v14911_v53  ;;  %v7792_v18 = vpop.f32.mrf.mxu3 }
0x1bba   :  { %v6785_v58 = vadd.f32 %v6784_v50, %v14914_v38  ;;  %v7813_v50 = vpack.c.bf16 %v7792_v18, %v7790_v21  ;;  %v11601_v18 = vld [vmem:[#allocation5 + $0x180] sm:$0x30] }
0x1bbc   :  { %v6786_v26 = vadd.f32 %v6785_v58, %v14920_v39  ;;  %v14981_v57 = vpop.f32.mrf.mxu1 }
0x1bbd   :  { %v14927_v1 = vpop.f32.mrf.mxu2 }
0x1bbe   :  { %v6787_v34 = vadd.f32 %v6786_v26, %v14927_v1 }
0x1bc1   :  { %v14954_v49 = vpop.f32.mrf.mxu0 }
0x1bc2   :  { %11110 = vmatmul.msk.bf16.vlgmr.msrb.gmra.mxu2 %vm213_vm0, %v7608_v56 }
0x1bc4   :  { %11160 = vmatmul.msk.bf16.gmra.mxu0 %vm213_vm0, %v7813_v50  ;;  %v7595_v42 = vpop.f32.mrf.mxu1  ;;  %v7611_v50 = vpack.c.bf16 %v7590_v40, %v14947_v35 }
0x1bc5   :  { %v14935_v23 = vpop.f32.mrf.mxu2 }
0x1bc6   :  { %v6788_v10 = vadd.f32 %v6787_v34, %v14935_v23 }
0x1bc9   :  { %v14983_v43 = vpop.f32.mrf.mxu0 }
0x1bcd   :  { %v14941_v41 = vpop.f32.mrf.mxu2 }
0x1bce   :  { %v6789_v0 = vsel %vm6000_vm14, %v14941_v41, 0.0 }
0x1bcf   :  { %v6790_v3 = vadd.f32 %v6789_v0, %v6788_v10  ;;  %v7795_v0 = vpop.f32.mrf.mxu3 }
0x1bd1   :  { %v6791_v12 = vrot.slane %v6790_v3, 4  ;;  %v15014_v21 = vpop.f32.mrf.mxu0 }
0x1bd2   :  { %11111 = vmatmul.msk.bf16.gmra.mxu2 %vm213_vm0, %v7609_v16 }
0x1bd3   :  { %v6792_v29 = vadd.f32 %v6791_v12, %v6790_v3 }
0x1bd5   :  { %v6793_v54 = vrot.slane %v6792_v29, 2  ;;  %v7271_v55 = vpop.f32.mrf.mxu2 }
0x1bd6   :  { %v7272_v20 = vadd.f32 %v7271_v55, %v14826_v9 }
0x1bd7   :  { %v6794_v2 = vadd.f32 %v6793_v54, %v6792_v29 }
0x1bd8   :  { %v14952_v36 = vadd.f32 %v7459_v13, %v7272_v20  ;;  %v11600_v13 = vld [vmem:[#allocation5 + $0x178] sm:$0xff]  ;;  %v7797_v20 = vpop.f32.mrf.mxu3 }
0x1bd9   :  { %v6795_v48 = vrot.slane %v6794_v2, 1  ;;  %8203 = vmatmul.bf16.gmra.mxu3 %v11600_v13 }
0x1bdb   :  { %v6796_v5 = vadd.f32 %v6795_v48, %v6794_v2 }
0x1bdd   :  { %v14956_v56 = vmul.f32 0.009259259, %v6796_v5  ;;  %v7273_v8 = vpop.f32.mrf.mxu2  ;;  %v7814_v5 = vpack.c.bf16 %v7797_v20, %v7795_v0  ;;  %v11592_v0 = vld [vmem:[#allocation5 + $0x148] sm:$0x30] }
0x1bde   :  { %v7274_v34 = vadd.f32 %v7273_v8, %v14835_v11  ;;  %v11237_v8 = vld [vmem:[#allocation5 + $0x180] sm:$0xf] }
0x1bdf   :  { %v14960_v17 = vsub.f32 %v14866_v30, %v14956_v56  ;;  %v14964_v9 = vsub.f32 %v14869_v22, %v14956_v56  ;;  %v14969_v58 = vsub.f32 %v14876_v7, %v14956_v56  ;;  %v14979_v22 = vsub.f32 %v14881_v19, %v14956_v56  ;;  %11161 = vmatmul.msk.bf16.gmra.mxu0 %vm213_vm0, %v7814_v5 }
0x1be0   :  { %v14987_v7 = vsub.f32 %v14889_v28, %v14956_v56  ;;  %v14991_v3 = vadd.f32 %v7461_v15, %v7274_v34  ;;  %v14996_v47 = vsub.f32 %v14894_v60, %v14956_v56  ;;  %v15004_v29 = vsub.f32 %v14900_v31, %v14956_v56 }
0x1be1   :  { %v6812_v26 = vmul.f32 %v14960_v17, %v14960_v17  ;;  %v6813_v30 = vmul.f32 %v14964_v9, %v14964_v9  ;;  %v6814_v11 = vmul.f32 %v14969_v58, %v14969_v58  ;;  %v6815_v28 = vmul.f32 %v14979_v22, %v14979_v22 }
0x1be2   :  { %11112 = vmatmul.msk.bf16.gmra.mxu2 %vm213_vm0, %v7610_v46  ;;  %v6816_v15 = vmul.f32 %v14987_v7, %v14987_v7  ;;  %v6817_v60 = vmul.f32 %v14996_v47, %v14996_v47  ;;  %v6818_v2 = vmul.f32 %v15004_v29, %v15004_v29  ;;  %v11238_v13 = vor.u32 %v11601_v18, %v11237_v8 }
0x1be3   :  { %v6826_v51 = vadd.f32 %v6813_v30, %v6812_v26  ;;  %v15026_v46 = vsub.f32 %v14914_v38, %v14956_v56  ;;  %v15043_v38 = vsub.f32 %v14927_v1, %v14956_v56  ;;  %v15055_v1 = vsub.f32 %v14935_v23, %v14956_v56 }
0x1be5   :  { %v7276_v10 = vpop.f32.mrf.mxu2  ;;  %v6827_v16 = vadd.f32 %v6826_v51, %v6814_v11  ;;  %v15051_v11 = vsub.f32 %v14941_v41, %v14956_v56  ;;  %v6824_v23 = vmul.f32 %v15055_v1, %v15055_v1 }
0x1be6   :  { %v7277_v19 = vadd.f32 %v7276_v10, %v14837_v24  ;;  %v15010_v24 = vsub.f32 %v14905_v27, %v14956_v56  ;;  %v15047_v10 = vpop.f32.mrf.mxu1 }
0x1be7   :  { %v6828_v54 = vadd.f32 %v6827_v16, %v6815_v28  ;;  %v7800_v28 = vpop.f32.mrf.mxu3 }
0x1be8   :  { %v15000_v12 = vadd.f32 %v7464_v6, %v7277_v19  ;;  %v15018_v6 = vsub.f32 %v14911_v53, %v14956_v56  ;;  %v6819_v53 = vmul.f32 %v15010_v24, %v15010_v24  ;;  %v11191_v19 = vor.u32 %v11592_v0, %v11190_v37 }
0x1be9   :  { %v6829_v55 = vadd.f32 %v6828_v54, %v6816_v15  ;;  %8208 = vmatmul.bf16.gmra.mxu3 %v11238_v13 }
0x1bea   :  { %v6820_v35 = vmul.f32 %v15018_v6, %v15018_v6  ;;  %8006 = vmatmul.bf16.gmra.mxu1 %v11191_v19 }
0x1beb   :  { %v6830_v48 = vadd.f32 %v6829_v55, %v6817_v60  ;;  %v6823_v60 = vmul.f32 %v15043_v38, %v15043_v38 }
0x1bed   :  { %v7278_v31 = vpop.f32.mrf.mxu2  ;;  %v6831_v26 = vadd.f32 %v6830_v48, %v6818_v2 }
0x1bee   :  { %v7279_v27 = vadd.f32 %v7278_v31, %v14841_v33  ;;  %v15036_v33 = vsub.f32 %v14920_v39, %v14956_v56  ;;  %v7476_v39 = vpop.f32.mrf.mxu0  ;;  %v6825_v31 = vmul.f32 %v15051_v11, %v15051_v11  ;;  %v7600_v2 = vpop.f32.mrf.mxu1 }
0x1bef   :  { %v6832_v40 = vadd.f32 %v6831_v26, %v6819_v53  ;;  %v7802_v5 = vpop.f32.mrf.mxu3  ;;  %v7612_v26 = vpack.c.bf16 %v7595_v42, %v14981_v57 }
0x1bf0   :  { %v15031_v30 = vadd.f32 %v14949_v14, %v7279_v27  ;;  %v6821_v14 = vmul.f32 %v15026_v46, %v15026_v46  ;;  %v6822_v16 = vmul.f32 %v15036_v33, %v15036_v33 }
0x1bf1   :  { %v6833_v34 = vadd.f32 %v6832_v40, %v6820_v35 }
0x1bf2   :  { %11113 = vmatmul.msk.bf16.gmra.mxu2 %vm213_vm0, %v7611_v50  ;;  %v7815_v50 = vpack.c.bf16 %v7802_v5, %v7800_v28  ;;  %v11605_v5 = vld [vmem:[#allocation5 + $0x190] sm:$0xff] }
0x1bf3   :  { %v6834_v15 = vadd.f32 %v6833_v34, %v6821_v14 }
0x1bf4   :  { %11162 = vmatmul.msk.bf16.gmra.mxu0 %vm213_vm0, %v7815_v50 }
0x1bf5   :  { %v7281_v51 = vpop.f32.mrf.mxu2  ;;  %v6835_v55 = vadd.f32 %v6834_v15, %v6822_v16 }
0x1bf6   :  { %v7282_v54 = vadd.f32 %v7281_v51, %v14843_v61  ;;  %v7479_v48 = vpop.f32.mrf.mxu0  ;;  %v6838_v61 = vsel %vm6000_vm14, %v6825_v31, 0.0  ;;  %v15077_v14 = vpop.f32.mrf.mxu1 }
0x1bf7   :  { %v6836_v56 = vadd.f32 %v6835_v55, %v6823_v60  ;;  %v7805_v0 = vpop.f32.mrf.mxu3 }
0x1bf8   :  { %v15063_v41 = vadd.f32 %v14954_v49, %v7282_v54  ;;  %v11613_v49 = vld [vmem:[#allocation5 + $0x1c0] sm:$0xff] }
0x1bf9   :  { %v6837_v20 = vadd.f32 %v6836_v56, %v6824_v23  ;;  %8582 = vmatmul.bf16.vlgmr.msrb.gmra.mxu3 %v11613_v49  ;;  %v11614_v56 = vld [vmem:[#allocation5 + $0x1c8] sm:$0xff]  ;;  %v11594_v49 = vld [vmem:[#allocation7 + $0x58] sm:$0xff] }
0x1bfa   :  { %8062 = vmatpush.bf16.msra.mxu2 %v11594_v49 }
0x1bfb   :  { %v6839_v8 = vadd.f32 %v6838_v61, %v6837_v20 }
0x1bfd   :  { %v7283_v27 = vpop.f32.mrf.mxu2  ;;  %v6840_v13 = vrot.slane %v6839_v8, 4 }
0x1bfe   :  { %v7284_v18 = vadd.f32 %v7283_v27, %v14850_v44  ;;  %v7481_v34 = vpop.f32.mrf.mxu0  ;;  %v11604_v44 = vld [vmem:[#allocation5 + $0x188] sm:$0xff]  ;;  %v7605_v16 = vpop.f32.mrf.mxu1 }
0x1bff   :  { %v6841_v35 = vadd.f32 %v6840_v13, %v6839_v8  ;;  %8380 = vmatmul.bf16.vlgmr.msrb.gmra.mxu1 %v11604_v44  ;;  %v7807_v60 = vpop.f32.mrf.mxu3  ;;  %v11602_v13 = vld [vmem:[#allocation7 + $0x60] sm:$0xff] }
0x1c00   :  { %v15072_v53 = vadd.f32 %v14983_v43, %v7284_v18  ;;  %v7816_v23 = vpack.c.bf16 %v7807_v60, %v7805_v0  ;;  %v11603_v18 = vld [vmem:[#allocation7 + $0x68] sm:$0xff] }
0x1c01   :  { %v6842_v40 = vrot.slane %v6841_v35, 2  ;;  %8264 = vmatpush.bf16.msrb.mxu0 %v11603_v18 }
0x1c02   :  { %11114 = vmatmul.msk.bf16.gmra.mxu2 %vm213_vm0, %v7612_v26 }
0x1c03   :  { %v6843_v51 = vadd.f32 %v6842_v40, %v6841_v35  ;;  %v11593_v35 = vld [vmem:[#allocation7 + $0x50] sm:$0xff] }
0x1c04   :  { %11163 = vmatmul.msk.bf16.gmra.mxu0 %vm213_vm0, %v7816_v23  ;;  %8063 = vmatpush.bf16.msra.mxu2 %v11593_v35 }
0x1c05   :  { %v7286_v37 = vpop.f32.mrf.mxu2  ;;  %v6844_v43 = vrot.slane %v6843_v51, 1  ;;  %8265 = vmatpush.bf16.msrb.mxu0 %v11602_v13 }
0x1c06   :  { %v7287_v19 = vadd.f32 %v7286_v37, %v14854_v45  ;;  %v15083_v15 = vpop.f32.mrf.mxu0  ;;  %v7613_v45 = vpack.c.bf16 %v7600_v2, %v15047_v10 }
0x1c07   :  { %v6845_v42 = vadd.f32 %v6844_v43, %v6843_v51  ;;  %v8179_v8 = vpop.f32.mrf.mxu3  ;;  %v11615_v51 = vld [vmem:[#allocation5 + $0x1d0] sm:$0xff] }
0x1c08   :  { %v15081_v57 = vadd.f32 %v15014_v21, %v7287_v19  ;;  %v15091_v21 = vpop.f32.mrf.mxu1 }
0x1c09   :  { %v6846_v28 = vmul.f32 0.009259259, %v6845_v42  ;;  %8587 = vmatmul.bf16.gmra.mxu3 %v11614_v56 }
0x1c0b   :  { %v6847_v55 = vadd.f32 1e-05, %v6846_v28  ;;  %v7614_v28 = vpack.c.bf16 %v7605_v16, %v15077_v14 }
0x1c0d   :  { %v7288_v54 = vpop.f32.mrf.mxu2  ;;  %11661 = vrsqrt.f32 %v6847_v55  ;;  %vm6854_vm9 = vweird.f32 %v6847_v55 }
0x1c0e   :  { %v7289_v31 = vadd.f32 %v7288_v54, %v14858_v52  ;;  %v15093_v61 = vpop.f32.mrf.mxu0 }
0x1c0f   :  { %8385 = vmatmul.bf16.gmra.mxu1 %v11605_v5 }
0x1c10   :  { %v15086_v20 = vadd.f32 %v7476_v39, %v7289_v31  ;;  %v15098_v40 = vpop.f32.mrf.mxu1 }
0x1c12   :  { %11115 = vmatmul.msk.bf16.gmra.mxu2 %vm213_vm0, %v7613_v45 }
0x1c13   :  { %v11662_v52 = vpop.eup %11661 }
0x1c14   :  { %v6849_v39 = vmul.f32 %v11662_v52, %v6847_v55  ;;  %vm6855_vm8 = vweird.f32 %v11662_v52 }
0x1c15   :  { %v7291_v27 = vpop.f32.mrf.mxu2  ;;  %vm6856_vm10 = vmor %vm6854_vm9, %vm6855_vm8 }
0x1c16   :  { %v7292_v50 = vadd.f32 %v7291_v27, %v14864_v32  ;;  %v6850_v2 = vmul.f32 %v11662_v52, %v6849_v39  ;;  %v15100_v37 = vpop.f32.mrf.mxu0  ;;  %v8181_v32 = vpop.f32.mrf.mxu3 }
0x1c18   :  { %v15096_v10 = vadd.f32 %v7479_v48, %v7292_v50  ;;  %v6851_v26 = vmul.f32 0.5, %v6850_v2  ;;  %v8214_v48 = vpack.c.bf16 %v8181_v32, %v8179_v8  ;;  %v15118_v16 = vpop.f32.mrf.mxu1 }
0x1c19   :  { %8592 = vmatmul.bf16.gmra.mxu3 %v11615_v51  ;;  %v11616_v51 = vld [vmem:[#allocation5 + $0x1d8] sm:$0xff] }
0x1c1a   :  { %v6852_v44 = vsub.f32 1.5, %v6851_v26  ;;  %11251 = vmatmul.msk.bf16.vlgmr.msrb.gmra.mxu0 %vm213_vm0, %v8214_v48 }
0x1c1c   :  { %v6853_v43 = vmul.f32 %v11662_v52, %v6852_v44 }
0x1c1d   :  { %v7293_v0 = vpop.f32.mrf.mxu2 }
0x1c1e   :  { %v7294_v19 = vadd.f32 %v7293_v0, %v14871_v4  ;;  %v6857_v54 = vsel %vm6856_vm10, %v11662_v52, %v6853_v43  ;;  %v11606_v4 = vld [vmem:[#allocation5 + $0x198] sm:$0xff]  ;;  %v15120_v56 = vpop.f32.mrf.mxu0  ;;  %v15122_v45 = vpop.f32.mrf.mxu3 }
0x1c1f   :  { %v6859_v60 = vmul.f32 %v6857_v54, %v14964_v9  ;;  %v6858_v31 = vmul.f32 %v6857_v54, %v14960_v17  ;;  %v6860_v23 = vmul.f32 %v6857_v54, %v14969_v58  ;;  %v6861_v55 = vmul.f32 %v6857_v54, %v14979_v22  ;;  %8390 = vmatmul.bf16.gmra.mxu1 %v11606_v4 }
0x1c20   :  { %v15103_v42 = vadd.f32 %v7481_v34, %v7294_v19  ;;  %v15113_v34 = vmul.f32 %v6857_v54, %v15018_v6  ;;  %v15116_v14 = vmul.f32 %v6857_v54, %v15026_v46  ;;  %v6862_v17 = vmul.f32 %v6857_v54, %v14987_v7  ;;  %v11612_v7 = vld [vmem:[#allocation7 + $0x78] sm:$0xff]  ;;  %v15148_v49 = vpop.f32.mrf.mxu1 }
0x1c21   :  { %v6863_v27 = vmul.f32 %v6857_v54, %v14996_v47  ;;  %v8012_v58 = vpack.c.bf16 %v15098_v40, %v15091_v21  ;;  %v6864_v22 = vmul.f32 %v6857_v54, %v15004_v29  ;;  %v6865_v6 = vmul.f32 %v6857_v54, %v15010_v24  ;;  %8466 = vmatpush.bf16.msrb.mxu2 %v11612_v7 }
0x1c22   :  { %11116 = vmatmul.msk.bf16.gmra.mxu2 %vm213_vm0, %v7614_v28  ;;  %v15131_v46 = vmul.f32 %v6857_v54, %v15036_v33  ;;  %v15134_v5 = vmul.f32 %v6857_v54, %v15043_v38  ;;  %vm6872_vm11 = vcmp.ge.f32.partialorder %v6858_v31, 0.0  ;;  %vm6873_vm13 = vcmp.ge.f32.partialorder %v6859_v60, 0.0 }
0x1c23   :  { %vm6874_vm15 = vcmp.ge.f32.partialorder %v6860_v23, 0.0  ;;  %vm6875_vm1 = vcmp.ge.f32.partialorder %v6861_v55, 0.0  ;;  %v15137_v47 = vmul.f32 %v6857_v54, %v15055_v1  ;;  %v6886_v8 = vmul.f32 0.01, %v6858_v31 }
0x1c24   :  { %v6887_v52 = vmul.f32 0.01, %v6859_v60  ;;  %v6888_v29 = vmul.f32 0.01, %v6860_v23  ;;  %v15140_v24 = vmul.f32 %v6857_v54, %v15051_v11  ;;  %v6889_v33 = vmul.f32 0.01, %v6861_v55 }
0x1c25   :  { %v7296_v9 = vpop.f32.mrf.mxu2  ;;  %v6890_v18 = vmul.f32 0.01, %v6862_v17  ;;  %v6891_v50 = vmul.f32 0.01, %v6863_v27  ;;  %vm6876_vm6 = vcmp.ge.f32.partialorder %v6862_v17, 0.0  ;;  %vm6877_vm12 = vcmp.ge.f32.partialorder %v6863_v27, 0.0 }
0x1c26   :  { %v6892_v38 = vmul.f32 0.01, %v6864_v22  ;;  %v6900_v39 = vsel %vm6872_vm11, %v6858_v31, %v6886_v8  ;;  %vm6878_vm2 = vcmp.ge.f32.partialorder %v6864_v22, 0.0  ;;  %v6893_v2 = vmul.f32 0.01, %v6865_v6  ;;  %v15150_v13 = vpop.f32.mrf.mxu0  ;;  %v8186_v32 = vpop.f32.mrf.mxu3 }
0x1c27   :  { %v6901_v1 = vsel %vm6873_vm13, %v6859_v60, %v6887_v52  ;;  %6914 = vst [vmem:[%s15731_s12] sm:$0xff] %v6900_v39  ;;  %v7297_v11 = vadd.f32 %v7296_v9, %v14879_v59  ;;  %vm6879_vm3 = vcmp.ge.f32.partialorder %v6865_v6, 0.0  ;;  %v6894_v26 = vmul.f32 0.01, %v15113_v34 }
0x1c28   :  { %v6902_v35 = vsel %vm6874_vm15, %v6860_v23, %v6888_v29  ;;  %v6903_v44 = vsel %vm6875_vm1, %v6861_v55, %v6889_v33  ;;  %6915 = vst [vmem:[%s15731_s12 + $0x8] sm:$0xff] %v6901_v1  ;;  %vm6880_vm4 = vcmp.ge.f32.partialorder %v15113_v34, 0.0  ;;  %v6895_v59 = vmul.f32 0.01, %v15116_v14  ;;  %v7987_v40 = vpop.f32.mrf.mxu1 }
0x1c29   :  { %v6904_v19 = vsel %vm6876_vm6, %v6862_v17, %v6890_v18  ;;  %v6905_v48 = vsel %vm6877_vm12, %v6863_v27, %v6891_v50  ;;  %6916 = vst [vmem:[%s15731_s12 + $0x10] sm:$0xff] %v6902_v35  ;;  %vm6881_vm8 = vcmp.ge.f32.partialorder %v15116_v14, 0.0  ;;  %vm6882_vm9 = vcmp.ge.f32.partialorder %v15131_v46, 0.0  ;;  %8597 = vmatmul.bf16.gmra.mxu3 %v11616_v51 }
0x1c2a   :  { %v6896_v43 = vmul.f32 0.01, %v15131_v46  ;;  %v6906_v28 = vsel %vm6878_vm2, %v6864_v22, %v6892_v38  ;;  %6917 = vst [vmem:[%s15731_s12 + $0x18] sm:$0xff] %v6903_v44  ;;  %v6897_v54 = vmul.f32 0.01, %v15134_v5  ;;  %v6907_v60 = vsel %vm6879_vm3, %v6865_v6, %v6893_v2 }
0x1c2b   :  { %6918 = vst [vmem:[%s15731_s12 + $0x20] sm:$0xff] %v6904_v19  ;;  %v15178_v31 = vadd.f32 %v15083_v15, %v7297_v11  ;;  %vm6883_vm10 = vcmp.ge.f32.partialorder %v15134_v5, 0.0  ;;  %v6898_v23 = vmul.f32 0.01, %v15137_v47  ;;  %v6908_v55 = vsel %vm6880_vm4, %v15113_v34, %v6894_v26 }
0x1c2c   :  { %6919 = vst [vmem:[%s15731_s12 + $0x28] sm:$0xff] %v6905_v48  ;;  %v8215_v9 = vpack.c.bf16 %v8186_v32, %v15122_v45  ;;  %vm6884_vm11 = vcmp.ge.f32.partialorder %v15137_v47, 0.0  ;;  %v6899_v15 = vmul.f32 0.01, %v15140_v24  ;;  %v11621_v45 = vld [vmem:[#allocation7 + $0x88] sm:$0xff]  ;;  %vm6885_vm13 = vcmp.ge.f32.partialorder %v15140_v24, 0.0 }
0x1c2d   :  { %v7298_v0 = vpop.f32.mrf.mxu2  ;;  %6920 = vst [vmem:[%s15731_s12 + $0x30] sm:$0xff] %v6906_v28  ;;  %v6910_v17 = vsel %vm6882_vm9, %v15131_v46, %v6896_v43  ;;  %v6911_v21 = vsel %vm6883_vm10, %v15134_v5, %v6897_v54  ;;  %8668 = vmatpush.bf16.msra.mxu0 %v11621_v45  ;;  %v6912_v27 = vsel %vm6884_vm11, %v15137_v47, %v6898_v23  ;;  %v11619_v28 = vld [vmem:[#allocation5 + $0x1f0] sm:$0x30] }
0x1c2e   :  { %v7299_v4 = vadd.f32 %v7298_v0, %v14887_v62  ;;  %v6909_v62 = vsel %vm6881_vm8, %v15116_v14, %v6895_v59  ;;  %6921 = vst [vmem:[%s15731_s12 + $0x38] sm:$0xff] %v6907_v60  ;;  %11252 = vmatmul.msk.bf16.gmra.mxu0 %vm213_vm0, %v8215_v9  ;;  %v7865_v14 = vpop.f32.mrf.mxu0  ;;  %v8189_v22 = vpop.f32.mrf.mxu3  ;;  %v6913_v6 = vsel %vm6885_vm13, %v15140_v24, %v6899_v15 }
0x1c2f   :  { %6922 = vst [vmem:[%s15731_s12 + $0x40] sm:$0xff] %v6908_v55  ;;  %v8013_v18 = vpack.c.bf16 %v15148_v49, %v15118_v16  ;;  %v11618_v16 = vld [vmem:[#allocation5 + $0x1e8] sm:$0xff] }
0x1c30   :  { %v15199_v34 = vadd.f32 %v15093_v61, %v7299_v4  ;;  %v11607_v61 = vld [vmem:[#allocation5 + $0x1a0] sm:$0xff]  ;;  %6923 = vst [vmem:[%s15731_s12 + $0x48] sm:$0xff] %v6909_v62  ;;  %v7989_v7 = vpop.f32.mrf.mxu1 }
0x1c31   :  { %6924 = vst [vmem:[%s15731_s12 + $0x50] sm:$0xff] %v6910_v17  ;;  %8395 = vmatmul.bf16.gmra.mxu1 %v11607_v61  ;;  %v8014_v32 = vpack.c.bf16 %v7989_v7, %v7987_v40  ;;  %v11284_v17 = vld [vmem:[#allocation5 + $0x1b8] sm:$0xf]  ;;  %v11610_v61 = vld [vmem:[#allocation5 + $0x1b8] sm:$0x30] }
0x1c32   :  { %11204 = vmatmul.msk.bf16.vlgmr.msra.gmra.mxu2 %vm213_vm0, %v8012_v58  ;;  %6925 = vst [vmem:[%s15731_s12 + $0x58] sm:$0xff] %v6911_v21  ;;  %v11285_v21 = vor.u32 %v11610_v61, %v11284_v17 }
0x1c33   :  { %6926 = vst [vmem:[%s15731_s12 + $0x60] sm:$0xff] %v6912_v27 }
0x1c34   :  { %6927 = vst [vmem:[%s15731_s12 + $0x68] sm:$0xf] %v6913_v6  ;;  %v11620_v6 = vld [vmem:[#allocation7 + $0x80] sm:$0xff] }
0x1c35   :  { %v7301_v58 = vpop.f32.mrf.mxu2  ;;  %8669 = vmatpush.bf16.msra.mxu0 %v11620_v6 }
0x1c36   :  { %v7302_v46 = vadd.f32 %v7301_v58, %v14892_v63  ;;  %v7868_v8 = vpop.f32.mrf.mxu0  ;;  %v11617_v63 = vld [vmem:[#allocation5 + $0x1e0] sm:$0xff]  ;;  %v8191_v29 = vpop.f32.mrf.mxu3 }
0x1c37   :  { %v8216_v24 = vpack.c.bf16 %v8191_v29, %v8189_v22 }
0x1c38   :  { %v15237_v5 = vadd.f32 %v15100_v37, %v7302_v46  ;;  %v11608_v37 = vld [vmem:[#allocation5 + $0x1a8] sm:$0xff]  ;;  %v7992_v50 = vpop.f32.mrf.mxu1 }
0x1c39   :  { %8602 = vmatmul.bf16.gmra.mxu3 %v11617_v63 }
0x1c3d   :  { %v7303_v47 = vpop.f32.mrf.mxu2 }
0x1c3e   :  { %v7304_v52 = vadd.f32 %v7303_v47, %v14903_v25  ;;  %11253 = vmatmul.msk.bf16.gmra.mxu0 %vm213_vm0, %v8216_v24  ;;  %v7870_v39 = vpop.f32.mrf.mxu0  ;;  %v8194_v25 = vpop.f32.mrf.mxu3 }
0x1c40   :  { %v15244_v33 = vadd.f32 %v15120_v56, %v7304_v52  ;;  %v7994_v56 = vpop.f32.mrf.mxu1 }
0x1c41   :  { %8400 = vmatmul.bf16.gmra.mxu1 %v11608_v37  ;;  %v8015_v45 = vpack.c.bf16 %v7994_v56, %v7992_v50 }
0x1c42   :  { %11205 = vmatmul.msk.bf16.gmra.mxu2 %vm213_vm0, %v8013_v18 }
0x1c45   :  { %v7661_v38 = vpop.f32.mrf.mxu2 }
0x1c46   :  { %v7696_v2 = vadd.f32 %v7661_v38, %v14952_v36  ;;  %v7873_v26 = vpop.f32.mrf.mxu0  ;;  %v8196_v35 = vpop.f32.mrf.mxu3  ;;  %v11609_v36 = vld [vmem:[#allocation5 + $0x1b0] sm:$0xff] }
0x1c47   :  { %v8217_v44 = vpack.c.bf16 %v8196_v35, %v8194_v25 }
0x1c48   :  { %v15252_v1 = vadd.f32 %v15150_v13, %v7696_v2  ;;  %v7997_v51 = vpop.f32.mrf.mxu1 }
0x1c49   :  { %8607 = vmatmul.bf16.gmra.mxu3 %v11618_v16 }
0x1c4d   :  { %v7663_v11 = vpop.f32.mrf.mxu2 }
0x1c4e   :  { %v7697_v49 = vadd.f32 %v7663_v11, %v14991_v3  ;;  %11254 = vmatmul.msk.bf16.gmra.mxu0 %vm213_vm0, %v8217_v44  ;;  %v7875_v59 = vpop.f32.mrf.mxu0  ;;  %v8199_v48 = vpop.f32.mrf.mxu3  ;;  %v11331_v3 = vld [vmem:[#allocation5 + $0x1f0] sm:$0xf] }
0x1c4f   :  { %v11332_v23 = vor.u32 %v11619_v28, %v11331_v3 }
0x1c50   :  { %v15255_v0 = vadd.f32 %v7865_v14, %v7697_v49  ;;  %v7999_v54 = vpop.f32.mrf.mxu1 }
0x1c51   :  { %8405 = vmatmul.bf16.gmra.mxu1 %v11609_v36  ;;  %v8016_v24 = vpack.c.bf16 %v7999_v54, %v7997_v51 }
0x1c52   :  { %11206 = vmatmul.msk.bf16.gmra.mxu2 %vm213_vm0, %v8014_v32 }
0x1c55   :  { %v7666_v13 = vpop.f32.mrf.mxu2 }
0x1c56   :  { %v7698_v19 = vadd.f32 %v7666_v13, %v15000_v12  ;;  %v7878_v4 = vpop.f32.mrf.mxu0  ;;  %v8201_v9 = vpop.f32.mrf.mxu3  ;;  %v11611_v12 = vld [vmem:[#allocation7 + $0x70] sm:$0xff] }
0x1c57   :  { %v8218_v15 = vpack.c.bf16 %v8201_v9, %v8199_v48  ;;  %8467 = vmatpush.bf16.msrb.mxu2 %v11611_v12 }
0x1c58   :  { %v15260_v43 = vadd.f32 %v7868_v8, %v7698_v19  ;;  %v8002_v40 = vpop.f32.mrf.mxu1 }
0x1c59   :  { %8612 = vmatmul.bf16.gmra.mxu3 %v11332_v23 }
0x1c5d   :  { %v7668_v60 = vpop.f32.mrf.mxu2 }
0x1c5e   :  { %v7699_v55 = vadd.f32 %v7668_v60, %v15031_v30  ;;  %11255 = vmatmul.msk.bf16.gmra.mxu0 %vm213_vm0, %v8218_v15  ;;  %v7880_v27 = vpop.f32.mrf.mxu0  ;;  %v8204_v58 = vpop.f32.mrf.mxu3 }
0x1c60   :  { %v15263_v62 = vadd.f32 %v7870_v39, %v7699_v55  ;;  %v8004_v46 = vpop.f32.mrf.mxu1 }
0x1c61   :  { %8410 = vmatmul.bf16.gmra.mxu1 %v11285_v21  ;;  %v8017_v49 = vpack.c.bf16 %v8004_v46, %v8002_v40 }
0x1c62   :  { %11207 = vmatmul.msk.bf16.gmra.mxu2 %vm213_vm0, %v8015_v45 }
0x1c65   :  { %v7671_v14 = vpop.f32.mrf.mxu2 }
0x1c66   :  { %v7700_v30 = vadd.f32 %v7671_v14, %v15063_v41  ;;  %v7883_v47 = vpop.f32.mrf.mxu0  ;;  %v8206_v63 = vpop.f32.mrf.mxu3 }
0x1c67   :  { %v8219_v52 = vpack.c.bf16 %v8206_v63, %v8204_v58 }
0x1c68   :  { %v15268_v22 = vadd.f32 %v7873_v26, %v7700_v30  ;;  %v8007_v41 = vpop.f32.mrf.mxu1 }
0x1c6d   :  { %v7673_v7 = vpop.f32.mrf.mxu2 }
0x1c6e   :  { %v7701_v8 = vadd.f32 %v7673_v7, %v15072_v53  ;;  %11256 = vmatmul.msk.bf16.gmra.mxu0 %vm213_vm0, %v8219_v52  ;;  %v7885_v37 = vpop.f32.mrf.mxu0  ;;  %v8209_v38 = vpop.f32.mrf.mxu3 }
0x1c70   :  { %v15271_v29 = vadd.f32 %v7875_v59, %v7701_v8  ;;  %v8009_v2 = vpop.f32.mrf.mxu1 }
0x1c71   :  { %v8018_v54 = vpack.c.bf16 %v8009_v2, %v8007_v41 }
0x1c72   :  { %11208 = vmatmul.msk.bf16.gmra.mxu2 %vm213_vm0, %v8016_v24 }
0x1c75   :  { %v7676_v18 = vpop.f32.mrf.mxu2 }
0x1c76   :  { %v7702_v50 = vadd.f32 %v7676_v18, %v15081_v57  ;;  %v7888_v53 = vpop.f32.mrf.mxu0  ;;  %v8211_v11 = vpop.f32.mrf.mxu3 }
0x1c77   :  { %v8220_v26 = vpack.c.bf16 %v8211_v11, %v8209_v38 }
0x1c78   :  { %v15276_v39 = vadd.f32 %v7878_v4, %v7702_v50 }
0x1c7c   :  { %v8381_v35 = vpop.f32.mrf.mxu1 }
0x1c7d   :  { %v7678_v25 = vpop.f32.mrf.mxu2 }
0x1c7e   :  { %v7703_v56 = vadd.f32 %v7678_v25, %v15086_v20  ;;  %11257 = vmatmul.msk.bf16.gmra.mxu0 %vm213_vm0, %v8220_v26  ;;  %v7890_v57 = vpop.f32.mrf.mxu0  ;;  %v8583_v36 = vpop.f32.mrf.mxu3 }
0x1c80   :  { %v15279_v16 = vadd.f32 %v7880_v27, %v7703_v56 }
0x1c82   :  { %11209 = vmatmul.msk.bf16.gmra.mxu2 %vm213_vm0, %v8017_v49 }
0x1c84   :  { %v8383_v13 = vpop.f32.mrf.mxu1 }
0x1c85   :  { %v7681_v44 = vpop.f32.mrf.mxu2  ;;  %v8416_v40 = vpack.c.bf16 %v8383_v13, %v8381_v35 }
0x1c86   :  { %v7704_v32 = vadd.f32 %v7681_v44, %v15096_v10  ;;  %v7893_v20 = vpop.f32.mrf.mxu0  ;;  %v8585_v48 = vpop.f32.mrf.mxu3 }
0x1c87   :  { %v8618_v3 = vpack.c.bf16 %v8585_v48, %v8583_v36 }
0x1c88   :  { %v15284_v51 = vadd.f32 %v7883_v47, %v7704_v32 }
0x1c8c   :  { %v8386_v60 = vpop.f32.mrf.mxu1 }
0x1c8d   :  { %v7683_v59 = vpop.f32.mrf.mxu2 }
0x1c8e   :  { %v7705_v19 = vadd.f32 %v7683_v59, %v15103_v42  ;;  %11345 = vmatmul.msk.bf16.vlgmr.msra.gmra.mxu0 %vm213_vm0, %v8618_v3  ;;  %v7895_v10 = vpop.f32.mrf.mxu0  ;;  %v8588_v55 = vpop.f32.mrf.mxu3 }
0x1c90   :  { %v15287_v28 = vadd.f32 %v7885_v37, %v7705_v19 }
0x1c92   :  { %11210 = vmatmul.msk.bf16.gmra.mxu2 %vm213_vm0, %v8018_v54 }
0x1c94   :  { %v8388_v15 = vpop.f32.mrf.mxu1 }
0x1c95   :  { %v7686_v4 = vpop.f32.mrf.mxu2  ;;  %v8417_v52 = vpack.c.bf16 %v8388_v15, %v8386_v60 }
0x1c96   :  { %v7706_v23 = vadd.f32 %v7686_v4, %v15178_v31  ;;  %v8590_v61 = vpop.f32.mrf.mxu3 }
0x1c97   :  { %v8267_v42 = vpop.f32.mrf.mxu0  ;;  %v8619_v12 = vpack.c.bf16 %v8590_v61, %v8588_v55 }
0x1c98   :  { %v15292_v9 = vadd.f32 %v7888_v53, %v7706_v23 }
0x1c9c   :  { %v8391_v14 = vpop.f32.mrf.mxu1 }
0x1c9d   :  { %v7688_v45 = vpop.f32.mrf.mxu2 }
0x1c9e   :  { %v7707_v17 = vadd.f32 %v7688_v45, %v15199_v34  ;;  %11346 = vmatmul.msk.bf16.gmra.mxu0 %vm213_vm0, %v8619_v12  ;;  %v8593_v58 = vpop.f32.mrf.mxu3 }
0x1c9f   :  { %v8269_v30 = vpop.f32.mrf.mxu0 }
0x1ca0   :  { %v15295_v21 = vadd.f32 %v7890_v57, %v7707_v17 }
0x1ca2   :  { %11298 = vmatmul.msk.bf16.vlgmr.msrb.gmra.mxu2 %vm213_vm0, %v8416_v40 }
0x1ca4   :  { %v8393_v7 = vpop.f32.mrf.mxu1 }
0x1ca5   :  { %v7691_v27 = vpop.f32.mrf.mxu2  ;;  %v8418_v11 = vpack.c.bf16 %v8393_v7, %v8391_v14 }
0x1ca6   :  { %v7708_v31 = vadd.f32 %v7691_v27, %v15237_v5  ;;  %v8595_v47 = vpop.f32.mrf.mxu3 }
0x1ca7   :  { %v8620_v8 = vpack.c.bf16 %v8595_v47, %v8593_v58 }
0x1ca8   :  { %v15300_v6 = vadd.f32 %v7893_v20, %v7708_v31 }
0x1cab   :  { %v8272_v24 = vpop.f32.mrf.mxu0 }
0x1cad   :  { %v7693_v46 = vpop.f32.mrf.mxu2 }
0x1cae   :  { %v7709_v34 = vadd.f32 %v7693_v46, %v15244_v33  ;;  %11347 = vmatmul.msk.bf16.gmra.mxu0 %vm213_vm0, %v8620_v8  ;;  %v8598_v18 = vpop.f32.mrf.mxu3  ;;  %v8396_v37 = vpop.f32.mrf.mxu1 }
0x1cb0   :  { %v15303_v63 = vadd.f32 %v7895_v10, %v7709_v34 }
0x1cb2   :  { %11299 = vmatmul.msk.bf16.gmra.mxu2 %vm213_vm0, %v8417_v52 }
0x1cb3   :  { %v8274_v38 = vpop.f32.mrf.mxu0 }
0x1cb5   :  { %v8065_v41 = vpop.f32.mrf.mxu2 }
0x1cb6   :  { %v8100_v5 = vadd.f32 %v8065_v41, %v15252_v1  ;;  %v8600_v25 = vpop.f32.mrf.mxu3  ;;  %v8398_v49 = vpop.f32.mrf.mxu1 }
0x1cb7   :  { %v8621_v53 = vpack.c.bf16 %v8600_v25, %v8598_v18  ;;  %v8419_v48 = vpack.c.bf16 %v8398_v49, %v8396_v37 }
0x1cb8   :  { %v15308_v50 = vadd.f32 %v8267_v42, %v8100_v5 }
0x1cbb   :  { %v8277_v26 = vpop.f32.mrf.mxu0 }
0x1cbd   :  { %v8067_v2 = vpop.f32.mrf.mxu2 }
0x1cbe   :  { %v8101_v33 = vadd.f32 %v8067_v2, %v15255_v0  ;;  %11348 = vmatmul.msk.bf16.gmra.mxu0 %vm213_vm0, %v8621_v53  ;;  %v8603_v44 = vpop.f32.mrf.mxu3  ;;  %v8401_v36 = vpop.f32.mrf.mxu1 }
0x1cc0   :  { %v15311_v56 = vadd.f32 %v8269_v30, %v8101_v33 }
0x1cc2   :  { %11300 = vmatmul.msk.bf16.gmra.mxu2 %vm213_vm0, %v8418_v11 }
0x1cc3   :  { %v8279_v32 = vpop.f32.mrf.mxu0 }
0x1cc5   :  { %v8070_v1 = vpop.f32.mrf.mxu2 }
0x1cc6   :  { %v8102_v35 = vadd.f32 %v8070_v1, %v15260_v43  ;;  %v8605_v59 = vpop.f32.mrf.mxu3  ;;  %v8403_v43 = vpop.f32.mrf.mxu1 }
0x1cc7   :  { %v8622_v20 = vpack.c.bf16 %v8605_v59, %v8603_v44  ;;  %v8420_v61 = vpack.c.bf16 %v8403_v43, %v8401_v36 }
0x1cc8   :  { %v15316_v57 = vadd.f32 %v8272_v24, %v8102_v35 }
0x1ccb   :  { %v8282_v3 = vpop.f32.mrf.mxu0 }
0x1ccd   :  { %v8072_v0 = vpop.f32.mrf.mxu2 }
0x1cce   :  { %v8103_v13 = vadd.f32 %v8072_v0, %v15263_v62  ;;  %11349 = vmatmul.msk.bf16.gmra.mxu0 %vm213_vm0, %v8622_v20  ;;  %v8608_v4 = vpop.f32.mrf.mxu3  ;;  %v8406_v45 = vpop.f32.mrf.mxu1 }
0x1cd0   :  { %v15319_v19 = vadd.f32 %v8274_v38, %v8103_v13 }
0x1cd2   :  { %11301 = vmatmul.msk.bf16.gmra.mxu2 %vm213_vm0, %v8419_v48 }
0x1cd3   :  { %v8284_v23 = vpop.f32.mrf.mxu0 }
0x1cd5   :  { %v8075_v54 = vpop.f32.mrf.mxu2 }
0x1cd6   :  { %v8104_v60 = vadd.f32 %v8075_v54, %v15268_v22  ;;  %v8610_v15 = vpop.f32.mrf.mxu3  ;;  %v8408_v30 = vpop.f32.mrf.mxu1 }
0x1cd7   :  { %v8623_v42 = vpack.c.bf16 %v8610_v15, %v8608_v4  ;;  %v8421_v47 = vpack.c.bf16 %v8408_v30, %v8406_v45 }
0x1cd8   :  { %v15324_v10 = vadd.f32 %v8277_v26, %v8104_v60 }
0x1cdb   :  { %v8287_v12 = vpop.f32.mrf.mxu0 }
0x1cdd   :  { %v8077_v55 = vpop.f32.mrf.mxu2 }
0x1cde   :  { %v8105_v62 = vadd.f32 %v8077_v55, %v15271_v29  ;;  %11350 = vmatmul.msk.bf16.gmra.mxu0 %vm213_vm0, %v8623_v42  ;;  %v8613_v14 = vpop.f32.mrf.mxu3  ;;  %v8411_v52 = vpop.f32.mrf.mxu1 }
0x1ce0   :  { %v15327_v17 = vadd.f32 %v8279_v32, %v8105_v62 }
0x1ce2   :  { %11302 = vmatmul.msk.bf16.gmra.mxu2 %vm213_vm0, %v8420_v61 }
0x1ce3   :  { %v8289_v31 = vpop.f32.mrf.mxu0 }
0x1ce5   :  { %v8080_v40 = vpop.f32.mrf.mxu2 }
0x1ce6   :  { %v8106_v22 = vadd.f32 %v8080_v40, %v15276_v39  ;;  %v8615_v46 = vpop.f32.mrf.mxu3  ;;  %v8413_v37 = vpop.f32.mrf.mxu1 }
0x1ce7   :  { %v8624_v7 = vpack.c.bf16 %v8615_v46, %v8613_v14  ;;  %v8422_v2 = vpack.c.bf16 %v8413_v37, %v8411_v52 }
0x1ce8   :  { %v15332_v27 = vadd.f32 %v8282_v3, %v8106_v22 }
0x1ceb   :  { %v8292_v8 = vpop.f32.mrf.mxu0 }
0x1ced   :  { %v8082_v29 = vpop.f32.mrf.mxu2 }
0x1cee   :  { %v8107_v58 = vadd.f32 %v8082_v29, %v15279_v16  ;;  %11351 = vmatmul.msk.bf16.gmra.mxu0 %vm213_vm0, %v8624_v7 }
0x1cf0   :  { %v15335_v34 = vadd.f32 %v8284_v23, %v8107_v58 }
0x1cf2   :  { %11303 = vmatmul.msk.bf16.gmra.mxu2 %vm213_vm0, %v8421_v47 }
0x1cf3   :  { %v8294_v5 = vpop.f32.mrf.mxu0 }
0x1cf5   :  { %v8085_v39 = vpop.f32.mrf.mxu2 }
0x1cf6   :  { %v8108_v24 = vadd.f32 %v8085_v39, %v15284_v51 }
0x1cf8   :  { %v15340_v41 = vadd.f32 %v8287_v12, %v8108_v24 }
0x1cfb   :  { %v8297_v33 = vpop.f32.mrf.mxu0 }
0x1cfd   :  { %v8087_v18 = vpop.f32.mrf.mxu2 }
0x1cfe   :  { %v8109_v16 = vadd.f32 %v8087_v18, %v15287_v28 }
0x1d00   :  { %v15343_v38 = vadd.f32 %v8289_v31, %v8109_v16 }
0x1d02   :  { %11304 = vmatmul.msk.bf16.gmra.mxu2 %vm213_vm0, %v8422_v2 }
0x1d03   :  { %v8299_v26 = vpop.f32.mrf.mxu0 }
0x1d05   :  { %v8090_v25 = vpop.f32.mrf.mxu2 }
0x1d06   :  { %v8110_v53 = vadd.f32 %v8090_v25, %v15292_v9 }
0x1d08   :  { %v8312_v11 = vadd.f32 %v8292_v8, %v8110_v53 }
0x1d0b   :  { %v8671_v35 = vpop.f32.mrf.mxu0 }
0x1d0d   :  { %v8092_v49 = vpop.f32.mrf.mxu2 }
0x1d0e   :  { %v8111_v51 = vadd.f32 %v8092_v49, %v15295_v21 }
0x1d10   :  { %v15348_v1 = vadd.f32 %v8294_v5, %v8111_v51 }
0x1d13   :  { %v8673_v36 = vpop.f32.mrf.mxu0 }
0x1d15   :  { %v8095_v44 = vpop.f32.mrf.mxu2 }
0x1d16   :  { %v8112_v28 = vadd.f32 %v8095_v44, %v15300_v6 }
0x1d18   :  { %v15351_v32 = vadd.f32 %v8297_v33, %v8112_v28 }
0x1d1b   :  { %v8676_v9 = vpop.f32.mrf.mxu0 }
0x1d1d   :  { %v8097_v0 = vpop.f32.mrf.mxu2 }
0x1d1e   :  { %v8113_v13 = vadd.f32 %v8097_v0, %v15303_v63 }
0x1d20   :  { %v15354_v59 = vadd.f32 %v8299_v26, %v8113_v13 }
0x1d23   :  { %v8678_v21 = vpop.f32.mrf.mxu0 }
0x1d25   :  { %v8469_v20 = vpop.f32.mrf.mxu2 }
0x1d26   :  { %v8504_v48 = vadd.f32 %v8469_v20, %v15308_v50 }
0x1d28   :  { %v15357_v3 = vadd.f32 %v8671_v35, %v8504_v48 }
0x1d2b   :  { %v8681_v23 = vpop.f32.mrf.mxu0 }
0x1d2d   :  { %v8471_v54 = vpop.f32.mrf.mxu2 }
0x1d2e   :  { %v8505_v43 = vadd.f32 %v8471_v54, %v15311_v56 }
0x1d30   :  { %v15360_v60 = vadd.f32 %v8673_v36, %v8505_v43 }
0x1d32   :  { %v8720_v6 = vadd.f32 %v15360_v60, %v15357_v3 }
0x1d33   :  { %v8683_v45 = vpop.f32.mrf.mxu0 }
0x1d35   :  { %v8474_v4 = vpop.f32.mrf.mxu2 }
0x1d36   :  { %v8506_v63 = vadd.f32 %v8474_v4, %v15316_v57 }
0x1d38   :  { %v15365_v55 = vadd.f32 %v8676_v9, %v8506_v63 }
0x1d3a   :  { %v8721_v62 = vadd.f32 %v8720_v6, %v15365_v55 }
0x1d3b   :  { %v8686_v22 = vpop.f32.mrf.mxu0 }
0x1d3d   :  { %v8476_v50 = vpop.f32.mrf.mxu2 }
0x1d3e   :  { %v8507_v15 = vadd.f32 %v8476_v50, %v15319_v19 }
0x1d40   :  { %v8709_v42 = vadd.f32 %v8678_v21, %v8507_v15 }
0x1d42   :  { %v8722_v61 = vadd.f32 %v8721_v62, %v8709_v42 }
0x1d43   :  { %v8688_v58 = vpop.f32.mrf.mxu0 }
0x1d45   :  { %v8479_v56 = vpop.f32.mrf.mxu2 }
0x1d46   :  { %v8508_v12 = vadd.f32 %v8479_v56, %v15324_v10 }
0x1d48   :  { %v8710_v40 = vadd.f32 %v8681_v23, %v8508_v12 }
0x1d4a   :  { %v8723_v14 = vadd.f32 %v8722_v61, %v8710_v40 }
0x1d4b   :  { %v8691_v52 = vpop.f32.mrf.mxu0 }
0x1d4d   :  { %v8481_v31 = vpop.f32.mrf.mxu2 }
0x1d4e   :  { %v8509_v30 = vadd.f32 %v8481_v31, %v15327_v17 }
0x1d50   :  { %v8711_v57 = vadd.f32 %v8683_v45, %v8509_v30 }
0x1d52   :  { %v8724_v29 = vadd.f32 %v8723_v14, %v8711_v57 }
0x1d53   :  { %v8693_v37 = vpop.f32.mrf.mxu0 }
0x1d55   :  { %v8484_v46 = vpop.f32.mrf.mxu2 }
0x1d56   :  { %v8510_v7 = vadd.f32 %v8484_v46, %v15332_v27 }
0x1d58   :  { %v8712_v47 = vadd.f32 %v8686_v22, %v8510_v7 }
0x1d5a   :  { %v8725_v19 = vadd.f32 %v8724_v29, %v8712_v47 }
0x1d5b   :  { %v8696_v53 = vpop.f32.mrf.mxu0 }
0x1d5d   :  { %v8486_v8 = vpop.f32.mrf.mxu2 }
0x1d5e   :  { %v8511_v39 = vadd.f32 %v8486_v8, %v15335_v34 }
0x1d60   :  { %v8713_v24 = vadd.f32 %v8688_v58, %v8511_v39 }
0x1d62   :  { %v8726_v10 = vadd.f32 %v8725_v19, %v8713_v24 }
0x1d63   :  { %v8698_v44 = vpop.f32.mrf.mxu0 }
0x1d65   :  { %v8489_v5 = vpop.f32.mrf.mxu2 }
0x1d66   :  { %v8512_v18 = vadd.f32 %v8489_v5, %v15340_v41 }
0x1d68   :  { %v8714_v16 = vadd.f32 %v8691_v52, %v8512_v18 }
0x1d6a   :  { %v8727_v17 = vadd.f32 %v8726_v10, %v8714_v16 }
0x1d6b   :  { %v8701_v13 = vpop.f32.mrf.mxu0 }
0x1d6d   :  { %v8491_v2 = vpop.f32.mrf.mxu2 }
0x1d6e   :  { %v8513_v33 = vadd.f32 %v8491_v2, %v15343_v38 }
0x1d70   :  { %v8715_v25 = vadd.f32 %v8693_v37, %v8513_v33 }
0x1d72   :  { %v8728_v27 = vadd.f32 %v8727_v17, %v8715_v25 }
0x1d73   :  { %v8703_v54 = vpop.f32.mrf.mxu0 }
0x1d75   :  { %v8494_v26 = vpop.f32.mrf.mxu2 }
0x1d76   :  { %v8514_v49 = vadd.f32 %v8494_v26, %v8312_v11 }
0x1d78   :  { %v8716_v51 = vadd.f32 %v8696_v53, %v8514_v49 }
0x1d7a   :  { %v8729_v35 = vadd.f32 %v8728_v27, %v8716_v51 }
0x1d7d   :  { %v8496_v34 = vpop.f32.mrf.mxu2 }
0x1d7e   :  { %v8515_v28 = vadd.f32 %v8496_v34, %v15348_v1 }
0x1d80   :  { %v8717_v36 = vadd.f32 %v8698_v44, %v8515_v28  ;;  %v11628_v28 = vld [vmem:[#allocation8 + $0x30] sm:$0xff] }
0x1d82   :  { %v8730_v0 = vadd.f32 %v8729_v35, %v8717_v36 }
0x1d85   :  { %v8499_v41 = vpop.f32.mrf.mxu2 }
0x1d86   :  { %v8516_v9 = vadd.f32 %v8499_v41, %v15351_v32  ;;  %v11627_v41 = vld [vmem:[#allocation8 + $0x28] sm:$0xff] }
0x1d88   :  { %v8718_v20 = vadd.f32 %v8701_v13, %v8516_v9  ;;  %v11626_v9 = vld [vmem:[#allocation8 + $0x20] sm:$0xff] }
0x1d8a   :  { %v8731_v48 = vadd.f32 %v8730_v0, %v8718_v20 }
0x1d8d   :  { %v8501_v38 = vpop.f32.mrf.mxu2 }
0x1d8e   :  { %v8517_v21 = vadd.f32 %v8501_v38, %v15354_v59  ;;  %v11625_v38 = vld [vmem:[#allocation8 + $0x18] sm:$0xff] }
0x1d90   :  { %v8719_v43 = vadd.f32 %v8703_v54, %v8517_v21 }
0x1d92   :  { %v8732_v11 = vsel %vm6000_vm14, %v8719_v43, 0.0 }
0x1d93   :  { %v8733_v6 = vadd.f32 %v8732_v11, %v8731_v48 }
0x1d95   :  { %v8734_v4 = vrot.slane %v8733_v6, 4 }
0x1d97   :  { %v8735_v23 = vadd.f32 %v8734_v4, %v8733_v6  ;;  %v11623_v6 = vld [vmem:[#allocation8 + $0x8] sm:$0xff]  ;;  %v11622_v4 = vld [vmem:[#allocation8] sm:$0xff] }
0x1d99   :  { %v8736_v63 = vrot.slane %v8735_v23, 2 }
0x1d9b   :  { %v8737_v1 = vadd.f32 %v8736_v63, %v8735_v23 }
0x1d9d   :  { %v8738_v62 = vrot.slane %v8737_v1, 1 }
0x1d9f   :  { %v8739_v50 = vadd.f32 %v8738_v62, %v8737_v1 }
0x1da1   :  { %v8740_v15 = vmul.f32 0.009259259, %v8739_v50 }
0x1da3   :  { %v15380_v45 = vsub.f32 %v15357_v3, %v8740_v15  ;;  %v15383_v32 = vsub.f32 %v15360_v60, %v8740_v15  ;;  %v15386_v59 = vsub.f32 %v15365_v55, %v8740_v15  ;;  %v15388_v61 = vsub.f32 %v8709_v42, %v8740_v15 }
0x1da4   :  { %v15390_v56 = vsub.f32 %v8710_v40, %v8740_v15  ;;  %v15392_v12 = vsub.f32 %v8711_v57, %v8740_v15  ;;  %v15394_v22 = vsub.f32 %v8712_v47, %v8740_v15  ;;  %v15396_v14 = vsub.f32 %v8713_v24, %v8740_v15 }
0x1da5   :  { %v15398_v31 = vsub.f32 %v8714_v16, %v8740_v15  ;;  %v15400_v3 = vsub.f32 %v8715_v25, %v8740_v15  ;;  %v15402_v30 = vsub.f32 %v8716_v51, %v8740_v15  ;;  %v15404_v60 = vsub.f32 %v8717_v36, %v8740_v15  ;;  %v11629_v51 = vld [vmem:[#allocation8 + $0x38] sm:$0xff] }
0x1da6   :  { %v15406_v55 = vsub.f32 %v8718_v20, %v8740_v15  ;;  %v15408_v42 = vsub.f32 %v8719_v43, %v8740_v15  ;;  %v8755_v40 = vmul.f32 %v15380_v45, %v15380_v45  ;;  %v8756_v57 = vmul.f32 %v15383_v32, %v15383_v32  ;;  %8928 = vmatpush.bf16.msra.mxu1 %v11629_v51  ;;  %v11624_v43 = vld [vmem:[#allocation8 + $0x10] sm:$0xff] }
0x1da7   :  { %v8757_v29 = vmul.f32 %v15386_v59, %v15386_v59  ;;  %v8758_v46 = vmul.f32 %v15388_v61, %v15388_v61  ;;  %v8759_v47 = vmul.f32 %v15390_v56, %v15390_v56  ;;  %v8760_v8 = vmul.f32 %v15392_v12, %v15392_v12 }
0x1da8   :  { %v8769_v58 = vadd.f32 %v8756_v57, %v8755_v40  ;;  %v8761_v39 = vmul.f32 %v15394_v22, %v15394_v22  ;;  %v8762_v10 = vmul.f32 %v15396_v14, %v15396_v14  ;;  %v8763_v18 = vmul.f32 %v15398_v31, %v15398_v31 }
0x1da9   :  { %v8764_v16 = vmul.f32 %v15400_v3, %v15400_v3  ;;  %v8765_v2 = vmul.f32 %v15402_v30, %v15402_v30  ;;  %v8766_v25 = vmul.f32 %v15404_v60, %v15404_v60  ;;  %v8768_v27 = vmul.f32 %v15408_v42, %v15408_v42 }
0x1daa   :  { %v8770_v7 = vadd.f32 %v8769_v58, %v8757_v29  ;;  %v8767_v26 = vmul.f32 %v15406_v55, %v15406_v55  ;;  %8929 = vmatpush.bf16.msra.mxu1 %v11628_v28 }
0x1dab   :  { %v8781_v44 = vsel %vm6000_vm14, %v8768_v27, 0.0 }
0x1dac   :  { %v8771_v19 = vadd.f32 %v8770_v7, %v8758_v46 }
0x1dae   :  { %v8772_v52 = vadd.f32 %v8771_v19, %v8759_v47  ;;  %8930 = vmatpush.bf16.msra.mxu1 %v11627_v41 }
0x1db0   :  { %v8773_v24 = vadd.f32 %v8772_v52, %v8760_v8 }
0x1db2   :  { %v8774_v5 = vadd.f32 %v8773_v24, %v8761_v39  ;;  %8931 = vmatpush.bf16.msra.mxu1 %v11626_v9 }
0x1db4   :  { %v8775_v37 = vadd.f32 %v8774_v5, %v8762_v10 }
0x1db6   :  { %v8776_v17 = vadd.f32 %v8775_v37, %v8763_v18  ;;  %8932 = vmatpush.bf16.msra.mxu1 %v11625_v38 }
0x1db8   :  { %v8777_v33 = vadd.f32 %v8776_v17, %v8764_v16 }
0x1dba   :  { %v8778_v53 = vadd.f32 %v8777_v33, %v8765_v2  ;;  %8933 = vmatpush.bf16.msra.mxu1 %v11624_v43 }
0x1dbc   :  { %v8779_v49 = vadd.f32 %v8778_v53, %v8766_v25 }
0x1dbe   :  { %v8780_v35 = vadd.f32 %v8779_v49, %v8767_v26  ;;  %8934 = vmatpush.bf16.msra.mxu1 %v11623_v6 }
0x1dc0   :  { %v8782_v34 = vadd.f32 %v8781_v44, %v8780_v35 }
0x1dc2   :  { %v8783_v36 = vrot.slane %v8782_v34, 4  ;;  %8935 = vmatpush.bf16.msra.mxu1 %v11622_v4 }
0x1dc4   :  { %v8784_v0 = vadd.f32 %v8783_v36, %v8782_v34 }
0x1dc6   :  { %v8785_v13 = vrot.slane %v8784_v0, 2 }
0x1dc8   :  { %v8786_v20 = vadd.f32 %v8785_v13, %v8784_v0 }
0x1dca   :  { %v8787_v48 = vrot.slane %v8786_v20, 1 }
0x1dcc   :  { %v8788_v21 = vadd.f32 %v8787_v48, %v8786_v20 }
0x1dce   :  { %v8789_v54 = vmul.f32 0.009259259, %v8788_v21 }
0x1dd0   :  { %v8790_v11 = vadd.f32 1e-05, %v8789_v54 }
0x1dd2   :  { %11663 = vrsqrt.f32 %v8790_v11  ;;  %vm8797_vm15 = vweird.f32 %v8790_v11 }
0x1dd8   :  { %v11664_v23 = vpop.eup %11663 }
0x1dd9   :  { %v8792_v63 = vmul.f32 %v11664_v23, %v8790_v11  ;;  %vm8798_vm0 = vweird.f32 %v11664_v23 }
0x1dda   :  { %vm8799_vm1 = vmor %vm8797_vm15, %vm8798_vm0 }
0x1ddb   :  { %v8793_v1 = vmul.f32 %v11664_v23, %v8792_v63 }
0x1ddd   :  { %v8794_v62 = vmul.f32 0.5, %v8793_v1 }
0x1ddf   :  { %v8795_v50 = vsub.f32 1.5, %v8794_v62 }
0x1de1   :  { %v8796_v15 = vmul.f32 %v11664_v23, %v8795_v50 }
0x1de3   :  { %v8800_v40 = vsel %vm8799_vm1, %v11664_v23, %v8796_v15 }
0x1de4   :  { %v8814_v57 = vmul.f32 %v8800_v40, %v15408_v42  ;;  %v8801_v29 = vmul.f32 %v8800_v40, %v15380_v45  ;;  %v8802_v58 = vmul.f32 %v8800_v40, %v15383_v32  ;;  %v8803_v46 = vmul.f32 %v8800_v40, %v15386_v59 }
0x1de5   :  { %v8804_v7 = vmul.f32 %v8800_v40, %v15388_v61  ;;  %v8805_v47 = vmul.f32 %v8800_v40, %v15390_v56  ;;  %v8806_v19 = vmul.f32 %v8800_v40, %v15392_v12  ;;  %v8807_v8 = vmul.f32 %v8800_v40, %v15394_v22 }
0x1de6   :  { %vm8815_vm6 = vcmp.ge.f32.partialorder %v8801_v29, 0.0  ;;  %vm8816_vm12 = vcmp.ge.f32.partialorder %v8802_v58, 0.0  ;;  %v8829_v52 = vmul.f32 0.01, %v8801_v29  ;;  %v8830_v39 = vmul.f32 0.01, %v8802_v58 }
0x1de7   :  { %vm8817_vm2 = vcmp.ge.f32.partialorder %v8803_v46, 0.0  ;;  %vm8818_vm3 = vcmp.ge.f32.partialorder %v8804_v7, 0.0  ;;  %v8831_v42 = vmul.f32 0.01, %v8803_v46  ;;  %v8832_v24 = vmul.f32 0.01, %v8804_v7 }
0x1de8   :  { %v8843_v45 = vsel %vm8815_vm6, %v8801_v29, %v8829_v52  ;;  %vm8819_vm4 = vcmp.ge.f32.partialorder %v8805_v47, 0.0  ;;  %vm8820_vm8 = vcmp.ge.f32.partialorder %v8806_v19, 0.0  ;;  %v8844_v32 = vsel %vm8816_vm12, %v8802_v58, %v8830_v39 }
0x1de9   :  { %v8845_v59 = vsel %vm8817_vm2, %v8803_v46, %v8831_v42  ;;  %v8833_v61 = vmul.f32 0.01, %v8805_v47  ;;  %v8834_v10 = vmul.f32 0.01, %v8806_v19  ;;  %v8857_v56 = vpack.c.bf16 %v8844_v32, %v8843_v45 }
0x1dea   :  { %v8846_v5 = vsel %vm8818_vm3, %v8804_v7, %v8832_v24  ;;  %v8808_v12 = vmul.f32 %v8800_v40, %v15396_v14  ;;  %vm8821_vm9 = vcmp.ge.f32.partialorder %v8807_v8, 0.0  ;;  %v8835_v16 = vmul.f32 0.01, %v8807_v8 }
0x1deb   :  { %v8858_v22 = vpack.c.bf16 %v8846_v5, %v8845_v59  ;;  %v8847_v18 = vsel %vm8819_vm4, %v8805_v47, %v8833_v61  ;;  %v8848_v37 = vsel %vm8820_vm8, %v8806_v19, %v8834_v10  ;;  %8936 = vmatmul.bf16.vlgmr.msra.gmra.mxu1 %v8857_v56  ;;  %v8842_v25 = vmul.f32 0.01, %v8814_v57 }
0x1dec   :  { %v8859_v17 = vpack.c.bf16 %v8848_v37, %v8847_v18  ;;  %vm8822_vm10 = vcmp.ge.f32.partialorder %v8808_v12, 0.0  ;;  %v8836_v2 = vmul.f32 0.01, %v8808_v12  ;;  %v8849_v33 = vsel %vm8821_vm9, %v8807_v8, %v8835_v16 }
0x1ded   :  { %v8813_v27 = vmul.f32 %v8800_v40, %v15406_v55  ;;  %vm8828_vm13 = vcmp.ge.f32.partialorder %v8814_v57, 0.0  ;;  %v8809_v44 = vmul.f32 %v8800_v40, %v15398_v31  ;;  %v8810_v34 = vmul.f32 %v8800_v40, %v15400_v3 }
0x1dee   :  { %v8850_v53 = vsel %vm8822_vm10, %v8808_v12, %v8836_v2  ;;  %v8856_v51 = vsel %vm8828_vm13, %v8814_v57, %v8842_v25  ;;  %v8811_v13 = vmul.f32 %v8800_v40, %v15402_v30  ;;  %v8812_v9 = vmul.f32 %v8800_v40, %v15404_v60 }
0x1def   :  { %v8860_v26 = vpack.c.bf16 %v8850_v53, %v8849_v33  ;;  %vm8827_vm11 = vcmp.ge.f32.partialorder %v8813_v27, 0.0  ;;  %v8841_v49 = vmul.f32 0.01, %v8813_v27  ;;  %v8837_v28 = vmul.f32 0.01, %v8809_v44 }
0x1df0   :  { %v8838_v36 = vmul.f32 0.01, %v8810_v34  ;;  %vm8823_vm0 = vcmp.ge.f32.partialorder %v8809_v44, 0.0  ;;  %vm8824_vm15 = vcmp.ge.f32.partialorder %v8810_v34, 0.0  ;;  %v8839_v20 = vmul.f32 0.01, %v8811_v13 }
0x1df1   :  { %v8855_v14 = vsel %vm8827_vm11, %v8813_v27, %v8841_v49  ;;  %v8851_v0 = vsel %vm8823_vm0, %v8809_v44, %v8837_v28  ;;  %v8840_v48 = vmul.f32 0.01, %v8812_v9  ;;  %vm8825_vm1 = vcmp.ge.f32.partialorder %v8811_v13, 0.0 }
0x1df2   :  { %v8863_v35 = vpack.c.bf16 %v8856_v51, %v8855_v14  ;;  %v8852_v55 = vsel %vm8824_vm15, %v8810_v34, %v8838_v36  ;;  %vm8826_vm6 = vcmp.ge.f32.partialorder %v8812_v9, 0.0  ;;  %v8853_v38 = vsel %vm8825_vm1, %v8811_v13, %v8839_v20 }
0x1df3   :  { %v8861_v41 = vpack.c.bf16 %v8852_v55, %v8851_v0  ;;  %v8854_v31 = vsel %vm8826_vm6, %v8812_v9, %v8840_v48 }
0x1df4   :  { %v8862_v21 = vpack.c.bf16 %v8854_v31, %v8853_v38 }
0x1dfb   :  { %8941 = vmatmul.bf16.gmra.mxu1 %v8858_v22 }
0x1e0b   :  { %8946 = vmatmul.bf16.gmra.mxu1 %v8859_v17 }
0x1e1b   :  { %8951 = vmatmul.bf16.gmra.mxu1 %v8860_v26 }
0x1e2b   :  { %8956 = vmatmul.bf16.gmra.mxu1 %v8861_v41 }
0x1e3b   :  { %8961 = vmatmul.bf16.gmra.mxu1 %v8862_v21 }
0x1e4b   :  { %8966 = vmatmul.bf16.gmra.mxu1 %v8863_v35 }
0x1e68   :  { %v8937_v3 = vpop.f32.mrf.mxu1 }
0x1e69   :  { %v8972_v50 = vsel %vm6241_vm5, %v8937_v3, 0.0 }
0x1e70   :  { %v8939_v54 = vpop.f32.mrf.mxu1 }
0x1e71   :  { %v8973_v60 = vsel %vm6241_vm5, %v8939_v54, 0.0 }
0x1e72   :  { %v8974_v40 = vadd.f32 %v8973_v60, %v8972_v50 }
0x1e78   :  { %v8942_v43 = vpop.f32.mrf.mxu1 }
0x1e79   :  { %v8975_v15 = vsel %vm6241_vm5, %v8942_v43, 0.0 }
0x1e7a   :  { %v8976_v29 = vadd.f32 %v8975_v15, %v8974_v40 }
0x1e80   :  { %v8944_v11 = vpop.f32.mrf.mxu1 }
0x1e81   :  { %v8977_v57 = vsel %vm6241_vm5, %v8944_v11, 0.0 }
0x1e82   :  { %v8978_v46 = vadd.f32 %v8977_v57, %v8976_v29 }
0x1e88   :  { %v8947_v6 = vpop.f32.mrf.mxu1 }
0x1e89   :  { %v8979_v58 = vsel %vm6241_vm5, %v8947_v6, 0.0 }
0x1e8a   :  { %v8980_v47 = vadd.f32 %v8979_v58, %v8978_v46 }
0x1e90   :  { %v8949_v4 = vpop.f32.mrf.mxu1 }
0x1e91   :  { %v8981_v7 = vsel %vm6241_vm5, %v8949_v4, 0.0 }
0x1e92   :  { %v8982_v52 = vadd.f32 %v8981_v7, %v8980_v47 }
0x1e98   :  { %v8952_v23 = vpop.f32.mrf.mxu1 }
0x1e99   :  { %v8983_v8 = vsel %vm6241_vm5, %v8952_v23, 0.0 }
0x1e9a   :  { %v8984_v42 = vadd.f32 %v8983_v8, %v8982_v52 }
0x1ea0   :  { %v8954_v63 = vpop.f32.mrf.mxu1 }
0x1ea1   :  { %v8985_v39 = vsel %vm6241_vm5, %v8954_v63, 0.0 }
0x1ea2   :  { %v8986_v24 = vadd.f32 %v8985_v39, %v8984_v42 }
0x1ea8   :  { %v8957_v30 = vpop.f32.mrf.mxu1 }
0x1ea9   :  { %v8987_v45 = vsel %vm6241_vm5, %v8957_v30, 0.0 }
0x1eaa   :  { %v8988_v59 = vadd.f32 %v8987_v45, %v8986_v24 }
0x1eb0   :  { %v15453_v1 = vpop.f32.mrf.mxu1 }
0x1eb1   :  { %v8989_v32 = vsel %vm6241_vm5, %v15453_v1, 0.0 }
0x1eb2   :  { %v8990_v56 = vadd.f32 %v8989_v32, %v8988_v59 }
0x1eb8   :  { %v15456_v62 = vpop.f32.mrf.mxu1 }
0x1eb9   :  { %v8991_v10 = vsel %vm6241_vm5, %v15456_v62, 0.0 }
0x1eba   :  { %v8992_v12 = vadd.f32 %v8991_v10, %v8990_v56 }
0x1ec0   :  { %v8964_v19 = vpop.f32.mrf.mxu1 }
0x1ec1   :  { %v8993_v5 = vsel %vm6241_vm5, %v8964_v19, 0.0 }
0x1ec2   :  { %v8994_v18 = vadd.f32 %v8993_v5, %v8992_v12 }
0x1ec8   :  { %v8967_v61 = vpop.f32.mrf.mxu1 }
0x1ec9   :  { %v8995_v22 = vsel %vm6241_vm5, %v8967_v61, 0.0 }
0x1eca   :  { %v8996_v37 = vadd.f32 %v8995_v22, %v8994_v18 }
0x1ed0   :  { %v8969_v16 = vpop.f32.mrf.mxu1 }
0x1ed1   :  { %v8997_v17 = vsel %vm6267_vm7, %v8969_v16, 0.0 }
0x1ed2   :  { %v8998_v2 = vadd.f32 %v8997_v17, %v8996_v37 }
0x1ed4   :  { %v8999_v33 = vrot.slane %v8998_v2, 4 }
0x1ed6   :  { %v9000_v25 = vadd.f32 %v8999_v33, %v8998_v2 }
0x1ed8   :  { %v9001_v53 = vrot.slane %v9000_v25, 2 }
0x1eda   :  { %v9002_v27 = vadd.f32 %v9001_v53, %v9000_v25  ;;  %v11633_v53 = vld [vmem:[#allocation10 + $0x18] sm:$0xff] }
0x1edb   :  { %9199 = vmatpush.bf16.msra.mxu2 %v11633_v53 }
0x1edc   :  { %v9003_v26 = vrot.slane %v9002_v27, 1 }
0x1ede   :  { %v9004_v49 = vadd.f32 %v9003_v26, %v9002_v27  ;;  %v11632_v26 = vld [vmem:[#allocation10 + $0x10] sm:$0xff] }
0x1edf   :  { %9200 = vmatpush.bf16.msra.mxu2 %v11632_v26 }
0x1ee0   :  { %v9005_v51 = vmul.f32 0.009259259, %v9004_v49 }
0x1ee2   :  { %v15473_v14 = vsub.f32 %v8937_v3, %v9005_v51  ;;  %v15475_v35 = vsub.f32 %v8939_v54, %v9005_v51  ;;  %v15477_v44 = vsub.f32 %v8942_v43, %v9005_v51  ;;  %v15479_v34 = vsub.f32 %v8944_v11, %v9005_v51 }
0x1ee3   :  { %v15485_v0 = vsub.f32 %v8947_v6, %v9005_v51  ;;  %v15489_v41 = vsub.f32 %v8949_v4, %v9005_v51  ;;  %v15495_v38 = vsub.f32 %v8952_v23, %v9005_v51  ;;  %v15500_v54 = vsub.f32 %v8954_v63, %v9005_v51 }
0x1ee4   :  { %v9020_v28 = vmul.f32 %v15473_v14, %v15473_v14  ;;  %v9021_v36 = vmul.f32 %v15475_v35, %v15475_v35  ;;  %v9022_v55 = vmul.f32 %v15477_v44, %v15477_v44  ;;  %v9023_v13 = vmul.f32 %v15479_v34, %v15479_v34 }
0x1ee5   :  { %v9024_v31 = vmul.f32 %v15485_v0, %v15485_v0  ;;  %v9025_v43 = vmul.f32 %v15489_v41, %v15489_v41  ;;  %v15505_v4 = vsub.f32 %v8957_v30, %v9005_v51  ;;  %v9026_v23 = vmul.f32 %v15495_v38, %v15495_v38 }
0x1ee6   :  { %v9034_v9 = vsel %vm6241_vm5, %v9020_v28, 0.0  ;;  %v9035_v20 = vsel %vm6241_vm5, %v9021_v36, 0.0  ;;  %v9037_v21 = vsel %vm6241_vm5, %v9022_v55, 0.0  ;;  %v9039_v11 = vsel %vm6241_vm5, %v9023_v13, 0.0  ;;  %v11631_v28 = vld [vmem:[#allocation10 + $0x8] sm:$0xff]  ;;  %v11630_v55 = vld [vmem:[#allocation10] sm:$0xff] }
0x1ee7   :  { %v9036_v48 = vadd.f32 %v9035_v20, %v9034_v9  ;;  %v9041_v60 = vsel %vm6241_vm5, %v9024_v31, 0.0  ;;  %v15511_v15 = vsub.f32 %v15453_v1, %v9005_v51  ;;  %v9027_v63 = vmul.f32 %v15500_v54, %v15500_v54  ;;  %9201 = vmatpush.bf16.msra.mxu2 %v11631_v28 }
0x1ee8   :  { %v9043_v40 = vsel %vm6241_vm5, %v9025_v43, 0.0  ;;  %v15517_v29 = vsub.f32 %v15456_v62, %v9005_v51  ;;  %v9028_v30 = vmul.f32 %v15505_v4, %v15505_v4  ;;  %v9045_v58 = vsel %vm6241_vm5, %v9026_v23, 0.0 }
0x1ee9   :  { %v9038_v3 = vadd.f32 %v9037_v21, %v9036_v48  ;;  %v15522_v7 = vsub.f32 %v8964_v19, %v9005_v51  ;;  %v9029_v1 = vmul.f32 %v15511_v15, %v15511_v15  ;;  %v9047_v47 = vsel %vm6241_vm5, %v9027_v63, 0.0 }
0x1eea   :  { %v9018_v52 = vsub.f32 %v8967_v61, %v9005_v51  ;;  %v9030_v39 = vmul.f32 %v15517_v29, %v15517_v29  ;;  %v9049_v62 = vsel %vm6241_vm5, %v9028_v30, 0.0  ;;  %v9019_v45 = vsub.f32 %v8969_v16, %v9005_v51 }
0x1eeb   :  { %v9040_v6 = vadd.f32 %v9039_v11, %v9038_v3  ;;  %v9031_v24 = vmul.f32 %v15522_v7, %v15522_v7  ;;  %v9051_v19 = vsel %vm6241_vm5, %v9029_v1, 0.0  ;;  %9202 = vmatpush.bf16.msra.mxu2 %v11630_v55 }
0x1eec   :  { %v9032_v59 = vmul.f32 %v9018_v52, %v9018_v52  ;;  %v9053_v10 = vsel %vm6241_vm5, %v9030_v39, 0.0  ;;  %v9033_v5 = vmul.f32 %v9019_v45, %v9019_v45 }
0x1eed   :  { %v9042_v50 = vadd.f32 %v9041_v60, %v9040_v6  ;;  %v9055_v61 = vsel %vm6241_vm5, %v9031_v24, 0.0 }
0x1eee   :  { %v9057_v22 = vsel %vm6241_vm5, %v9032_v59, 0.0  ;;  %v9059_v37 = vsel %vm6267_vm7, %v9033_v5, 0.0 }
0x1eef   :  { %v9044_v57 = vadd.f32 %v9043_v40, %v9042_v50 }
0x1ef1   :  { %v9046_v46 = vadd.f32 %v9045_v58, %v9044_v57 }
0x1ef3   :  { %v9048_v8 = vadd.f32 %v9047_v47, %v9046_v46 }
0x1ef5   :  { %v9050_v42 = vadd.f32 %v9049_v62, %v9048_v8 }
0x1ef7   :  { %v9052_v32 = vadd.f32 %v9051_v19, %v9050_v42 }
0x1ef9   :  { %v9054_v56 = vadd.f32 %v9053_v10, %v9052_v32 }
0x1efb   :  { %v9056_v12 = vadd.f32 %v9055_v61, %v9054_v56 }
0x1efd   :  { %v9058_v18 = vadd.f32 %v9057_v22, %v9056_v12 }
0x1eff   :  { %v9060_v16 = vadd.f32 %v9059_v37, %v9058_v18 }
0x1f01   :  { %v9061_v17 = vrot.slane %v9060_v16, 4 }
0x1f03   :  { %v9062_v2 = vadd.f32 %v9061_v17, %v9060_v16 }
0x1f05   :  { %v9063_v33 = vrot.slane %v9062_v2, 2 }
0x1f07   :  { %v9064_v25 = vadd.f32 %v9063_v33, %v9062_v2 }
0x1f09   :  { %v9065_v27 = vrot.slane %v9064_v25, 1 }
0x1f0b   :  { %v9066_v49 = vadd.f32 %v9065_v27, %v9064_v25 }
0x1f0d   :  { %v9067_v51 = vmul.f32 0.009259259, %v9066_v49 }
0x1f0f   :  { %v9068_v36 = vadd.f32 1e-05, %v9067_v51 }
0x1f11   :  { %11665 = vrsqrt.f32 %v9068_v36  ;;  %vm9075_vm2 = vweird.f32 %v9068_v36 }
0x1f17   :  { %v11666_v13 = vpop.eup %11665 }
0x1f18   :  { %v9070_v9 = vmul.f32 %v11666_v13, %v9068_v36  ;;  %vm9076_vm12 = vweird.f32 %v11666_v13 }
0x1f19   :  { %vm9077_vm3 = vmor %vm9075_vm2, %vm9076_vm12 }
0x1f1a   :  { %v9071_v20 = vmul.f32 %v11666_v13, %v9070_v9 }
0x1f1c   :  { %v9072_v48 = vmul.f32 0.5, %v9071_v20 }
0x1f1e   :  { %v9073_v31 = vsub.f32 1.5, %v9072_v48 }
0x1f20   :  { %v9074_v21 = vmul.f32 %v11666_v13, %v9073_v31 }
0x1f22   :  { %v9078_v3 = vsel %vm9077_vm3, %v11666_v13, %v9074_v21 }
0x1f23   :  { %v9092_v43 = vmul.f32 %v9078_v3, %v9019_v45  ;;  %v9079_v11 = vmul.f32 %v9078_v3, %v15473_v14  ;;  %v9080_v6 = vmul.f32 %v9078_v3, %v15475_v35  ;;  %v9081_v30 = vmul.f32 %v9078_v3, %v15477_v44 }
0x1f24   :  { %v9082_v58 = vmul.f32 %v9078_v3, %v15479_v34  ;;  %v9091_v46 = vmul.f32 %v9078_v3, %v9018_v52  ;;  %v9083_v24 = vmul.f32 %v9078_v3, %v15485_v0  ;;  %v9084_v44 = vmul.f32 %v9078_v3, %v15489_v41 }
0x1f25   :  { %vm9093_vm4 = vcmp.ge.f32.partialorder %v9079_v11, 0.0  ;;  %vm9094_vm8 = vcmp.ge.f32.partialorder %v9080_v6, 0.0  ;;  %v9107_v23 = vmul.f32 0.01, %v9079_v11  ;;  %v9108_v60 = vmul.f32 0.01, %v9080_v6 }
0x1f26   :  { %v9120_v57 = vmul.f32 0.01, %v9092_v43  ;;  %vm9106_vm9 = vcmp.ge.f32.partialorder %v9092_v43, 0.0  ;;  %vm9105_vm10 = vcmp.ge.f32.partialorder %v9091_v46, 0.0  ;;  %v9119_v14 = vmul.f32 0.01, %v9091_v46 }
0x1f27   :  { %v9121_v50 = vsel %vm9093_vm4, %v9079_v11, %v9107_v23  ;;  %v9122_v63 = vsel %vm9094_vm8, %v9080_v6, %v9108_v60  ;;  %v9109_v35 = vmul.f32 0.01, %v9081_v30  ;;  %v9110_v47 = vmul.f32 0.01, %v9082_v58 }
0x1f28   :  { %v9135_v40 = vpack.c.bf16 %v9122_v63, %v9121_v50  ;;  %v9134_v1 = vsel %vm9106_vm9, %v9092_v43, %v9120_v57  ;;  %vm9095_vm11 = vcmp.ge.f32.partialorder %v9081_v30, 0.0  ;;  %vm9096_vm13 = vcmp.ge.f32.partialorder %v9082_v58, 0.0 }
0x1f29   :  { %v9133_v8 = vsel %vm9105_vm10, %v9091_v46, %v9119_v14  ;;  %v9123_v62 = vsel %vm9095_vm11, %v9081_v30, %v9109_v35  ;;  %v9124_v42 = vsel %vm9096_vm13, %v9082_v58, %v9110_v47  ;;  %v9111_v34 = vmul.f32 0.01, %v9083_v24 }
0x1f2a   :  { %11400 = vmatmul.msk.bf16.vlgmr.msra.gmra.mxu2 %vm6241_vm5, %v9135_v40  ;;  %v9141_v39 = vpack.c.bf16 %v9134_v1, %v9133_v8  ;;  %v9136_v45 = vpack.c.bf16 %v9124_v42, %v9123_v62  ;;  %v9112_v52 = vmul.f32 0.01, %v9084_v44  ;;  %vm9097_vm0 = vcmp.ge.f32.partialorder %v9083_v24, 0.0 }
0x1f2b   :  { %vm9098_vm15 = vcmp.ge.f32.partialorder %v9084_v44, 0.0  ;;  %v9125_v19 = vsel %vm9097_vm0, %v9083_v24, %v9111_v34  ;;  %v9085_v10 = vmul.f32 %v9078_v3, %v15495_v38  ;;  %v9086_v56 = vmul.f32 %v9078_v3, %v15500_v54 }
0x1f2c   :  { %v9126_v32 = vsel %vm9098_vm15, %v9084_v44, %v9112_v52  ;;  %v9087_v22 = vmul.f32 %v9078_v3, %v15505_v4  ;;  %v9088_v18 = vmul.f32 %v9078_v3, %v15511_v15  ;;  %v9089_v2 = vmul.f32 %v9078_v3, %v15517_v29 }
0x1f2d   :  { %v9137_v59 = vpack.c.bf16 %v9126_v32, %v9125_v19  ;;  %v9113_v5 = vmul.f32 0.01, %v9085_v10  ;;  %v9114_v61 = vmul.f32 0.01, %v9086_v56  ;;  %vm9099_vm1 = vcmp.ge.f32.partialorder %v9085_v10, 0.0 }
0x1f2e   :  { %vm9100_vm6 = vcmp.ge.f32.partialorder %v9086_v56, 0.0  ;;  %v9115_v37 = vmul.f32 0.01, %v9087_v22  ;;  %v9116_v16 = vmul.f32 0.01, %v9088_v18  ;;  %vm9101_vm12 = vcmp.ge.f32.partialorder %v9087_v22, 0.0 }
0x1f2f   :  { %v9127_v0 = vsel %vm9099_vm1, %v9085_v10, %v9113_v5  ;;  %v9128_v12 = vsel %vm9100_vm6, %v9086_v56, %v9114_v61  ;;  %vm9102_vm2 = vcmp.ge.f32.partialorder %v9088_v18, 0.0  ;;  %v9090_v33 = vmul.f32 %v9078_v3, %v15522_v7 }
0x1f30   :  { %v9138_v41 = vpack.c.bf16 %v9128_v12, %v9127_v0  ;;  %v9129_v38 = vsel %vm9101_vm12, %v9087_v22, %v9115_v37  ;;  %v9130_v17 = vsel %vm9102_vm2, %v9088_v18, %v9116_v16  ;;  %v9117_v25 = vmul.f32 0.01, %v9089_v2 }
0x1f31   :  { %v9139_v54 = vpack.c.bf16 %v9130_v17, %v9129_v38  ;;  %v9118_v53 = vmul.f32 0.01, %v9090_v33  ;;  %vm9103_vm3 = vcmp.ge.f32.partialorder %v9089_v2, 0.0  ;;  %vm9104_vm4 = vcmp.ge.f32.partialorder %v9090_v33, 0.0 }
0x1f32   :  { %v9131_v4 = vsel %vm9103_vm3, %v9089_v2, %v9117_v25 }
0x1f33   :  { %v9132_v27 = vsel %vm9104_vm4, %v9090_v33, %v9118_v53 }
0x1f34   :  { %v9140_v15 = vpack.c.bf16 %v9132_v27, %v9131_v4 }
0x1f3a   :  { %11401 = vmatmul.msk.bf16.gmra.mxu2 %vm6241_vm5, %v9136_v45 }
0x1f4a   :  { %11402 = vmatmul.msk.bf16.gmra.mxu2 %vm6241_vm5, %v9137_v59 }
0x1f5a   :  { %11403 = vmatmul.msk.bf16.gmra.mxu2 %vm6241_vm5, %v9138_v41 }
0x1f6a   :  { %11404 = vmatmul.msk.bf16.gmra.mxu2 %vm6241_vm5, %v9139_v54 }
0x1f7a   :  { %11405 = vmatmul.msk.bf16.gmra.mxu2 %vm6241_vm5, %v9140_v15 }
0x1f8a   :  { %11406 = vmatmul.msk.bf16.gmra.mxu2 %vm6241_vm5, %v9141_v39 }
0x1fad   :  { %v9204_v26 = vpop.f32.mrf.mxu2 }
0x1fae   :  { %v9239_v31 = vsel %vm6241_vm5, %v9204_v26, 0.0 }
0x1fb5   :  { %v9206_v49 = vpop.f32.mrf.mxu2 }
0x1fb6   :  { %v9240_v20 = vsel %vm6241_vm5, %v9206_v49, 0.0 }
0x1fb7   :  { %v9241_v3 = vadd.f32 %v9240_v20, %v9239_v31 }
0x1fbd   :  { %v9209_v51 = vpop.f32.mrf.mxu2 }
0x1fbe   :  { %v9242_v21 = vsel %vm6241_vm5, %v9209_v51, 0.0 }
0x1fbf   :  { %v9243_v11 = vadd.f32 %v9242_v21, %v9241_v3 }
0x1fc5   :  { %v9211_v28 = vpop.f32.mrf.mxu2 }
0x1fc6   :  { %v9244_v43 = vsel %vm6241_vm5, %v9211_v28, 0.0 }
0x1fc7   :  { %v9245_v23 = vadd.f32 %v9244_v43, %v9243_v11 }
0x1fcd   :  { %v9214_v36 = vpop.f32.mrf.mxu2 }
0x1fce   :  { %v9246_v6 = vsel %vm6241_vm5, %v9214_v36, 0.0 }
0x1fcf   :  { %v9247_v50 = vadd.f32 %v9246_v6, %v9245_v23 }
0x1fd5   :  { %v9216_v55 = vpop.f32.mrf.mxu2 }
0x1fd6   :  { %v9248_v60 = vsel %vm6241_vm5, %v9216_v55, 0.0 }
0x1fd7   :  { %v9249_v57 = vadd.f32 %v9248_v60, %v9247_v50 }
0x1fdd   :  { %v9219_v29 = vpop.f32.mrf.mxu2 }
0x1fde   :  { %v9250_v40 = vsel %vm6241_vm5, %v9219_v29, 0.0 }
0x1fdf   :  { %v9251_v58 = vadd.f32 %v9250_v40, %v9249_v57 }
0x1fe5   :  { %v9221_v13 = vpop.f32.mrf.mxu2 }
0x1fe6   :  { %v9252_v30 = vsel %vm6241_vm5, %v9221_v13, 0.0 }
0x1fe7   :  { %v9253_v1 = vadd.f32 %v9252_v30, %v9251_v58 }
0x1fed   :  { %v9224_v7 = vpop.f32.mrf.mxu2 }
0x1fee   :  { %v9254_v46 = vsel %vm6241_vm5, %v9224_v7, 0.0 }
0x1fef   :  { %v9255_v35 = vadd.f32 %v9254_v46, %v9253_v1 }
0x1ff5   :  { %v15556_v9 = vpop.f32.mrf.mxu2 }
0x1ff6   :  { %v9256_v14 = vsel %vm6241_vm5, %v15556_v9, 0.0 }
0x1ff7   :  { %v9257_v39 = vadd.f32 %v9256_v14, %v9255_v35 }
0x1ffd   :  { %v15559_v48 = vpop.f32.mrf.mxu2 }
0x1ffe   :  { %v9258_v8 = vsel %vm6241_vm5, %v15559_v48, 0.0 }
0x1fff   :  { %v9259_v42 = vadd.f32 %v9258_v8, %v9257_v39 }
0x2005   :  { %v9231_v63 = vpop.f32.mrf.mxu2 }
0x2006   :  { %v9260_v62 = vsel %vm6241_vm5, %v9231_v63, 0.0 }
0x2007   :  { %v9261_v24 = vadd.f32 %v9260_v62, %v9259_v42 }
0x200d   :  { %v9234_v47 = vpop.f32.mrf.mxu2 }
0x200e   :  { %v9262_v45 = vsel %vm6241_vm5, %v9234_v47, 0.0 }
0x200f   :  { %v9263_v44 = vadd.f32 %v9262_v45, %v9261_v24 }
0x2015   :  { %v9236_v34 = vpop.f32.mrf.mxu2 }
0x2016   :  { %v9264_v52 = vsel %vm6267_vm7, %v9236_v34, 0.0 }
0x2017   :  { %v9265_v19 = vadd.f32 %v9264_v52, %v9263_v44 }
0x2019   :  { %v9266_v32 = vrot.slane %v9265_v19, 4 }
0x201b   :  { %v9267_v59 = vadd.f32 %v9266_v32, %v9265_v19  ;;  %v11637_v32 = vld [vmem:[#allocation11 + $0x18] sm:$0xff] }
0x201c   :  { %9466 = vmatpush.bf16.msra.mxu3 %v11637_v32 }
0x201d   :  { %v9268_v10 = vrot.slane %v9267_v59, 2 }
0x201f   :  { %v9269_v56 = vadd.f32 %v9268_v10, %v9267_v59 }
0x2021   :  { %v9270_v5 = vrot.slane %v9269_v56, 1 }
0x2023   :  { %v9271_v61 = vadd.f32 %v9270_v5, %v9269_v56  ;;  %v11636_v56 = vld [vmem:[#allocation11 + $0x10] sm:$0xff] }
0x2024   :  { %9467 = vmatpush.bf16.msra.mxu3 %v11636_v56 }
0x2025   :  { %v9272_v0 = vmul.f32 0.009259259, %v9271_v61  ;;  %v11635_v61 = vld [vmem:[#allocation11 + $0x8] sm:$0xff] }
0x2027   :  { %v15576_v12 = vsub.f32 %v9204_v26, %v9272_v0  ;;  %v15578_v41 = vsub.f32 %v9206_v49, %v9272_v0  ;;  %v15580_v22 = vsub.f32 %v9209_v51, %v9272_v0  ;;  %v15582_v18 = vsub.f32 %v9211_v28, %v9272_v0 }
0x2028   :  { %v15588_v38 = vsub.f32 %v9214_v36, %v9272_v0  ;;  %v15592_v54 = vsub.f32 %v9216_v55, %v9272_v0  ;;  %v15598_v4 = vsub.f32 %v9219_v29, %v9272_v0  ;;  %v15603_v49 = vsub.f32 %v9221_v13, %v9272_v0  ;;  %9468 = vmatpush.bf16.msra.mxu3 %v11635_v61 }
0x2029   :  { %v9287_v37 = vmul.f32 %v15576_v12, %v15576_v12  ;;  %v9288_v16 = vmul.f32 %v15578_v41, %v15578_v41  ;;  %v9289_v17 = vmul.f32 %v15580_v22, %v15580_v22  ;;  %v9290_v2 = vmul.f32 %v15582_v18, %v15582_v18 }
0x202a   :  { %v9291_v27 = vmul.f32 %v15588_v38, %v15588_v38  ;;  %v9292_v51 = vmul.f32 %v15592_v54, %v15592_v54  ;;  %v15608_v55 = vsub.f32 %v9224_v7, %v9272_v0  ;;  %v9293_v29 = vmul.f32 %v15598_v4, %v15598_v4 }
0x202b   :  { %v9301_v33 = vsel %vm6241_vm5, %v9287_v37, 0.0  ;;  %v9302_v25 = vsel %vm6241_vm5, %v9288_v16, 0.0  ;;  %v9304_v15 = vsel %vm6241_vm5, %v9289_v17, 0.0  ;;  %v9306_v28 = vsel %vm6241_vm5, %v9290_v2, 0.0  ;;  %v11634_v16 = vld [vmem:[#allocation11] sm:$0xff] }
0x202c   :  { %v9303_v53 = vadd.f32 %v9302_v25, %v9301_v33  ;;  %v9308_v20 = vsel %vm6241_vm5, %v9291_v27, 0.0  ;;  %v15614_v21 = vsub.f32 %v15556_v9, %v9272_v0  ;;  %v9294_v13 = vmul.f32 %v15603_v49, %v15603_v49  ;;  %9469 = vmatpush.bf16.msra.mxu3 %v11634_v16 }
0x202d   :  { %v9310_v3 = vsel %vm6241_vm5, %v9292_v51, 0.0  ;;  %v15620_v11 = vsub.f32 %v15559_v48, %v9272_v0  ;;  %v9295_v7 = vmul.f32 %v15608_v55, %v15608_v55  ;;  %v9312_v6 = vsel %vm6241_vm5, %v9293_v29, 0.0 }
0x202e   :  { %v9305_v26 = vadd.f32 %v9304_v15, %v9303_v53  ;;  %v15625_v60 = vsub.f32 %v9231_v63, %v9272_v0  ;;  %v9296_v9 = vmul.f32 %v15614_v21, %v15614_v21  ;;  %v9314_v50 = vsel %vm6241_vm5, %v9294_v13, 0.0 }
0x202f   :  { %v9285_v57 = vsub.f32 %v9234_v47, %v9272_v0  ;;  %v9297_v30 = vmul.f32 %v15620_v11, %v15620_v11  ;;  %v9316_v48 = vsel %vm6241_vm5, %v9295_v7, 0.0  ;;  %v9286_v46 = vsub.f32 %v9236_v34, %v9272_v0 }
0x2030   :  { %v9307_v36 = vadd.f32 %v9306_v28, %v9305_v26  ;;  %v9298_v1 = vmul.f32 %v15625_v60, %v15625_v60  ;;  %v9318_v63 = vsel %vm6241_vm5, %v9296_v9, 0.0 }
0x2031   :  { %v9299_v35 = vmul.f32 %v9285_v57, %v9285_v57  ;;  %v9320_v8 = vsel %vm6241_vm5, %v9297_v30, 0.0  ;;  %v9300_v62 = vmul.f32 %v9286_v46, %v9286_v46 }
0x2032   :  { %v9309_v31 = vadd.f32 %v9308_v20, %v9307_v36  ;;  %v9322_v47 = vsel %vm6241_vm5, %v9298_v1, 0.0 }
0x2033   :  { %v9324_v45 = vsel %vm6241_vm5, %v9299_v35, 0.0  ;;  %v9326_v44 = vsel %vm6267_vm7, %v9300_v62, 0.0 }
0x2034   :  { %v9311_v43 = vadd.f32 %v9310_v3, %v9309_v31 }
0x2036   :  { %v9313_v23 = vadd.f32 %v9312_v6, %v9311_v43 }
0x2038   :  { %v9315_v40 = vadd.f32 %v9314_v50, %v9313_v23 }
0x203a   :  { %v9317_v58 = vadd.f32 %v9316_v48, %v9315_v40 }
0x203c   :  { %v9319_v14 = vadd.f32 %v9318_v63, %v9317_v58 }
0x203e   :  { %v9321_v39 = vadd.f32 %v9320_v8, %v9319_v14 }
0x2040   :  { %v9323_v42 = vadd.f32 %v9322_v47, %v9321_v39 }
0x2042   :  { %v9325_v24 = vadd.f32 %v9324_v45, %v9323_v42 }
0x2044   :  { %v9327_v34 = vadd.f32 %v9326_v44, %v9325_v24 }
0x2046   :  { %v9328_v52 = vrot.slane %v9327_v34, 4 }
0x2048   :  { %v9329_v19 = vadd.f32 %v9328_v52, %v9327_v34 }
0x204a   :  { %v9330_v59 = vrot.slane %v9329_v19, 2 }
0x204c   :  { %v9331_v10 = vadd.f32 %v9330_v59, %v9329_v19 }
0x204e   :  { %v9332_v5 = vrot.slane %v9331_v10, 1 }
0x2050   :  { %v9333_v0 = vadd.f32 %v9332_v5, %v9331_v10 }
0x2052   :  { %v9334_v37 = vmul.f32 0.009259259, %v9333_v0 }
0x2054   :  { %v9335_v17 = vadd.f32 1e-05, %v9334_v37 }
0x2056   :  { %11667 = vrsqrt.f32 %v9335_v17  ;;  %vm9342_vm8 = vweird.f32 %v9335_v17 }
0x205c   :  { %v11668_v2 = vpop.eup %11667 }
0x205d   :  { %v9337_v33 = vmul.f32 %v11668_v2, %v9335_v17  ;;  %vm9343_vm7 = vweird.f32 %v11668_v2 }
0x205e   :  { %vm9344_vm9 = vmor %vm9342_vm8, %vm9343_vm7 }
0x205f   :  { %v9338_v25 = vmul.f32 %v11668_v2, %v9337_v33 }
0x2061   :  { %v9339_v53 = vmul.f32 0.5, %v9338_v25 }
0x2063   :  { %v9340_v27 = vsub.f32 1.5, %v9339_v53 }
0x2065   :  { %v9341_v15 = vmul.f32 %v11668_v2, %v9340_v27 }
0x2067   :  { %v9345_v26 = vsel %vm9344_vm9, %v11668_v2, %v9341_v15 }
0x2068   :  { %v9359_v51 = vmul.f32 %v9345_v26, %v9286_v46  ;;  %v9346_v28 = vmul.f32 %v9345_v26, %v15576_v12  ;;  %v9347_v36 = vmul.f32 %v9345_v26, %v15578_v41  ;;  %v9348_v7 = vmul.f32 %v9345_v26, %v15580_v22 }
0x2069   :  { %v9349_v6 = vmul.f32 %v9345_v26, %v15582_v18  ;;  %v9358_v23 = vmul.f32 %v9345_v26, %v9285_v57  ;;  %v9350_v1 = vmul.f32 %v9345_v26, %v15588_v38  ;;  %v9351_v22 = vmul.f32 %v9345_v26, %v15592_v54 }
0x206a   :  { %vm9360_vm10 = vcmp.ge.f32.partialorder %v9346_v28, 0.0  ;;  %vm9361_vm11 = vcmp.ge.f32.partialorder %v9347_v36, 0.0  ;;  %v9374_v29 = vmul.f32 0.01, %v9346_v28  ;;  %v9375_v20 = vmul.f32 0.01, %v9347_v36 }
0x206b   :  { %v9387_v43 = vmul.f32 0.01, %v9359_v51  ;;  %vm9373_vm13 = vcmp.ge.f32.partialorder %v9359_v51, 0.0  ;;  %vm9372_vm0 = vcmp.ge.f32.partialorder %v9358_v23, 0.0  ;;  %v9386_v12 = vmul.f32 0.01, %v9358_v23 }
0x206c   :  { %v9388_v31 = vsel %vm9360_vm10, %v9346_v28, %v9374_v29  ;;  %v9389_v13 = vsel %vm9361_vm11, %v9347_v36, %v9375_v20  ;;  %v9376_v41 = vmul.f32 0.01, %v9348_v7  ;;  %v9377_v50 = vmul.f32 0.01, %v9349_v6 }
0x206d   :  { %v9402_v3 = vpack.c.bf16 %v9389_v13, %v9388_v31  ;;  %v9401_v9 = vsel %vm9373_vm13, %v9359_v51, %v9387_v43  ;;  %vm9362_vm15 = vcmp.ge.f32.partialorder %v9348_v7, 0.0  ;;  %vm9363_vm1 = vcmp.ge.f32.partialorder %v9349_v6, 0.0 }
0x206e   :  { %v9400_v40 = vsel %vm9372_vm0, %v9358_v23, %v9386_v12  ;;  %v9390_v48 = vsel %vm9362_vm15, %v9348_v7, %v9376_v41  ;;  %v9391_v58 = vsel %vm9363_vm1, %v9349_v6, %v9377_v50  ;;  %v9378_v18 = vmul.f32 0.01, %v9350_v1 }
0x206f   :  { %11423 = vmatmul.msk.bf16.vlgmr.msra.gmra.mxu3 %vm6241_vm5, %v9402_v3  ;;  %v9408_v30 = vpack.c.bf16 %v9401_v9, %v9400_v40  ;;  %v9403_v46 = vpack.c.bf16 %v9391_v58, %v9390_v48  ;;  %v9379_v57 = vmul.f32 0.01, %v9351_v22  ;;  %vm9364_vm6 = vcmp.ge.f32.partialorder %v9350_v1, 0.0 }
0x2070   :  { %vm9365_vm12 = vcmp.ge.f32.partialorder %v9351_v22, 0.0  ;;  %v9392_v63 = vsel %vm9364_vm6, %v9350_v1, %v9378_v18  ;;  %v9352_v8 = vmul.f32 %v9345_v26, %v15598_v4  ;;  %v9353_v39 = vmul.f32 %v9345_v26, %v15603_v49 }
0x2071   :  { %v9393_v14 = vsel %vm9365_vm12, %v9351_v22, %v9379_v57  ;;  %v9354_v45 = vmul.f32 %v9345_v26, %v15608_v55  ;;  %v9355_v24 = vmul.f32 %v9345_v26, %v15614_v21  ;;  %v9356_v19 = vmul.f32 %v9345_v26, %v15620_v11 }
0x2072   :  { %v9404_v35 = vpack.c.bf16 %v9393_v14, %v9392_v63  ;;  %v9380_v62 = vmul.f32 0.01, %v9352_v8  ;;  %v9381_v47 = vmul.f32 0.01, %v9353_v39  ;;  %vm9366_vm2 = vcmp.ge.f32.partialorder %v9352_v8, 0.0 }
0x2073   :  { %vm9367_vm3 = vcmp.ge.f32.partialorder %v9353_v39, 0.0  ;;  %v9382_v44 = vmul.f32 0.01, %v9354_v45  ;;  %v9383_v34 = vmul.f32 0.01, %v9355_v24  ;;  %vm9368_vm4 = vcmp.ge.f32.partialorder %v9354_v45, 0.0 }
0x2074   :  { %v9394_v38 = vsel %vm9366_vm2, %v9352_v8, %v9380_v62  ;;  %v9395_v42 = vsel %vm9367_vm3, %v9353_v39, %v9381_v47  ;;  %vm9369_vm7 = vcmp.ge.f32.partialorder %v9355_v24, 0.0  ;;  %v9357_v32 = vmul.f32 %v9345_v26, %v15625_v60 }
0x2075   :  { %v9405_v54 = vpack.c.bf16 %v9395_v42, %v9394_v38  ;;  %v9396_v4 = vsel %vm9368_vm4, %v9354_v45, %v9382_v44  ;;  %v9397_v52 = vsel %vm9369_vm7, %v9355_v24, %v9383_v34  ;;  %v9384_v59 = vmul.f32 0.01, %v9356_v19 }
0x2076   :  { %v9406_v49 = vpack.c.bf16 %v9397_v52, %v9396_v4  ;;  %v9385_v10 = vmul.f32 0.01, %v9357_v32  ;;  %vm9370_vm8 = vcmp.ge.f32.partialorder %v9356_v19, 0.0  ;;  %vm9371_vm9 = vcmp.ge.f32.partialorder %v9357_v32, 0.0 }
0x2077   :  { %v9398_v55 = vsel %vm9370_vm8, %v9356_v19, %v9384_v59 }
0x2078   :  { %v9399_v56 = vsel %vm9371_vm9, %v9357_v32, %v9385_v10 }
0x2079   :  { %v9407_v21 = vpack.c.bf16 %v9399_v56, %v9398_v55 }
0x207f   :  { %11424 = vmatmul.msk.bf16.gmra.mxu3 %vm6241_vm5, %v9403_v46 }
0x208f   :  { %11425 = vmatmul.msk.bf16.gmra.mxu3 %vm6241_vm5, %v9404_v35 }
0x209f   :  { %11426 = vmatmul.msk.bf16.gmra.mxu3 %vm6241_vm5, %v9405_v54 }
0x20af   :  { %11427 = vmatmul.msk.bf16.gmra.mxu3 %vm6241_vm5, %v9406_v49 }
0x20bf   :  { %11428 = vmatmul.msk.bf16.gmra.mxu3 %vm6241_vm5, %v9407_v21 }
0x20cf   :  { %11429 = vmatmul.msk.bf16.gmra.mxu3 %vm6241_vm5, %v9408_v30 }
0x20f2   :  { %v9471_v5 = vpop.f32.mrf.mxu3 }
0x20fa   :  { %v9473_v61 = vpop.f32.mrf.mxu3 }
0x20fb   :  { %v9506_v53 = vadd.f32 %v9473_v61, %v9471_v5 }
0x2102   :  { %v9476_v0 = vpop.f32.mrf.mxu3 }
0x2103   :  { %v9507_v27 = vadd.f32 %v9506_v53, %v9476_v0 }
0x210a   :  { %v9478_v37 = vpop.f32.mrf.mxu3 }
0x210b   :  { %v9508_v15 = vadd.f32 %v9507_v27, %v9478_v37 }
0x2112   :  { %v9481_v16 = vpop.f32.mrf.mxu3 }
0x2113   :  { %v9509_v26 = vadd.f32 %v9508_v15, %v9481_v16 }
0x211a   :  { %v9483_v17 = vpop.f32.mrf.mxu3 }
0x211b   :  { %v9510_v28 = vadd.f32 %v9509_v26, %v9483_v17 }
0x2122   :  { %v9486_v11 = vpop.f32.mrf.mxu3 }
0x2123   :  { %v9511_v36 = vadd.f32 %v9510_v28, %v9486_v11 }
0x212a   :  { %v9488_v2 = vpop.f32.mrf.mxu3 }
0x212b   :  { %v9512_v29 = vadd.f32 %v9511_v36, %v9488_v2 }
0x2132   :  { %v9491_v60 = vpop.f32.mrf.mxu3 }
0x2133   :  { %v9513_v20 = vadd.f32 %v9512_v29, %v9491_v60 }
0x213a   :  { %v9493_v33 = vpop.f32.mrf.mxu3 }
0x213b   :  { %v9514_v13 = vadd.f32 %v9513_v20, %v9493_v33 }
0x2142   :  { %v9496_v25 = vpop.f32.mrf.mxu3 }
0x2143   :  { %v9515_v3 = vadd.f32 %v9514_v13, %v9496_v25 }
0x214a   :  { %v9498_v51 = vpop.f32.mrf.mxu3 }
0x214b   :  { %v9516_v43 = vadd.f32 %v9515_v3, %v9498_v51 }
0x2152   :  { %v9501_v31 = vpop.f32.mrf.mxu3 }
0x2153   :  { %v9517_v7 = vadd.f32 %v9516_v43, %v9501_v31 }
0x215a   :  { %v9503_v6 = vpop.f32.mrf.mxu3 }
0x215b   :  { %v9518_v23 = vsel %vm6000_vm14, %v9503_v6, 0.0 }
0x215c   :  { %v9519_v9 = vadd.f32 %v9518_v23, %v9517_v7 }
0x215e   :  { %v9520_v12 = vrot.slane %v9519_v9, 4 }
0x2160   :  { %v9521_v41 = vadd.f32 %v9520_v12, %v9519_v9 }
0x2162   :  { %v9522_v50 = vrot.slane %v9521_v41, 2 }
0x2164   :  { %v9523_v40 = vadd.f32 %v9522_v50, %v9521_v41 }
0x2166   :  { %v9524_v30 = vrot.slane %v9523_v40, 1 }
0x2168   :  { %v9525_v48 = vadd.f32 %v9524_v30, %v9523_v40 }
0x216a   :  { %v9526_v58 = vmul.f32 0.009259259, %v9525_v48 }
0x216c   :  { %v9527_v46 = vsub.f32 %v9471_v5, %v9526_v58  ;;  %v9528_v1 = vsub.f32 %v9473_v61, %v9526_v58  ;;  %v15663_v22 = vsub.f32 %v9476_v0, %v9526_v58  ;;  %v9530_v63 = vsub.f32 %v9478_v37, %v9526_v58 }
0x216d   :  { %v9531_v14 = vsub.f32 %v9481_v16, %v9526_v58  ;;  %v9532_v39 = vsub.f32 %v9483_v17, %v9526_v58  ;;  %v9533_v38 = vsub.f32 %v9486_v11, %v9526_v58  ;;  %v9534_v45 = vsub.f32 %v9488_v2, %v9526_v58 }
0x216e   :  { %v9541_v18 = vmul.f32 %v9527_v46, %v9527_v46  ;;  %v9542_v57 = vmul.f32 %v9528_v1, %v9528_v1  ;;  %v9543_v35 = vmul.f32 %v15663_v22, %v15663_v22  ;;  %v9544_v62 = vmul.f32 %v9530_v63, %v9530_v63 }
0x216f   :  { %v9545_v42 = vmul.f32 %v9531_v14, %v9531_v14  ;;  %v9546_v24 = vmul.f32 %v9532_v39, %v9532_v39  ;;  %v9535_v34 = vsub.f32 %v9491_v60, %v9526_v58  ;;  %v9547_v4 = vmul.f32 %v9533_v38, %v9533_v38 }
0x2170   :  { %v9555_v8 = vadd.f32 %v9542_v57, %v9541_v18  ;;  %v9536_v49 = vsub.f32 %v9493_v33, %v9526_v58  ;;  %v9548_v19 = vmul.f32 %v9534_v45, %v9534_v45  ;;  %v9537_v59 = vsub.f32 %v9496_v25, %v9526_v58 }
0x2171   :  { %v9549_v10 = vmul.f32 %v9535_v34, %v9535_v34  ;;  %v9538_v56 = vsub.f32 %v9498_v51, %v9526_v58  ;;  %v15667_v61 = vsub.f32 %v9503_v6, %v9526_v58  ;;  %v9539_v0 = vsub.f32 %v9501_v31, %v9526_v58 }
0x2172   :  { %v9556_v47 = vadd.f32 %v9555_v8, %v9543_v35  ;;  %v9550_v21 = vmul.f32 %v9536_v49, %v9536_v49  ;;  %v9551_v37 = vmul.f32 %v9537_v59, %v9537_v59 }
0x2173   :  { %v9552_v17 = vmul.f32 %v9538_v56, %v9538_v56  ;;  %v9554_v2 = vmul.f32 %v15667_v61, %v15667_v61  ;;  %v9553_v60 = vmul.f32 %v9539_v0, %v9539_v0 }
0x2174   :  { %v9557_v54 = vadd.f32 %v9556_v47, %v9544_v62 }
0x2175   :  { %v9567_v25 = vsel %vm6000_vm14, %v9554_v2, 0.0 }
0x2176   :  { %v9558_v44 = vadd.f32 %v9557_v54, %v9545_v42 }
0x2178   :  { %v9559_v52 = vadd.f32 %v9558_v44, %v9546_v24 }
0x217a   :  { %v9560_v32 = vadd.f32 %v9559_v52, %v9547_v4 }
0x217c   :  { %v9561_v55 = vadd.f32 %v9560_v32, %v9548_v19 }
0x217e   :  { %v9562_v5 = vadd.f32 %v9561_v55, %v9549_v10 }
0x2180   :  { %v9563_v16 = vadd.f32 %v9562_v5, %v9550_v21 }
0x2182   :  { %v9564_v11 = vadd.f32 %v9563_v16, %v9551_v37 }
0x2184   :  { %v9565_v33 = vadd.f32 %v9564_v11, %v9552_v17 }
0x2186   :  { %v9566_v53 = vadd.f32 %v9565_v33, %v9553_v60 }
0x2188   :  { %v9568_v27 = vadd.f32 %v9567_v25, %v9566_v53 }
0x218a   :  { %v9569_v15 = vrot.slane %v9568_v27, 4 }
0x218c   :  { %v9570_v26 = vadd.f32 %v9569_v15, %v9568_v27 }
0x218e   :  { %v9571_v51 = vrot.slane %v9570_v26, 2 }
0x2190   :  { %v9572_v28 = vadd.f32 %v9571_v51, %v9570_v26 }
0x2192   :  { %v9573_v36 = vrot.slane %v9572_v28, 1 }
0x2194   :  { %v9574_v29 = vadd.f32 %v9573_v36, %v9572_v28 }
0x2196   :  { %v9575_v20 = vmul.f32 0.009259259, %v9574_v29 }
0x2198   :  { %v9576_v31 = vadd.f32 1e-05, %v9575_v20 }
0x219a   :  { %11669 = vrsqrt.f32 %v9576_v31  ;;  %vm9583_vm10 = vweird.f32 %v9576_v31 }
0x21a0   :  { %v11670_v13 = vpop.eup %11669 }
0x21a1   :  { %v9578_v3 = vmul.f32 %v11670_v13, %v9576_v31  ;;  %vm9584_vm5 = vweird.f32 %v11670_v13 }
0x21a2   :  { %vm9585_vm11 = vmor %vm9583_vm10, %vm9584_vm5 }
0x21a3   :  { %v9579_v43 = vmul.f32 %v11670_v13, %v9578_v3 }
0x21a5   :  { %v9580_v7 = vmul.f32 0.5, %v9579_v43 }
0x21a7   :  { %v9581_v6 = vsub.f32 1.5, %v9580_v7 }
0x21a9   :  { %v9582_v23 = vmul.f32 %v11670_v13, %v9581_v6 }
0x21ab   :  { %v9586_v9 = vsel %vm9585_vm11, %v11670_v13, %v9582_v23 }
0x21ac   :  { %v9588_v12 = vmul.f32 %v9586_v9, %v9528_v1  ;;  %v9587_v41 = vmul.f32 %v9586_v9, %v9527_v46  ;;  %v9595_v50 = vmul.f32 %v9586_v9, %v9535_v34  ;;  %v9596_v40 = vmul.f32 %v9586_v9, %v9536_v49 }
0x21ad   :  { %v9589_v30 = vmul.f32 %v9586_v9, %v15663_v22  ;;  %v9590_v48 = vmul.f32 %v9586_v9, %v9530_v63  ;;  %v9591_v58 = vmul.f32 %v9586_v9, %v9531_v14  ;;  %v9592_v18 = vmul.f32 %v9586_v9, %v9532_v39 }
0x21ae   :  { %v9593_v57 = vmul.f32 %v9586_v9, %v9533_v38  ;;  %vm9601_vm14 = vcmp.ge.f32.partialorder %v9587_v41, 0.0  ;;  %vm9602_vm13 = vcmp.ge.f32.partialorder %v9588_v12, 0.0  ;;  %v9594_v35 = vmul.f32 %v9586_v9, %v9534_v45 }
0x21af   :  { %v9615_v8 = vmul.f32 0.01, %v9587_v41  ;;  %v9616_v62 = vmul.f32 0.01, %v9588_v12  ;;  %v9617_v47 = vmul.f32 0.01, %v9589_v30  ;;  %v9597_v1 = vmul.f32 %v9586_v9, %v9537_v59 }
0x21b0   :  { %vm9603_vm0 = vcmp.ge.f32.partialorder %v9589_v30, 0.0  ;;  %vm9604_vm15 = vcmp.ge.f32.partialorder %v9590_v48, 0.0  ;;  %v9618_v42 = vmul.f32 0.01, %v9590_v48  ;;  %v9619_v54 = vmul.f32 0.01, %v9591_v58 }
0x21b1   :  { %vm9605_vm1 = vcmp.ge.f32.partialorder %v9591_v58, 0.0  ;;  %v9620_v46 = vmul.f32 0.01, %v9592_v18  ;;  %v9629_v24 = vsel %vm9601_vm14, %v9587_v41, %v9615_v8  ;;  %v9598_v44 = vmul.f32 %v9586_v9, %v9538_v56 }
0x21b2   :  { %vm9606_vm6 = vcmp.ge.f32.partialorder %v9592_v18, 0.0  ;;  %v9621_v22 = vmul.f32 0.01, %v9593_v57  ;;  %v9630_v63 = vsel %vm9602_vm13, %v9588_v12, %v9616_v62  ;;  %vm9607_vm12 = vcmp.ge.f32.partialorder %v9593_v57, 0.0  ;;  %11430 = vst [vmem:[%s15731_s12 + $0x70] sm:$0xff] %v9629_v24 }
0x21b3   :  { %v9622_v14 = vmul.f32 0.01, %v9594_v35  ;;  %v9631_v39 = vsel %vm9603_vm0, %v9589_v30, %v9617_v47  ;;  %v9632_v38 = vsel %vm9604_vm15, %v9590_v48, %v9618_v42  ;;  %v9599_v45 = vmul.f32 %v9586_v9, %v9539_v0  ;;  %11431 = vst [vmem:[%s15731_s12 + $0x78] sm:$0xff] %v9630_v63 }
0x21b4   :  { %vm9608_vm2 = vcmp.ge.f32.partialorder %v9594_v35, 0.0  ;;  %v9623_v34 = vmul.f32 0.01, %v9595_v50  ;;  %v9633_v4 = vsel %vm9605_vm1, %v9591_v58, %v9619_v54  ;;  %v9600_v52 = vmul.f32 %v9586_v9, %v15667_v61  ;;  %11432 = vst [vmem:[%s15731_s12 + $0x80] sm:$0xff] %v9631_v39 }
0x21b5   :  { %vm9609_vm3 = vcmp.ge.f32.partialorder %v9595_v50, 0.0  ;;  %v9624_v49 = vmul.f32 0.01, %v9596_v40  ;;  %v9634_v19 = vsel %vm9606_vm6, %v9592_v18, %v9620_v46  ;;  %vm9610_vm4 = vcmp.ge.f32.partialorder %v9596_v40, 0.0  ;;  %11433 = vst [vmem:[%s15731_s12 + $0x88] sm:$0xff] %v9632_v38 }
0x21b6   :  { %v9625_v32 = vmul.f32 0.01, %v9597_v1  ;;  %v9635_v59 = vsel %vm9607_vm12, %v9593_v57, %v9621_v22  ;;  %vm9611_vm7 = vcmp.ge.f32.partialorder %v9597_v1, 0.0  ;;  %v9626_v10 = vmul.f32 0.01, %v9598_v44  ;;  %11434 = vst [vmem:[%s15731_s12 + $0x90] sm:$0xff] %v9633_v4 }
0x21b7   :  { %v9636_v55 = vsel %vm9608_vm2, %v9594_v35, %v9622_v14  ;;  %vm9612_vm8 = vcmp.ge.f32.partialorder %v9598_v44, 0.0  ;;  %v9627_v56 = vmul.f32 0.01, %v9599_v45  ;;  %v9637_v21 = vsel %vm9609_vm3, %v9595_v50, %v9623_v34  ;;  %11435 = vst [vmem:[%s15731_s12 + $0x98] sm:$0xff] %v9634_v19 }
0x21b8   :  { %vm9613_vm9 = vcmp.ge.f32.partialorder %v9599_v45, 0.0  ;;  %v9628_v5 = vmul.f32 0.01, %v9600_v52  ;;  %v9638_v61 = vsel %vm9610_vm4, %v9596_v40, %v9624_v49  ;;  %11436 = vst [vmem:[%s15731_s12 + $0xa0] sm:$0xff] %v9635_v59  ;;  %vm9614_vm5 = vcmp.ge.f32.partialorder %v9600_v52, 0.0 }
0x21b9   :  { %v9639_v0 = vsel %vm9611_vm7, %v9597_v1, %v9625_v32  ;;  %11437 = vst [vmem:[%s15731_s12 + $0xa8] sm:$0xff] %v9636_v55  ;;  %v9640_v37 = vsel %vm9612_vm8, %v9598_v44, %v9626_v10  ;;  %v9641_v16 = vsel %vm9613_vm9, %v9599_v45, %v9627_v56 }
0x21ba   :  { %11438 = vst [vmem:[%s15731_s12 + $0xb0] sm:$0xff] %v9637_v21  ;;  %v9642_v17 = vsel %vm9614_vm5, %v9600_v52, %v9628_v5 }
0x21bb   :  { %11439 = vst [vmem:[%s15731_s12 + $0xb8] sm:$0xff] %v9638_v61 }
0x21bc   :  { %11440 = vst [vmem:[%s15731_s12 + $0xc0] sm:$0xff] %v9639_v0 }
0x21bd   :  { %11441 = vst [vmem:[%s15731_s12 + $0xc8] sm:$0xff] %v9640_v37 }
0x21be   :  { %11442 = vst [vmem:[%s15731_s12 + $0xd0] sm:$0xff] %v9641_v16 }
0x21bf   :  { %11443 = vst [vmem:[%s15731_s12 + $0xd8] sm:$0xf] %v9642_v17 }
0x21c0   :  { %11867 = dma.done.wait [#allocation4], 256  }
0x21c1   :  { %11868 = vsyncadd [#allocation4], 4294967040 }
0x21c2   :  { %9685 = vsyncpa [#allocation3], 1 }
0x21c3   :  { %9686 = vsyncpa [#allocation6], 1 }
0x21c4   :  { %9687 = vsyncpa [#allocation9], 1 }
0x21c5   :  { %9688 = vsyncpa [#allocation12], 1 }
0x21c6   :  { %9689 = vsyncpa [#allocation4], 1 }

</bundles_post_ra>
